<compile_context>
chip_gen: v5e
topology: v5e:2x2
jax: 0.10.0
libtpu: 0.0.40
codegen_flags: <defaults>
</compile_context>

<pallas_src>
import math

import jax
import jax.numpy as jnp
from jax.experimental import pallas as pl
from jax.experimental.pallas import tpu as pltpu

BN_EPS = 1e-5
_INV_SQRT2 = 1.0 / math.sqrt(2.0)

TILE_B = 256  # batch tile; fits comfortably in v7x's 32 MiB scoped VMEM


def _gelu_exact(x):
    # matches torch.nn.GELU() default (erf-based, not tanh approximation)
    return 0.5 * x * (1.0 + jax.lax.erf(x * _INV_SQRT2))


def risk_mlp_kernel(x_ref, w1_ref, b1_ref, w2_ref, b2_ref, w3_ref, b3_ref, o_ref):
    # x_ref: (TILE_B, K_pad) bf16; w1: (K_pad, H1) bf16; w2: (H1, H2) bf16;
    # biases f32; w3: (1, H2) f32; b3: (1, 1) f32; o_ref: (TILE_B, 1) f32.
    x = x_ref[...]

    # ---- Block 1: (Linear + folded BN) -> GELU -> Dropout(identity, eval) ----
    h = jnp.dot(x, w1_ref[...], preferred_element_type=jnp.float32) + b1_ref[...]
    h = _gelu_exact(h)

    # ---- Block 2: (Linear + folded BN) -> GELU -> Dropout(identity, eval) ----
    h = jnp.dot(h.astype(jnp.bfloat16), w2_ref[...],
                preferred_element_type=jnp.float32) + b2_ref[...]
    h = _gelu_exact(h)

    # ---- Final Linear(H2, 1): VPU mul + row reduction (avoid N=1 MXU pass) ----
    o_ref[...] = jnp.sum(h * w3_ref[...], axis=-1, keepdims=True) + b3_ref[...]


def risk_nn_forward(x_num, x_cat, params, *, tile_b=TILE_B):
    """x_num: (B, num_features) f32, x_cat: (B, n_cat) int32 -> (B,) f32."""
    # Embedding lookup + concat (glue, plain JAX). Order: embeddings, then numeric.
    embs = [tbl[x_cat[:, i]] for i, tbl in enumerate(params["emb"])]
    x = jnp.concatenate(embs + [x_num], axis=1).astype(jnp.float32)
    B, in_dim = x.shape

    # ---- Fold eval-mode BatchNorm1d into the preceding Linear (f32, one-time) ----
    s1 = params["g1"] * jax.lax.rsqrt(params["v1"] + BN_EPS)          # (1, H1)
    w1f = params["w1"] * s1                                            # (in, H1)
    b1f = (params["b1"] - params["m1"]) * s1 + params["beta1"]         # (1, H1)
    s2 = params["g2"] * jax.lax.rsqrt(params["v2"] + BN_EPS)           # (1, H2)
    w2f = params["w2"] * s2                                            # (H1, H2)
    b2f = (params["b2"] - params["m2"]) * s2 + params["beta2"]         # (1, H2)
    w3_row = params["w3"].T.astype(jnp.float32)                        # (1, H2)
    b3 = params["b3"].astype(jnp.float32)                              # (1, 1)

    H1 = w1f.shape[1]
    H2 = w2f.shape[1]

    # ---- Pad feature dim to lane-friendly 128 and batch to tile multiple ----
    k_pad = max(128, ((in_dim + 127) // 128) * 128)
    b_pad = ((B + tile_b - 1) // tile_b) * tile_b
    num_tiles = b_pad // tile_b

    x_p = jnp.zeros((b_pad, k_pad), jnp.bfloat16)
    x_p = x_p.at[:B, :in_dim].set(x.astype(jnp.bfloat16))
    w1_p = jnp.zeros((k_pad, H1), jnp.bfloat16)
    w1_p = w1_p.at[:in_dim, :].set(w1f.astype(jnp.bfloat16))
    w2_p = w2f.astype(jnp.bfloat16)

    flops = 2 * b_pad * (k_pad * H1 + H1 * H2 + H2)
    transcendentals = b_pad * (H1 + H2)
    bytes_accessed = (
        b_pad * k_pad * 2 + k_pad * H1 * 2 + H1 * H2 * 2   # bf16 x / w1 / w2
        + (H1 + H2 + H2 + 1) * 4                           # f32 biases + w3
        + b_pad * 4                                        # f32 output
    )

    out = pl.pallas_call(
        risk_mlp_kernel,
        out_shape=jax.ShapeDtypeStruct((b_pad, 1), jnp.float32),
        grid=(num_tiles,),
        in_specs=[
            pl.BlockSpec((tile_b, k_pad), lambda i: (i, 0)),   # x tile (streamed)
            pl.BlockSpec((k_pad, H1), lambda i: (0, 0)),       # w1 (resident)
            pl.BlockSpec((1, H1), lambda i: (0, 0)),           # b1
            pl.BlockSpec((H1, H2), lambda i: (0, 0)),          # w2
            pl.BlockSpec((1, H2), lambda i: (0, 0)),           # b2
            pl.BlockSpec((1, H2), lambda i: (0, 0)),           # w3 row
            pl.BlockSpec((1, 1), lambda i: (0, 0)),            # b3
        ],
        out_specs=pl.BlockSpec((tile_b, 1), lambda i: (i, 0)),
        compiler_params=pltpu.CompilerParams(
            dimension_semantics=("parallel",),
            vmem_limit_bytes=32 * 1024 * 1024,
        ),
        cost_estimate=pl.CostEstimate(
            flops=flops,
            transcendentals=transcendentals,
            bytes_accessed=bytes_accessed,
        ),
    )(x_p, w1_p, b1f, w2_p, b2f, w3_row, b3)

    return out[:B, 0]  # drop batch padding + .squeeze(1)


def init_params(key, num_features, cat_dims, emb_dims, hidden):
    """Deterministic synthetic init with PyTorch-like shapes."""
    assert len(hidden) == 2, "this script specializes to the default 2 hidden layers"
    in_dim = num_features + sum(emb_dims)
    h1, h2 = hidden
    keys = iter(jax.random.split(key, 32))

    def linear(kin, kout):
        bound = 1.0 / math.sqrt(kin)
        w = jax.random.uniform(next(keys), (kin, kout), jnp.float32, -bound, bound)
        b = jax.random.uniform(next(keys), (1, kout), jnp.float32, -bound, bound)
        return w, b

    def bn(h):
        g = jax.random.uniform(next(keys), (1, h), jnp.float32, 0.5, 1.5)       # weight
        beta = 0.1 * jax.random.normal(next(keys), (1, h), jnp.float32)          # bias
        m = 0.1 * jax.random.normal(next(keys), (1, h), jnp.float32)             # running_mean
        v = jax.random.uniform(next(keys), (1, h), jnp.float32, 0.5, 1.5)        # running_var
        return g, beta, m, v

    emb = [jax.random.normal(next(keys), (dim, e), jnp.float32)
           for dim, e in zip(cat_dims, emb_dims)]

    w1, b1 = linear(in_dim, h1)
    g1, beta1, m1, v1 = bn(h1)
    w2, b2 = linear(h1, h2)
    g2, beta2, m2, v2 = bn(h2)
    w3, b3 = linear(h2, 1)

    return dict(emb=emb,
                w1=w1, b1=b1, g1=g1, beta1=beta1, m1=m1, v1=v1,
                w2=w2, b2=b2, g2=g2, beta2=beta2, m2=m2, v2=v2,
                w3=w3, b3=b3)


if __name__ == "__main__":
    # Small, deterministic example consistent with RiskNN's __init__.
    B = 8
    num_features = 16
    cat_dims = (10, 7, 5)
    emb_dims = (4, 3, 2)
    hidden = (256, 128)   # RiskNN default

    root = jax.random.PRNGKey(0)
    k_params, k_num, k_cat = jax.random.split(root, 3)

    params = init_params(k_params, num_features, cat_dims, emb_dims, hidden)

    x_num = jax.random.normal(k_num, (B, num_features), jnp.float32)
    cat_keys = jax.random.split(k_cat, len(cat_dims))
    x_cat = jnp.stack(
        [jax.random.randint(ck, (B,), 0, d, jnp.int32) for ck, d in zip(cat_keys, cat_dims)],
        axis=1,
    )

    out = risk_nn_forward(x_num, x_cat, params)
    out = jax.block_until_ready(out)
    assert out.shape == (B,), out.shape
    # TODO(synk): training-mode Dropout / BatchNorm batch statistics are not
    # implemented (kernel reproduces eval-mode forward only).
    print("KERNEL_OK")
</pallas_src>

<mosaic_0001>
module attributes {stable_mosaic.version = 11 : i64} {
  func.func @risk_mlp_kernel(%arg0: i32, %arg1: memref<256x128xbf16, #tpu.memory_space<vmem>>, %arg2: memref<128x256xbf16, #tpu.memory_space<vmem>>, %arg3: memref<1x256xf32, #tpu.memory_space<vmem>>, %arg4: memref<256x128xbf16, #tpu.memory_space<vmem>>, %arg5: memref<1x128xf32, #tpu.memory_space<vmem>>, %arg6: memref<1x128xf32, #tpu.memory_space<vmem>>, %arg7: memref<1x1xf32, #tpu.memory_space<vmem>>, %arg8: memref<256x1xf32, #tpu.memory_space<vmem>>) attributes {dimension_semantics = [#tpu.dimension_semantics<parallel>], iteration_bounds = array<i64: 1>, scalar_prefetch = 0 : i64, scratch_operands = 0 : i64, tpu.core_type = #tpu.core_type<tc>, window_params = [{transform_indices = @transform_0, window_bounds = array<i64: 256, 128>}, {pipeline_mode = #tpu.pipeline_mode<synchronous>, transform_indices = @transform_1, window_bounds = array<i64: 128, 256>}, {pipeline_mode = #tpu.pipeline_mode<synchronous>, transform_indices = @transform_2, window_bounds = array<i64: 1, 256>}, {pipeline_mode = #tpu.pipeline_mode<synchronous>, transform_indices = @transform_3, window_bounds = array<i64: 256, 128>}, {pipeline_mode = #tpu.pipeline_mode<synchronous>, transform_indices = @transform_4, window_bounds = array<i64: 1, 128>}, {pipeline_mode = #tpu.pipeline_mode<synchronous>, transform_indices = @transform_5, window_bounds = array<i64: 1, 128>}, {pipeline_mode = #tpu.pipeline_mode<synchronous>, transform_indices = @transform_6, window_bounds = array<i64: 1, 1>}, {transform_indices = @transform_7, window_bounds = array<i64: 256, 1>}]} {
    %c0 = arith.constant 0 : index
    %c0_0 = arith.constant 0 : index
    %0 = vector.load %arg1[%c0, %c0_0] : memref<256x128xbf16, #tpu.memory_space<vmem>>, vector<256x128xbf16>
    %c0_1 = arith.constant 0 : index
    %c0_2 = arith.constant 0 : index
    %1 = vector.load %arg2[%c0_1, %c0_2] : memref<128x256xbf16, #tpu.memory_space<vmem>>, vector<128x256xbf16>
    %cst = arith.constant dense<0.000000e+00> : vector<256x256xf32>
    %2 = tpu.matmul %0, %1, %cst {dimension_numbers = #tpu.dot_dimension_numbers<[1], [0], [0], [1], [0, 0, 1, 1], [], []>} : vector<256x128xbf16>, vector<128x256xbf16>, vector<256x256xf32> -> vector<256x256xf32>
    %c0_3 = arith.constant 0 : index
    %c0_4 = arith.constant 0 : index
    %3 = vector.load %arg3[%c0_3, %c0_4] : memref<1x256xf32, #tpu.memory_space<vmem>>, vector<1x256xf32>
    %4 = vector.broadcast %3 : vector<1x256xf32> to vector<256x256xf32>
    %5 = arith.addf %2, %4 : vector<256x256xf32>
    %cst_5 = arith.constant 5.000000e-01 : f32
    %6 = vector.broadcast %cst_5 : f32 to vector<256x256xf32>
    %7 = arith.mulf %6, %5 : vector<256x256xf32>
    %cst_6 = arith.constant 0.707106769 : f32
    %8 = vector.broadcast %cst_6 : f32 to vector<256x256xf32>
    %9 = arith.mulf %5, %8 : vector<256x256xf32>
    %10 = math.erf %9 : vector<256x256xf32>
    %cst_7 = arith.constant 1.000000e+00 : f32
    %11 = vector.broadcast %cst_7 : f32 to vector<256x256xf32>
    %12 = arith.addf %11, %10 : vector<256x256xf32>
    %13 = arith.mulf %7, %12 : vector<256x256xf32>
    %14 = arith.truncf %13 : vector<256x256xf32> to vector<256x256xbf16>
    %c0_8 = arith.constant 0 : index
    %c0_9 = arith.constant 0 : index
    %15 = vector.load %arg4[%c0_8, %c0_9] : memref<256x128xbf16, #tpu.memory_space<vmem>>, vector<256x128xbf16>
    %cst_10 = arith.constant dense<0.000000e+00> : vector<256x128xf32>
    %16 = tpu.matmul %14, %15, %cst_10 {dimension_numbers = #tpu.dot_dimension_numbers<[1], [0], [0], [1], [0, 0, 1, 1], [], []>} : vector<256x256xbf16>, vector<256x128xbf16>, vector<256x128xf32> -> vector<256x128xf32>
    %c0_11 = arith.constant 0 : index
    %c0_12 = arith.constant 0 : index
    %17 = vector.load %arg5[%c0_11, %c0_12] : memref<1x128xf32, #tpu.memory_space<vmem>>, vector<1x128xf32>
    %18 = vector.broadcast %17 : vector<1x128xf32> to vector<256x128xf32>
    %19 = arith.addf %16, %18 : vector<256x128xf32>
    %cst_13 = arith.constant 5.000000e-01 : f32
    %20 = vector.broadcast %cst_13 : f32 to vector<256x128xf32>
    %21 = arith.mulf %20, %19 : vector<256x128xf32>
    %cst_14 = arith.constant 0.707106769 : f32
    %22 = vector.broadcast %cst_14 : f32 to vector<256x128xf32>
    %23 = arith.mulf %19, %22 : vector<256x128xf32>
    %24 = math.erf %23 : vector<256x128xf32>
    %cst_15 = arith.constant 1.000000e+00 : f32
    %25 = vector.broadcast %cst_15 : f32 to vector<256x128xf32>
    %26 = arith.addf %25, %24 : vector<256x128xf32>
    %27 = arith.mulf %21, %26 : vector<256x128xf32>
    %c0_16 = arith.constant 0 : index
    %c0_17 = arith.constant 0 : index
    %28 = vector.load %arg6[%c0_16, %c0_17] : memref<1x128xf32, #tpu.memory_space<vmem>>, vector<1x128xf32>
    %29 = vector.broadcast %28 : vector<1x128xf32> to vector<256x128xf32>
    %30 = arith.mulf %27, %29 : vector<256x128xf32>
    %cst_18 = arith.constant dense<0.000000e+00> : vector<256xf32>
    %31 = vector.multi_reduction <add>, %30, %cst_18 [1] : vector<256x128xf32> to vector<256xf32>
    %32 = vector.shape_cast %31 : vector<256xf32> to vector<256x1xf32>
    %c0_19 = arith.constant 0 : index
    %c0_20 = arith.constant 0 : index
    %33 = vector.load %arg7[%c0_19, %c0_20] : memref<1x1xf32, #tpu.memory_space<vmem>>, vector<1x1xf32>
    %34 = vector.broadcast %33 : vector<1x1xf32> to vector<256x1xf32>
    %35 = arith.addf %32, %34 : vector<256x1xf32>
    %c0_21 = arith.constant 0 : index
    %c0_22 = arith.constant 0 : index
    %36 = vector.load %arg8[%c0_21, %c0_22] : memref<256x1xf32, #tpu.memory_space<vmem>>, vector<256x1xf32>
    tpu.vector_store %arg8[%c0_21, %c0_22], %35 {strides = array<i32>} : memref<256x1xf32, #tpu.memory_space<vmem>>, vector<256x1xf32>,
    return
  }
  func.func @transform_0(%arg0: i32) -> (i32, i32) {
    %c0_i32 = arith.constant 0 : i32
    %c0_i32_0 = arith.constant 0 : i32
    return %arg0, %c0_i32 : i32, i32
  }
  func.func @transform_1(%arg0: i32) -> (i32, i32) {
    %c0_i32 = arith.constant 0 : i32
    %c0_i32_0 = arith.constant 0 : i32
    %c0_i32_1 = arith.constant 0 : i32
    return %c0_i32, %c0_i32_0 : i32, i32
  }
  func.func @transform_2(%arg0: i32) -> (i32, i32) {
    %c0_i32 = arith.constant 0 : i32
    %c0_i32_0 = arith.constant 0 : i32
    %c0_i32_1 = arith.constant 0 : i32
    return %c0_i32, %c0_i32_0 : i32, i32
  }
  func.func @transform_3(%arg0: i32) -> (i32, i32) {
    %c0_i32 = arith.constant 0 : i32
    %c0_i32_0 = arith.constant 0 : i32
    %c0_i32_1 = arith.constant 0 : i32
    return %c0_i32, %c0_i32_0 : i32, i32
  }
  func.func @transform_4(%arg0: i32) -> (i32, i32) {
    %c0_i32 = arith.constant 0 : i32
    %c0_i32_0 = arith.constant 0 : i32
    %c0_i32_1 = arith.constant 0 : i32
    return %c0_i32, %c0_i32_0 : i32, i32
  }
  func.func @transform_5(%arg0: i32) -> (i32, i32) {
    %c0_i32 = arith.constant 0 : i32
    %c0_i32_0 = arith.constant 0 : i32
    %c0_i32_1 = arith.constant 0 : i32
    return %c0_i32, %c0_i32_0 : i32, i32
  }
  func.func @transform_6(%arg0: i32) -> (i32, i32) {
    %c0_i32 = arith.constant 0 : i32
    %c0_i32_0 = arith.constant 0 : i32
    %c0_i32_1 = arith.constant 0 : i32
    return %c0_i32, %c0_i32_0 : i32, i32
  }
  func.func @transform_7(%arg0: i32) -> (i32, i32) {
    %c0_i32 = arith.constant 0 : i32
    %c0_i32_0 = arith.constant 0 : i32
    return %arg0, %c0_i32 : i32, i32
  }
}

</mosaic_0001>

<bundles_post_ra>
// kernel: tpu_custom_call.1
= control target key start
LH: loop header
LB: loop body
LE: loop exit
PB: predicated region body
PF: predicated region fallthrough
CT: control target
= control target key end

     0   :  { %s10280_s0 = inlined_call_operand.hbm [shape: bf16[256,128], index: 0, kind: input, shape index: {}]   ;;  %s10281_s1 = inlined_call_operand.hbm [shape: bf16[128,256], index: 1, kind: input, shape index: {}]   ;;  %s10282_s2 = inlined_call_operand.vmem [shape: f32[1,256], index: 2, kind: input, shape index: {}]   ;;  %s10283_s3 = inlined_call_operand.hbm [shape: bf16[256,128], index: 3, kind: input, shape index: {}]   ;;  %s10284_s4 = inlined_call_operand.vmem [shape: f32[1,128], index: 4, kind: input, shape index: {}]   ;;  %s10285_s5 = inlined_call_operand.vmem [shape: f32[1,128], index: 5, kind: input, shape index: {}]   ;;  %s10286_s6 = inlined_call_operand.<no memory space> [shape: f32[1,1], index: 6, kind: input, shape index: {}]   ;;  %s10287_s7 = inlined_call_operand.vmem [shape: f32[256,1], index: 7, kind: output, shape index: {}]  }
   0x1   :  { %v12_v0 = vstv %s10286_s6 }
   0x2   :  { %13 = vst [vmem:[#allocation2] sm:$0x1] %v12_v0 }
   0x3   :  { %14 = vsyncpa [#allocation4], 0 }
   0x4   :  { %15 = vsyncpa [#allocation6], 0  ;;  %s33_s28 = sshll.u32 %s10281_s1, 4  ;;  %s5845_s29 = smov [#allocation5]   ;;  %s34_s28 = int_to_ptr.hbm [resolvable:$true] %s33_s28 }
   0x5   :  { %s35_s30 = sshll.u32 %s5845_s29, 4  ;;  %s20_s10 = sshll.u32 %s10280_s0, 4  ;;  %s36_s30 = int_to_ptr.vmem [resolvable:$true] %s35_s30  ;;  %s21_s10 = int_to_ptr.hbm [resolvable:$true] %s20_s10 }
   0x6   :  { %s5846_s11 = smov 128   ;;  %s5847_s12 = smov 8  }
   0x7   :  { %41 = dma.hbm_to_vmem [thread:$0]  %s34_s28, 2048, %s36_s30, [#allocation6], %s5846_s11, %s5846_s11, %s5847_s12  }
   0x8   :  { %s5848_s6 = smov [#allocation3]   ;;  %s5849_s14 = smov 64  }
   0x9   :  { %s22_s13 = sshll.u32 %s5848_s6, 4  ;;  %s5850_s15 = smov 4   ;;  %s23_s13 = int_to_ptr.vmem [resolvable:$true] %s22_s13 }
   0xa   :  { %28 = dma.hbm_to_vmem [thread:$0]  %s21_s10, 2048, %s23_s13, [#allocation4], %s5849_s14, %s5849_s14, %s5850_s15  }
   0xb   :  { %s48_s17 = sshll.u32 %s10283_s3, 4  ;;  %s5851_s18 = smov [#allocation7]   ;;  %s49_s17 = int_to_ptr.hbm [resolvable:$true] %s48_s17 }
   0xc   :  { %s50_s19 = sshll.u32 %s5851_s18, 4  ;;  %s51_s19 = int_to_ptr.vmem [resolvable:$true] %s50_s19 }
   0xd   :  { %56 = dma.hbm_to_vmem [thread:$0]  %s49_s17, 2048, %s51_s19, [#allocation6], %s5849_s14, %s5849_s14, %s5850_s15  }
   0xe   :  { %5841 = dma.done.wait [#allocation4], 2048  }
   0xf   :  { %5842 = vsyncadd [#allocation4], 4294965248 }
  0x10   :  { %5843 = dma.done.wait [#allocation6], 4096  }
  0x11   :  { %5844 = vsyncadd [#allocation6], 4294963200  ;;  %v5346_v1 = vld [vmem:[#allocation5 + $0x70] sm:$0xf]  ;;  %v5543_v2 = vld [vmem:[#allocation5 + $0x74] sm:$0xf0] }
  0x12   :  { %v5542_v3 = vld [vmem:[#allocation5 + $0x74] sm:$0xf]  ;;  %v5347_v4 = vor.u32 %v5543_v2, %v5346_v1  ;;  %v5348_v5 = vld [vmem:[#allocation5 + $0x78] sm:$0xf0]  ;;  %v5338_v6 = vld [vmem:[#allocation5 + $0x60] sm:$0xf] }
  0x13   :  { %v5541_v7 = vld [vmem:[#allocation5 + $0x64] sm:$0xf0]  ;;  %v5351_v8 = vor.u32 %v5542_v3, %v5348_v5  ;;  %v5540_v9 = vld [vmem:[#allocation5 + $0x64] sm:$0xf]  ;;  %v5340_v10 = vld [vmem:[#allocation5 + $0x68] sm:$0xf0] }
  0x14   :  { %305 = vmatpush.bf16.msra.mxu0 %v5347_v4  ;;  %v5339_v11 = vor.u32 %v5541_v7, %v5338_v6  ;;  %v5343_v12 = vor.u32 %v5540_v9, %v5340_v10  ;;  %v5330_v13 = vld [vmem:[#allocation5 + $0x50] sm:$0xf]  ;;  %v5539_v14 = vld [vmem:[#allocation5 + $0x54] sm:$0xf0]  ;;  %v5538_v15 = vld [vmem:[#allocation5 + $0x54] sm:$0xf] }
  0x15   :  { %394 = vmatpush.bf16.msra.mxu1 %v5351_v8  ;;  %v5332_v16 = vld [vmem:[#allocation5 + $0x58] sm:$0xf0]  ;;  %v5331_v17 = vor.u32 %v5539_v14, %v5330_v13  ;;  %v5322_v19 = vld [vmem:[#allocation5 + $0x40] sm:$0xf]  ;;  %v5537_v20 = vld [vmem:[#allocation5 + $0x44] sm:$0xf0] }
  0x16   :  { %v5335_v18 = vor.u32 %v5538_v15, %v5332_v16  ;;  %v5536_v21 = vld [vmem:[#allocation5 + $0x44] sm:$0xf]  ;;  %v5324_v22 = vld [vmem:[#allocation5 + $0x48] sm:$0xf0]  ;;  %v5323_v23 = vor.u32 %v5537_v20, %v5322_v19  ;;  %v5314_v25 = vld [vmem:[#allocation5 + $0x30] sm:$0xf] }
  0x17   :  { %v5327_v24 = vor.u32 %v5536_v21, %v5324_v22  ;;  %v5535_v26 = vld [vmem:[#allocation5 + $0x34] sm:$0xf0]  ;;  %v5534_v27 = vld [vmem:[#allocation5 + $0x34] sm:$0xf]  ;;  %v5316_v28 = vld [vmem:[#allocation5 + $0x38] sm:$0xf0] }
  0x18   :  { %306 = vmatpush.bf16.msra.mxu0 %v5339_v11  ;;  %v5315_v29 = vor.u32 %v5535_v26, %v5314_v25  ;;  %v5319_v30 = vor.u32 %v5534_v27, %v5316_v28  ;;  %v5306_v31 = vld [vmem:[#allocation5 + $0x20] sm:$0xf]  ;;  %v5533_v32 = vld [vmem:[#allocation5 + $0x24] sm:$0xf0]  ;;  %v5532_v33 = vld [vmem:[#allocation5 + $0x24] sm:$0xf] }
  0x19   :  { %395 = vmatpush.bf16.msra.mxu1 %v5343_v12  ;;  %v5308_v34 = vld [vmem:[#allocation5 + $0x28] sm:$0xf0]  ;;  %v5307_v35 = vor.u32 %v5533_v32, %v5306_v31  ;;  %v5298_v37 = vld [vmem:[#allocation5 + $0x10] sm:$0xf]  ;;  %v5531_v38 = vld [vmem:[#allocation5 + $0x14] sm:$0xf0] }
  0x1a   :  { %v5311_v36 = vor.u32 %v5532_v33, %v5308_v34  ;;  %v5530_v39 = vld [vmem:[#allocation5 + $0x14] sm:$0xf]  ;;  %v5300_v40 = vld [vmem:[#allocation5 + $0x18] sm:$0xf0]  ;;  %v5299_v41 = vor.u32 %v5531_v38, %v5298_v37  ;;  %v5290_v43 = vld [vmem:[#allocation5] sm:$0xf] }
  0x1b   :  { %v5303_v42 = vor.u32 %v5530_v39, %v5300_v40  ;;  %v5529_v44 = vld [vmem:[#allocation5 + $0x4] sm:$0xf0]  ;;  %v5528_v45 = vld [vmem:[#allocation5 + $0x4] sm:$0xf]  ;;  %v5292_v46 = vld [vmem:[#allocation5 + $0x8] sm:$0xf0] }
  0x1c   :  { %307 = vmatpush.bf16.msra.mxu0 %v5331_v17  ;;  %v5291_v47 = vor.u32 %v5529_v44, %v5290_v43  ;;  %v5295_v48 = vor.u32 %v5528_v45, %v5292_v46  ;;  %v5512_v49 = vld [vmem:[#allocation3] sm:$0xff]  ;;  %v5513_v50 = vld [vmem:[#allocation3 + $0x8] sm:$0xff]  ;;  %v5514_v51 = vld [vmem:[#allocation3 + $0x10] sm:$0xff] }
  0x1d   :  { %396 = vmatpush.bf16.msra.mxu1 %v5335_v18  ;;  %v5515_v52 = vld [vmem:[#allocation3 + $0x18] sm:$0xff]  ;;  %v5516_v53 = vld [vmem:[#allocation3 + $0x20] sm:$0xff]  ;;  %v5517_v54 = vld [vmem:[#allocation3 + $0x28] sm:$0xff] }
  0x1e   :  { %v5518_v55 = vld [vmem:[#allocation3 + $0x30] sm:$0xff]  ;;  %v5519_v56 = vld [vmem:[#allocation3 + $0x38] sm:$0xff]  ;;  %v5520_v57 = vld [vmem:[#allocation3 + $0x40] sm:$0xff] }
  0x1f   :  { %v5551_v59 = vld [vmem:[#allocation7 + $0x38] sm:$0xff]  ;;  %v5550_v62 = vld [vmem:[#allocation7 + $0x30] sm:$0xff]  ;;  %v5549_v3 = vld [vmem:[#allocation7 + $0x28] sm:$0xff] }
  0x20   :  { %308 = vmatpush.bf16.msra.mxu0 %v5323_v23  ;;  %v5559_v60 = vld [vmem:[#allocation7 + $0x78] sm:$0xff]  ;;  %3463 = vmatpush.bf16.msra.mxu2 %v5551_v59  ;;  %v5558_v63 = vld [vmem:[#allocation7 + $0x70] sm:$0xff]  ;;  %v5557_v4 = vld [vmem:[#allocation7 + $0x68] sm:$0xff] }
  0x21   :  { %397 = vmatpush.bf16.msra.mxu1 %v5327_v24  ;;  %3552 = vmatpush.bf16.msra.mxu3 %v5559_v60  ;;  %v123_v0 = vld [vmem:[%s10282_s2] sm:$0x3]  ;;  %v5521_v6 = vld [vmem:[#allocation3 + $0x48] sm:$0xff]  ;;  %v5546_v21 = vld [vmem:[#allocation7 + $0x10] sm:$0xff] }
  0x22   :  { %v5907_v2 = vperm.slane %v123_v0, 0  ;;  %v5912_v8 = vperm.slane %v123_v0, 1  ;;  %v5548_v9 = vld [vmem:[#allocation7 + $0x20] sm:$0xff]  ;;  %v5547_v15 = vld [vmem:[#allocation7 + $0x18] sm:$0xff]  ;;  %v5554_v24 = vld [vmem:[#allocation7 + $0x50] sm:$0xff] }
  0x23   :  { %v5556_v10 = vld [vmem:[#allocation7 + $0x60] sm:$0xff]  ;;  %v5555_v16 = vld [vmem:[#allocation7 + $0x58] sm:$0xff]  ;;  %v5545_v31 = vld [vmem:[#allocation7 + $0x8] sm:$0xff] }
  0x24   :  { %309 = vmatpush.bf16.msra.mxu0 %v5315_v29  ;;  %3464 = vmatpush.bf16.msra.mxu2 %v5550_v62  ;;  %v5553_v32 = vld [vmem:[#allocation7 + $0x48] sm:$0xff]  ;;  %v5522_v34 = vld [vmem:[#allocation3 + $0x50] sm:$0xff]  ;;  %v5544_v40 = vld [vmem:[#allocation7] sm:$0xff] }
  0x25   :  { %398 = vmatpush.bf16.msra.mxu1 %v5319_v30  ;;  %3553 = vmatpush.bf16.msra.mxu3 %v5558_v63 }
  0x28   :  { %310 = vmatpush.bf16.msra.mxu0 %v5307_v35  ;;  %3465 = vmatpush.bf16.msra.mxu2 %v5549_v3 }
  0x29   :  { %399 = vmatpush.bf16.msra.mxu1 %v5311_v36  ;;  %3554 = vmatpush.bf16.msra.mxu3 %v5557_v4 }
  0x2c   :  { %311 = vmatpush.bf16.msra.mxu0 %v5299_v41  ;;  %3466 = vmatpush.bf16.msra.mxu2 %v5548_v9  ;;  %v5552_v41 = vld [vmem:[#allocation7 + $0x40] sm:$0xff] }
  0x2d   :  { %400 = vmatpush.bf16.msra.mxu1 %v5303_v42  ;;  %3555 = vmatpush.bf16.msra.mxu3 %v5556_v10 }
  0x30   :  { %312 = vmatpush.bf16.msra.mxu0 %v5291_v47  ;;  %3467 = vmatpush.bf16.msra.mxu2 %v5547_v15  ;;  %v5523_v15 = vld [vmem:[#allocation3 + $0x58] sm:$0xff] }
  0x31   :  { %401 = vmatpush.bf16.msra.mxu1 %v5295_v48  ;;  %3556 = vmatpush.bf16.msra.mxu3 %v5555_v16 }
  0x33   :  { %313 = vmatmul.bf16.vlgmr.msra.gmra.mxu0 %v5512_v49 }
  0x34   :  { %402 = vmatmul.bf16.vlgmr.msra.gmra.mxu1 %v5512_v49  ;;  %3468 = vmatpush.bf16.msra.mxu2 %v5546_v21 }
  0x35   :  { %3557 = vmatpush.bf16.msra.mxu3 %v5554_v24 }
  0x38   :  { %3469 = vmatpush.bf16.msra.mxu2 %v5545_v31 }
  0x39   :  { %3558 = vmatpush.bf16.msra.mxu3 %v5553_v32 }
  0x3c   :  { %3470 = vmatpush.bf16.msra.mxu2 %v5544_v40 }
  0x3d   :  { %3559 = vmatpush.bf16.msra.mxu3 %v5552_v41 }
  0x43   :  { %318 = vmatmul.bf16.gmra.mxu0 %v5513_v50 }
  0x44   :  { %407 = vmatmul.bf16.gmra.mxu1 %v5513_v50 }
  0x53   :  { %323 = vmatmul.bf16.gmra.mxu0 %v5514_v51 }
  0x54   :  { %412 = vmatmul.bf16.gmra.mxu1 %v5514_v51 }
  0x63   :  { %328 = vmatmul.bf16.gmra.mxu0 %v5515_v52 }
  0x64   :  { %417 = vmatmul.bf16.gmra.mxu1 %v5515_v52 }
  0x73   :  { %333 = vmatmul.bf16.gmra.mxu0 %v5516_v53 }
  0x74   :  { %422 = vmatmul.bf16.gmra.mxu1 %v5516_v53 }
  0x83   :  { %338 = vmatmul.bf16.gmra.mxu0 %v5517_v54 }
  0x84   :  { %427 = vmatmul.bf16.gmra.mxu1 %v5517_v54 }
  0x93   :  { %343 = vmatmul.bf16.gmra.mxu0 %v5518_v55 }
  0x94   :  { %432 = vmatmul.bf16.gmra.mxu1 %v5518_v55 }
  0xa3   :  { %348 = vmatmul.bf16.gmra.mxu0 %v5519_v56 }
  0xa4   :  { %437 = vmatmul.bf16.gmra.mxu1 %v5519_v56 }
  0xb0   :  { %v314_v58 = vpop.f32.mrf.mxu0 }
  0xb1   :  { %v403_v61 = vpop.f32.mrf.mxu1  ;;  %v5910_v7 = vadd.f32 %v314_v58, %v5907_v2 }
  0xb2   :  { %v5918_v12 = vadd.f32 %v403_v61, %v5912_v8 }
  0xb3   :  { %353 = vmatmul.bf16.gmra.mxu0 %v5520_v57  ;;  %v5915_v11 = vmul.f32 0.70710677, %v5910_v7 }
  0xb4   :  { %442 = vmatmul.bf16.gmra.mxu1 %v5520_v57  ;;  %v5929_v19 = vmul.f32 0.70710677, %v5918_v12 }
  0xb5   :  { %v611_v18 = vmul.f32 %v5915_v11, %v5915_v11 }
  0xb6   :  { %v651_v27 = vmul.f32 %v5929_v19, %v5929_v19 }
  0xb7   :  { %v5940_v26 = vmin.f32 %v611_v18, 16.0 }
  0xb8   :  { %v316_v1 = vpop.f32.mrf.mxu0  ;;  %v5954_v35 = vmin.f32 %v651_v27, 16.0 }
  0xb9   :  { %v405_v5 = vpop.f32.mrf.mxu1  ;;  %v5921_v13 = vadd.f32 %v316_v1, %v5907_v2  ;;  %v624_v38 = vmul.f32 3.8918573e-05, %v5940_v26  ;;  %v613_v44 = vmul.f32 2.1237322e-06, %v5940_v26 }
  0xba   :  { %v5924_v17 = vadd.f32 %v405_v5, %v5912_v8  ;;  %v653_v46 = vmul.f32 2.1237322e-06, %v5954_v35 }
  0xbb   :  { %v5935_v22 = vmul.f32 0.70710677, %v5921_v13  ;;  %v625_v49 = vadd.f32 0.001143296, %v624_v38  ;;  %v614_v54 = vadd.f32 0.00028619796, %v613_v44 }
  0xbc   :  { %v5938_v25 = vmul.f32 0.70710677, %v5924_v17  ;;  %v654_v55 = vadd.f32 0.00028619796, %v653_v46 }
  0xbd   :  { %v691_v30 = vmul.f32 %v5935_v22, %v5935_v22  ;;  %v626_v58 = vmul.f32 %v625_v49, %v5940_v26  ;;  %v615_v63 = vmul.f32 %v614_v54, %v5940_v26 }
  0xbe   :  { %v731_v33 = vmul.f32 %v5938_v25, %v5938_v25  ;;  %v655_v0 = vmul.f32 %v654_v55, %v5954_v35 }
  0xbf   :  { %v5962_v39 = vmin.f32 %v691_v30, 16.0  ;;  %v627_v4 = vadd.f32 0.014752088, %v626_v58 }
  0xc0   :  { %v319_v14 = vpop.f32.mrf.mxu0  ;;  %v5964_v42 = vmin.f32 %v731_v33, 16.0  ;;  %v656_v16 = vadd.f32 0.0036580483, %v655_v0 }
  0xc1   :  { %v5932_v20 = vadd.f32 %v319_v14, %v5907_v2  ;;  %v408_v23 = vpop.f32.mrf.mxu1  ;;  %v693_v50 = vmul.f32 2.1237322e-06, %v5962_v39  ;;  %v616_v14 = vadd.f32 0.0036580483, %v615_v63  ;;  %v628_v24 = vmul.f32 %v627_v4, %v5940_v26 }
  0xc2   :  { %v5948_v29 = vadd.f32 %v408_v23, %v5912_v8  ;;  %v733_v52 = vmul.f32 2.1237322e-06, %v5964_v42  ;;  %v657_v38 = vmul.f32 %v656_v16, %v5954_v35 }
  0xc3   :  { %358 = vmatmul.bf16.gmra.mxu0 %v5521_v6  ;;  %v5945_v28 = vmul.f32 0.70710677, %v5932_v20  ;;  %v694_v59 = vadd.f32 0.00028619796, %v693_v50  ;;  %v617_v33 = vmul.f32 %v616_v14, %v5940_v26 }
  0xc4   :  { %447 = vmatmul.bf16.gmra.mxu1 %v5521_v6  ;;  %v5959_v37 = vmul.f32 0.70710677, %v5948_v29  ;;  %v734_v61 = vadd.f32 0.00028619796, %v733_v52  ;;  %v658_v54 = vadd.f32 0.05243302, %v657_v38 }
  0xc5   :  { %v771_v36 = vmul.f32 %v5945_v28, %v5945_v28  ;;  %v695_v5 = vmul.f32 %v694_v59, %v5962_v39  ;;  %v618_v50 = vadd.f32 0.05243302, %v617_v33 }
  0xc6   :  { %v811_v48 = vmul.f32 %v5959_v37, %v5959_v37  ;;  %v735_v9 = vmul.f32 %v734_v61, %v5964_v42 }
  0xc7   :  { %v5968_v47 = vmin.f32 %v771_v36, 16.0  ;;  %v696_v27 = vadd.f32 0.0036580483, %v695_v5  ;;  %v659_v5 = vmul.f32 %v658_v54, %v5954_v35 }
  0xc8   :  { %v321_v43 = vpop.f32.mrf.mxu0  ;;  %v5981_v57 = vmin.f32 %v811_v48, 16.0  ;;  %v736_v31 = vadd.f32 0.0036580483, %v735_v9 }
  0xc9   :  { %v410_v45 = vpop.f32.mrf.mxu1  ;;  %v5974_v51 = vadd.f32 %v321_v43, %v5907_v2  ;;  %v773_v56 = vmul.f32 2.1237322e-06, %v5968_v47  ;;  %v629_v43 = vadd.f32 0.112945676, %v628_v24  ;;  %v697_v44 = vmul.f32 %v696_v27, %v5962_v39 }
  0xca   :  { %v5978_v53 = vadd.f32 %v410_v45, %v5912_v8  ;;  %v813_v3 = vmul.f32 2.1237322e-06, %v5981_v57  ;;  %v737_v46 = vmul.f32 %v736_v31, %v5964_v42  ;;  %v660_v33 = vadd.f32 0.18741608, %v659_v5 }
  0xcb   :  { %v5985_v60 = vmul.f32 0.70710677, %v5974_v51  ;;  %v774_v1 = vadd.f32 0.00028619796, %v773_v56  ;;  %v630_v58 = vmul.f32 %v629_v43, %v5940_v26  ;;  %v698_v59 = vadd.f32 0.05243302, %v697_v44 }
  0xcc   :  { %v5988_v62 = vmul.f32 0.70710677, %v5978_v53  ;;  %v814_v21 = vadd.f32 0.00028619796, %v813_v3  ;;  %v738_v63 = vadd.f32 0.05243302, %v737_v46  ;;  %v619_v3 = vmul.f32 %v618_v50, %v5940_v26 }
  0xcd   :  { %v851_v6 = vmul.f32 %v5985_v60, %v5985_v60  ;;  %v775_v18 = vmul.f32 %v774_v1, %v5968_v47  ;;  %v631_v14 = vadd.f32 0.4994258, %v630_v58  ;;  %v6072_v5 = vmul.f32 0.5, %v5932_v20 }
  0xce   :  { %v891_v10 = vmul.f32 %v5988_v62, %v5988_v62  ;;  %v815_v41 = vmul.f32 %v814_v21, %v5981_v57  ;;  %v620_v24 = vadd.f32 0.18741608, %v619_v3  ;;  %v6066_v3 = vmul.f32 0.5, %v5924_v17 }
  0xcf   :  { %v6001_v30 = vmin.f32 %v851_v6, 16.0  ;;  %v776_v40 = vadd.f32 0.0036580483, %v775_v18  ;;  %v739_v18 = vmul.f32 %v738_v63, %v5964_v42 }
  0xd0   :  { %v324_v23 = vpop.f32.mrf.mxu0  ;;  %v6003_v32 = vmin.f32 %v891_v10, 16.0  ;;  %v816_v56 = vadd.f32 0.0036580483, %v815_v41  ;;  %v6045_v41 = vmul.f32 0.5, %v5910_v7 }
  0xd1   :  { %v413_v36 = vpop.f32.mrf.mxu1  ;;  %v853_v45 = vmul.f32 2.1237322e-06, %v6001_v30  ;;  %v777_v55 = vmul.f32 %v776_v40, %v5968_v47  ;;  %v632_v40 = vmul.f32 %v631_v14, %v5940_v26  ;;  %v740_v46 = vadd.f32 0.18741608, %v739_v18 }
  0xd2   :  { %v893_v48 = vmul.f32 2.1237322e-06, %v6003_v32  ;;  %v6016_v49 = vadd.f32 %v413_v36, %v5912_v8  ;;  %v817_v9 = vmul.f32 %v816_v56, %v5981_v57  ;;  %v6054_v56 = vmul.f32 0.5, %v5921_v13 }
  0xd3   :  { %363 = vmatmul.bf16.gmra.mxu0 %v5522_v34  ;;  %v854_v61 = vadd.f32 0.00028619796, %v853_v45  ;;  %v778_v6 = vadd.f32 0.05243302, %v777_v55  ;;  %v6048_v45 = vmul.f32 0.5, %v5918_v12  ;;  %v621_v55 = vmul.f32 %v620_v24, %v5940_v26 }
  0xd4   :  { %452 = vmatmul.bf16.gmra.mxu1 %v5522_v34  ;;  %v6007_v34 = vadd.f32 %v324_v23, %v5907_v2  ;;  %v894_v0 = vadd.f32 0.00028619796, %v893_v48  ;;  %v6024_v1 = vmul.f32 0.70710677, %v6016_v49  ;;  %v818_v38 = vadd.f32 0.05243302, %v817_v9 }
  0xd5   :  { %v855_v16 = vmul.f32 %v854_v61, %v6001_v30  ;;  %v779_v36 = vmul.f32 %v778_v6, %v5968_v47  ;;  %v6062_v63 = vadd.f32 1.0, %v632_v40  ;;  %v6077_v14 = vmul.f32 0.5, %v5948_v29 }
  0xd6   :  { %v6019_v52 = vmul.f32 0.70710677, %v6007_v34  ;;  %v895_v21 = vmul.f32 %v894_v0, %v6003_v32  ;;  %v971_v23 = vmul.f32 %v6024_v1, %v6024_v1  ;;  %v819_v12 = vmul.f32 %v818_v38, %v5981_v57 }
  0xd7   :  { %v856_v44 = vadd.f32 0.0036580483, %v855_v16  ;;  %v780_v61 = vadd.f32 0.18741608, %v779_v36  ;;  %10310 = vst [vmem:[#allocation10_spill] sm:$0xff] %v6077_v14  ;;  %5570 = vrcp.f32 %v6062_v63  ;;  %v6089_v40 = vmul.f32 0.5, %v5974_v51 }
  0xd8   :  { %v931_v4 = vmul.f32 %v6019_v52, %v6019_v52  ;;  %v326_v10 = vpop.f32.mrf.mxu0  ;;  %v896_v48 = vadd.f32 0.0036580483, %v895_v21  ;;  %v6050_v50 = vmin.f32 %v971_v23, 16.0  ;;  %v820_v21 = vadd.f32 0.18741608, %v819_v12 }
  0xd9   :  { %v6040_v31 = vadd.f32 %v326_v10, %v5907_v2  ;;  %v415_v54 = vpop.f32.mrf.mxu1  ;;  %v857_v13 = vmul.f32 %v856_v44, %v6001_v30  ;;  %v622_v10 = vadd.f32 1.1283791, %v621_v55  ;;  %v781_v18 = vmul.f32 %v780_v61, %v5968_v47 }
  0xda   :  { %v6037_v27 = vmin.f32 %v931_v4, 16.0  ;;  %v416_v26 = vadd.f32 %v415_v54, %v5912_v8  ;;  %v741_v4 = vmul.f32 %v740_v46, %v5964_v42  ;;  %v897_v6 = vmul.f32 %v896_v48, %v6003_v32 }
  0xdb   :  { %v6058_v7 = vmul.f32 0.70710677, %v6040_v31  ;;  %v973_v9 = vmul.f32 2.1237322e-06, %v6050_v50  ;;  %v858_v23 = vadd.f32 0.05243302, %v857_v13  ;;  %v6086_v29 = vmul.f32 %v622_v10, %v5915_v11 }
  0xdc   :  { %v933_v58 = vmul.f32 2.1237322e-06, %v6037_v27  ;;  %v6083_v24 = vmul.f32 0.70710677, %v416_v26  ;;  %v898_v36 = vadd.f32 0.05243302, %v897_v6  ;;  %v821_v54 = vmul.f32 %v820_v21, %v5981_v57 }
  0xdd   :  { %v1011_v17 = vmul.f32 %v6058_v7, %v6058_v7  ;;  %v974_v38 = vadd.f32 0.00028619796, %v973_v9  ;;  %v782_v48 = vadd.f32 1.1283791, %v781_v18  ;;  %v6101_v11 = vmul.f32 0.5, %v5978_v53  ;;  %v6108_v12 = vpop.eup %5570 }
  0xde   :  { %v6104_v51 = vmul.f32 0.5, %v6007_v34  ;;  %v1051_v61 = vmul.f32 %v6083_v24, %v6083_v24  ;;  %v899_v13 = vmul.f32 %v898_v36, %v6003_v32  ;;  %v6119_v6 = vmul.f32 0.5, %v6016_v49 }
  0xdf   :  { %v6092_v44 = vmin.f32 %v1011_v17, 16.0  ;;  %10311 = vst [vmem:[#allocation11_spill] sm:$0xff] %v6101_v11  ;;  %v6124_v10 = vmul.f32 %v782_v48, %v5945_v28  ;;  %v635_v49 = vmul.f32 %v6108_v12, %v6062_v63  ;;  %v664_v28 = vmul.f32 3.8918573e-05, %v5954_v35 }
  0xe0   :  { %v329_v55 = vpop.f32.mrf.mxu0  ;;  %10312 = vst [vmem:[#allocation12_spill] sm:$0xff] %v6104_v51  ;;  %v6131_v18 = vmin.f32 %v1051_v61, 16.0  ;;  %vm640_vm0 = vweird.f32 %v6108_v12  ;;  %vm639_vm1 = vweird.f32 %v6062_v63 }
  0xe1   :  { %10313 = vst [vmem:[#allocation13_spill] sm:$0xff] %v6119_v6  ;;  %v1013_v34 = vmul.f32 2.1237322e-06, %v6092_v44  ;;  %v330_v9 = vadd.f32 %v329_v55, %v5907_v2  ;;  %v418_v21 = vpop.f32.mrf.mxu1  ;;  %v665_v55 = vadd.f32 0.001143296, %v664_v28  ;;  %vm6181_vm2 = vmor %vm639_vm1, %vm640_vm0 }
  0xe2   :  { %v419_v48 = vadd.f32 %v418_v21, %v5912_v8 }
  0xe3   :  { %368 = vmatmul.bf16.gmra.mxu0 %v5523_v15  ;;  %v6147_v61 = vmul.f32 0.5, %v330_v9 }
  0xe4   :  { %457 = vmatmul.bf16.gmra.mxu1 %v5523_v15  ;;  %v699_v15 = vmul.f32 %v698_v59, %v5962_v39  ;;  %v661_v59 = vmul.f32 %v660_v33, %v5954_v35  ;;  %v742_v33 = vadd.f32 1.1283791, %v741_v4  ;;  %v975_v4 = vmul.f32 %v974_v38, %v6050_v50 }
  0xe5   :  { %v6138_v38 = vmul.f32 0.70710677, %v330_v9  ;;  %10318 = vst [vmem:[#allocation18_spill] sm:$0xff] %v6147_v61 }
  0xe6   :  { %v700_v43 = vadd.f32 0.18741608, %v699_v15  ;;  %v934_v15 = vadd.f32 0.00028619796, %v933_v58  ;;  %v662_v16 = vadd.f32 1.1283791, %v661_v59  ;;  %v859_v59 = vmul.f32 %v858_v23, %v6001_v30 }
  0xe7   :  { %v704_v58 = vmul.f32 3.8918573e-05, %v5962_v39  ;;  %v976_v23 = vadd.f32 0.0036580483, %v975_v4  ;;  %10316 = vst [vmem:[#allocation16_spill] sm:$0xff] %v6138_v38 }
  0xe8   :  { %v701_v0 = vmul.f32 %v700_v43, %v5962_v39  ;;  %v935_v43 = vmul.f32 %v934_v15, %v6037_v27  ;;  %v6095_v46 = vmul.f32 %v662_v16, %v5929_v19  ;;  %v6127_v15 = vmul.f32 0.5, %v6040_v31 }
  0xe9   :  { %v860_v17 = vadd.f32 0.18741608, %v859_v59  ;;  %v6129_v16 = vmul.f32 0.5, %v416_v26  ;;  %v1014_v31 = vadd.f32 0.00028619796, %v1013_v34  ;;  %v977_v4 = vmul.f32 %v976_v23, %v6050_v50 }
  0xea   :  { %v702_v20 = vadd.f32 1.1283791, %v701_v0  ;;  %v6114_v0 = vmul.f32 %v742_v33, %v5938_v25  ;;  %v936_v53 = vadd.f32 0.0036580483, %v935_v43  ;;  %10314 = vst [vmem:[#allocation14_spill] sm:$0xff] %v6127_v15  ;;  %v666_v34 = vmul.f32 %v665_v55, %v5954_v35 }
  0xeb   :  { %v705_v25 = vadd.f32 0.001143296, %v704_v58  ;;  %10315 = vst [vmem:[#allocation15_spill] sm:$0xff] %v6129_v16  ;;  %v744_v26 = vmul.f32 3.8918573e-05, %v5964_v42  ;;  %v861_v58 = vmul.f32 %v860_v17, %v6001_v30  ;;  %v1015_v21 = vmul.f32 %v1014_v31, %v6092_v44 }
  0xec   :  { %v6111_v19 = vmul.f32 %v702_v20, %v5935_v22  ;;  %v822_v22 = vadd.f32 1.1283791, %v821_v54  ;;  %v900_v20 = vadd.f32 0.18741608, %v899_v13  ;;  %v937_v36 = vmul.f32 %v936_v53, %v6037_v27 }
  0xed   :  { %v706_v33 = vmul.f32 %v705_v25, %v5962_v39  ;;  %v1053_v59 = vmul.f32 2.1237322e-06, %v6131_v18  ;;  %v636_v13 = vsub.f32 1.0, %v635_v49  ;;  %v745_v25 = vadd.f32 0.001143296, %v744_v26 }
  0xee   :  { %v6142_v43 = vmul.f32 %v822_v22, %v5959_v37  ;;  %v901_v37 = vmul.f32 %v900_v20, %v6003_v32  ;;  %v938_v22 = vadd.f32 0.05243302, %v937_v36  ;;  %v1091_v17 = vmul.f32 %v6138_v38, %v6138_v38 }
  0xef   :  { %v707_v54 = vadd.f32 0.014752088, %v706_v33  ;;  %v6156_v33 = vmul.f32 0.70710677, %v419_v48  ;;  %v667_v28 = vadd.f32 0.014752088, %v666_v34  ;;  %v746_v49 = vmul.f32 %v745_v25, %v5964_v42 }
  0xf0   :  { %10317 = vst [vmem:[#allocation17_spill] sm:$0xff] %v6142_v43  ;;  %v862_v23 = vadd.f32 1.1283791, %v861_v58  ;;  %v1054_v61 = vadd.f32 0.00028619796, %v1053_v59  ;;  %v637_v26 = vmul.f32 %v6108_v12, %v636_v13  ;;  %v939_v16 = vmul.f32 %v938_v22, %v6037_v27  ;;  %v331_v22 = vpop.f32.mrf.mxu0 }
  0xf1   :  { %v708_v53 = vmul.f32 %v707_v54, %v5962_v39  ;;  %10319 = vst [vmem:[#allocation19_spill] sm:$0xff] %v6156_v33  ;;  %v6159_v54 = vmul.f32 0.5, %v419_v48  ;;  %v978_v55 = vadd.f32 0.05243302, %v977_v4  ;;  %v668_v36 = vmul.f32 %v667_v28, %v5954_v35 }
  0xf2   :  { %v747_v31 = vadd.f32 0.014752088, %v746_v49  ;;  %v1016_v6 = vadd.f32 0.0036580483, %v1015_v21  ;;  %v6165_v15 = vmin.f32 %v1091_v17, 16.0  ;;  %v1131_v58 = vmul.f32 %v6156_v33, %v6156_v33 }
  0xf3   :  { %v709_v9 = vadd.f32 0.112945676, %v708_v53  ;;  %10320 = vst [vmem:[#allocation20_spill] sm:$0xff] %v6159_v54  ;;  %v784_v53 = vmul.f32 3.8918573e-05, %v5968_v47  ;;  %v1055_v4 = vmul.f32 %v1054_v61, %v6131_v18  ;;  %v638_v34 = vadd.f32 %v6108_v12, %v637_v26 }
  0xf4   :  { %v669_v59 = vadd.f32 0.112945676, %v668_v36  ;;  %v748_v13 = vmul.f32 %v747_v31, %v5964_v42  ;;  %v645_v21 = vand.u32 2147483648, %v6062_v63  ;;  %v940_v49 = vadd.f32 0.18741608, %v939_v16 }
  0xf5   :  { %v710_v20 = vmul.f32 %v709_v9, %v5962_v39  ;;  %v785_v25 = vadd.f32 0.001143296, %v784_v53  ;;  %v1093_v26 = vmul.f32 2.1237322e-06, %v6165_v15  ;;  %v6190_v16 = vadd.f32 %v331_v22, %v5907_v2 }
  0xf6   :  { %v670_v9 = vmul.f32 %v669_v59, %v5954_v35  ;;  %v749_v28 = vadd.f32 0.112945676, %v748_v13  ;;  %v1056_v13 = vadd.f32 0.0036580483, %v1055_v4  ;;  %v646_v54 = vor.u32 1.1754944e-38, %v645_v21  ;;  %v5524_v21 = vld [vmem:[#allocation3 + $0x60] sm:$0xff] }
  0xf7   :  { %v711_v48 = vadd.f32 0.4994258, %v710_v20  ;;  %v643_v20 = vand.u32 2147483647, %v6062_v63  ;;  %v786_v61 = vmul.f32 %v785_v25, %v5968_v47  ;;  %v642_v63 = vsel %vm6181_vm2, %v6108_v12, %v638_v34  ;;  %373 = vmatmul.bf16.gmra.mxu0 %v5524_v21  ;;  %462 = vmatmul.bf16.gmra.mxu1 %v5524_v21 }
  0xf8   :  { %v671_v53 = vadd.f32 0.4994258, %v670_v9  ;;  %v6195_v25 = vmin.f32 %v1131_v58, 16.0  ;;  %v1017_v22 = vmul.f32 %v1016_v6, %v6092_v44  ;;  %v1094_v51 = vadd.f32 0.00028619796, %v1093_v26  ;;  %v420_v6 = vpop.f32.mrf.mxu1 }
  0xf9   :  { %v712_v17 = vmul.f32 %v711_v48, %v5962_v39  ;;  %v750_v39 = vmul.f32 %v749_v28, %v5964_v42  ;;  %v979_v48 = vmul.f32 %v978_v55, %v6050_v50  ;;  %v787_v59 = vadd.f32 0.014752088, %v786_v61 }
  0xfa   :  { %vm644_vm3 = vcmp.eq.f32.partialorder %v643_v20, 8.507059e+37  ;;  %v902_v28 = vadd.f32 1.1283791, %v901_v37  ;;  %v941_v12 = vmul.f32 %v940_v49, %v6037_v27  ;;  %v6206_v20 = vmul.f32 %v862_v23, %v5985_v60 }
  0xfb   :  { %v6185_v31 = vadd.f32 1.0, %v712_v17  ;;  %v672_v17 = vmul.f32 %v671_v53, %v5954_v35  ;;  %v751_v9 = vadd.f32 0.4994258, %v750_v39  ;;  %v788_v55 = vmul.f32 %v787_v59, %v5968_v47 }
  0xfc   :  { %v647_v33 = vsel %vm644_vm3, %v646_v54, %v642_v63  ;;  %v980_v34 = vadd.f32 0.18741608, %v979_v48  ;;  %v1057_v35 = vmul.f32 %v1056_v13, %v6131_v18  ;;  %v1133_v61 = vmul.f32 2.1237322e-06, %v6195_v25 }
  0xfd   :  { %5572 = vrcp.f32 %v6185_v31  ;;  %v6202_v4 = vadd.f32 1.0, %v672_v17  ;;  %v752_v58 = vmul.f32 %v751_v9, %v5964_v42  ;;  %v6211_v37 = vmul.f32 0.70710677, %v6190_v16 }
  0xfe   :  { %v648_v54 = vmul.f32 %v647_v33, %v6086_v29  ;;  %v789_v49 = vadd.f32 0.112945676, %v788_v55  ;;  %v864_v42 = vmul.f32 3.8918573e-05, %v6001_v30  ;;  %v6217_v60 = vmul.f32 %v902_v28, %v5988_v62 }
  0xff   :  { %10323 = vst [vmem:[#allocation21_spill] sm:$0xff] %v6211_v37  ;;  %5574 = vrcp.f32 %v6202_v4  ;;  %v1018_v23 = vadd.f32 0.05243302, %v1017_v22  ;;  %v1095_v36 = vmul.f32 %v1094_v51, %v6165_v15  ;;  %v6220_v53 = vadd.f32 1.0, %v752_v58  ;;  %v334_v51 = vpop.f32.mrf.mxu0 }
 0x100   :  { %10324 = vst [vmem:[#allocation22_spill] sm:$0xff] %v6217_v60  ;;  %v6222_v39 = vadd.f32 1.1283791, %v941_v12  ;;  %v6225_v29 = vmul.f32 %v980_v34, %v6050_v50  ;;  %v6228_v33 = vadd.f32 %v420_v6, %v5912_v8  ;;  %v6231_v63 = vadd.f32 0.05243302, %v1057_v35 }
 0x101   :  { %v6233_v59 = vadd.f32 0.00028619796, %v1133_v61  ;;  %v1171_v62 = vmul.f32 %v6211_v37, %v6211_v37  ;;  %5576 = vrcp.f32 %v6220_v53  ;;  %v5352_v13 = vclamps-f32 %v648_v54, 1.0 }
 0x102   :  { %v790_v9 = vmul.f32 %v789_v49, %v5968_v47  ;;  %v865_v55 = vadd.f32 0.001143296, %v864_v42  ;;  %v6240_v28 = vmul.f32 %v1018_v23, %v6092_v44  ;;  %v6242_v22 = vadd.f32 0.0036580483, %v1095_v36 }
 0x103   :  { %v5573_v26 = vpop.eup %5572  ;;  %v725_v12 = vand.u32 2147483648, %v6185_v31  ;;  %v824_v34 = vmul.f32 3.8918573e-05, %v5981_v57  ;;  %v723_v35 = vand.u32 2147483647, %v6185_v31  ;;  %v6247_v6 = vmin.f32 %v1171_v62, 16.0 }
 0x104   :  { %v715_v48 = vmul.f32 %v5573_v26, %v6185_v31  ;;  %vm720_vm4 = vweird.f32 %v5573_v26  ;;  %v791_v61 = vadd.f32 0.4994258, %v790_v9  ;;  %v6250_v54 = vmul.f32 0.70710677, %v6228_v33 }
 0x105   :  { %v5575_v58 = vpop.eup %5574  ;;  %v6253_v49 = vadd.f32 %v334_v51, %v5907_v2  ;;  %vm719_vm5 = vweird.f32 %v6185_v31  ;;  %v3171_v36 = vadd.f32 1.0, %v5352_v13  ;;  %v726_v37 = vor.u32 1.1754944e-38, %v725_v12 }
 0x106   :  { %v716_v17 = vsub.f32 1.0, %v715_v48  ;;  %v675_v42 = vmul.f32 %v5575_v58, %v6202_v4  ;;  %v866_v48 = vmul.f32 %v865_v55, %v6001_v30  ;;  %vm721_vm6 = vmor %vm719_vm5, %vm720_vm4  ;;  %v685_v62 = vand.u32 2147483648, %v6202_v4 }
 0x107   :  { %v792_v11 = vmul.f32 %v791_v61, %v5968_v47  ;;  %vm724_vm7 = vcmp.eq.f32.partialorder %v723_v35, 8.507059e+37  ;;  %v825_v38 = vadd.f32 0.001143296, %v824_v34  ;;  %vm680_vm8 = vweird.f32 %v5575_v58 }
 0x108   :  { %v717_v21 = vmul.f32 %v5573_v26, %v716_v17  ;;  %v5577_v17 = vpop.eup %5576  ;;  %v676_v9 = vsub.f32 1.0, %v675_v42  ;;  %v683_v31 = vand.u32 2147483647, %v6202_v4  ;;  %vm679_vm9 = vweird.f32 %v6202_v4 }
 0x109   :  { %v755_v51 = vmul.f32 %v5577_v17, %v6220_v53  ;;  %v867_v12 = vadd.f32 0.014752088, %v866_v48  ;;  %v686_v43 = vor.u32 1.1754944e-38, %v685_v62  ;;  %v765_v47 = vand.u32 2147483648, %v6220_v53  ;;  %vm681_vm10 = vmor %vm679_vm9, %vm680_vm8 }
 0x10a   :  { %v718_v23 = vadd.f32 %v5573_v26, %v717_v21  ;;  %v677_v21 = vmul.f32 %v5575_v58, %v676_v9  ;;  %vm760_vm11 = vweird.f32 %v5577_v17  ;;  %vm684_vm12 = vcmp.eq.f32.partialorder %v683_v31, 8.507059e+37 }
 0x10b   :  { %v756_v55 = vsub.f32 1.0, %v755_v51  ;;  %vm759_vm13 = vweird.f32 %v6220_v53  ;;  %v766_v9 = vor.u32 1.1754944e-38, %v765_v47  ;;  %v868_v62 = vmul.f32 %v867_v12, %v6001_v30 }
 0x10c   :  { %v722_v14 = vsel %vm721_vm6, %v5573_v26, %v718_v23  ;;  %v678_v42 = vadd.f32 %v5575_v58, %v677_v21  ;;  %v6265_v26 = vadd.f32 1.0, %v792_v11  ;;  %v423_v11 = vpop.f32.mrf.mxu1  ;;  %v3235_v23 = vmul.f32 %v3171_v36, %v6045_v41  ;;  %vm761_vm14 = vmor %vm759_vm13, %vm760_vm11 }
 0x10d   :  { %v727_v60 = vsel %vm724_vm7, %v726_v37, %v722_v14  ;;  %v757_v34 = vmul.f32 %v5577_v17, %v756_v55  ;;  %v763_v14 = vand.u32 2147483647, %v6220_v53  ;;  %v1211_v37 = vmul.f32 %v6250_v54, %v6250_v54 }
 0x10e   :  { %v728_v13 = vmul.f32 %v727_v60, %v6111_v19  ;;  %v682_v19 = vsel %vm681_vm10, %v5575_v58, %v678_v42  ;;  %5578 = vrcp.f32 %v6265_v26  ;;  %v826_v21 = vmul.f32 %v825_v38, %v5981_v57 }
 0x10f   :  { %v687_v60 = vsel %vm684_vm12, %v686_v43, %v682_v19  ;;  %v758_v61 = vadd.f32 %v5577_v17, %v757_v34  ;;  %vm764_vm15 = vcmp.eq.f32.partialorder %v763_v14, 8.507059e+37  ;;  %v1173_v43 = vmul.f32 2.1237322e-06, %v6247_v6 }
 0x110   :  { %v5354_v35 = vclamps-f32 %v728_v13, 1.0  ;;  %v688_v48 = vmul.f32 %v687_v60, %v6095_v46  ;;  %v6279_v31 = vmul.f32 0.70710677, %v6253_v49  ;;  %v1020_v41 = vadd.f32 0.18741608, %v6240_v28 }
 0x111   :  { %v762_v58 = vsel %vm761_vm14, %v5577_v17, %v758_v61  ;;  %v6283_v46 = vadd.f32 %v423_v11, %v5912_v8  ;;  %v1059_v38 = vmul.f32 %v6231_v63, %v6131_v18  ;;  %v1135_v17 = vmul.f32 %v6233_v59, %v6195_v25 }
 0x112   :  { %v3173_v4 = vadd.f32 1.0, %v5354_v35  ;;  %v5353_v53 = vclamps-f32 %v688_v48, 1.0  ;;  %v767_v13 = vsel %vm764_vm15, %v766_v9, %v762_v58  ;;  %v6292_v12 = vmin.f32 %v1211_v37, 16.0 }
 0x113   :  { %v768_v55 = vmul.f32 %v767_v13, %v6114_v0  ;;  %v869_v42 = vadd.f32 0.112945676, %v868_v62  ;;  %v6295_v47 = vmul.f32 0.5, %v6190_v16  ;;  %v827_v34 = vadd.f32 0.014752088, %v826_v21 }
 0x114   :  { %v3237_v51 = vmul.f32 %v3173_v4, %v6054_v56  ;;  %v6286_v56 = vpop.eup %5578  ;;  %v3172_v35 = vadd.f32 1.0, %v5353_v53  ;;  %v982_v0 = vadd.f32 1.1283791, %v6225_v29  ;;  %v1097_v14 = vmul.f32 %v6242_v22, %v6165_v15 }
 0x115   :  { %v5355_v28 = vclamps-f32 %v768_v55, 1.0  ;;  %v1174_v19 = vadd.f32 0.00028619796, %v1173_v43  ;;  %v1251_v63 = vmul.f32 %v6279_v31, %v6279_v31  ;;  %v1021_v59 = vmul.f32 %v1020_v41, %v6092_v44 }
 0x116   :  { %v3299_v36 = vpack.c.bf16 %v3237_v51, %v3235_v23  ;;  %v6304_v37 = vmul.f32 0.70710677, %v6283_v46  ;;  %v795_v4 = vmul.f32 %v6286_v56, %v6265_v26  ;;  %v1060_v60 = vadd.f32 0.18741608, %v1059_v38 }
 0x117   :  { %v3174_v16 = vadd.f32 1.0, %v5355_v28  ;;  %v1136_v61 = vadd.f32 0.0036580483, %v1135_v17  ;;  %v1213_v29 = vmul.f32 2.1237322e-06, %v6292_v12  ;;  %v870_v11 = vmul.f32 %v869_v42, %v6001_v30 }
 0x118   :  { %3471 = vmatmul.bf16.vlgmr.msra.gmra.mxu2 %v3299_v36  ;;  %v3236_v22 = vmul.f32 %v3172_v35, %v6048_v45  ;;  %v828_v48 = vmul.f32 %v827_v34, %v5981_v57  ;;  %v904_v9 = vmul.f32 3.8918573e-05, %v6003_v32  ;;  %v6316_v62 = vmul.f32 %v6222_v39, %v6019_v52 }
 0x119   :  { %v3238_v23 = vmul.f32 %v3174_v16, %v6066_v3  ;;  %v1098_v51 = vadd.f32 0.05243302, %v1097_v14  ;;  %v1175_v58 = vmul.f32 %v1174_v19, %v6247_v6  ;;  %v6319_v21 = vmin.f32 %v1251_v63, 16.0 }
 0x11a   :  { %v6322_v43 = vmul.f32 0.5, %v6228_v33  ;;  %v1291_v45 = vmul.f32 %v6304_v37, %v6304_v37  ;;  %v796_v53 = vsub.f32 1.0, %v795_v4  ;;  %v6327_v13 = vmul.f32 %v982_v0, %v6024_v1 }
 0x11b   :  { %v3300_v3 = vpack.c.bf16 %v3238_v23, %v3236_v22  ;;  %v1022_v41 = vadd.f32 1.1283791, %v1021_v59  ;;  %v1137_v52 = vmul.f32 %v1136_v61, %v6195_v25  ;;  %v871_v39 = vadd.f32 0.4994258, %v870_v11 }
 0x11c   :  { %v1061_v36 = vmul.f32 %v1060_v60, %v6131_v18  ;;  %v1214_v55 = vadd.f32 0.00028619796, %v1213_v29  ;;  %v829_v38 = vadd.f32 0.112945676, %v828_v48  ;;  %v905_v17 = vadd.f32 0.001143296, %v904_v9 }
 0x11d   :  { %3560 = vmatmul.bf16.vlgmr.msra.gmra.mxu3 %v3300_v3  ;;  %v1099_v33 = vmul.f32 %v1098_v51, %v6165_v15  ;;  %v1176_v42 = vadd.f32 0.0036580483, %v1175_v58  ;;  %v1253_v28 = vmul.f32 2.1237322e-06, %v6319_v21  ;;  %v872_v35 = vmul.f32 %v871_v39, %v6001_v30 }
 0x11e   :  { %v6335_v1 = vmul.f32 0.5, %v6253_v49  ;;  %v6337_v34 = vmin.f32 %v1291_v45, 16.0  ;;  %v797_v0 = vmul.f32 %v6286_v56, %v796_v53  ;;  %v830_v14 = vmul.f32 %v829_v38, %v5981_v57 }
 0x11f   :  { %v6342_v19 = vmul.f32 %v1022_v41, %v6058_v7  ;;  %v6344_v63 = vadd.f32 1.0, %v872_v35  ;;  %v906_v59 = vmul.f32 %v905_v17, %v6003_v32  ;;  %v944_v16 = vmul.f32 3.8918573e-05, %v6037_v27 }
 0x120   :  { %v1062_v4 = vadd.f32 1.1283791, %v1061_v36  ;;  %v1138_v30 = vadd.f32 0.05243302, %v1137_v52  ;;  %v1215_v49 = vmul.f32 %v1214_v55, %v6292_v12  ;;  %v831_v60 = vadd.f32 0.4994258, %v830_v14 }
 0x121   :  { %v1100_v61 = vadd.f32 0.18741608, %v1099_v33  ;;  %v1177_v29 = vmul.f32 %v1176_v42, %v6247_v6  ;;  %v1254_v11 = vadd.f32 0.00028619796, %v1253_v28  ;;  %5580 = vrcp.f32 %v6344_v63 }
 0x122   :  { %v1293_v7 = vmul.f32 2.1237322e-06, %v6337_v34  ;;  %v798_v22 = vadd.f32 %v6286_v56, %v797_v0  ;;  %vm800_vm0 = vweird.f32 %v6286_v56  ;;  %v832_v23 = vmul.f32 %v831_v60, %v5981_v57 }
 0x123   :  { %v6356_v48 = vmul.f32 0.5, %v6283_v46  ;;  %v805_v9 = vand.u32 2147483648, %v6265_v26  ;;  %v907_v51 = vadd.f32 0.014752088, %v906_v59  ;;  %v945_v58 = vadd.f32 0.001143296, %v944_v16 }
 0x124   :  { %v1216_v45 = vadd.f32 0.0036580483, %v1215_v49  ;;  %vm799_vm1 = vweird.f32 %v6265_v26  ;;  %v803_v3 = vand.u32 2147483647, %v6265_v26  ;;  %v6361_v53 = vadd.f32 1.0, %v832_v23 }
 0x125   :  { %v1139_v41 = vmul.f32 %v1138_v30, %v6195_v25  ;;  %v1255_v52 = vmul.f32 %v1254_v11, %v6319_v21  ;;  %vm6365_vm2 = vmor %vm799_vm1, %vm800_vm0  ;;  %v908_v46 = vmul.f32 %v907_v51, %v6003_v32  ;;  %v946_v39 = vmul.f32 %v945_v58, %v6037_v27  ;;  %v5525_v58 = vld [vmem:[#allocation3 + $0x68] sm:$0xff] }
 0x126   :  { %v1178_v36 = vadd.f32 0.05243302, %v1177_v29  ;;  %v1294_v55 = vadd.f32 0.00028619796, %v1293_v7  ;;  %v802_v26 = vsel %vm6365_vm2, %v6286_v56, %v798_v22  ;;  %5582 = vrcp.f32 %v6361_v53  ;;  %378 = vmatmul.bf16.gmra.mxu0 %v5525_v58  ;;  %467 = vmatmul.bf16.gmra.mxu1 %v5525_v58 }
 0x127   :  { %v5581_v38 = vpop.eup %5580  ;;  %v6376_v17 = vmul.f32 %v1062_v4, %v6083_v24  ;;  %v806_v33 = vor.u32 1.1754944e-38, %v805_v9  ;;  %v909_v42 = vadd.f32 0.112945676, %v908_v46  ;;  %v947_v28 = vadd.f32 0.014752088, %v946_v39  ;;  %v336_v39 = vpop.f32.mrf.mxu0 }
 0x128   :  { %v1101_v35 = vmul.f32 %v1100_v61, %v6165_v15  ;;  %v1217_v0 = vmul.f32 %v1216_v45, %v6292_v12  ;;  %vm804_vm3 = vcmp.eq.f32.partialorder %v803_v3, 8.507059e+37  ;;  %v875_v14 = vmul.f32 %v5581_v38, %v6344_v63 }
 0x129   :  { %v1256_v59 = vadd.f32 0.0036580483, %v1255_v52  ;;  %v807_v16 = vsel %vm804_vm3, %v806_v33, %v802_v26  ;;  %v910_v56 = vmul.f32 %v909_v42, %v6003_v32  ;;  %v948_v30 = vmul.f32 %v947_v28, %v6037_v27 }
 0x12a   :  { %v1140_v49 = vadd.f32 0.18741608, %v1139_v41  ;;  %v1295_v24 = vmul.f32 %v1294_v55, %v6337_v34  ;;  %v876_v4 = vsub.f32 1.0, %v875_v14  ;;  %v885_v60 = vand.u32 2147483648, %v6344_v63 }
 0x12b   :  { %v1179_v29 = vmul.f32 %v1178_v36, %v6247_v6  ;;  %v911_v61 = vadd.f32 0.4994258, %v910_v56  ;;  %v949_v11 = vadd.f32 0.112945676, %v948_v30  ;;  %v1024_v7 = vmul.f32 3.8918573e-05, %v6092_v44 }
 0x12c   :  { %v5583_v22 = vpop.eup %5582  ;;  %v808_v23 = vmul.f32 %v807_v16, %v6124_v10  ;;  %v877_v9 = vmul.f32 %v5581_v38, %v876_v4  ;;  %vm880_vm4 = vweird.f32 %v5581_v38  ;;  %v883_v51 = vand.u32 2147483647, %v6344_v63 }
 0x12d   :  { %v1218_v45 = vadd.f32 0.05243302, %v1217_v0  ;;  %v1257_v3 = vmul.f32 %v1256_v59, %v6319_v21  ;;  %v835_v41 = vmul.f32 %v5583_v22, %v6361_v53  ;;  %v912_v52 = vmul.f32 %v911_v61, %v6003_v32  ;;  %v425_v61 = vpop.f32.mrf.mxu1 }
 0x12e   :  { %v1296_v57 = vadd.f32 0.0036580483, %v1295_v24  ;;  %v878_v46 = vadd.f32 %v5581_v38, %v877_v9  ;;  %vm879_vm5 = vweird.f32 %v6344_v63  ;;  %v950_v10 = vmul.f32 %v949_v11, %v6037_v27 }
 0x12f   :  { %vm881_vm6 = vmor %vm879_vm5, %vm880_vm4  ;;  %v886_v36 = vor.u32 1.1754944e-38, %v885_v60  ;;  %v836_v55 = vsub.f32 1.0, %v835_v41  ;;  %v6394_v26 = vadd.f32 1.0, %v912_v52  ;;  %v1025_v33 = vadd.f32 0.001143296, %v1024_v7 }
 0x130   :  { %v5356_v42 = vclamps-f32 %v808_v23, 1.0  ;;  %v882_v28 = vsel %vm881_vm6, %v5581_v38, %v878_v46  ;;  %vm884_vm7 = vcmp.eq.f32.partialorder %v883_v51, 8.507059e+37  ;;  %v951_v0 = vadd.f32 0.4994258, %v950_v10 }
 0x131   :  { %v887_v32 = vsel %vm884_vm7, %v886_v36, %v882_v28  ;;  %v837_v14 = vmul.f32 %v5583_v22, %v836_v55  ;;  %vm840_vm8 = vweird.f32 %v5583_v22  ;;  %5584 = vrcp.f32 %v6394_v26 }
 0x132   :  { %v6398_v63 = vadd.f32 %v336_v39, %v5907_v2  ;;  %v888_v59 = vmul.f32 %v887_v32, %v6206_v20  ;;  %vm839_vm9 = vweird.f32 %v6361_v53  ;;  %v845_v16 = vand.u32 2147483648, %v6361_v53 }
 0x133   :  { %v838_v56 = vadd.f32 %v5583_v22, %v837_v14  ;;  %v843_v30 = vand.u32 2147483647, %v6361_v53  ;;  %v952_v38 = vmul.f32 %v951_v0, %v6037_v27  ;;  %v1026_v24 = vmul.f32 %v1025_v33, %v6092_v44  ;;  %vm6409_vm10 = vmor %vm839_vm9, %vm840_vm8 }
 0x134   :  { %v6406_v4 = vadd.f32 1.1283791, %v1101_v35  ;;  %v1180_v60 = vadd.f32 0.18741608, %v1179_v29  ;;  %v5358_v11 = vclamps-f32 %v888_v59, 1.0  ;;  %v3175_v7 = vadd.f32 1.0, %v5356_v42 }
 0x135   :  { %v1219_v23 = vmul.f32 %v1218_v45, %v6292_v12  ;;  %v1258_v9 = vadd.f32 0.05243302, %v1257_v3  ;;  %v842_v53 = vsel %vm6409_vm10, %v5583_v22, %v838_v56  ;;  %v984_v27 = vmul.f32 3.8918573e-05, %v6050_v50  ;;  %v428_v20 = vpop.f32.mrf.mxu1 }
 0x136   :  { %v1141_v35 = vmul.f32 %v1140_v49, %v6195_v25  ;;  %v6419_v29 = vmul.f32 0.70710677, %v6398_v63  ;;  %v3177_v51 = vadd.f32 1.0, %v5358_v11  ;;  %v846_v58 = vor.u32 1.1754944e-38, %v845_v16  ;;  %v339_v16 = vpop.f32.mrf.mxu0 }
 0x137   :  { %v5585_v41 = vpop.eup %5584  ;;  %v1297_v52 = vmul.f32 %v1296_v57, %v6337_v34  ;;  %vm844_vm11 = vcmp.eq.f32.partialorder %v843_v30, 8.507059e+37  ;;  %v6422_v46 = vadd.f32 1.0, %v952_v38  ;;  %v1027_v45 = vadd.f32 0.014752088, %v1026_v24 }
 0x138   :  { %v3239_v3 = vmul.f32 %v3175_v7, %v6072_v5  ;;  %v3241_v22 = vmul.f32 %v3177_v51, %v6089_v40  ;;  %v847_v10 = vsel %vm844_vm11, %v846_v58, %v842_v53  ;;  %v915_v39 = vmul.f32 %v5585_v41, %v6394_v26  ;;  %v10329_v5 = vld [vmem:[#allocation17_spill] sm:$0xff] }
 0x139   :  { %v1181_v49 = vmul.f32 %v1180_v60, %v6247_v6  ;;  %v1220_v36 = vadd.f32 0.18741608, %v1219_v23  ;;  %v1259_v55 = vmul.f32 %v1258_v9, %v6319_v21  ;;  %v985_v33 = vadd.f32 0.001143296, %v984_v27 }
 0x13a   :  { %v1331_v57 = vmul.f32 %v6419_v29, %v6419_v29  ;;  %v6432_v42 = vadd.f32 %v425_v61, %v5912_v8  ;;  %v3301_v28 = vpack.c.bf16 %v3241_v22, %v3239_v3  ;;  %v916_v0 = vsub.f32 1.0, %v915_v39 }
 0x13b   :  { %v848_v32 = vmul.f32 %v847_v10, %v10329_v5  ;;  %v925_v40 = vand.u32 2147483648, %v6394_v26  ;;  %5586 = vrcp.f32 %v6422_v46  ;;  %v1028_v14 = vmul.f32 %v1027_v45, %v6092_v44 }
 0x13c   :  { %v1298_v59 = vadd.f32 0.05243302, %v1297_v52  ;;  %3476 = vmatmul.bf16.gmra.mxu2 %v3301_v28  ;;  %v917_v56 = vmul.f32 %v5585_v41, %v916_v0  ;;  %vm920_vm12 = vweird.f32 %v5585_v41  ;;  %v923_v30 = vand.u32 2147483647, %v6394_v26 }
 0x13d   :  { %v1142_v38 = vadd.f32 1.1283791, %v1141_v35  ;;  %v1182_v24 = vadd.f32 1.1283791, %v1181_v49  ;;  %v1221_v60 = vmul.f32 %v1220_v36, %v6292_v12  ;;  %v986_v61 = vmul.f32 %v985_v33, %v6050_v50  ;;  %v10330_v36 = vld [vmem:[#allocation22_spill] sm:$0xff]  ;;  %v10331_v33 = vld [vmem:[#allocation16_spill] sm:$0xff] }
 0x13e   :  { %v6441_v11 = vmin.f32 %v1331_v57, 16.0  ;;  %v6444_v7 = vmul.f32 0.70710677, %v6432_v42  ;;  %v918_v23 = vadd.f32 %v5585_v41, %v917_v56  ;;  %vm919_vm13 = vweird.f32 %v6394_v26 }
 0x13f   :  { %v6448_v9 = vadd.f32 %v339_v16, %v5907_v2  ;;  %v5357_v53 = vclamps-f32 %v848_v32, 1.0  ;;  %vm921_vm14 = vmor %vm919_vm13, %vm920_vm12  ;;  %v926_v27 = vor.u32 1.1754944e-38, %v925_v40  ;;  %v1029_v35 = vadd.f32 0.112945676, %v1028_v14 }
 0x140   :  { %v1260_v51 = vadd.f32 0.18741608, %v1259_v55  ;;  %v1299_v58 = vmul.f32 %v1298_v59, %v6337_v34  ;;  %v922_v52 = vsel %vm921_vm14, %v5585_v41, %v918_v23  ;;  %vm924_vm15 = vcmp.eq.f32.partialorder %v923_v30, 8.507059e+37 }
 0x141   :  { %v6451_v45 = vpop.eup %5586  ;;  %v6454_v3 = vadd.f32 %v428_v20, %v5912_v8  ;;  %v927_v22 = vsel %vm924_vm15, %v926_v27, %v922_v52  ;;  %v1030_v26 = vmul.f32 %v1029_v35, %v6092_v44  ;;  %v987_v10 = vadd.f32 0.014752088, %v986_v61  ;;  %v10332_v35 = vld [vmem:[#allocation10_spill] sm:$0xff] }
 0x142   :  { %v1333_v39 = vmul.f32 2.1237322e-06, %v6441_v11  ;;  %v1371_v49 = vmul.f32 %v6444_v7, %v6444_v7  ;;  %v928_v55 = vmul.f32 %v927_v22, %v10330_v36  ;;  %v955_v41 = vmul.f32 %v6451_v45, %v6422_v46  ;;  %v10333_v22 = vld [vmem:[#allocation11_spill] sm:$0xff] }
 0x143   :  { %v6465_v57 = vmul.f32 %v6406_v4, %v10331_v33  ;;  %v6468_v28 = vmul.f32 0.70710677, %v6448_v9  ;;  %v3176_v0 = vadd.f32 1.0, %v5357_v53  ;;  %v1031_v5 = vadd.f32 0.4994258, %v1030_v26  ;;  %v10334_v33 = vld [vmem:[#allocation19_spill] sm:$0xff] }
 0x144   :  { %v1222_v32 = vadd.f32 1.1283791, %v1221_v60  ;;  %v1261_v40 = vmul.f32 %v1260_v51, %v6319_v21  ;;  %v5359_v14 = vclamps-f32 %v928_v55, 1.0  ;;  %v956_v59 = vsub.f32 1.0, %v955_v41 }
 0x145   :  { %v6472_v16 = vmul.f32 0.70710677, %v6454_v3  ;;  %v1032_v56 = vmul.f32 %v1031_v5, %v6092_v44  ;;  %v988_v30 = vmul.f32 %v987_v10, %v6050_v50  ;;  %v1064_v4 = vmul.f32 3.8918573e-05, %v6131_v18  ;;  %v10335_v5 = vld [vmem:[#allocation21_spill] sm:$0xff] }
 0x146   :  { %v1300_v61 = vadd.f32 0.18741608, %v1299_v58  ;;  %v6477_v20 = vmin.f32 %v1371_v49, 16.0  ;;  %v3178_v23 = vadd.f32 1.0, %v5359_v14  ;;  %v957_v53 = vmul.f32 %v6451_v45, %v956_v59 }
 0x147   :  { %v1334_v60 = vadd.f32 0.00028619796, %v1333_v39  ;;  %v1411_v27 = vmul.f32 %v6468_v28, %v6468_v28  ;;  %v3240_v51 = vmul.f32 %v3176_v0, %v10332_v35  ;;  %v6483_v52 = vadd.f32 1.0, %v1032_v56 }
 0x148   :  { %v3242_v44 = vmul.f32 %v3178_v23, %v10333_v22  ;;  %v958_v26 = vadd.f32 %v6451_v45, %v957_v53  ;;  %vm960_vm0 = vweird.f32 %v6451_v45  ;;  %v989_v58 = vadd.f32 0.112945676, %v988_v30 }
 0x149   :  { %v1451_v10 = vmul.f32 %v6472_v16, %v6472_v16  ;;  %v965_v49 = vand.u32 2147483648, %v6422_v46  ;;  %5588 = vrcp.f32 %v6483_v52  ;;  %v1065_v39 = vadd.f32 0.001143296, %v1064_v4 }
 0x14a   :  { %v1373_v36 = vmul.f32 2.1237322e-06, %v6477_v20  ;;  %v3302_v55 = vpack.c.bf16 %v3242_v44, %v3240_v51  ;;  %vm959_vm1 = vweird.f32 %v6422_v46  ;;  %v963_v41 = vand.u32 2147483647, %v6422_v46 }
 0x14b   :  { %v6496_v0 = vmul.f32 %v1142_v38, %v10334_v33  ;;  %v6499_v14 = vmul.f32 %v1182_v24, %v10335_v5  ;;  %v1262_v59 = vadd.f32 1.1283791, %v1261_v40  ;;  %v1301_v56 = vmul.f32 %v1300_v61, %v6337_v34  ;;  %vm6502_vm2 = vmor %vm959_vm1, %vm960_vm0 }
 0x14c   :  { %v1335_v4 = vmul.f32 %v1334_v60, %v6441_v11  ;;  %v6507_v23 = vmin.f32 %v1411_v27, 16.0  ;;  %3565 = vmatmul.bf16.gmra.mxu3 %v3302_v55  ;;  %v962_v46 = vsel %vm6502_vm2, %v6451_v45, %v958_v26  ;;  %v990_v38 = vmul.f32 %v989_v58, %v6050_v50 }
 0x14d   :  { %v6513_v24 = vmin.f32 %v1451_v10, 16.0  ;;  %v966_v40 = vor.u32 1.1754944e-38, %v965_v49  ;;  %v1066_v61 = vmul.f32 %v1065_v39, %v6131_v18  ;;  %v1104_v53 = vmul.f32 3.8918573e-05, %v6165_v15 }
 0x14e   :  { %v6518_v35 = vmul.f32 %v1222_v32, %v6250_v54  ;;  %v1374_v60 = vadd.f32 0.00028619796, %v1373_v36  ;;  %vm964_vm3 = vcmp.eq.f32.partialorder %v963_v41, 8.507059e+37  ;;  %v991_v27 = vadd.f32 0.4994258, %v990_v38 }
 0x14f   :  { %v5589_v51 = vpop.eup %5588  ;;  %v6521_v22 = vmul.f32 %v1262_v59, %v6279_v31  ;;  %v967_v45 = vsel %vm964_vm3, %v966_v40, %v962_v46  ;;  %v1067_v44 = vadd.f32 0.014752088, %v1066_v61  ;;  %v1105_v26 = vadd.f32 0.001143296, %v1104_v53 }
 0x150   :  { %v1302_v58 = vadd.f32 1.1283791, %v1301_v56  ;;  %v1336_v10 = vadd.f32 0.0036580483, %v1335_v4  ;;  %v1413_v49 = vmul.f32 2.1237322e-06, %v6507_v23  ;;  %v1035_v39 = vmul.f32 %v5589_v51, %v6483_v52 }
 0x151   :  { %v1453_v55 = vmul.f32 2.1237322e-06, %v6513_v24  ;;  %v992_v54 = vmul.f32 %v991_v27, %v6050_v50  ;;  %v1068_v32 = vmul.f32 %v1067_v44, %v6131_v18  ;;  %v1106_v36 = vmul.f32 %v1105_v26, %v6165_v15  ;;  %v341_v44 = vpop.f32.mrf.mxu0 }
 0x152   :  { %v1375_v31 = vmul.f32 %v1374_v60, %v6477_v20  ;;  %v968_v41 = vmul.f32 %v967_v45, %v6316_v62  ;;  %v1036_v33 = vsub.f32 1.0, %v1035_v39  ;;  %v1184_v5 = vmul.f32 3.8918573e-05, %v6247_v6 }
 0x153   :  { %v1045_v59 = vand.u32 2147483648, %v6483_v52  ;;  %v6533_v56 = vadd.f32 1.0, %v992_v54  ;;  %v1069_v30 = vadd.f32 0.112945676, %v1068_v32  ;;  %v1107_v4 = vadd.f32 0.014752088, %v1106_v36  ;;  %v430_v32 = vpop.f32.mrf.mxu1 }
 0x154   :  { %v1037_v46 = vmul.f32 %v5589_v51, %v1036_v33  ;;  %vm1040_vm4 = vweird.f32 %v5589_v51  ;;  %v1043_v50 = vand.u32 2147483647, %v6483_v52  ;;  %v1185_v38 = vadd.f32 0.001143296, %v1184_v5 }
 0x155   :  { %v1337_v40 = vmul.f32 %v1336_v10, %v6441_v11  ;;  %v1414_v61 = vadd.f32 0.00028619796, %v1413_v49  ;;  %v1454_v53 = vadd.f32 0.00028619796, %v1453_v55  ;;  %5590 = vrcp.f32 %v6533_v56 }
 0x156   :  { %v1038_v62 = vadd.f32 %v5589_v51, %v1037_v46  ;;  %vm1039_vm5 = vweird.f32 %v6483_v52  ;;  %v1070_v60 = vmul.f32 %v1069_v30, %v6131_v18  ;;  %v1108_v27 = vmul.f32 %v1107_v4, %v6165_v15  ;;  %v5526_v30 = vld [vmem:[#allocation3 + $0x70] sm:$0xff] }
 0x157   :  { %v1376_v45 = vadd.f32 0.0036580483, %v1375_v31  ;;  %v5360_v26 = vclamps-f32 %v968_v41, 1.0  ;;  %vm1041_vm6 = vmor %vm1039_vm5, %vm1040_vm4  ;;  %v1046_v39 = vor.u32 1.1754944e-38, %v1045_v59  ;;  %v1186_v54 = vmul.f32 %v1185_v38, %v6247_v6  ;;  %383 = vmatmul.bf16.gmra.mxu0 %v5526_v30  ;;  %472 = vmatmul.bf16.gmra.mxu1 %v5526_v30 }
 0x158   :  { %v1042_v10 = vsel %vm1041_vm6, %v5589_v51, %v1038_v62  ;;  %vm1044_vm7 = vcmp.eq.f32.partialorder %v1043_v50, 8.507059e+37  ;;  %v1071_v49 = vadd.f32 0.4994258, %v1070_v60  ;;  %v1109_v55 = vadd.f32 0.112945676, %v1108_v27 }
 0x159   :  { %v1338_v36 = vadd.f32 0.05243302, %v1337_v40  ;;  %v1415_v33 = vmul.f32 %v1414_v61, %v6507_v23  ;;  %v1455_v52 = vmul.f32 %v1454_v53, %v6513_v24  ;;  %v1047_v5 = vsel %vm1044_vm7, %v1046_v39, %v1042_v10  ;;  %v10338_v39 = vld [vmem:[#allocation12_spill] sm:$0xff] }
 0x15a   :  { %v6545_v31 = vmul.f32 %v1302_v58, %v6304_v37  ;;  %v6548_v41 = vadd.f32 %v341_v44, %v5907_v2  ;;  %v1048_v59 = vmul.f32 %v1047_v5, %v6342_v19  ;;  %v1072_v51 = vmul.f32 %v1071_v49, %v6131_v18  ;;  %v10339_v49 = vld [vmem:[#allocation14_spill] sm:$0xff] }
 0x15b   :  { %v5591_v4 = vpop.eup %5590  ;;  %v6553_v46 = vmul.f32 0.5, %v6398_v63  ;;  %v6556_v50 = vadd.f32 %v430_v32, %v5912_v8  ;;  %v3179_v38 = vadd.f32 1.0, %v5360_v26  ;;  %v1187_v40 = vadd.f32 0.014752088, %v1186_v54 }
 0x15c   :  { %v5362_v37 = vclamps-f32 %v1048_v59, 1.0  ;;  %v995_v58 = vmul.f32 %v5591_v4, %v6533_v56  ;;  %v6559_v61 = vadd.f32 1.0, %v1072_v51  ;;  %v1110_v19 = vmul.f32 %v1109_v55, %v6165_v15 }
 0x15d   :  { %v1339_v18 = vmul.f32 %v1338_v36, %v6441_v11  ;;  %v1377_v53 = vmul.f32 %v1376_v45, %v6477_v20  ;;  %v1416_v63 = vadd.f32 0.0036580483, %v1415_v33  ;;  %v1456_v62 = vadd.f32 0.0036580483, %v1455_v52 }
 0x15e   :  { %v6565_v60 = vmul.f32 0.70710677, %v6548_v41  ;;  %v3181_v27 = vadd.f32 1.0, %v5362_v37  ;;  %v996_v44 = vsub.f32 1.0, %v995_v58  ;;  %5592 = vrcp.f32 %v6559_v61 }
 0x15f   :  { %v6569_v26 = vmul.f32 0.70710677, %v6556_v50  ;;  %v3243_v54 = vmul.f32 %v3179_v38, %v10338_v39  ;;  %v1005_v32 = vand.u32 2147483648, %v6533_v56  ;;  %v1188_v10 = vmul.f32 %v1187_v40, %v6247_v6 }
 0x160   :  { %v3245_v45 = vmul.f32 %v3181_v27, %v10339_v49  ;;  %v997_v55 = vmul.f32 %v5591_v4, %v996_v44  ;;  %vm1000_vm8 = vweird.f32 %v5591_v4  ;;  %v1111_v36 = vadd.f32 0.4994258, %v1110_v19 }
 0x161   :  { %v1340_v33 = vadd.f32 0.18741608, %v1339_v18  ;;  %v1378_v52 = vadd.f32 0.05243302, %v1377_v53  ;;  %v1417_v5 = vmul.f32 %v1416_v63, %v6507_v23  ;;  %v1003_v30 = vand.u32 2147483647, %v6533_v56 }
 0x162   :  { %v1457_v59 = vmul.f32 %v1456_v62, %v6513_v24  ;;  %v3303_v51 = vpack.c.bf16 %v3245_v45, %v3243_v54  ;;  %v998_v37 = vadd.f32 %v5591_v4, %v997_v55  ;;  %vm999_vm9 = vweird.f32 %v6533_v56  ;;  %v344_v55 = vpop.f32.mrf.mxu0 }
 0x163   :  { %v6580_v38 = vmul.f32 0.5, %v6432_v42  ;;  %v1491_v40 = vmul.f32 %v6565_v60, %v6565_v60  ;;  %vm6584_vm10 = vmor %vm999_vm9, %vm1000_vm8  ;;  %v1112_v19 = vmul.f32 %v1111_v36, %v6165_v15  ;;  %v1189_v18 = vadd.f32 0.112945676, %v1188_v10 }
 0x164   :  { %v5593_v53 = vpop.eup %5592  ;;  %v1531_v63 = vmul.f32 %v6569_v26, %v6569_v26  ;;  %3481 = vmatmul.bf16.gmra.mxu2 %v3303_v51  ;;  %v1002_v56 = vsel %vm6584_vm10, %v5591_v4, %v998_v37  ;;  %v1006_v42 = vor.u32 1.1754944e-38, %v1005_v32  ;;  %v1144_v62 = vmul.f32 3.8918573e-05, %v6195_v25 }
 0x165   :  { %10340 = vst [vmem:[#allocation17_spill] sm:$0xff] %v6580_v38  ;;  %v1379_v27 = vmul.f32 %v1378_v52, %v6477_v20  ;;  %v6596_v44 = vmul.f32 0.5, %v6448_v9  ;;  %vm1004_vm11 = vcmp.eq.f32.partialorder %v1003_v30, 8.507059e+37  ;;  %v1075_v15 = vmul.f32 %v5593_v53, %v6559_v61 }
 0x166   :  { %v1341_v39 = vmul.f32 %v1340_v33, %v6441_v11  ;;  %v1418_v54 = vadd.f32 0.05243302, %v1417_v5  ;;  %v1458_v10 = vadd.f32 0.05243302, %v1457_v59  ;;  %v1007_v49 = vsel %vm1004_vm11, %v1006_v42, %v1002_v56 }
 0x167   :  { %10343 = vst [vmem:[#allocation22_spill] sm:$0xff] %v6596_v44  ;;  %v6600_v45 = vmin.f32 %v1491_v40, 16.0  ;;  %v1076_v4 = vsub.f32 1.0, %v1075_v15  ;;  %v6602_v32 = vadd.f32 1.0, %v1112_v19  ;;  %v1190_v36 = vmul.f32 %v1189_v18, %v6247_v6 }
 0x168   :  { %v6605_v52 = vmin.f32 %v1531_v63, 16.0  ;;  %v1083_v9 = vand.u32 2147483647, %v6559_v61  ;;  %v1085_v30 = vand.u32 2147483648, %v6559_v61  ;;  %v1145_v51 = vadd.f32 0.001143296, %v1144_v62  ;;  %v433_v62 = vpop.f32.mrf.mxu1 }
 0x169   :  { %v1008_v33 = vmul.f32 %v1007_v49, %v6327_v13  ;;  %v1077_v5 = vmul.f32 %v5593_v53, %v1076_v4  ;;  %vm1080_vm12 = vweird.f32 %v5593_v53  ;;  %5594 = vrcp.f32 %v6602_v32 }
 0x16a   :  { %v1380_v59 = vadd.f32 0.18741608, %v1379_v27  ;;  %v1419_v37 = vmul.f32 %v1418_v54, %v6507_v23  ;;  %v1459_v40 = vmul.f32 %v1458_v10, %v6513_v24  ;;  %v6614_v58 = vadd.f32 %v344_v55, %v5907_v2 }
 0x16b   :  { %v1493_v19 = vmul.f32 2.1237322e-06, %v6600_v45  ;;  %v1078_v18 = vadd.f32 %v5593_v53, %v1077_v5  ;;  %vm1079_vm13 = vweird.f32 %v6559_v61  ;;  %v1191_v63 = vadd.f32 0.4994258, %v1190_v36 }
 0x16c   :  { %v1342_v56 = vadd.f32 1.1283791, %v1341_v39  ;;  %v6619_v13 = vmul.f32 0.5, %v6454_v3  ;;  %v1533_v42 = vmul.f32 2.1237322e-06, %v6605_v52  ;;  %vm1081_vm14 = vmor %vm1079_vm13, %vm1080_vm12  ;;  %v1086_v27 = vor.u32 1.1754944e-38, %v1085_v30 }
 0x16d   :  { %v5361_v15 = vclamps-f32 %v1008_v33, 1.0  ;;  %v1082_v54 = vsel %vm1081_vm14, %v5593_v53, %v1078_v18  ;;  %vm1084_vm15 = vcmp.eq.f32.partialorder %v1083_v9, 8.507059e+37  ;;  %v1146_v10 = vmul.f32 %v1145_v51, %v6195_v25 }
 0x16e   :  { %10344 = vst [vmem:[#allocation16_spill] sm:$0xff] %v6619_v13  ;;  %v1420_v49 = vadd.f32 0.18741608, %v1419_v37  ;;  %v1460_v55 = vadd.f32 0.18741608, %v1459_v40  ;;  %v1087_v61 = vsel %vm1084_vm15, %v1086_v27, %v1082_v54  ;;  %v6627_v3 = vadd.f32 %v433_v62, %v5912_v8 }
 0x16f   :  { %v6624_v4 = vmul.f32 0.70710677, %v6614_v58  ;;  %v5595_v39 = vpop.eup %5594  ;;  %v1494_v36 = vadd.f32 0.00028619796, %v1493_v19  ;;  %v1088_v5 = vmul.f32 %v1087_v61, %v6376_v17  ;;  %v1192_v30 = vmul.f32 %v1191_v63, %v6247_v6 }
 0x170   :  { %v1381_v53 = vmul.f32 %v1380_v59, %v6477_v20  ;;  %v1534_v9 = vadd.f32 0.00028619796, %v1533_v42  ;;  %v1115_v51 = vmul.f32 %v5595_v39, %v6602_v32  ;;  %v1224_v33 = vmul.f32 3.8918573e-05, %v6292_v12 }
 0x171   :  { %v5363_v37 = vclamps-f32 %v1088_v5, 1.0  ;;  %v3180_v40 = vadd.f32 1.0, %v5361_v15  ;;  %v6634_v18 = vadd.f32 1.0, %v1192_v30  ;;  %v1147_v27 = vadd.f32 0.014752088, %v1146_v10 }
 0x172   :  { %v1421_v19 = vmul.f32 %v1420_v49, %v6507_v23  ;;  %v1461_v62 = vmul.f32 %v1460_v55, %v6513_v24  ;;  %v1571_v17 = vmul.f32 %v6624_v4, %v6624_v4  ;;  %v1116_v6 = vsub.f32 1.0, %v1115_v51  ;;  %v10345_v49 = vld [vmem:[#allocation13_spill] sm:$0xff]  ;;  %v10346_v55 = vld [vmem:[#allocation15_spill] sm:$0xff] }
 0x173   :  { %v1495_v59 = vmul.f32 %v1494_v36, %v6600_v45  ;;  %v6642_v63 = vmul.f32 0.70710677, %v6627_v3  ;;  %v3182_v42 = vadd.f32 1.0, %v5363_v37  ;;  %5596 = vrcp.f32 %v6634_v18 }
 0x174   :  { %v1535_v15 = vmul.f32 %v1534_v9, %v6605_v52  ;;  %v1117_v54 = vmul.f32 %v5595_v39, %v1116_v6  ;;  %vm1120_vm0 = vweird.f32 %v5595_v39  ;;  %v1225_v10 = vadd.f32 0.001143296, %v1224_v33 }
 0x175   :  { %v3244_v61 = vmul.f32 %v3180_v40, %v10345_v49  ;;  %v3246_v5 = vmul.f32 %v3182_v42, %v10346_v55  ;;  %v1125_v30 = vand.u32 2147483648, %v6602_v32  ;;  %v1148_v51 = vmul.f32 %v1147_v27, %v6195_v25 }
 0x176   :  { %v6650_v36 = vmin.f32 %v1571_v17, 16.0  ;;  %v1118_v13 = vadd.f32 %v5595_v39, %v1117_v54  ;;  %vm1119_vm1 = vweird.f32 %v6602_v32  ;;  %v1123_v37 = vand.u32 2147483647, %v6602_v32 }
 0x177   :  { %v6655_v9 = vmul.f32 %v1342_v56, %v6419_v29  ;;  %v1382_v6 = vadd.f32 1.1283791, %v1381_v53  ;;  %v1422_v33 = vadd.f32 1.1283791, %v1421_v19  ;;  %v3304_v44 = vpack.c.bf16 %v3246_v5, %v3244_v61  ;;  %vm6657_vm2 = vmor %vm1119_vm1, %vm1120_vm0 }
 0x178   :  { %v1462_v42 = vadd.f32 1.1283791, %v1461_v62  ;;  %v1496_v49 = vadd.f32 0.0036580483, %v1495_v59  ;;  %v1611_v27 = vmul.f32 %v6642_v63, %v6642_v63  ;;  %v1122_v17 = vsel %vm6657_vm2, %v5595_v39, %v1118_v13 }
 0x179   :  { %v5597_v54 = vpop.eup %5596  ;;  %3570 = vmatmul.bf16.gmra.mxu3 %v3304_v44  ;;  %v1126_v32 = vor.u32 1.1754944e-38, %v1125_v30  ;;  %v1149_v29 = vadd.f32 0.112945676, %v1148_v51  ;;  %v1226_v56 = vmul.f32 %v1225_v10, %v6292_v12  ;;  %v1264_v53 = vmul.f32 3.8918573e-05, %v6319_v21 }
 0x17a   :  { %v1536_v19 = vadd.f32 0.0036580483, %v1535_v15  ;;  %v1573_v61 = vmul.f32 2.1237322e-06, %v6650_v36  ;;  %vm1124_vm3 = vcmp.eq.f32.partialorder %v1123_v37, 8.507059e+37  ;;  %v1195_v62 = vmul.f32 %v5597_v54, %v6634_v18 }
 0x17b   :  { %v1127_v59 = vsel %vm1124_vm3, %v1126_v32, %v1122_v17  ;;  %v1150_v55 = vmul.f32 %v1149_v29, %v6195_v25  ;;  %v1227_v5 = vadd.f32 0.014752088, %v1226_v56  ;;  %v1265_v40 = vadd.f32 0.001143296, %v1264_v53 }
 0x17c   :  { %v1497_v13 = vmul.f32 %v1496_v49, %v6600_v45  ;;  %v6671_v44 = vmin.f32 %v1611_v27, 16.0  ;;  %v1196_v39 = vsub.f32 1.0, %v1195_v62  ;;  %v1205_v10 = vand.u32 2147483648, %v6634_v18 }
 0x17d   :  { %v1151_v30 = vadd.f32 0.4994258, %v1150_v55  ;;  %v1228_v15 = vmul.f32 %v1227_v5, %v6292_v12  ;;  %v1266_v51 = vmul.f32 %v1265_v40, %v6319_v21  ;;  %v1344_v37 = vmul.f32 3.8918573e-05, %v6441_v11 }
 0x17e   :  { %v1128_v17 = vmul.f32 %v1127_v59, %v6465_v57  ;;  %v1197_v32 = vmul.f32 %v5597_v54, %v1196_v39  ;;  %vm1200_vm4 = vweird.f32 %v5597_v54  ;;  %v1203_v29 = vand.u32 2147483647, %v6634_v18 }
 0x17f   :  { %v1574_v56 = vadd.f32 0.00028619796, %v1573_v61  ;;  %v1152_v49 = vmul.f32 %v1151_v30, %v6195_v25  ;;  %v1229_v27 = vadd.f32 0.112945676, %v1228_v15  ;;  %v1267_v53 = vadd.f32 0.014752088, %v1266_v51  ;;  %v346_v51 = vpop.f32.mrf.mxu0 }
 0x180   :  { %v1613_v62 = vmul.f32 2.1237322e-06, %v6671_v44  ;;  %v1198_v55 = vadd.f32 %v5597_v54, %v1197_v32  ;;  %vm1199_vm5 = vweird.f32 %v6634_v18  ;;  %v1206_v5 = vor.u32 1.1754944e-38, %v1205_v10 }
 0x181   :  { %vm1201_vm6 = vmor %vm1199_vm5, %vm1200_vm4  ;;  %v6682_v40 = vadd.f32 1.0, %v1152_v49  ;;  %v1230_v57 = vmul.f32 %v1229_v27, %v6292_v12  ;;  %v1268_v59 = vmul.f32 %v1267_v53, %v6319_v21  ;;  %v1345_v39 = vadd.f32 0.001143296, %v1344_v37 }
 0x182   :  { %v1537_v61 = vmul.f32 %v1536_v19, %v6605_v52  ;;  %v5364_v38 = vclamps-f32 %v1128_v17, 1.0  ;;  %v1202_v25 = vsel %vm1201_vm6, %v5597_v54, %v1198_v55  ;;  %vm1204_vm7 = vcmp.eq.f32.partialorder %v1203_v29, 8.507059e+37  ;;  %v435_v29 = vpop.f32.mrf.mxu1 }
 0x183   :  { %v1498_v30 = vadd.f32 0.05243302, %v1497_v13  ;;  %v1575_v15 = vmul.f32 %v1574_v56, %v6650_v36  ;;  %v1207_v32 = vsel %vm1204_vm7, %v1206_v5, %v1202_v25  ;;  %5598 = vrcp.f32 %v6682_v40  ;;  %v5527_v13 = vld [vmem:[#allocation3 + $0x78] sm:$0xff] }
 0x184   :  { %v1614_v18 = vadd.f32 0.00028619796, %v1613_v62  ;;  %v1208_v10 = vmul.f32 %v1207_v32, %v6499_v14  ;;  %v1231_v49 = vadd.f32 0.4994258, %v1230_v57  ;;  %v1269_v27 = vadd.f32 0.112945676, %v1268_v59  ;;  %388 = vmatmul.bf16.gmra.mxu0 %v5527_v13  ;;  %477 = vmatmul.bf16.gmra.mxu1 %v5527_v13 }
 0x185   :  { %v6691_v53 = vmul.f32 %v1382_v6, %v6444_v7  ;;  %v6694_v19 = vmul.f32 %v1422_v33, %v6468_v28  ;;  %v6697_v54 = vmul.f32 %v1462_v42, %v6472_v16  ;;  %v1346_v37 = vmul.f32 %v1345_v39, %v6441_v11  ;;  %v10350_v39 = vld [vmem:[#allocation18_spill] sm:$0xff] }
 0x186   :  { %v6701_v17 = vmul.f32 0.5, %v6548_v41  ;;  %v5366_v56 = vclamps-f32 %v1208_v10, 1.0  ;;  %v3183_v14 = vadd.f32 1.0, %v5364_v38  ;;  %v1232_v62 = vmul.f32 %v1231_v49, %v6292_v12 }
 0x187   :  { %10349 = vst [vmem:[#allocation10_spill] sm:$0xff] %v6697_v54  ;;  %v1499_v7 = vmul.f32 %v1498_v30, %v6600_v45  ;;  %v1538_v6 = vadd.f32 0.05243302, %v1537_v61  ;;  %v1576_v55 = vadd.f32 0.0036580483, %v1575_v15  ;;  %v1270_v28 = vmul.f32 %v1269_v27, %v6319_v21 }
 0x188   :  { %v1615_v16 = vmul.f32 %v1614_v18, %v6671_v44  ;;  %v3185_v33 = vadd.f32 1.0, %v5366_v56  ;;  %v6707_v42 = vadd.f32 1.0, %v1232_v62  ;;  %v1304_v41 = vmul.f32 3.8918573e-05, %v6337_v34 }
 0x189   :  { %v5599_v5 = vpop.eup %5598  ;;  %v6711_v38 = vadd.f32 %v346_v51, %v5907_v2  ;;  %v6714_v12 = vadd.f32 %v435_v29, %v5912_v8  ;;  %v1271_v57 = vadd.f32 0.4994258, %v1270_v28  ;;  %v1347_v59 = vadd.f32 0.014752088, %v1346_v37  ;;  %v349_v29 = vpop.f32.mrf.mxu0 }
 0x18a   :  { %v3247_v61 = vmul.f32 %v3183_v14, %v10350_v39  ;;  %v3249_v25 = vmul.f32 %v3185_v33, %v6295_v47  ;;  %v1155_v30 = vmul.f32 %v5599_v5, %v6682_v40  ;;  %5600 = vrcp.f32 %v6707_v42 }
 0x18b   :  { %v1500_v15 = vadd.f32 0.18741608, %v1499_v7  ;;  %v6721_v32 = vmul.f32 0.5, %v6556_v50  ;;  %v1539_v51 = vmul.f32 %v1538_v6, %v6605_v52  ;;  %v1577_v18 = vmul.f32 %v1576_v55, %v6650_v36 }
 0x18c   :  { %v3305_v10 = vpack.c.bf16 %v3249_v25, %v3247_v61  ;;  %v1156_v49 = vsub.f32 1.0, %v1155_v30  ;;  %v1272_v27 = vmul.f32 %v1271_v57, %v6319_v21  ;;  %v1305_v13 = vadd.f32 0.001143296, %v1304_v41  ;;  %v438_v41 = vpop.f32.mrf.mxu1 }
 0x18d   :  { %10351 = vst [vmem:[#allocation11_spill] sm:$0xff] %v6721_v32  ;;  %v1616_v37 = vadd.f32 0.0036580483, %v1615_v16  ;;  %v6727_v47 = vmul.f32 0.70710677, %v6711_v38  ;;  %v1165_v56 = vand.u32 2147483648, %v6682_v40  ;;  %v1348_v14 = vmul.f32 %v1347_v59, %v6441_v11 }
 0x18e   :  { %v6732_v50 = vmul.f32 0.70710677, %v6714_v12  ;;  %3486 = vmatmul.bf16.gmra.mxu2 %v3305_v10  ;;  %v1157_v62 = vmul.f32 %v5599_v5, %v1156_v49  ;;  %vm1160_vm8 = vweird.f32 %v5599_v5  ;;  %v1163_v7 = vand.u32 2147483647, %v6682_v40 }
 0x18f   :  { %v1540_v6 = vadd.f32 0.18741608, %v1539_v51  ;;  %v6736_v21 = vmul.f32 0.5, %v6614_v58  ;;  %v1578_v55 = vadd.f32 0.05243302, %v1577_v18  ;;  %v6738_v28 = vadd.f32 1.0, %v1272_v27 }
 0x190   :  { %v5601_v16 = vpop.eup %5600  ;;  %v6741_v33 = vadd.f32 %v349_v29, %v5907_v2  ;;  %v1158_v57 = vadd.f32 %v5599_v5, %v1157_v62  ;;  %vm1159_vm9 = vweird.f32 %v6682_v40  ;;  %v1306_v59 = vmul.f32 %v1305_v13, %v6337_v34 }
 0x191   :  { %10352 = vst [vmem:[#allocation19_spill] sm:$0xff] %v6736_v21  ;;  %v1617_v39 = vmul.f32 %v1616_v37, %v6671_v44  ;;  %vm1161_vm10 = vmor %vm1159_vm9, %vm1160_vm8  ;;  %v1166_v61 = vor.u32 1.1754944e-38, %v1165_v56  ;;  %v1235_v58 = vmul.f32 %v5601_v16, %v6707_v42  ;;  %v1349_v25 = vadd.f32 0.112945676, %v1348_v14 }
 0x192   :  { %v1651_v30 = vmul.f32 %v6727_v47, %v6727_v47  ;;  %v1691_v51 = vmul.f32 %v6732_v50, %v6732_v50  ;;  %v1162_v18 = vsel %vm1161_vm10, %v5599_v5, %v1158_v57  ;;  %vm1164_vm11 = vcmp.eq.f32.partialorder %v1163_v7, 8.507059e+37 }
 0x193   :  { %v6752_v10 = vadd.f32 %v438_v41, %v5912_v8  ;;  %v1167_v40 = vsel %vm1164_vm11, %v1166_v61, %v1162_v18  ;;  %v1236_v49 = vsub.f32 1.0, %v1235_v58  ;;  %5602 = vrcp.f32 %v6738_v28 }
 0x194   :  { %v6756_v27 = vmul.f32 0.70710677, %v6741_v33  ;;  %v1168_v13 = vmul.f32 %v1167_v40, %v6496_v0  ;;  %v1245_v37 = vand.u32 2147483648, %v6707_v42  ;;  %v1307_v29 = vadd.f32 0.014752088, %v1306_v59 }
 0x195   :  { %v1237_v56 = vmul.f32 %v5601_v16, %v1236_v49  ;;  %vm1240_vm12 = vweird.f32 %v5601_v16  ;;  %v1243_v5 = vand.u32 2147483647, %v6707_v42  ;;  %v1350_v14 = vmul.f32 %v1349_v25, %v6441_v11 }
 0x196   :  { %v1501_v62 = vmul.f32 %v1500_v15, %v6600_v45  ;;  %v1541_v7 = vmul.f32 %v1540_v6, %v6605_v52  ;;  %v1579_v41 = vmul.f32 %v1578_v55, %v6650_v36  ;;  %v6765_v57 = vmin.f32 %v1651_v30, 16.0 }
 0x197   :  { %v1618_v61 = vadd.f32 0.05243302, %v1617_v39  ;;  %v6768_v0 = vmul.f32 0.70710677, %v6752_v10  ;;  %v1238_v58 = vadd.f32 %v5601_v16, %v1237_v56  ;;  %vm1239_vm13 = vweird.f32 %v6707_v42 }
 0x198   :  { %v6771_v59 = vmin.f32 %v1691_v51, 16.0  ;;  %v1731_v25 = vmul.f32 %v6756_v27, %v6756_v27  ;;  %v5365_v18 = vclamps-f32 %v1168_v13, 1.0  ;;  %vm1241_vm14 = vmor %vm1239_vm13, %vm1240_vm12  ;;  %v1246_v15 = vor.u32 1.1754944e-38, %v1245_v37 }
 0x199   :  { %10353 = vst [vmem:[#allocation21_spill] sm:$0xff] %v6768_v0  ;;  %v6775_v6 = vpop.eup %5602  ;;  %v1242_v55 = vsel %vm1241_vm14, %v5601_v16, %v1238_v58  ;;  %vm1244_vm15 = vcmp.eq.f32.partialorder %v1243_v5, 8.507059e+37  ;;  %v1351_v30 = vadd.f32 0.4994258, %v1350_v14  ;;  %v1308_v39 = vmul.f32 %v1307_v29, %v6337_v34 }
 0x19a   :  { %v1502_v40 = vadd.f32 1.1283791, %v1501_v62  ;;  %v1580_v49 = vadd.f32 0.18741608, %v1579_v41  ;;  %v1653_v56 = vmul.f32 2.1237322e-06, %v6765_v57  ;;  %v1247_v42 = vsel %vm1244_vm15, %v1246_v15, %v1242_v55 }
 0x19b   :  { %v1619_v51 = vmul.f32 %v1618_v61, %v6671_v44  ;;  %v1771_v21 = vmul.f32 %v6768_v0, %v6768_v0  ;;  %v1248_v13 = vmul.f32 %v1247_v42, %v6518_v35  ;;  %v1275_v37 = vmul.f32 %v6775_v6, %v6738_v28 }
 0x19c   :  { %v1693_v16 = vmul.f32 2.1237322e-06, %v6771_v59  ;;  %v6786_v5 = vmin.f32 %v1731_v25, 16.0  ;;  %v3184_v29 = vadd.f32 1.0, %v5365_v18  ;;  %v1352_v14 = vmul.f32 %v1351_v30, %v6441_v11 }
 0x19d   :  { %v1542_v62 = vadd.f32 1.1283791, %v1541_v7  ;;  %v5367_v41 = vclamps-f32 %v1248_v13, 1.0  ;;  %v1276_v58 = vsub.f32 1.0, %v1275_v37  ;;  %v1309_v15 = vadd.f32 0.112945676, %v1308_v39 }
 0x19e   :  { %v1581_v61 = vmul.f32 %v1580_v49, %v6650_v36  ;;  %v1654_v55 = vadd.f32 0.00028619796, %v1653_v56  ;;  %v6790_v32 = vadd.f32 1.0, %v1352_v14  ;;  %v1384_v35 = vmul.f32 3.8918573e-05, %v6477_v20  ;;  %v10354_v7 = vld [vmem:[#allocation20_spill] sm:$0xff] }
 0x19f   :  { %v1620_v42 = vadd.f32 0.18741608, %v1619_v51  ;;  %v6793_v54 = vmin.f32 %v1771_v21, 16.0  ;;  %v3186_v0 = vadd.f32 1.0, %v5367_v41  ;;  %v1277_v25 = vmul.f32 %v6775_v6, %v1276_v58 }
 0x1a0   :  { %v1694_v18 = vadd.f32 0.00028619796, %v1693_v16  ;;  %v1733_v11 = vmul.f32 2.1237322e-06, %v6786_v5  ;;  %v3248_v30 = vmul.f32 %v3184_v29, %v10354_v7  ;;  %5604 = vrcp.f32 %v6790_v32 }
 0x1a1   :  { %v3250_v39 = vmul.f32 %v3186_v0, %v6322_v43  ;;  %v1278_v49 = vadd.f32 %v6775_v6, %v1277_v25  ;;  %vm1280_vm0 = vweird.f32 %v6775_v6  ;;  %v1310_v56 = vmul.f32 %v1309_v15, %v6337_v34 }
 0x1a2   :  { %v6804_v21 = vmul.f32 0.5, %v6627_v3  ;;  %v1655_v51 = vmul.f32 %v1654_v55, %v6765_v57  ;;  %v1285_v13 = vand.u32 2147483648, %v6738_v28  ;;  %v1385_v37 = vadd.f32 0.001143296, %v1384_v35 }
 0x1a3   :  { %v1773_v16 = vmul.f32 2.1237322e-06, %v6793_v54  ;;  %v3306_v29 = vpack.c.bf16 %v3250_v39, %v3248_v30  ;;  %vm1279_vm1 = vweird.f32 %v6738_v28  ;;  %v1283_v43 = vand.u32 2147483647, %v6738_v28 }
 0x1a4   :  { %10355 = vst [vmem:[#allocation12_spill] sm:$0xff] %v6804_v21  ;;  %v6812_v0 = vmul.f32 %v1502_v40, %v6565_v60  ;;  %v6815_v14 = vmul.f32 %v1542_v62, %v6569_v26  ;;  %v6817_v3 = vadd.f32 1.1283791, %v1581_v61  ;;  %v6820_v41 = vmul.f32 %v1620_v42, %v6671_v44  ;;  %vm6822_vm2 = vmor %vm1279_vm1, %vm1280_vm0 }
 0x1a5   :  { %v1695_v15 = vmul.f32 %v1694_v18, %v6771_v59  ;;  %v1734_v55 = vadd.f32 0.00028619796, %v1733_v11  ;;  %3575 = vmatmul.bf16.gmra.mxu3 %v3306_v29  ;;  %v1282_v60 = vsel %vm6822_vm2, %v6775_v6, %v1278_v49  ;;  %v1311_v28 = vadd.f32 0.4994258, %v1310_v56 }
 0x1a6   :  { %v5605_v26 = vpop.eup %5604  ;;  %v1286_v40 = vor.u32 1.1754944e-38, %v1285_v13  ;;  %v1386_v62 = vmul.f32 %v1385_v37, %v6477_v20  ;;  %v1424_v61 = vmul.f32 3.8918573e-05, %v6507_v23  ;;  %v1504_v35 = vmul.f32 3.8918573e-05, %v6600_v45 }
 0x1a7   :  { %v1656_v42 = vadd.f32 0.0036580483, %v1655_v51  ;;  %v1774_v25 = vadd.f32 0.00028619796, %v1773_v16  ;;  %vm1284_vm3 = vcmp.eq.f32.partialorder %v1283_v43, 8.507059e+37  ;;  %v1355_v18 = vmul.f32 %v5605_v26, %v6790_v32 }
 0x1a8   :  { %v1287_v11 = vsel %vm1284_vm3, %v1286_v40, %v1282_v60  ;;  %v1312_v7 = vmul.f32 %v1311_v28, %v6337_v34  ;;  %v1387_v30 = vadd.f32 0.014752088, %v1386_v62  ;;  %v1425_v39 = vadd.f32 0.001143296, %v1424_v61  ;;  %v351_v40 = vpop.f32.mrf.mxu0 }
 0x1a9   :  { %v1735_v6 = vmul.f32 %v1734_v55, %v6786_v5  ;;  %v1356_v49 = vsub.f32 1.0, %v1355_v18  ;;  %v1363_v56 = vand.u32 2147483647, %v6790_v32  ;;  %v1505_v13 = vadd.f32 0.001143296, %v1504_v35 }
 0x1aa   :  { %v1365_v37 = vand.u32 2147483648, %v6790_v32  ;;  %v6838_v29 = vadd.f32 1.0, %v1312_v7  ;;  %v1388_v51 = vmul.f32 %v1387_v30, %v6477_v20  ;;  %v1426_v16 = vmul.f32 %v1425_v39, %v6507_v23  ;;  %v440_v7 = vpop.f32.mrf.mxu1 }
 0x1ab   :  { %v1288_v43 = vmul.f32 %v1287_v11, %v6521_v22  ;;  %v1357_v58 = vmul.f32 %v5605_v26, %v1356_v49  ;;  %vm1360_vm4 = vweird.f32 %v5605_v26  ;;  %v1506_v34 = vmul.f32 %v1505_v13, %v6600_v45 }
 0x1ac   :  { %v1657_v55 = vmul.f32 %v1656_v42, %v6765_v57  ;;  %v1696_v60 = vadd.f32 0.0036580483, %v1695_v15  ;;  %v1775_v28 = vmul.f32 %v1774_v25, %v6793_v54  ;;  %5606 = vrcp.f32 %v6838_v29 }
 0x1ad   :  { %v1358_v62 = vadd.f32 %v5605_v26, %v1357_v58  ;;  %vm1359_vm5 = vweird.f32 %v6790_v32  ;;  %v1389_v61 = vadd.f32 0.112945676, %v1388_v51  ;;  %v1427_v35 = vadd.f32 0.014752088, %v1426_v16 }
 0x1ae   :  { %v1736_v18 = vadd.f32 0.0036580483, %v1735_v6  ;;  %vm1361_vm6 = vmor %vm1359_vm5, %vm1360_vm4  ;;  %vm1364_vm7 = vcmp.eq.f32.partialorder %v1363_v56, 8.507059e+37  ;;  %v1366_v22 = vor.u32 1.1754944e-38, %v1365_v37  ;;  %v1507_v11 = vadd.f32 0.014752088, %v1506_v34 }
 0x1af   :  { %v5368_v30 = vclamps-f32 %v1288_v43, 1.0  ;;  %v1362_v39 = vsel %vm1361_vm6, %v5605_v26, %v1358_v62  ;;  %v1390_v15 = vmul.f32 %v1389_v61, %v6477_v20  ;;  %v1428_v42 = vmul.f32 %v1427_v35, %v6507_v23 }
 0x1b0   :  { %v1776_v25 = vadd.f32 0.0036580483, %v1775_v28  ;;  %v6851_v49 = vadd.f32 %v351_v40, %v5907_v2  ;;  %v1367_v13 = vsel %vm1364_vm7, %v1366_v22, %v1362_v39  ;;  %v1508_v32 = vmul.f32 %v1507_v11, %v6600_v45 }
 0x1b1   :  { %v1697_v6 = vmul.f32 %v1696_v60, %v6771_v59  ;;  %v1368_v56 = vmul.f32 %v1367_v13, %v6655_v9  ;;  %v1391_v37 = vadd.f32 0.4994258, %v1390_v15  ;;  %v1429_v51 = vadd.f32 0.112945676, %v1428_v42 }
 0x1b2   :  { %v5607_v16 = vpop.eup %5606  ;;  %v1658_v43 = vadd.f32 0.05243302, %v1657_v55  ;;  %v1737_v26 = vmul.f32 %v1736_v18, %v6786_v5  ;;  %v6858_v58 = vadd.f32 %v440_v7, %v5912_v8  ;;  %v1509_v34 = vadd.f32 0.112945676, %v1508_v32 }
 0x1b3   :  { %v5370_v28 = vclamps-f32 %v1368_v56, 1.0  ;;  %v3187_v40 = vadd.f32 1.0, %v5368_v30  ;;  %v1315_v62 = vmul.f32 %v5607_v16, %v6838_v29  ;;  %v1392_v61 = vmul.f32 %v1391_v37, %v6477_v20 }
 0x1b4   :  { %v1622_v60 = vadd.f32 1.1283791, %v6820_v41  ;;  %v1777_v9 = vmul.f32 %v1776_v25, %v6793_v54  ;;  %v6865_v35 = vmul.f32 0.70710677, %v6851_v49  ;;  %v1430_v55 = vmul.f32 %v1429_v51, %v6507_v23 }
 0x1b5   :  { %v3189_v18 = vadd.f32 1.0, %v5370_v28  ;;  %v1316_v22 = vsub.f32 1.0, %v1315_v62  ;;  %v6868_v11 = vadd.f32 1.0, %v1392_v61  ;;  %v1510_v7 = vmul.f32 %v1509_v34, %v6600_v45 }
 0x1b6   :  { %v1659_v30 = vmul.f32 %v1658_v43, %v6765_v57  ;;  %v1698_v39 = vadd.f32 0.05243302, %v1697_v6  ;;  %v1738_v15 = vadd.f32 0.05243302, %v1737_v26  ;;  %v6873_v20 = vmul.f32 0.70710677, %v6858_v58 }
 0x1b7   :  { %v3251_v41 = vmul.f32 %v3187_v40, %v6335_v1  ;;  %v3253_v42 = vmul.f32 %v3189_v18, %v6553_v46  ;;  %v1317_v25 = vmul.f32 %v5607_v16, %v1316_v22  ;;  %5608 = vrcp.f32 %v6868_v11 }
 0x1b8   :  { %v1778_v13 = vadd.f32 0.05243302, %v1777_v9  ;;  %v1811_v32 = vmul.f32 %v6865_v35, %v6865_v35  ;;  %vm1320_vm8 = vweird.f32 %v5607_v16  ;;  %v1325_v56 = vand.u32 2147483648, %v6838_v29 }
 0x1b9   :  { %v3307_v37 = vpack.c.bf16 %v3253_v42, %v3251_v41  ;;  %v1318_v6 = vadd.f32 %v5607_v16, %v1317_v25  ;;  %v1431_v51 = vadd.f32 0.4994258, %v1430_v55  ;;  %v1511_v43 = vadd.f32 0.4994258, %v1510_v7 }
 0x1ba   :  { %v1699_v26 = vmul.f32 %v1698_v39, %v6771_v59  ;;  %v1739_v1 = vmul.f32 %v1738_v15, %v6786_v5  ;;  %vm1319_vm9 = vweird.f32 %v6838_v29  ;;  %v1323_v46 = vand.u32 2147483647, %v6838_v29 }
 0x1bb   :  { %v6887_v34 = vmul.f32 %v6817_v3, %v6624_v4  ;;  %v6890_v28 = vmul.f32 %v1622_v60, %v6642_v63  ;;  %v1851_v40 = vmul.f32 %v6873_v20, %v6873_v20  ;;  %3491 = vmatmul.bf16.gmra.mxu2 %v3307_v37  ;;  %vm6894_vm10 = vmor %vm1319_vm9, %vm1320_vm8  ;;  %v1432_v61 = vmul.f32 %v1431_v51, %v6507_v23  ;;  %v354_v3 = vpop.f32.mrf.mxu0 }
 0x1bc   :  { %v6900_v9 = vmul.f32 0.5, %v6711_v38  ;;  %v1779_v29 = vmul.f32 %v1778_v13, %v6793_v54  ;;  %v6903_v4 = vmin.f32 %v1811_v32, 16.0  ;;  %v1322_v63 = vsel %vm6894_vm10, %v5607_v16, %v1318_v6 }
 0x1bd   :  { %v5609_v60 = vpop.eup %5608  ;;  %v1660_v55 = vadd.f32 0.18741608, %v1659_v30  ;;  %v6908_v18 = vmul.f32 0.5, %v6714_v12  ;;  %v1326_v22 = vor.u32 1.1754944e-38, %v1325_v56  ;;  %v1512_v7 = vmul.f32 %v1511_v43, %v6600_v45  ;;  %v443_v45 = vpop.f32.mrf.mxu1 }
 0x1be   :  { %v1700_v23 = vadd.f32 0.18741608, %v1699_v26  ;;  %v1740_v39 = vadd.f32 0.18741608, %v1739_v1  ;;  %vm1324_vm11 = vcmp.eq.f32.partialorder %v1323_v46, 8.507059e+37  ;;  %v1395_v38 = vmul.f32 %v5609_v60, %v6868_v11 }
 0x1bf   :  { %10360 = vst [vmem:[#allocation14_spill] sm:$0xff] %v6908_v18  ;;  %v6912_v15 = vmin.f32 %v1851_v40, 16.0  ;;  %v6915_v41 = vadd.f32 %v354_v3, %v5907_v2  ;;  %v1327_v42 = vsel %vm1324_vm11, %v1326_v22, %v1322_v63  ;;  %v6917_v16 = vadd.f32 1.0, %v1432_v61 }
 0x1c0   :  { %v6920_v30 = vmul.f32 0.5, %v6741_v33  ;;  %v1780_v12 = vadd.f32 0.18741608, %v1779_v29  ;;  %v1813_v25 = vmul.f32 2.1237322e-06, %v6903_v4  ;;  %v1396_v13 = vsub.f32 1.0, %v1395_v38 }
 0x1c1   :  { %v1405_v32 = vand.u32 2147483648, %v6868_v11  ;;  %5610 = vrcp.f32 %v6917_v16  ;;  %v6925_v56 = vadd.f32 1.0, %v1512_v7  ;;  %v1464_v37 = vmul.f32 3.8918573e-05, %v6513_v24 }
 0x1c2   :  { %10361 = vst [vmem:[#allocation13_spill] sm:$0xff] %v6920_v30  ;;  %v1328_v6 = vmul.f32 %v1327_v42, %v6545_v31  ;;  %v1397_v51 = vmul.f32 %v5609_v60, %v1396_v13  ;;  %vm1400_vm12 = vweird.f32 %v5609_v60  ;;  %v1403_v33 = vand.u32 2147483647, %v6868_v11 }
 0x1c3   :  { %v1661_v43 = vmul.f32 %v1660_v55, %v6765_v57  ;;  %v1853_v26 = vmul.f32 2.1237322e-06, %v6912_v15  ;;  %v6933_v1 = vmul.f32 0.70710677, %v6915_v41  ;;  %v6936_v46 = vadd.f32 %v443_v45, %v5912_v8 }
 0x1c4   :  { %v1701_v40 = vmul.f32 %v1700_v23, %v6771_v59  ;;  %v1741_v62 = vmul.f32 %v1740_v39, %v6786_v5  ;;  %v1398_v61 = vadd.f32 %v5609_v60, %v1397_v51  ;;  %vm1399_vm13 = vweird.f32 %v6868_v11 }
 0x1c5   :  { %v1814_v31 = vadd.f32 0.00028619796, %v1813_v25  ;;  %vm1401_vm14 = vmor %vm1399_vm13, %vm1400_vm12  ;;  %v1406_v29 = vor.u32 1.1754944e-38, %v1405_v32  ;;  %5612 = vrcp.f32 %v6925_v56  ;;  %v1465_v3 = vadd.f32 0.001143296, %v1464_v37 }
 0x1c6   :  { %v1781_v63 = vmul.f32 %v1780_v12, %v6793_v54  ;;  %v5369_v55 = vclamps-f32 %v1328_v6, 1.0  ;;  %v1402_v22 = vsel %vm1401_vm14, %v5609_v60, %v1398_v61  ;;  %vm1404_vm15 = vcmp.eq.f32.partialorder %v1403_v33, 8.507059e+37 }
 0x1c7   :  { %v5611_v7 = vpop.eup %5610  ;;  %v1854_v38 = vadd.f32 0.00028619796, %v1853_v26  ;;  %v1891_v23 = vmul.f32 %v6933_v1, %v6933_v1  ;;  %v6946_v39 = vmul.f32 0.70710677, %v6936_v46  ;;  %v1407_v11 = vsel %vm1404_vm15, %v1406_v29, %v1402_v22 }
 0x1c8   :  { %v6948_v42 = vadd.f32 1.1283791, %v1661_v43  ;;  %v6951_v25 = vmul.f32 0.5, %v6752_v10  ;;  %v1408_v45 = vmul.f32 %v1407_v11, %v6691_v53  ;;  %v1435_v12 = vmul.f32 %v5611_v7, %v6917_v16 }
 0x1c9   :  { %v6955_v60 = vadd.f32 1.1283791, %v1701_v40  ;;  %v6957_v13 = vadd.f32 1.1283791, %v1741_v62  ;;  %v1815_v32 = vmul.f32 %v1814_v31, %v6903_v4  ;;  %v1466_v37 = vmul.f32 %v1465_v3, %v6513_v24 }
 0x1ca   :  { %10362 = vst [vmem:[#allocation15_spill] sm:$0xff] %v6951_v25  ;;  %v6961_v6 = vadd.f32 1.1283791, %v1781_v63  ;;  %v5371_v51 = vclamps-f32 %v1408_v45, 1.0  ;;  %v3188_v33 = vadd.f32 1.0, %v5369_v55  ;;  %v1436_v43 = vsub.f32 1.0, %v1435_v12 }
 0x1cb   :  { %v5613_v26 = vpop.eup %5612  ;;  %v1855_v10 = vmul.f32 %v1854_v38, %v6912_v15  ;;  %v6964_v61 = vmin.f32 %v1891_v23, 16.0  ;;  %v1931_v53 = vmul.f32 %v6946_v39, %v6946_v39  ;;  %v1445_v40 = vand.u32 2147483648, %v6917_v16  ;;  %v10363_v23 = vld [vmem:[#allocation17_spill] sm:$0xff] }
 0x1cc   :  { %v3190_v62 = vadd.f32 1.0, %v5371_v51  ;;  %v1437_v29 = vmul.f32 %v5611_v7, %v1436_v43  ;;  %vm1440_vm0 = vweird.f32 %v5611_v7  ;;  %v1443_v31 = vand.u32 2147483647, %v6917_v16 }
 0x1cd   :  { %v1816_v3 = vadd.f32 0.0036580483, %v1815_v32  ;;  %v1515_v63 = vmul.f32 %v5613_v26, %v6925_v56  ;;  %v1467_v55 = vadd.f32 0.014752088, %v1466_v37  ;;  %v1544_v22 = vmul.f32 3.8918573e-05, %v6605_v52 }
 0x1ce   :  { %v3252_v38 = vmul.f32 %v3188_v33, %v6356_v48  ;;  %v3254_v11 = vmul.f32 %v3190_v62, %v10363_v23  ;;  %v1438_v45 = vadd.f32 %v5611_v7, %v1437_v29  ;;  %vm1439_vm1 = vweird.f32 %v6917_v16 }
 0x1cf   :  { %v1856_v12 = vadd.f32 0.0036580483, %v1855_v10  ;;  %v1893_v51 = vmul.f32 2.1237322e-06, %v6964_v61  ;;  %vm1441_vm2 = vmor %vm1439_vm1, %vm1440_vm0  ;;  %v1446_v43 = vor.u32 1.1754944e-38, %v1445_v40  ;;  %v1516_v25 = vsub.f32 1.0, %v1515_v63 }
 0x1d0   :  { %v3308_v30 = vpack.c.bf16 %v3254_v11, %v3252_v38  ;;  %v1442_v32 = vsel %vm1441_vm2, %v5611_v7, %v1438_v45  ;;  %vm1444_vm3 = vcmp.eq.f32.partialorder %v1443_v31, 8.507059e+37  ;;  %v1525_v37 = vand.u32 2147483648, %v6925_v56  ;;  %v445_v11 = vpop.f32.mrf.mxu1 }
 0x1d1   :  { %v1447_v18 = vsel %vm1444_vm3, %v1446_v43, %v1442_v32  ;;  %v1517_v21 = vmul.f32 %v5613_v26, %v1516_v25  ;;  %vm1520_vm4 = vweird.f32 %v5613_v26  ;;  %v1523_v48 = vand.u32 2147483647, %v6925_v56 }
 0x1d2   :  { %3580 = vmatmul.bf16.gmra.mxu3 %v3308_v30  ;;  %v1448_v33 = vmul.f32 %v1447_v18, %v6694_v19  ;;  %v1468_v16 = vmul.f32 %v1467_v55, %v6513_v24  ;;  %v1545_v10 = vadd.f32 0.001143296, %v1544_v22  ;;  %v1584_v62 = vmul.f32 3.8918573e-05, %v6650_v36  ;;  %v356_v18 = vpop.f32.mrf.mxu0 }
 0x1d3   :  { %v6981_v40 = vmin.f32 %v1931_v53, 16.0  ;;  %v1518_v29 = vadd.f32 %v5613_v26, %v1517_v21  ;;  %vm1519_vm5 = vweird.f32 %v6925_v56  ;;  %v1664_v7 = vmul.f32 3.8918573e-05, %v6765_v57 }
 0x1d4   :  { %vm1521_vm6 = vmor %vm1519_vm5, %vm1520_vm4  ;;  %v1526_v25 = vor.u32 1.1754944e-38, %v1525_v37  ;;  %v1469_v31 = vadd.f32 0.112945676, %v1468_v16  ;;  %v1546_v63 = vmul.f32 %v1545_v10, %v6605_v52  ;;  %v1585_v30 = vadd.f32 0.001143296, %v1584_v62 }
 0x1d5   :  { %v1817_v19 = vmul.f32 %v1816_v3, %v6903_v4  ;;  %v5372_v55 = vclamps-f32 %v1448_v33, 1.0  ;;  %v1522_v22 = vsel %vm1521_vm6, %v5613_v26, %v1518_v29  ;;  %vm1524_vm7 = vcmp.eq.f32.partialorder %v1523_v48, 8.507059e+37 }
 0x1d6   :  { %v1894_v38 = vadd.f32 0.00028619796, %v1893_v51  ;;  %v1527_v53 = vsel %vm1524_vm7, %v1526_v25, %v1522_v22  ;;  %v1470_v21 = vmul.f32 %v1469_v31, %v6513_v24  ;;  %v1547_v23 = vadd.f32 0.014752088, %v1546_v63 }
 0x1d7   :  { %v1857_v56 = vmul.f32 %v1856_v12, %v6912_v15  ;;  %v1528_v45 = vmul.f32 %v1527_v53, %v6812_v0  ;;  %v1586_v43 = vmul.f32 %v1585_v30, %v6650_v36  ;;  %v1665_v32 = vadd.f32 0.001143296, %v1664_v7 }
 0x1d8   :  { %v1933_v37 = vmul.f32 2.1237322e-06, %v6981_v40  ;;  %v6993_v3 = vadd.f32 %v356_v18, %v5907_v2  ;;  %v1471_v26 = vadd.f32 0.4994258, %v1470_v21  ;;  %v1548_v51 = vmul.f32 %v1547_v23, %v6605_v52 }
 0x1d9   :  { %v1818_v48 = vadd.f32 0.05243302, %v1817_v19  ;;  %v5374_v33 = vclamps-f32 %v1528_v45, 1.0  ;;  %v3191_v16 = vadd.f32 1.0, %v5372_v55  ;;  %v1587_v10 = vadd.f32 0.014752088, %v1586_v43 }
 0x1da   :  { %v1895_v12 = vmul.f32 %v1894_v38, %v6964_v61  ;;  %v6998_v62 = vadd.f32 %v445_v11, %v5912_v8  ;;  %v1472_v0 = vmul.f32 %v1471_v26, %v6513_v24  ;;  %v1549_v29 = vadd.f32 0.112945676, %v1548_v51  ;;  %v10364_v38 = vld [vmem:[#allocation22_spill] sm:$0xff] }
 0x1db   :  { %v1858_v7 = vadd.f32 0.05243302, %v1857_v56  ;;  %v3193_v25 = vadd.f32 1.0, %v5374_v33  ;;  %v1588_v31 = vmul.f32 %v1587_v10, %v6650_v36  ;;  %v1666_v63 = vmul.f32 %v1665_v32, %v6765_v57 }
 0x1dc   :  { %v1934_v30 = vadd.f32 0.00028619796, %v1933_v37  ;;  %v7004_v19 = vmul.f32 0.70710677, %v6993_v3  ;;  %v7006_v18 = vadd.f32 1.0, %v1472_v0  ;;  %v1550_v55 = vmul.f32 %v1549_v29, %v6605_v52 }
 0x1dd   :  { %v1819_v22 = vmul.f32 %v1818_v48, %v6903_v4  ;;  %v3255_v53 = vmul.f32 %v3191_v16, %v10364_v38  ;;  %v3257_v24 = vmul.f32 %v3193_v25, %v6701_v17  ;;  %v1589_v21 = vadd.f32 0.112945676, %v1588_v31  ;;  %v10365_v16 = vld [vmem:[#allocation21_spill] sm:$0xff] }
 0x1de   :  { %v1896_v23 = vadd.f32 0.0036580483, %v1895_v12  ;;  %v7013_v56 = vmul.f32 0.70710677, %v6998_v62  ;;  %5614 = vrcp.f32 %v7006_v18  ;;  %v1624_v11 = vmul.f32 3.8918573e-05, %v6671_v44 }
 0x1df   :  { %v3309_v45 = vpack.c.bf16 %v3257_v24, %v3255_v53  ;;  %v1551_v43 = vadd.f32 0.4994258, %v1550_v55  ;;  %v1590_v32 = vmul.f32 %v1589_v21, %v6650_v36  ;;  %v1667_v37 = vadd.f32 0.014752088, %v1666_v63  ;;  %v359_v55 = vpop.f32.mrf.mxu0 }
 0x1e0   :  { %v7020_v26 = vmul.f32 %v6948_v42, %v6727_v47  ;;  %v7024_v17 = vmul.f32 %v6955_v60, %v6732_v50  ;;  %v1935_v51 = vmul.f32 %v1934_v30, %v6981_v40  ;;  %v1971_v48 = vmul.f32 %v7004_v19, %v7004_v19 }
 0x1e1   :  { %v7031_v33 = vmul.f32 %v6957_v13, %v6756_v27  ;;  %v7035_v10 = vmul.f32 %v6961_v6, %v10365_v16  ;;  %3496 = vmatmul.bf16.gmra.mxu2 %v3309_v45  ;;  %v1552_v47 = vmul.f32 %v1551_v43, %v6605_v52  ;;  %v1591_v42 = vadd.f32 0.4994258, %v1590_v32  ;;  %v448_v32 = vpop.f32.mrf.mxu1 }
 0x1e2   :  { %v1820_v12 = vadd.f32 0.18741608, %v1819_v22  ;;  %v1859_v50 = vmul.f32 %v1858_v7, %v6912_v15  ;;  %v1897_v60 = vmul.f32 %v1896_v23, %v6964_v61  ;;  %v2011_v0 = vmul.f32 %v7013_v56, %v7013_v56 }
 0x1e3   :  { %10366 = vst [vmem:[#allocation18_spill] sm:$0xff] %v7035_v10  ;;  %v7043_v29 = vmul.f32 0.5, %v6851_v49  ;;  %v7045_v27 = vadd.f32 1.0, %v1552_v47  ;;  %v1668_v13 = vmul.f32 %v1667_v37, %v6765_v57  ;;  %v1625_v6 = vadd.f32 0.001143296, %v1624_v11 }
 0x1e4   :  { %v5615_v25 = vpop.eup %5614  ;;  %v7049_v52 = vmul.f32 0.5, %v6858_v58  ;;  %v1936_v31 = vadd.f32 0.0036580483, %v1935_v51  ;;  %v7051_v63 = vmin.f32 %v1971_v48, 16.0  ;;  %v1592_v7 = vmul.f32 %v1591_v42, %v6650_v36 }
 0x1e5   :  { %v7055_v30 = vmul.f32 0.5, %v6915_v41  ;;  %v7058_v49 = vmul.f32 0.5, %v6936_v46  ;;  %v1475_v22 = vmul.f32 %v5615_v25, %v7006_v18  ;;  %5616 = vrcp.f32 %v7045_v27 }
 0x1e6   :  { %10367 = vst [vmem:[#allocation20_spill] sm:$0xff] %v7049_v52  ;;  %v1821_v38 = vmul.f32 %v1820_v12, %v6903_v4  ;;  %v1860_v58 = vadd.f32 0.18741608, %v1859_v50  ;;  %v1898_v53 = vadd.f32 0.05243302, %v1897_v60  ;;  %v7063_v24 = vmin.f32 %v2011_v0, 16.0 }
 0x1e7   :  { %10368 = vst [vmem:[#allocation17_spill] sm:$0xff] %v7055_v30  ;;  %v1476_v21 = vsub.f32 1.0, %v1475_v22  ;;  %v7065_v23 = vadd.f32 1.0, %v1592_v7  ;;  %v1669_v36 = vadd.f32 0.112945676, %v1668_v13  ;;  %v1626_v41 = vmul.f32 %v1625_v6, %v6671_v44 }
 0x1e8   :  { %10369 = vst [vmem:[#allocation22_spill] sm:$0xff] %v7058_v49  ;;  %v1937_v46 = vmul.f32 %v1936_v31, %v6981_v40  ;;  %v1973_v11 = vmul.f32 2.1237322e-06, %v7051_v63  ;;  %v7071_v45 = vadd.f32 %v359_v55, %v5907_v2  ;;  %v1485_v43 = vand.u32 2147483648, %v7006_v18 }
 0x1e9   :  { %v1477_v37 = vmul.f32 %v5615_v25, %v1476_v21  ;;  %vm1480_vm8 = vweird.f32 %v5615_v25  ;;  %v1483_v51 = vand.u32 2147483647, %v7006_v18  ;;  %5618 = vrcp.f32 %v7065_v23 }
 0x1ea   :  { %v1822_v48 = vadd.f32 1.1283791, %v1821_v38  ;;  %v1861_v16 = vmul.f32 %v1860_v58, %v6912_v15  ;;  %v1899_v47 = vmul.f32 %v1898_v53, %v6964_v61  ;;  %v2013_v42 = vmul.f32 2.1237322e-06, %v7063_v24 }
 0x1eb   :  { %v5617_v12 = vpop.eup %5616  ;;  %v1478_v50 = vadd.f32 %v5615_v25, %v1477_v37  ;;  %vm1479_vm9 = vweird.f32 %v7006_v18  ;;  %v1670_v60 = vmul.f32 %v1669_v36, %v6765_v57  ;;  %v1627_v0 = vadd.f32 0.014752088, %v1626_v41 }
 0x1ec   :  { %v1938_v13 = vadd.f32 0.05243302, %v1937_v46  ;;  %v7082_v6 = vadd.f32 %v448_v32, %v5912_v8  ;;  %vm1481_vm10 = vmor %vm1479_vm9, %vm1480_vm8  ;;  %v1486_v31 = vor.u32 1.1754944e-38, %v1485_v43  ;;  %v1555_v7 = vmul.f32 %v5617_v12, %v7045_v27 }
 0x1ed   :  { %v1974_v55 = vadd.f32 0.00028619796, %v1973_v11  ;;  %v7086_v22 = vmul.f32 0.70710677, %v7071_v45  ;;  %v1482_v38 = vsel %vm1481_vm10, %v5615_v25, %v1478_v50  ;;  %vm1484_vm11 = vcmp.eq.f32.partialorder %v1483_v51, 8.507059e+37  ;;  %v10370_v11 = vld [vmem:[#allocation10_spill] sm:$0xff] }
 0x1ee   :  { %v2014_v58 = vadd.f32 0.00028619796, %v2013_v42  ;;  %v1487_v53 = vsel %vm1484_vm11, %v1486_v31, %v1482_v38  ;;  %v1556_v18 = vsub.f32 1.0, %v1555_v7  ;;  %v1704_v21 = vmul.f32 3.8918573e-05, %v6771_v59 }
 0x1ef   :  { %v7089_v36 = vpop.eup %5618  ;;  %v1563_v41 = vand.u32 2147483647, %v7045_v27  ;;  %v1565_v46 = vand.u32 2147483648, %v7045_v27  ;;  %v1671_v43 = vadd.f32 0.4994258, %v1670_v60  ;;  %v1628_v32 = vmul.f32 %v1627_v0, %v6671_v44 }
 0x1f0   :  { %v1488_v37 = vmul.f32 %v1487_v53, %v10370_v11  ;;  %v1557_v49 = vmul.f32 %v5617_v12, %v1556_v18  ;;  %vm1560_vm12 = vweird.f32 %v5617_v12  ;;  %v1595_v25 = vmul.f32 %v7089_v36, %v7065_v23 }
 0x1f1   :  { %v1900_v51 = vadd.f32 0.18741608, %v1899_v47  ;;  %v1939_v42 = vmul.f32 %v1938_v13, %v6981_v40  ;;  %v2051_v50 = vmul.f32 %v7086_v22, %v7086_v22  ;;  %v7101_v31 = vmul.f32 0.70710677, %v7082_v6 }
 0x1f2   :  { %v1975_v60 = vmul.f32 %v1974_v55, %v7051_v63  ;;  %v1558_v7 = vadd.f32 %v5617_v12, %v1557_v49  ;;  %vm1559_vm13 = vweird.f32 %v7045_v27  ;;  %v1596_v0 = vsub.f32 1.0, %v1595_v25 }
 0x1f3   :  { %v2015_v38 = vmul.f32 %v2014_v58, %v7063_v24  ;;  %vm1561_vm14 = vmor %vm1559_vm13, %vm1560_vm12  ;;  %v1566_v53 = vor.u32 1.1754944e-38, %v1565_v46  ;;  %v1672_v47 = vmul.f32 %v1671_v43, %v6765_v57  ;;  %v1629_v18 = vadd.f32 0.112945676, %v1628_v32 }
 0x1f4   :  { %v5373_v13 = vclamps-f32 %v1488_v37, 1.0  ;;  %v1562_v11 = vsel %vm1561_vm14, %v5617_v12, %v1558_v7  ;;  %vm1564_vm15 = vcmp.eq.f32.partialorder %v1563_v41, 8.507059e+37  ;;  %v1705_v30 = vadd.f32 0.001143296, %v1704_v21 }
 0x1f5   :  { %v1862_v52 = vadd.f32 1.1283791, %v1861_v16  ;;  %v2091_v10 = vmul.f32 %v7101_v31, %v7101_v31  ;;  %v1567_v55 = vsel %vm1564_vm15, %v1566_v53, %v1562_v11  ;;  %v1597_v49 = vmul.f32 %v7089_v36, %v1596_v0  ;;  %v10372_v0 = vld [vmem:[#allocation16_spill] sm:$0xff]  ;;  %v10373_v53 = vld [vmem:[#allocation11_spill] sm:$0xff] }
 0x1f6   :  { %v7111_v27 = vmul.f32 %v1822_v48, %v6865_v35  ;;  %v1940_v58 = vadd.f32 0.18741608, %v1939_v42  ;;  %v7113_v25 = vmin.f32 %v2051_v50, 16.0  ;;  %v1568_v57 = vmul.f32 %v1567_v55, %v6815_v14 }
 0x1f7   :  { %v1901_v46 = vmul.f32 %v1900_v51, %v6964_v61  ;;  %v1976_v12 = vadd.f32 0.0036580483, %v1975_v60  ;;  %v7117_v41 = vadd.f32 1.0, %v1672_v47  ;;  %v1630_v16 = vmul.f32 %v1629_v18, %v6671_v44 }
 0x1f8   :  { %v2016_v21 = vadd.f32 0.0036580483, %v2015_v38  ;;  %v5375_v43 = vclamps-f32 %v1568_v57, 1.0  ;;  %v3192_v32 = vadd.f32 1.0, %v5373_v13  ;;  %v1706_v37 = vmul.f32 %v1705_v30, %v6771_v59 }
 0x1f9   :  { %v7121_v7 = vmin.f32 %v2091_v10, 16.0  ;;  %v1598_v35 = vadd.f32 %v7089_v36, %v1597_v49  ;;  %vm1600_vm0 = vweird.f32 %v7089_v36  ;;  %5620 = vrcp.f32 %v7117_v41 }
 0x1fa   :  { %v1941_v14 = vmul.f32 %v1940_v58, %v6981_v40  ;;  %v2053_v48 = vmul.f32 2.1237322e-06, %v7113_v25  ;;  %v3194_v51 = vadd.f32 1.0, %v5375_v43  ;;  %v1605_v42 = vand.u32 2147483648, %v7065_v23 }
 0x1fb   :  { %10371 = vst [vmem:[#allocation21_spill] sm:$0xff] %v7121_v7  ;;  %v1977_v50 = vmul.f32 %v1976_v12, %v7051_v63  ;;  %vm1599_vm1 = vweird.f32 %v7065_v23  ;;  %v1603_v10 = vand.u32 2147483647, %v7065_v23  ;;  %v1631_v30 = vadd.f32 0.4994258, %v1630_v16 }
 0x1fc   :  { %v2017_v60 = vmul.f32 %v2016_v21, %v7063_v24  ;;  %v3256_v38 = vmul.f32 %v3192_v32, %v10372_v0  ;;  %v3258_v47 = vmul.f32 %v3194_v51, %v10373_v53  ;;  %vm7135_vm2 = vmor %vm1599_vm1, %vm1600_vm0  ;;  %v1707_v13 = vadd.f32 0.014752088, %v1706_v37  ;;  %v361_v37 = vpop.f32.mrf.mxu0  ;;  %v450_v0 = vpop.f32.mrf.mxu1 }
 0x1fd   :  { %v1902_v11 = vadd.f32 1.1283791, %v1901_v46  ;;  %v2093_v55 = vmul.f32 2.1237322e-06, %v7121_v7  ;;  %v1602_v49 = vsel %vm7135_vm2, %v7089_v36, %v1598_v35  ;;  %v1744_v23 = vmul.f32 3.8918573e-05, %v6786_v5 }
 0x1fe   :  { %v7145_v58 = vmul.f32 %v1862_v52, %v6873_v20  ;;  %v7147_v57 = vadd.f32 1.1283791, %v1941_v14  ;;  %v3310_v12 = vpack.c.bf16 %v3258_v47, %v3256_v38  ;;  %v1606_v16 = vor.u32 1.1754944e-38, %v1605_v42 }
 0x1ff   :  { %v5621_v21 = vpop.eup %5620  ;;  %v1978_v43 = vadd.f32 0.05243302, %v1977_v50  ;;  %v2054_v32 = vadd.f32 0.00028619796, %v2053_v48  ;;  %vm1604_vm3 = vcmp.eq.f32.partialorder %v1603_v10, 8.507059e+37  ;;  %v1632_v46 = vmul.f32 %v1631_v30, %v6671_v44 }
 0x200   :  { %v2018_v51 = vadd.f32 0.05243302, %v2017_v60  ;;  %3585 = vmatmul.bf16.gmra.mxu3 %v3310_v12  ;;  %v1607_v36 = vsel %vm1604_vm3, %v1606_v16, %v1602_v49  ;;  %v1675_v35 = vmul.f32 %v5621_v21, %v7117_v41  ;;  %v1708_v20 = vmul.f32 %v1707_v13, %v6771_v59 }
 0x201   :  { %v7153_v52 = vmul.f32 %v1902_v11, %v6933_v1  ;;  %v2094_v14 = vadd.f32 0.00028619796, %v2093_v55  ;;  %v7155_v42 = vadd.f32 1.0, %v1632_v46  ;;  %v1745_v50 = vadd.f32 0.001143296, %v1744_v23 }
 0x202   :  { %v7158_v48 = vadd.f32 %v361_v37, %v5907_v2  ;;  %v1676_v10 = vsub.f32 1.0, %v1675_v35  ;;  %v1709_v44 = vadd.f32 0.112945676, %v1708_v20  ;;  %v1824_v30 = vmul.f32 3.8918573e-05, %v6903_v4 }
 0x203   :  { %v7162_v60 = vadd.f32 %v450_v0, %v5912_v8  ;;  %v1608_v38 = vmul.f32 %v1607_v36, %v6887_v34  ;;  %v1685_v53 = vand.u32 2147483648, %v7117_v41  ;;  %5622 = vrcp.f32 %v7155_v42 }
 0x204   :  { %v1677_v1 = vmul.f32 %v5621_v21, %v1676_v10  ;;  %vm1680_vm4 = vweird.f32 %v5621_v21  ;;  %v1683_v47 = vand.u32 2147483647, %v7117_v41  ;;  %v1710_v18 = vmul.f32 %v1709_v44, %v6771_v59 }
 0x205   :  { %v2055_v13 = vmul.f32 %v2054_v32, %v7113_v25  ;;  %v2095_v11 = vmul.f32 %v2094_v14, %v7121_v7  ;;  %v1746_v55 = vmul.f32 %v1745_v50, %v6786_v5  ;;  %v1825_v49 = vadd.f32 0.001143296, %v1824_v30 }
 0x206   :  { %v7173_v23 = vmul.f32 0.70710677, %v7158_v48  ;;  %v1678_v34 = vadd.f32 %v5621_v21, %v1677_v1  ;;  %vm1679_vm5 = vweird.f32 %v7117_v41  ;;  %v1711_v12 = vadd.f32 0.4994258, %v1710_v18 }
 0x207   :  { %v7177_v16 = vmul.f32 0.70710677, %v7162_v60  ;;  %vm1681_vm6 = vmor %vm1679_vm5, %vm1680_vm4  ;;  %v1686_v37 = vor.u32 1.1754944e-38, %v1685_v53  ;;  %v1747_v46 = vadd.f32 0.014752088, %v1746_v55  ;;  %v1826_v32 = vmul.f32 %v1825_v49, %v6903_v4 }
 0x208   :  { %v5376_v0 = vclamps-f32 %v1608_v38, 1.0  ;;  %v1682_v36 = vsel %vm1681_vm6, %v5621_v21, %v1678_v34  ;;  %vm1684_vm7 = vcmp.eq.f32.partialorder %v1683_v47, 8.507059e+37  ;;  %v1712_v35 = vmul.f32 %v1711_v12, %v6771_v59  ;;  %v364_v34 = vpop.f32.mrf.mxu0 }
 0x209   :  { %v5623_v20 = vpop.eup %5622  ;;  %v1979_v14 = vmul.f32 %v1978_v43, %v7051_v63  ;;  %v2056_v50 = vadd.f32 0.0036580483, %v2055_v13  ;;  %v1687_v10 = vsel %vm1684_vm7, %v1686_v37, %v1682_v36  ;;  %v1748_v41 = vmul.f32 %v1747_v46, %v6786_v5 }
 0x20a   :  { %v1688_v44 = vmul.f32 %v1687_v10, %v7020_v26  ;;  %v1635_v30 = vmul.f32 %v5623_v20, %v7155_v42  ;;  %v7185_v53 = vadd.f32 1.0, %v1712_v35  ;;  %v1827_v1 = vadd.f32 0.014752088, %v1826_v32  ;;  %v10377_v35 = vld [vmem:[#allocation19_spill] sm:$0xff] }
 0x20b   :  { %v2019_v38 = vmul.f32 %v2018_v51, %v7063_v24  ;;  %v2096_v21 = vadd.f32 0.0036580483, %v2095_v11  ;;  %v2131_v59 = vmul.f32 %v7173_v23, %v7173_v23  ;;  %v2171_v43 = vmul.f32 %v7177_v16, %v7177_v16 }
 0x20c   :  { %v5378_v47 = vclamps-f32 %v1688_v44, 1.0  ;;  %v3195_v18 = vadd.f32 1.0, %v5376_v0  ;;  %v1636_v13 = vsub.f32 1.0, %v1635_v30  ;;  %5624 = vrcp.f32 %v7185_v53 }
 0x20d   :  { %v1980_v26 = vadd.f32 0.18741608, %v1979_v14  ;;  %v2057_v55 = vmul.f32 %v2056_v50, %v7113_v25  ;;  %vm1640_vm8 = vweird.f32 %v5623_v20  ;;  %v1645_v49 = vand.u32 2147483648, %v7155_v42 }
 0x20e   :  { %v3197_v51 = vadd.f32 1.0, %v5378_v47  ;;  %v1637_v11 = vmul.f32 %v5623_v20, %v1636_v13  ;;  %v1749_v12 = vadd.f32 0.112945676, %v1748_v41  ;;  %v1828_v37 = vmul.f32 %v1827_v1, %v6903_v4 }
 0x20f   :  { %v2097_v46 = vmul.f32 %v2096_v21, %v7121_v7  ;;  %v7197_v32 = vmin.f32 %v2131_v59, 16.0  ;;  %v7199_v0 = vmin.f32 %v2171_v43, 16.0  ;;  %v1643_v36 = vand.u32 2147483647, %v7155_v42 }
 0x210   :  { %v3259_v14 = vmul.f32 %v3195_v18, %v10377_v35  ;;  %v3261_v50 = vmul.f32 %v3197_v51, %v6900_v9  ;;  %v1638_v10 = vadd.f32 %v5623_v20, %v1637_v11  ;;  %vm1639_vm9 = vweird.f32 %v7155_v42  ;;  %v453_v9 = vpop.f32.mrf.mxu1 }
 0x211   :  { %10376 = vst [vmem:[#allocation10_spill] sm:$0xff] %v7199_v0  ;;  %v7207_v41 = vmul.f32 %v7147_v57, %v6946_v39  ;;  %v2020_v44 = vadd.f32 0.18741608, %v2019_v38  ;;  %v7210_v30 = vadd.f32 %v364_v34, %v5907_v2  ;;  %vm7213_vm10 = vmor %vm1639_vm9, %vm1640_vm8  ;;  %v1750_v21 = vmul.f32 %v1749_v12, %v6786_v5 }
 0x212   :  { %v5625_v59 = vpop.eup %5624  ;;  %v3311_v43 = vpack.c.bf16 %v3261_v50, %v3259_v14  ;;  %v1642_v42 = vsel %vm7213_vm10, %v5623_v20, %v1638_v10  ;;  %v1646_v47 = vor.u32 1.1754944e-38, %v1645_v49  ;;  %v1829_v39 = vadd.f32 0.112945676, %v1828_v37 }
 0x213   :  { %v1981_v57 = vmul.f32 %v1980_v26, %v7051_v63  ;;  %v2058_v38 = vadd.f32 0.05243302, %v2057_v55  ;;  %vm1644_vm11 = vcmp.eq.f32.partialorder %v1643_v36, 8.507059e+37  ;;  %v1715_v18 = vmul.f32 %v5625_v59, %v7185_v53 }
 0x214   :  { %v2098_v13 = vadd.f32 0.05243302, %v2097_v46  ;;  %v2133_v34 = vmul.f32 2.1237322e-06, %v7197_v32  ;;  %v2173_v51 = vmul.f32 2.1237322e-06, %v7199_v0  ;;  %3501 = vmatmul.bf16.gmra.mxu2 %v3311_v43  ;;  %v1647_v11 = vsel %vm1644_vm11, %v1646_v47, %v1642_v42 }
 0x215   :  { %v7225_v12 = vmul.f32 0.70710677, %v7210_v30  ;;  %v7228_v20 = vadd.f32 %v453_v9, %v5912_v8  ;;  %v1716_v49 = vsub.f32 1.0, %v1715_v18  ;;  %v1751_v37 = vadd.f32 0.4994258, %v1750_v21 }
 0x216   :  { %v1723_v26 = vand.u32 2147483647, %v7185_v53  ;;  %v1725_v55 = vand.u32 2147483648, %v7185_v53  ;;  %v1830_v46 = vmul.f32 %v1829_v39, %v6903_v4  ;;  %v1784_v36 = vmul.f32 3.8918573e-05, %v6793_v54 }
 0x217   :  { %v1648_v35 = vmul.f32 %v1647_v11, %v6890_v28  ;;  %v1717_v14 = vmul.f32 %v5625_v59, %v1716_v49  ;;  %vm1720_vm12 = vweird.f32 %v5625_v59  ;;  %v1752_v50 = vmul.f32 %v1751_v37, %v6786_v5 }
 0x218   :  { %v2059_v10 = vmul.f32 %v2058_v38, %v7113_v25  ;;  %v2099_v1 = vmul.f32 %v2098_v13, %v7121_v7  ;;  %v2134_v9 = vadd.f32 0.00028619796, %v2133_v34  ;;  %v2174_v21 = vadd.f32 0.00028619796, %v2173_v51 }
 0x219   :  { %v7239_v43 = vmul.f32 0.70710677, %v7228_v20  ;;  %v1718_v42 = vadd.f32 %v5625_v59, %v1717_v14  ;;  %vm1719_vm13 = vweird.f32 %v7185_v53  ;;  %v7242_v47 = vadd.f32 1.0, %v1752_v50 }
 0x21a   :  { %v2211_v28 = vmul.f32 %v7225_v12, %v7225_v12  ;;  %vm1721_vm14 = vmor %vm1719_vm13, %vm1720_vm12  ;;  %v1726_v39 = vor.u32 1.1754944e-38, %v1725_v55  ;;  %v1831_v5 = vadd.f32 0.4994258, %v1830_v46  ;;  %v1785_v18 = vadd.f32 0.001143296, %v1784_v36 }
 0x21b   :  { %v5377_v38 = vclamps-f32 %v1648_v35, 1.0  ;;  %v1722_v11 = vsel %vm1721_vm14, %v5625_v59, %v1718_v42  ;;  %vm1724_vm15 = vcmp.eq.f32.partialorder %v1723_v26, 8.507059e+37  ;;  %5626 = vrcp.f32 %v7242_v47 }
 0x21c   :  { %v7248_v13 = vmul.f32 0.5, %v6993_v3  ;;  %v2021_v34 = vmul.f32 %v2020_v44, %v7063_v24  ;;  %v2135_v53 = vmul.f32 %v2134_v9, %v7197_v32  ;;  %v1727_v51 = vsel %vm1724_vm15, %v1726_v39, %v1722_v11  ;;  %v10385_v11 = vld [vmem:[#allocation14_spill] sm:$0xff] }
 0x21d   :  { %v7253_v49 = vmul.f32 0.5, %v6998_v62  ;;  %v2060_v37 = vadd.f32 0.18741608, %v2059_v10  ;;  %v2100_v55 = vadd.f32 0.18741608, %v2099_v1  ;;  %v1728_v46 = vmul.f32 %v1727_v51, %v7024_v17 }
 0x21e   :  { %v2175_v59 = vmul.f32 %v2174_v21, %v7199_v0  ;;  %v7257_v26 = vmin.f32 %v2211_v28, 16.0  ;;  %v2251_v3 = vmul.f32 %v7239_v43, %v7239_v43  ;;  %v1832_v36 = vmul.f32 %v1831_v5, %v6903_v4 }
 0x21f   :  { %v1982_v44 = vadd.f32 1.1283791, %v1981_v57  ;;  %v5379_v35 = vclamps-f32 %v1728_v46, 1.0  ;;  %v3196_v14 = vadd.f32 1.0, %v5377_v38  ;;  %v1786_v50 = vmul.f32 %v1785_v18, %v6793_v54  ;;  %v10384_v18 = vld [vmem:[#allocation12_spill] sm:$0xff] }
 0x220   :  { %10380 = vst [vmem:[#allocation16_spill] sm:$0xff] %v7257_v26  ;;  %v2022_v62 = vadd.f32 1.1283791, %v2021_v34  ;;  %v7264_v10 = vmul.f32 0.5, %v7071_v45  ;;  %v2136_v1 = vadd.f32 0.0036580483, %v2135_v53  ;;  %v2061_v21 = vmul.f32 %v2060_v37, %v7113_v25  ;;  %v366_v53 = vpop.f32.mrf.mxu0 }
 0x221   :  { %v7266_v17 = vadd.f32 1.0, %v1832_v36  ;;  %v5627_v9 = vpop.eup %5626  ;;  %v7270_v42 = vmul.f32 0.5, %v7082_v6  ;;  %v2101_v4 = vmul.f32 %v2100_v55, %v7121_v7  ;;  %v3198_v57 = vadd.f32 1.0, %v5379_v35 }
 0x222   :  { %10381 = vst [vmem:[#allocation11_spill] sm:$0xff] %v7264_v10  ;;  %v2176_v28 = vadd.f32 0.0036580483, %v2175_v59  ;;  %v2213_v39 = vmul.f32 2.1237322e-06, %v7257_v26  ;;  %v7274_v5 = vmin.f32 %v2251_v3, 16.0  ;;  %v1755_v45 = vmul.f32 %v5627_v9, %v7242_v47 }
 0x223   :  { %10382 = vst [vmem:[#allocation19_spill] sm:$0xff] %v7270_v42  ;;  %v3260_v38 = vmul.f32 %v3196_v14, %v10384_v18  ;;  %v3262_v34 = vmul.f32 %v3198_v57, %v10385_v11  ;;  %5628 = vrcp.f32 %v7266_v17  ;;  %v1787_v51 = vadd.f32 0.014752088, %v1786_v50 }
 0x224   :  { %10383 = vst [vmem:[#allocation23_spill] sm:$0xff] %v7274_v5  ;;  %v7281_v6 = vmul.f32 %v1982_v44, %v7004_v19  ;;  %v7284_v37 = vmul.f32 %v2022_v62, %v7013_v56  ;;  %v2137_v55 = vmul.f32 %v2136_v1, %v7197_v32  ;;  %v1756_v46 = vsub.f32 1.0, %v1755_v45 }
 0x225   :  { %v2062_v59 = vadd.f32 1.1283791, %v2061_v21  ;;  %v7287_v3 = vadd.f32 1.1283791, %v2101_v4  ;;  %v3312_v36 = vpack.c.bf16 %v3262_v34, %v3260_v38  ;;  %v1765_v35 = vand.u32 2147483648, %v7242_v47  ;;  %v455_v34 = vpop.f32.mrf.mxu1 }
 0x226   :  { %v2177_v14 = vmul.f32 %v2176_v28, %v7199_v0  ;;  %v1757_v57 = vmul.f32 %v5627_v9, %v1756_v46  ;;  %vm1760_vm0 = vweird.f32 %v5627_v9  ;;  %v1763_v50 = vand.u32 2147483647, %v7242_v47 }
 0x227   :  { %v2214_v19 = vadd.f32 0.00028619796, %v2213_v39  ;;  %v2253_v44 = vmul.f32 2.1237322e-06, %v7274_v5  ;;  %3590 = vmatmul.bf16.gmra.mxu3 %v3312_v36  ;;  %v1788_v56 = vmul.f32 %v1787_v51, %v6793_v54  ;;  %v1864_v62 = vmul.f32 3.8918573e-05, %v6912_v15 }
 0x228   :  { %v2138_v1 = vadd.f32 0.05243302, %v2137_v55  ;;  %v1758_v21 = vadd.f32 %v5627_v9, %v1757_v57  ;;  %vm1759_vm1 = vweird.f32 %v7242_v47  ;;  %v1904_v4 = vmul.f32 3.8918573e-05, %v6964_v61 }
 0x229   :  { %v5629_v45 = vpop.eup %5628  ;;  %v7298_v28 = vmul.f32 %v2062_v59, %v7086_v22  ;;  %vm1761_vm2 = vmor %vm1759_vm1, %vm1760_vm0  ;;  %v1766_v18 = vor.u32 1.1754944e-38, %v1765_v35  ;;  %v1789_v39 = vadd.f32 0.112945676, %v1788_v56  ;;  %v1865_v38 = vadd.f32 0.001143296, %v1864_v62  ;;  %v7305_v56 = vpop.f32.mrf.mxu0 }
 0x22a   :  { %v2178_v11 = vadd.f32 0.05243302, %v2177_v14  ;;  %v1762_v46 = vsel %vm1761_vm2, %v5627_v9, %v1758_v21  ;;  %vm1764_vm3 = vcmp.eq.f32.partialorder %v1763_v50, 8.507059e+37  ;;  %v1835_v51 = vmul.f32 %v5629_v45, %v7266_v17 }
 0x22b   :  { %10386 = vst [vmem:[#allocation12_spill] sm:$0xff] %v7298_v28  ;;  %v2254_v55 = vadd.f32 0.00028619796, %v2253_v44  ;;  %v1767_v36 = vsel %vm1764_vm3, %v1766_v18, %v1762_v46  ;;  %v1790_v47 = vmul.f32 %v1789_v39, %v6793_v54  ;;  %v1866_v57 = vmul.f32 %v1865_v38, %v6912_v15 }
 0x22c   :  { %v2215_v42 = vmul.f32 %v2214_v19, %v7257_v26  ;;  %v1836_v22 = vsub.f32 1.0, %v1835_v51  ;;  %v1843_v59 = vand.u32 2147483647, %v7266_v17  ;;  %v1905_v35 = vadd.f32 0.001143296, %v1904_v4 }
 0x22d   :  { %v1768_v14 = vmul.f32 %v1767_v36, %v7031_v33  ;;  %v1845_v9 = vand.u32 2147483648, %v7266_v17  ;;  %v1791_v50 = vadd.f32 0.4994258, %v1790_v47  ;;  %v1867_v62 = vadd.f32 0.014752088, %v1866_v57 }
 0x22e   :  { %v1837_v44 = vmul.f32 %v5629_v45, %v1836_v22  ;;  %vm1840_vm4 = vweird.f32 %v5629_v45  ;;  %v1906_v21 = vmul.f32 %v1905_v35, %v6964_v61  ;;  %v1984_v18 = vmul.f32 3.8918573e-05, %v7051_v63 }
 0x22f   :  { %v2139_v19 = vmul.f32 %v2138_v1, %v7197_v32  ;;  %v7313_v39 = vadd.f32 %v366_v53, %v5907_v2  ;;  %v1792_v4 = vmul.f32 %v1791_v50, %v6793_v54  ;;  %v1868_v38 = vmul.f32 %v1867_v62, %v6912_v15 }
 0x230   :  { %v1838_v33 = vadd.f32 %v5629_v45, %v1837_v44  ;;  %vm1839_vm5 = vweird.f32 %v7266_v17  ;;  %v1907_v46 = vadd.f32 0.014752088, %v1906_v21  ;;  %v1985_v51 = vadd.f32 0.001143296, %v1984_v18 }
 0x231   :  { %v5380_v36 = vclamps-f32 %v1768_v14, 1.0  ;;  %vm1841_vm6 = vmor %vm1839_vm5, %vm1840_vm4  ;;  %v1846_v47 = vor.u32 1.1754944e-38, %v1845_v9  ;;  %v7318_v57 = vadd.f32 1.0, %v1792_v4  ;;  %v1869_v22 = vadd.f32 0.112945676, %v1868_v38  ;;  %v7330_v9 = vpop.f32.mrf.mxu1 }
 0x232   :  { %v1842_v35 = vsel %vm1841_vm6, %v5629_v45, %v1838_v33  ;;  %vm1844_vm7 = vcmp.eq.f32.partialorder %v1843_v59, 8.507059e+37  ;;  %v1908_v53 = vmul.f32 %v1907_v46, %v6964_v61  ;;  %v1986_v1 = vmul.f32 %v1985_v51, %v7051_v63 }
 0x233   :  { %v7323_v54 = vmul.f32 0.70710677, %v7313_v39  ;;  %v7326_v50 = vadd.f32 %v455_v34, %v5912_v8  ;;  %v1847_v17 = vsel %vm1844_vm7, %v1846_v47, %v1842_v35  ;;  %5630 = vrcp.f32 %v7318_v57 }
 0x234   :  { %v2179_v14 = vmul.f32 %v2178_v11, %v7199_v0  ;;  %v1848_v45 = vmul.f32 %v1847_v17, %v7111_v27  ;;  %v1870_v59 = vmul.f32 %v1869_v22, %v6912_v15  ;;  %v1909_v62 = vadd.f32 0.112945676, %v1908_v53 }
 0x235   :  { %v2216_v44 = vadd.f32 0.0036580483, %v2215_v42  ;;  %v2255_v21 = vmul.f32 %v2254_v55, %v7274_v5  ;;  %v3199_v18 = vadd.f32 1.0, %v5380_v36  ;;  %v1987_v4 = vadd.f32 0.014752088, %v1986_v1  ;;  %v7348_v55 = vpop.f32.mrf.mxu0 }
 0x236   :  { %v7337_v34 = vmul.f32 %v7287_v3, %v7101_v31  ;;  %v5382_v38 = vclamps-f32 %v1848_v45, 1.0  ;;  %v1871_v33 = vadd.f32 0.4994258, %v1870_v59  ;;  %v1910_v11 = vmul.f32 %v1909_v62, %v6964_v61 }
 0x237   :  { %v7341_v46 = vmul.f32 0.5, %v7158_v48  ;;  %v2140_v27 = vadd.f32 0.18741608, %v2139_v19  ;;  %v2291_v51 = vmul.f32 %v7323_v54, %v7323_v54  ;;  %v7346_v42 = vmul.f32 0.70710677, %v7326_v50  ;;  %v10390_v19 = vld [vmem:[#allocation13_spill] sm:$0xff] }
 0x238   :  { %10387 = vst [vmem:[#allocation14_spill] sm:$0xff] %v7337_v34  ;;  %v7351_v36 = vmul.f32 0.5, %v7162_v60  ;;  %v2180_v31 = vadd.f32 0.18741608, %v2179_v14  ;;  %v3201_v3 = vadd.f32 1.0, %v5382_v38  ;;  %v1872_v47 = vmul.f32 %v1871_v33, %v6912_v15 }
 0x239   :  { %10388 = vst [vmem:[#allocation24_spill] sm:$0xff] %v7341_v46  ;;  %v5631_v22 = vpop.eup %5630  ;;  %v2217_v48 = vmul.f32 %v2216_v44, %v7257_v26  ;;  %v2256_v35 = vadd.f32 0.0036580483, %v2255_v21  ;;  %v3263_v53 = vmul.f32 %v3199_v18, %v10390_v19  ;;  %v1988_v1 = vmul.f32 %v1987_v4, %v7051_v63 }
 0x23a   :  { %10389 = vst [vmem:[#allocation25_spill] sm:$0xff] %v7351_v36  ;;  %v3265_v17 = vmul.f32 %v3201_v3, %v7043_v29  ;;  %v1795_v45 = vmul.f32 %v5631_v22, %v7318_v57  ;;  %v7359_v59 = vadd.f32 1.0, %v1872_v47  ;;  %v1911_v60 = vadd.f32 0.4994258, %v1910_v11  ;;  %v10395_v36 = vld [vmem:[#allocation18_spill] sm:$0xff] }
 0x23b   :  { %v2141_v14 = vmul.f32 %v2140_v27, %v7197_v32  ;;  %v7363_v62 = vmul.f32 0.5, %v7210_v30  ;;  %v7365_v15 = vmin.f32 %v2291_v51, 16.0  ;;  %v2331_v44 = vmul.f32 %v7346_v42, %v7346_v42  ;;  %v7374_v51 = vpop.f32.mrf.mxu1 }
 0x23c   :  { %v2181_v21 = vmul.f32 %v2180_v31, %v7199_v0  ;;  %v3313_v18 = vpack.c.bf16 %v3265_v17, %v3263_v53  ;;  %v1796_v4 = vsub.f32 1.0, %v1795_v45  ;;  %5632 = vrcp.f32 %v7359_v59 }
 0x23d   :  { %10391 = vst [vmem:[#allocation13_spill] sm:$0xff] %v7363_v62  ;;  %v2218_v29 = vadd.f32 0.05243302, %v2217_v48  ;;  %v2257_v38 = vmul.f32 %v2256_v35, %v7274_v5  ;;  %v1989_v33 = vadd.f32 0.112945676, %v1988_v1  ;;  %vm1800_vm8 = vweird.f32 %v5631_v22  ;;  %v374_v19 = vpop.f32.mrf.mxu0 }
 0x23e   :  { %v1944_v11 = vmul.f32 3.8918573e-05, %v6981_v40  ;;  %3506 = vmatmul.bf16.gmra.mxu2 %v3313_v18  ;;  %v1797_v30 = vmul.f32 %v5631_v22, %v1796_v4  ;;  %v1805_v27 = vand.u32 2147483648, %v7318_v57  ;;  %v1912_v3 = vmul.f32 %v1911_v60, %v6964_v61 }
 0x23f   :  { %v2293_v31 = vmul.f32 2.1237322e-06, %v7365_v15  ;;  %v7378_v47 = vmin.f32 %v2331_v44, 16.0  ;;  %v7382_v48 = vadd.f32 %v7305_v56, %v5907_v2  ;;  %v1803_v35 = vand.u32 2147483647, %v7318_v57 }
 0x240   :  { %v1798_v53 = vadd.f32 %v5631_v22, %v1797_v30  ;;  %vm1799_vm9 = vweird.f32 %v7318_v57  ;;  %v7387_v1 = vadd.f32 %v374_v19, %v5907_v2  ;;  %v7389_v17 = vadd.f32 1.0, %v1912_v3 }
 0x241   :  { %v2219_v61 = vmul.f32 %v2218_v29, %v7257_v26  ;;  %v2258_v45 = vadd.f32 0.05243302, %v2257_v38  ;;  %vm7393_vm10 = vmor %vm1799_vm9, %vm1800_vm8  ;;  %v1990_v56 = vmul.f32 %v1989_v33, %v7051_v63  ;;  %v1945_v44 = vadd.f32 0.001143296, %v1944_v11 }
 0x242   :  { %v5633_v18 = vpop.eup %5632  ;;  %v1802_v57 = vsel %vm7393_vm10, %v5631_v22, %v1798_v53  ;;  %v1806_v4 = vor.u32 1.1754944e-38, %v1805_v27  ;;  %v7401_v30 = vmul.f32 0.70710677, %v7387_v1  ;;  %5634 = vrcp.f32 %v7389_v17 }
 0x243   :  { %v2142_v29 = vadd.f32 1.1283791, %v2141_v14  ;;  %v7404_v38 = vadd.f32 1.1283791, %v2181_v21  ;;  %vm1804_vm11 = vcmp.eq.f32.partialorder %v1803_v35, 8.507059e+37  ;;  %v1875_v3 = vmul.f32 %v5633_v18, %v7359_v59 }
 0x244   :  { %v2294_v19 = vadd.f32 0.00028619796, %v2293_v31  ;;  %v2333_v33 = vmul.f32 2.1237322e-06, %v7378_v47  ;;  %v7409_v11 = vmul.f32 0.70710677, %v7382_v48  ;;  %v1807_v60 = vsel %vm1804_vm11, %v1806_v4, %v1802_v57 }
 0x245   :  { %v2220_v22 = vadd.f32 0.18741608, %v2219_v61  ;;  %v7412_v27 = vmul.f32 0.5, %v7228_v20  ;;  %v1876_v53 = vsub.f32 1.0, %v1875_v3  ;;  %v1991_v62 = vadd.f32 0.4994258, %v1990_v56  ;;  %v463_v3 = vpop.f32.mrf.mxu1 }
 0x246   :  { %v2259_v14 = vmul.f32 %v2258_v45, %v7274_v5  ;;  %v1885_v21 = vand.u32 2147483648, %v7359_v59  ;;  %v2531_v35 = vmul.f32 %v7401_v30, %v7401_v30  ;;  %v1946_v31 = vmul.f32 %v1945_v44, %v6981_v40 }
 0x247   :  { %10394 = vst [vmem:[#allocation26_spill] sm:$0xff] %v7412_v27  ;;  %v1808_v34 = vmul.f32 %v1807_v60, %v10395_v36  ;;  %v1877_v46 = vmul.f32 %v5633_v18, %v1876_v53  ;;  %vm1880_vm12 = vweird.f32 %v5633_v18  ;;  %v1883_v61 = vand.u32 2147483647, %v7359_v59 }
 0x248   :  { %v7421_v57 = vpop.eup %5634  ;;  %v2295_v20 = vmul.f32 %v2294_v19, %v7365_v15  ;;  %v2334_v56 = vadd.f32 0.00028619796, %v2333_v33  ;;  %v2371_v45 = vmul.f32 %v7409_v11, %v7409_v11  ;;  %v7428_v4 = vadd.f32 %v7330_v9, %v5912_v8 }
 0x249   :  { %v1878_v44 = vadd.f32 %v5633_v18, %v1877_v46  ;;  %vm1879_vm13 = vweird.f32 %v7359_v59  ;;  %v7432_v36 = vadd.f32 %v463_v3, %v5912_v8  ;;  %v1992_v60 = vmul.f32 %v1991_v62, %v7051_v63 }
 0x24a   :  { %vm1881_vm14 = vmor %vm1879_vm13, %vm1880_vm12  ;;  %v1886_v53 = vor.u32 1.1754944e-38, %v1885_v21  ;;  %v7435_v19 = vmin.f32 %v2531_v35, 16.0  ;;  %v1915_v33 = vmul.f32 %v7421_v57, %v7389_v17  ;;  %v1947_v27 = vadd.f32 0.014752088, %v1946_v31 }
 0x24b   :  { %v5381_v10 = vclamps-f32 %v1808_v34, 1.0  ;;  %v1882_v9 = vsel %vm1881_vm14, %v5633_v18, %v1878_v44  ;;  %vm1884_vm15 = vcmp.eq.f32.partialorder %v1883_v61, 8.507059e+37  ;;  %v7440_v46 = vmul.f32 0.70710677, %v7432_v36 }
 0x24c   :  { %v2335_v59 = vmul.f32 %v2334_v56, %v7378_v47  ;;  %v7444_v3 = vmul.f32 0.70710677, %v7428_v4  ;;  %v1887_v63 = vsel %vm1884_vm15, %v1886_v53, %v1882_v9  ;;  %v1916_v62 = vsub.f32 1.0, %v1915_v33 }
 0x24d   :  { %v2260_v21 = vadd.f32 0.18741608, %v2259_v14  ;;  %v7446_v35 = vmin.f32 %v2371_v45, 16.0  ;;  %v1888_v28 = vmul.f32 %v1887_v63, %v7145_v58  ;;  %v7449_v0 = vadd.f32 1.0, %v1992_v60  ;;  %v10398_v63 = vld [vmem:[#allocation20_spill] sm:$0xff] }
 0x24e   :  { %v2296_v34 = vadd.f32 0.0036580483, %v2295_v20  ;;  %v2544_v18 = vmul.f32 3.8918573e-05, %v7435_v19  ;;  %v2571_v31 = vmul.f32 %v7440_v46, %v7440_v46  ;;  %v1948_v61 = vmul.f32 %v1947_v27, %v6981_v40 }
 0x24f   :  { %v7456_v56 = vmul.f32 %v2142_v29, %v7173_v23  ;;  %v5383_v44 = vclamps-f32 %v1888_v28, 1.0  ;;  %v3200_v53 = vadd.f32 1.0, %v5381_v10  ;;  %v1917_v14 = vmul.f32 %v7421_v57, %v1916_v62 }
 0x250   :  { %v2221_v45 = vmul.f32 %v2220_v22, %v7257_v26  ;;  %v2336_v58 = vadd.f32 0.0036580483, %v2335_v59  ;;  %v2411_v20 = vmul.f32 %v7444_v3, %v7444_v3  ;;  %v7462_v60 = vmin.f32 %v2571_v31, 16.0  ;;  %v10397_v22 = vld [vmem:[#allocation15_spill] sm:$0xff] }
 0x251   :  { %10396 = vst [vmem:[#allocation18_spill] sm:$0xff] %v7456_v56  ;;  %v2261_v33 = vmul.f32 %v2260_v21, %v7274_v5  ;;  %v2373_v9 = vmul.f32 2.1237322e-06, %v7446_v35  ;;  %v3202_v27 = vadd.f32 1.0, %v5383_v44  ;;  %5636 = vrcp.f32 %v7449_v0 }
 0x252   :  { %v2297_v23 = vmul.f32 %v2296_v34, %v7365_v15  ;;  %v2545_v10 = vadd.f32 0.001143296, %v2544_v18  ;;  %v1949_v28 = vadd.f32 0.112945676, %v1948_v61  ;;  %v2024_v29 = vmul.f32 3.8918573e-05, %v7063_v24 }
 0x253   :  { %v3264_v59 = vmul.f32 %v3200_v53, %v10397_v22  ;;  %v3266_v62 = vmul.f32 %v3202_v27, %v10398_v63  ;;  %v1918_v31 = vadd.f32 %v7421_v57, %v1917_v14  ;;  %vm1920_vm0 = vweird.f32 %v7421_v57 }
 0x254   :  { %v2337_v21 = vmul.f32 %v2336_v58, %v7378_v47  ;;  %v7474_v5 = vmin.f32 %v2411_v20, 16.0  ;;  %v2584_v44 = vmul.f32 3.8918573e-05, %v7462_v60  ;;  %v1925_v34 = vand.u32 2147483648, %v7389_v17 }
 0x255   :  { %v2374_v18 = vadd.f32 0.00028619796, %v2373_v9  ;;  %v3314_v61 = vpack.c.bf16 %v3266_v62, %v3264_v59  ;;  %vm1919_vm1 = vweird.f32 %v7389_v17  ;;  %v1923_v53 = vand.u32 2147483647, %v7389_v17 }
 0x256   :  { %10399 = vst [vmem:[#allocation15_spill] sm:$0xff] %v7474_v5  ;;  %v7482_v27 = vmul.f32 %v7404_v38, %v7177_v16  ;;  %v2222_v14 = vadd.f32 1.1283791, %v2221_v45  ;;  %v2262_v22 = vadd.f32 1.1283791, %v2261_v33  ;;  %v2546_v58 = vmul.f32 %v2545_v10, %v7435_v19  ;;  %vm7485_vm2 = vmor %vm1919_vm1, %vm1920_vm0 }
 0x257   :  { %v5637_v63 = vpop.eup %5636  ;;  %3595 = vmatmul.bf16.gmra.mxu3 %v3314_v61  ;;  %v7491_v9 = vadd.f32 %v7348_v55, %v5907_v2  ;;  %v1922_v17 = vsel %vm7485_vm2, %v7421_v57, %v1918_v31  ;;  %v1950_v16 = vmul.f32 %v1949_v28, %v6981_v40  ;;  %v2025_v38 = vadd.f32 0.001143296, %v2024_v29 }
 0x258   :  { %10400 = vst [vmem:[#allocation20_spill] sm:$0xff] %v7482_v27  ;;  %v2298_v45 = vadd.f32 0.05243302, %v2297_v23  ;;  %v2585_v33 = vadd.f32 0.001143296, %v2584_v44  ;;  %v1926_v10 = vor.u32 1.1754944e-38, %v1925_v34  ;;  %v1995_v59 = vmul.f32 %v5637_v63, %v7449_v0 }
 0x259   :  { %v2338_v62 = vadd.f32 0.05243302, %v2337_v21  ;;  %v2375_v27 = vmul.f32 %v2374_v18, %v7446_v35  ;;  %v2413_v61 = vmul.f32 2.1237322e-06, %v7474_v5  ;;  %vm1924_vm3 = vcmp.eq.f32.partialorder %v1923_v53, 8.507059e+37 }
 0x25a   :  { %v7502_v55 = vadd.f32 %v7374_v51, %v5912_v8  ;;  %v2547_v20 = vadd.f32 0.014752088, %v2546_v58  ;;  %v1927_v57 = vsel %vm1924_vm3, %v1926_v10, %v1922_v17  ;;  %v1996_v31 = vsub.f32 1.0, %v1995_v59 }
 0x25b   :  { %v7505_v28 = vmul.f32 0.70710677, %v7491_v9  ;;  %v2005_v23 = vand.u32 2147483648, %v7449_v0  ;;  %v1951_v29 = vadd.f32 0.4994258, %v1950_v16  ;;  %v2026_v21 = vmul.f32 %v2025_v38, %v7063_v24 }
 0x25c   :  { %v2586_v44 = vmul.f32 %v2585_v33, %v7462_v60  ;;  %v1997_v34 = vmul.f32 %v5637_v63, %v1996_v31  ;;  %vm2000_vm4 = vweird.f32 %v5637_v63  ;;  %v2003_v18 = vand.u32 2147483647, %v7449_v0 }
 0x25d   :  { %v2299_v51 = vmul.f32 %v2298_v45, %v7365_v15  ;;  %v2339_v53 = vmul.f32 %v2338_v62, %v7378_v47  ;;  %v2414_v58 = vadd.f32 0.00028619796, %v2413_v61  ;;  %v1928_v17 = vmul.f32 %v1927_v57, %v7153_v52 }
 0x25e   :  { %v2376_v10 = vadd.f32 0.0036580483, %v2375_v27  ;;  %v2548_v59 = vmul.f32 %v2547_v20, %v7435_v19  ;;  %v1998_v56 = vadd.f32 %v5637_v63, %v1997_v34  ;;  %vm1999_vm5 = vweird.f32 %v7449_v0 }
 0x25f   :  { %v2451_v16 = vmul.f32 %v7505_v28, %v7505_v28  ;;  %v7519_v38 = vmul.f32 0.70710677, %v7502_v55  ;;  %vm2001_vm6 = vmor %vm1999_vm5, %vm2000_vm4  ;;  %v2006_v33 = vor.u32 1.1754944e-38, %v2005_v23  ;;  %v1952_v45 = vmul.f32 %v1951_v29, %v6981_v40 }
 0x260   :  { %v2587_v62 = vadd.f32 0.014752088, %v2586_v44  ;;  %v2002_v61 = vsel %vm2001_vm6, %v5637_v63, %v1998_v56  ;;  %vm2004_vm7 = vcmp.eq.f32.partialorder %v2003_v18, 8.507059e+37  ;;  %v2027_v52 = vadd.f32 0.014752088, %v2026_v21 }
 0x261   :  { %v2300_v27 = vadd.f32 0.18741608, %v2299_v51  ;;  %v5384_v57 = vclamps-f32 %v1928_v17, 1.0  ;;  %v2007_v20 = vsel %vm2004_vm7, %v2006_v33, %v2002_v61  ;;  %v7522_v31 = vadd.f32 1.0, %v1952_v45  ;;  %v10409_v45 = vld [vmem:[#allocation17_spill] sm:$0xff] }
 0x262   :  { %v2415_v0 = vmul.f32 %v2414_v58, %v7474_v5  ;;  %v2549_v34 = vadd.f32 0.112945676, %v2548_v59  ;;  %v2008_v26 = vmul.f32 %v2007_v20, %v7281_v6  ;;  %v2028_v7 = vmul.f32 %v2027_v52, %v7063_v24 }
 0x263   :  { %v7528_v23 = vmul.f32 %v2222_v14, %v7225_v12  ;;  %v2377_v40 = vmul.f32 %v2376_v10, %v7446_v35  ;;  %v2491_v56 = vmul.f32 %v7519_v38, %v7519_v38  ;;  %5638 = vrcp.f32 %v7522_v31 }
 0x264   :  { %v7535_v63 = vmul.f32 %v2262_v22, %v7239_v43  ;;  %v2340_v29 = vadd.f32 0.18741608, %v2339_v53  ;;  %v7537_v21 = vmin.f32 %v2451_v16, 16.0  ;;  %v2588_v6 = vmul.f32 %v2587_v62, %v7462_v60 }
 0x265   :  { %10403 = vst [vmem:[#allocation27_spill] sm:$0xff] %v7528_v23  ;;  %v7541_v44 = vmul.f32 0.5, %v7313_v39  ;;  %v5386_v12 = vclamps-f32 %v2008_v26, 1.0  ;;  %v3203_v14 = vadd.f32 1.0, %v5384_v57  ;;  %v2029_v18 = vadd.f32 0.112945676, %v2028_v7 }
 0x266   :  { %10404 = vst [vmem:[#allocation28_spill] sm:$0xff] %v7535_v63  ;;  %v2301_v51 = vmul.f32 %v2300_v27, %v7365_v15  ;;  %v7545_v58 = vmul.f32 0.5, %v7326_v50  ;;  %v2416_v17 = vadd.f32 0.0036580483, %v2415_v0  ;;  %v2550_v43 = vmul.f32 %v2549_v34, %v7435_v19 }
 0x267   :  { %10405 = vst [vmem:[#allocation29_spill] sm:$0xff] %v7537_v21  ;;  %v2378_v22 = vadd.f32 0.05243302, %v2377_v40  ;;  %v7548_v53 = vmin.f32 %v2491_v56, 16.0  ;;  %v3205_v10 = vadd.f32 1.0, %v5386_v12  ;;  %v2030_v59 = vmul.f32 %v2029_v18, %v7063_v24 }
 0x268   :  { %10406 = vst [vmem:[#allocation30_spill] sm:$0xff] %v7541_v44  ;;  %v2341_v39 = vmul.f32 %v2340_v29, %v7378_v47  ;;  %v7553_v26 = vmul.f32 0.5, %v7382_v48  ;;  %v2453_v7 = vmul.f32 2.1237322e-06, %v7537_v21  ;;  %v2589_v16 = vadd.f32 0.112945676, %v2588_v6  ;;  %v376_v29 = vpop.f32.mrf.mxu0 }
 0x269   :  { %10407 = vst [vmem:[#allocation31_spill] sm:$0xff] %v7545_v58  ;;  %v7556_v33 = vpop.eup %5638  ;;  %v2533_v50 = vmul.f32 2.1237322e-06, %v7435_v19  ;;  %v3267_v62 = vmul.f32 %v3203_v14, %v10409_v45  ;;  %v3269_v61 = vmul.f32 %v3205_v10, %v7248_v13  ;;  %v2031_v52 = vadd.f32 0.4994258, %v2030_v59 }
 0x26a   :  { %10408 = vst [vmem:[#allocation32_spill] sm:$0xff] %v7553_v26  ;;  %v2302_v27 = vadd.f32 1.1283791, %v2301_v51  ;;  %v2417_v57 = vmul.f32 %v2416_v17, %v7474_v5  ;;  %v2551_v20 = vadd.f32 0.4994258, %v2550_v43  ;;  %v1955_v48 = vmul.f32 %v7556_v33, %v7522_v31 }
 0x26b   :  { %v2379_v0 = vmul.f32 %v2378_v22, %v7446_v35  ;;  %v2493_v34 = vmul.f32 2.1237322e-06, %v7548_v53  ;;  %v3315_v40 = vpack.c.bf16 %v3269_v61, %v3267_v62  ;;  %v2032_v56 = vmul.f32 %v2031_v52, %v7063_v24  ;;  %v7574_v18 = vld [vmem:[%s10284_s4] ss:$0 sm:$0xff]  ;;  %v3472_v22 = vpop.f32.mrf.mxu2 }
 0x26c   :  { %v2342_v6 = vadd.f32 1.1283791, %v2341_v39  ;;  %v7568_v12 = vmul.f32 0.5, %v7428_v4  ;;  %v2590_v13 = vmul.f32 %v2589_v16, %v7462_v60  ;;  %v1956_v14 = vsub.f32 1.0, %v1955_v48 }
 0x26d   :  { %v2454_v51 = vadd.f32 0.00028619796, %v2453_v7  ;;  %v2534_v17 = vadd.f32 0.00028619796, %v2533_v50  ;;  %3511 = vmatmul.bf16.gmra.mxu2 %v3315_v40  ;;  %v7576_v43 = vadd.f32 1.0, %v2032_v56  ;;  %v7579_v24 = vadd.f32 %v376_v29, %v5907_v2 }
 0x26e   :  { %10410 = vst [vmem:[#allocation17_spill] sm:$0xff] %v7568_v12  ;;  %v7582_v4 = vmul.f32 %v2302_v27, %v7323_v54  ;;  %v2418_v10 = vadd.f32 0.05243302, %v2417_v57  ;;  %v2552_v59 = vmul.f32 %v2551_v20, %v7435_v19  ;;  %v1957_v39 = vmul.f32 %v7556_v33, %v1956_v14 }
 0x26f   :  { %v2380_v16 = vadd.f32 0.18741608, %v2379_v0  ;;  %v2494_v45 = vadd.f32 0.00028619796, %v2493_v34  ;;  %v2573_v7 = vmul.f32 2.1237322e-06, %v7462_v60  ;;  %5640 = vrcp.f32 %v7576_v43 }
 0x270   :  { %10411 = vst [vmem:[#allocation33_spill] sm:$0xff] %v7582_v4  ;;  %v2591_v50 = vadd.f32 0.4994258, %v2590_v13  ;;  %v1958_v62 = vadd.f32 %v7556_v33, %v1957_v39  ;;  %vm1960_vm8 = vweird.f32 %v7556_v33  ;;  %v3473_v61 = vadd.f32 %v7574_v18, %v3472_v22  ;;  %v3561_v13 = vpop.f32.mrf.mxu3  ;;  %v379_v58 = vpop.f32.mrf.mxu0 }
 0x271   :  { %v2455_v54 = vmul.f32 %v2454_v51, %v7537_v21  ;;  %v2535_v52 = vmul.f32 %v2534_v17, %v7435_v19  ;;  %v1965_v27 = vand.u32 2147483648, %v7522_v31  ;;  %v7595_v57 = vmul.f32 0.70710677, %v7579_v24 }
 0x272   :  { %v2419_v20 = vmul.f32 %v2418_v10, %v7474_v5  ;;  %v7598_v48 = vadd.f32 1.0, %v2552_v59  ;;  %vm1959_vm9 = vweird.f32 %v7522_v31  ;;  %v1963_v0 = vand.u32 2147483647, %v7522_v31 }
 0x273   :  { %v7603_v34 = vmul.f32 %v2342_v6, %v7346_v42  ;;  %v2381_v40 = vmul.f32 %v2380_v16, %v7446_v35  ;;  %v2574_v56 = vadd.f32 0.00028619796, %v2573_v7  ;;  %vm7606_vm10 = vmor %vm1959_vm9, %vm1960_vm8  ;;  %v2611_v14 = vmul.f32 %v7595_v57, %v7595_v57  ;;  %v465_v7 = vpop.f32.mrf.mxu1 }
 0x274   :  { %v2495_v51 = vmul.f32 %v2494_v45, %v7548_v53  ;;  %v2592_v17 = vmul.f32 %v2591_v50, %v7462_v60  ;;  %v1962_v42 = vsel %vm7606_vm10, %v7556_v33, %v1958_v62  ;;  %v7617_v31 = vadd.f32 %v3561_v13, %v3473_v61 }
 0x275   :  { %10412 = vst [vmem:[#allocation34_spill] sm:$0xff] %v7603_v34  ;;  %v5641_v6 = vpop.eup %5640  ;;  %v2456_v22 = vadd.f32 0.0036580483, %v2455_v54  ;;  %v2536_v10 = vadd.f32 0.0036580483, %v2535_v52  ;;  %v1966_v59 = vor.u32 1.1754944e-38, %v1965_v27  ;;  %5642 = vrcp.f32 %v7598_v48 }
 0x276   :  { %v7619_v39 = vmin.f32 %v2611_v14, 16.0  ;;  %v2420_v16 = vadd.f32 0.18741608, %v2419_v20  ;;  %vm1964_vm11 = vcmp.eq.f32.partialorder %v1963_v0, 8.507059e+37  ;;  %v2035_v45 = vmul.f32 %v5641_v6, %v7576_v43 }
 0x277   :  { %v2382_v50 = vadd.f32 1.1283791, %v2381_v40  ;;  %v2575_v12 = vmul.f32 %v2574_v56, %v7462_v60  ;;  %v1967_v29 = vsel %vm1964_vm11, %v1966_v59, %v1962_v42  ;;  %v2496_v62 = vadd.f32 0.0036580483, %v2495_v51 }
 0x278   :  { %v2624_v33 = vmul.f32 3.8918573e-05, %v7619_v39  ;;  %v7625_v61 = vadd.f32 1.0, %v2592_v17  ;;  %v2036_v54 = vsub.f32 1.0, %v2035_v45  ;;  %v7628_v52 = vmul.f32 0.70710677, %v7617_v31 }
 0x279   :  { %v2457_v27 = vmul.f32 %v2456_v22, %v7537_v21  ;;  %v2537_v20 = vmul.f32 %v2536_v10, %v7435_v19  ;;  %v2045_v0 = vand.u32 2147483648, %v7576_v43  ;;  %v7634_v40 = vadd.f32 %v465_v7, %v5912_v8 }
 0x27a   :  { %v1968_v56 = vmul.f32 %v1967_v29, %v7207_v41  ;;  %v2037_v13 = vmul.f32 %v5641_v6, %v2036_v54  ;;  %vm2040_vm12 = vweird.f32 %v5641_v6  ;;  %v2043_v14 = vand.u32 2147483647, %v7576_v43 }
 0x27b   :  { %v2421_v51 = vmul.f32 %v2420_v16, %v7474_v5  ;;  %v2576_v17 = vadd.f32 0.0036580483, %v2575_v12  ;;  %v2625_v42 = vadd.f32 0.001143296, %v2624_v33  ;;  %v2064_v59 = vmul.f32 3.8918573e-05, %v7113_v25  ;;  %v7640_v22 = vpop.eup %5642 }
 0x27c   :  { %5644 = vrcp.f32 %v7625_v61  ;;  %v2038_v10 = vadd.f32 %v5641_v6, %v2037_v13  ;;  %vm2039_vm13 = vweird.f32 %v7576_v43  ;;  %v3705_v41 = vmul.f32 %v7628_v52, %v7628_v52 }
 0x27d   :  { %v2497_v45 = vmul.f32 %v2496_v62, %v7548_v53  ;;  %v2538_v7 = vadd.f32 0.05243302, %v2537_v20  ;;  %vm2041_vm14 = vmor %vm2039_vm13, %vm2040_vm12  ;;  %v2046_v29 = vor.u32 1.1754944e-38, %v2045_v0  ;;  %v7648_v12 = vmul.f32 0.70710677, %v7634_v40 }
 0x27e   :  { %v2458_v16 = vadd.f32 0.05243302, %v2457_v27  ;;  %v5385_v33 = vclamps-f32 %v1968_v56, 1.0  ;;  %v2042_v54 = vsel %vm2041_vm14, %v5641_v6, %v2038_v10  ;;  %vm2044_vm15 = vcmp.eq.f32.partialorder %v2043_v14, 8.507059e+37 }
 0x27f   :  { %v2555_v13 = vmul.f32 %v7640_v22, %v7598_v48  ;;  %v2577_v43 = vmul.f32 %v2576_v17, %v7462_v60  ;;  %v2047_v26 = vsel %vm2044_vm15, %v2046_v29, %v2042_v54  ;;  %v2626_v5 = vmul.f32 %v2625_v42, %v7619_v39 }
 0x280   :  { %v7655_v62 = vmul.f32 %v2382_v50, %v7409_v11  ;;  %v2048_v20 = vmul.f32 %v2047_v26, %v7284_v37  ;;  %v7658_v0 = vmin.f32 %v3705_v41, 16.0  ;;  %v2065_v27 = vadd.f32 0.001143296, %v2064_v59 }
 0x281   :  { %v7660_v56 = vadd.f32 1.1283791, %v2421_v51  ;;  %v2498_v6 = vadd.f32 0.05243302, %v2497_v45  ;;  %v2539_v14 = vmul.f32 %v2538_v7, %v7435_v19  ;;  %v2651_v17 = vmul.f32 %v7648_v12, %v7648_v12  ;;  %v3474_v51 = vpop.f32.mrf.mxu2 }
 0x282   :  { %10415 = vst [vmem:[#allocation35_spill] sm:$0xff] %v7655_v62  ;;  %v7665_v10 = vpop.eup %5644  ;;  %v7668_v42 = vmul.f32 0.5, %v7491_v9  ;;  %v2459_v11 = vmul.f32 %v2458_v16, %v7537_v21  ;;  %v5387_v37 = vclamps-f32 %v2048_v20, 1.0  ;;  %v3204_v26 = vadd.f32 1.0, %v5385_v33 }
 0x283   :  { %v2556_v50 = vsub.f32 1.0, %v2555_v13  ;;  %v2578_v41 = vadd.f32 0.05243302, %v2577_v43  ;;  %v2627_v59 = vadd.f32 0.014752088, %v2626_v5  ;;  %v7672_v45 = vadd.f32 %v379_v58, %v5907_v2  ;;  %v10417_v13 = vld [vmem:[#allocation22_spill] sm:$0xff] }
 0x284   :  { %10416 = vst [vmem:[#allocation36_spill] sm:$0xff] %v7668_v42  ;;  %v3206_v7 = vadd.f32 1.0, %v5387_v37  ;;  %v3707_v29 = vmul.f32 2.1237322e-06, %v7658_v0  ;;  %v2613_v54 = vmul.f32 2.1237322e-06, %v7619_v39  ;;  %v2066_v62 = vmul.f32 %v2065_v27, %v7113_v25 }
 0x285   :  { %v2499_v9 = vmul.f32 %v2498_v6, %v7548_v53  ;;  %v2540_v42 = vadd.f32 0.18741608, %v2539_v14  ;;  %v2595_v16 = vmul.f32 %v7665_v10, %v7625_v61  ;;  %v7680_v33 = vmin.f32 %v2651_v17, 16.0 }
 0x286   :  { %v2460_v5 = vadd.f32 0.18741608, %v2459_v11  ;;  %v3268_v43 = vmul.f32 %v3204_v26, %v10417_v13  ;;  %v3270_v58 = vmul.f32 %v3206_v7, %v7253_v49  ;;  %v3475_v20 = vadd.f32 %v7574_v18, %v3474_v51  ;;  %v3563_v7 = vpop.f32.mrf.mxu3 }
 0x287   :  { %v2557_v37 = vmul.f32 %v7640_v22, %v2556_v50  ;;  %v2579_v34 = vmul.f32 %v2578_v41, %v7462_v60  ;;  %v2628_v27 = vmul.f32 %v2627_v59, %v7619_v39  ;;  %v7689_v6 = vmul.f32 0.70710677, %v7672_v45 }
 0x288   :  { %v3316_v14 = vpack.c.bf16 %v3270_v58, %v3268_v43  ;;  %v3708_v63 = vadd.f32 0.00028619796, %v3707_v29  ;;  %v2614_v17 = vadd.f32 0.00028619796, %v2613_v54  ;;  %v2067_v44 = vadd.f32 0.014752088, %v2066_v62 }
 0x289   :  { %v7691_v11 = vadd.f32 0.18741608, %v2499_v9  ;;  %v2541_v26 = vmul.f32 %v2540_v42, %v7435_v19  ;;  %v2596_v49 = vsub.f32 1.0, %v2595_v16  ;;  %v2664_v51 = vmul.f32 3.8918573e-05, %v7680_v33  ;;  %v468_v42 = vpop.f32.mrf.mxu1 }
 0x28a   :  { %v7696_v50 = vmul.f32 %v2460_v5, %v7537_v21  ;;  %v2563_v41 = vand.u32 2147483647, %v7598_v48  ;;  %v2565_v59 = vand.u32 2147483648, %v7598_v48  ;;  %3600 = vmatmul.bf16.gmra.mxu3 %v3316_v14  ;;  %v7700_v13 = vadd.f32 %v3563_v7, %v3475_v20 }
 0x28b   :  { %vm2560_vm0 = vweird.f32 %v7640_v22  ;;  %v2580_v62 = vadd.f32 0.18741608, %v2579_v34  ;;  %v2629_v29 = vadd.f32 0.112945676, %v2628_v27  ;;  %v2691_v19 = vmul.f32 %v7689_v6, %v7689_v6 }
 0x28c   :  { %v2558_v54 = vadd.f32 %v7640_v22, %v2557_v37  ;;  %v3709_v9 = vmul.f32 %v3708_v63, %v7658_v0  ;;  %v2615_v16 = vmul.f32 %v2614_v17, %v7619_v39  ;;  %v2068_v5 = vmul.f32 %v2067_v44, %v7113_v25 }
 0x28d   :  { %v2542_v43 = vadd.f32 1.1283791, %v2541_v26  ;;  %vm2559_vm1 = vweird.f32 %v7598_v48  ;;  %v2597_v58 = vmul.f32 %v7665_v10, %v2596_v49  ;;  %v2665_v20 = vadd.f32 0.001143296, %v2664_v51 }
 0x28e   :  { %vm7711_vm2 = vcmp.eq.f32.partialorder %v2563_v41, 8.507059e+37  ;;  %v2653_v27 = vmul.f32 2.1237322e-06, %v7680_v33  ;;  %v7717_v37 = vmul.f32 0.70710677, %v7700_v13  ;;  %v7720_v63 = vadd.f32 %v468_v42, %v5912_v8  ;;  %vm7724_vm3 = vmor %vm2559_vm1, %vm2560_vm0 }
 0x28f   :  { %v2566_v48 = vor.u32 1.1754944e-38, %v2565_v59  ;;  %v2581_v14 = vmul.f32 %v2580_v62, %v7462_v60  ;;  %v2630_v17 = vmul.f32 %v2629_v29, %v7619_v39  ;;  %v7730_v26 = vmin.f32 %v2691_v19, 16.0 }
 0x290   :  { %v2562_v49 = vsel %vm7724_vm3, %v7640_v22, %v2558_v54  ;;  %v3710_v51 = vadd.f32 0.0036580483, %v3709_v9  ;;  %v2616_v7 = vadd.f32 0.0036580483, %v2615_v16  ;;  %v2069_v41 = vadd.f32 0.112945676, %v2068_v5 }
 0x291   :  { %v2598_v42 = vadd.f32 %v7665_v10, %v2597_v58  ;;  %vm2600_vm4 = vweird.f32 %v7665_v10  ;;  %v2666_v21 = vmul.f32 %v2665_v20, %v7680_v33  ;;  %v7739_v59 = vmul.f32 0.70710677, %v7720_v63 }
 0x292   :  { %v2605_v60 = vand.u32 2147483648, %v7625_v61  ;;  %v2654_v62 = vadd.f32 0.00028619796, %v2653_v27  ;;  %v3745_v29 = vmul.f32 %v7717_v37, %v7717_v37  ;;  %v2070_v22 = vmul.f32 %v2069_v41, %v7113_v25 }
 0x293   :  { %vm2599_vm5 = vweird.f32 %v7625_v61  ;;  %v2603_v19 = vand.u32 2147483647, %v7625_v61  ;;  %v2631_v54 = vadd.f32 0.4994258, %v2630_v17  ;;  %v2704_v9 = vmul.f32 3.8918573e-05, %v7730_v26 }
 0x294   :  { %v2543_v16 = vmul.f32 %v2542_v43, %v7401_v30  ;;  %v2567_v5 = vsel %vm7711_vm2, %v2566_v48, %v2562_v49  ;;  %vm7751_vm6 = vmor %vm2599_vm5, %vm2600_vm4  ;;  %v3711_v20 = vmul.f32 %v3710_v51, %v7658_v0  ;;  %v2617_v27 = vmul.f32 %v2616_v7, %v7619_v39 }
 0x295   :  { %v2582_v44 = vadd.f32 1.1283791, %v2581_v14  ;;  %v2602_v61 = vsel %vm7751_vm6, %v7665_v10, %v2598_v42  ;;  %v2667_v17 = vadd.f32 0.014752088, %v2666_v21  ;;  %v2731_v30 = vmul.f32 %v7739_v59, %v7739_v59 }
 0x296   :  { %v2606_v43 = vor.u32 1.1754944e-38, %v2605_v60  ;;  %v2655_v34 = vmul.f32 %v2654_v62, %v7680_v33  ;;  %v7763_v48 = vmin.f32 %v3745_v29, 16.0  ;;  %v2071_v49 = vadd.f32 0.4994258, %v2070_v22 }
 0x297   :  { %v2568_v41 = vmul.f32 %v2567_v5, %v2543_v16  ;;  %vm2604_vm7 = vcmp.eq.f32.partialorder %v2603_v19, 8.507059e+37  ;;  %v2632_v51 = vmul.f32 %v2631_v54, %v7619_v39  ;;  %v2705_v7 = vadd.f32 0.001143296, %v2704_v9 }
 0x298   :  { %10424 = vst [vmem:[#allocation22_spill] sm:$0xff] %v7763_v48  ;;  %v2607_v14 = vsel %vm2604_vm7, %v2606_v43, %v2602_v61  ;;  %v3712_v4 = vadd.f32 0.05243302, %v3711_v20  ;;  %v2618_v23 = vadd.f32 0.05243302, %v2617_v27  ;;  %v2072_v10 = vmul.f32 %v2071_v49, %v7113_v25 }
 0x299   :  { %v7768_v21 = vmul.f32 0.5, %v7502_v55  ;;  %v2583_v42 = vmul.f32 %v2582_v44, %v7440_v46  ;;  %v2668_v60 = vmul.f32 %v2667_v17, %v7680_v33  ;;  %v7772_v62 = vmin.f32 %v2731_v30, 16.0 }
 0x29a   :  { %v2501_v29 = vmul.f32 %v7691_v11, %v7548_v53  ;;  %v2656_v22 = vadd.f32 0.0036580483, %v2655_v34  ;;  %v3747_v19 = vmul.f32 2.1237322e-06, %v7763_v48  ;;  %v2693_v54 = vmul.f32 2.1237322e-06, %v7730_v26 }
 0x29b   :  { %10425 = vst [vmem:[#allocation37_spill] sm:$0xff] %v7768_v21  ;;  %v2462_v9 = vadd.f32 1.1283791, %v7696_v50  ;;  %v2608_v25 = vmul.f32 %v2607_v14, %v2583_v42  ;;  %v7779_v16 = vadd.f32 1.0, %v2632_v51  ;;  %v2706_v55 = vmul.f32 %v2705_v7, %v7730_v26 }
 0x29c   :  { %v5400_v46 = vclamps-f32 %v2568_v41, 1.0  ;;  %v3713_v5 = vmul.f32 %v3712_v4, %v7658_v0  ;;  %v2619_v58 = vmul.f32 %v2618_v23, %v7619_v39  ;;  %v7784_v20 = vadd.f32 1.0, %v2072_v10 }
 0x29d   :  { %v7788_v11 = vmul.f32 %v7660_v56, %v7444_v3  ;;  %v2669_v27 = vadd.f32 0.112945676, %v2668_v60  ;;  %v2744_v44 = vmul.f32 3.8918573e-05, %v7772_v62  ;;  %v2144_v50 = vmul.f32 3.8918573e-05, %v7197_v32 }
 0x29e   :  { %v2657_v61 = vmul.f32 %v2656_v22, %v7680_v33  ;;  %v3748_v17 = vadd.f32 0.00028619796, %v3747_v19  ;;  %v2694_v30 = vadd.f32 0.00028619796, %v2693_v54  ;;  %5646 = vrcp.f32 %v7784_v20 }
 0x29f   :  { %10426 = vst [vmem:[#allocation38_spill] sm:$0xff] %v7788_v11  ;;  %v2502_v4 = vadd.f32 1.1283791, %v2501_v29  ;;  %v5401_v43 = vclamps-f32 %v2608_v25, 1.0  ;;  %5648 = vrcp.f32 %v7779_v16  ;;  %v2707_v23 = vadd.f32 0.014752088, %v2706_v55 }
 0x2a0   :  { %v531_v34 = vmul.f32 0.5, %v7387_v1  ;;  %v3219_v3 = vadd.f32 1.0, %v5400_v46  ;;  %v3714_v56 = vadd.f32 0.18741608, %v3713_v5  ;;  %v2620_v49 = vadd.f32 0.18741608, %v2619_v58 }
 0x2a1   :  { %v532_v41 = vmul.f32 0.5, %v7432_v36  ;;  %v2670_v51 = vmul.f32 %v2669_v27, %v7680_v33  ;;  %v2745_v7 = vadd.f32 0.001143296, %v2744_v44  ;;  %v2145_v14 = vadd.f32 0.001143296, %v2144_v50 }
 0x2a2   :  { %v7799_v10 = vmul.f32 %v2462_v9, %v7505_v28  ;;  %v2658_v42 = vadd.f32 0.05243302, %v2657_v61  ;;  %v3749_v60 = vmul.f32 %v3748_v17, %v7763_v48  ;;  %v2695_v29 = vmul.f32 %v2694_v30, %v7730_v26  ;;  %v10432_v30 = vld [vmem:[#allocation21_spill] sm:$0xff] }
 0x2a3   :  { %v7804_v22 = vmul.f32 %v2502_v4, %v7519_v38  ;;  %v3220_v1 = vadd.f32 1.0, %v5401_v43  ;;  %v7807_v19 = vmul.f32 0.5, %v7579_v24  ;;  %v2708_v36 = vmul.f32 %v2707_v23, %v7730_v26 }
 0x2a4   :  { %10427 = vst [vmem:[#allocation39_spill] sm:$0xff] %v7799_v10  ;;  %v7810_v54 = vpop.eup %5646  ;;  %v7812_v25 = vmul.f32 %v3219_v3, %v531_v34  ;;  %v7815_v28 = vmul.f32 0.5, %v7617_v31  ;;  %v3715_v9 = vmul.f32 %v3714_v56, %v7658_v0  ;;  %v2621_v55 = vmul.f32 %v2620_v49, %v7619_v39  ;;  %v10455_v10 = vld [vmem:[#allocation25_spill] sm:$0xff] }
 0x2a5   :  { %10428 = vst [vmem:[#allocation40_spill] sm:$0xff] %v7804_v22  ;;  %v7819_v46 = vpop.eup %5648  ;;  %v7822_v38 = vmul.f32 0.5, %v7634_v40  ;;  %v2671_v24 = vadd.f32 0.4994258, %v2670_v51  ;;  %v2746_v5 = vmul.f32 %v2745_v7, %v7772_v62  ;;  %v2146_v58 = vmul.f32 %v2145_v14, %v7197_v32 }
 0x2a6   :  { %10429 = vst [vmem:[#allocation41_spill] sm:$0xff] %v7812_v25  ;;  %v2659_v27 = vmul.f32 %v2658_v42, %v7680_v33  ;;  %v3750_v44 = vadd.f32 0.0036580483, %v3749_v60  ;;  %v2696_v50 = vadd.f32 0.0036580483, %v2695_v29  ;;  %v2075_v31 = vmul.f32 %v7810_v54, %v7784_v20  ;;  %v10434_v42 = vld [vmem:[#allocation10_spill] sm:$0xff] }
 0x2a7   :  { %10430 = vst [vmem:[#allocation42_spill] sm:$0xff] %v7815_v28  ;;  %v7829_v61 = vmul.f32 %v3220_v1, %v532_v41  ;;  %v2709_v39 = vadd.f32 0.112945676, %v2708_v36  ;;  %v2147_v17 = vadd.f32 0.014752088, %v2146_v58  ;;  %v2635_v23 = vmul.f32 %v7819_v46, %v7779_v16  ;;  %v10446_v25 = vld [vmem:[#allocation14_spill] sm:$0xff] }
 0x2a8   :  { %v2104_v4 = vmul.f32 3.8918573e-05, %v10432_v30  ;;  %v7832_v40 = vadd.f32 1.1283791, %v3715_v9  ;;  %v2622_v43 = vadd.f32 1.1283791, %v2621_v55  ;;  %v2672_v3 = vmul.f32 %v2671_v24, %v7680_v33 }
 0x2a9   :  { %10431 = vst [vmem:[#allocation43_spill] sm:$0xff] %v7829_v61  ;;  %v7837_v34 = vmul.f32 0.5, %v7700_v13  ;;  %v2747_v56 = vadd.f32 0.014752088, %v2746_v5  ;;  %v2148_v49 = vmul.f32 %v2147_v17, %v7197_v32  ;;  %v2660_v51 = vadd.f32 0.18741608, %v2659_v27  ;;  %v3566_v61 = vpop.f32.mrf.mxu3 }
 0x2aa   :  { %v2105_v41 = vadd.f32 0.001143296, %v2104_v4  ;;  %v3751_v7 = vmul.f32 %v3750_v44, %v7763_v48  ;;  %v2076_v14 = vsub.f32 1.0, %v2075_v31  ;;  %v2184_v60 = vmul.f32 3.8918573e-05, %v10434_v42 }
 0x2ab   :  { %10433 = vst [vmem:[#allocation21_spill] sm:$0xff] %v7837_v34  ;;  %v2697_v29 = vmul.f32 %v2696_v50, %v7730_v26  ;;  %v2710_v1 = vmul.f32 %v2709_v39, %v7730_v26  ;;  %v2149_v36 = vadd.f32 0.112945676, %v2148_v49  ;;  %v7847_v9 = vmul.f32 %v2622_v43, %v7595_v57 }
 0x2ac   :  { %v2106_v13 = vmul.f32 %v2105_v41, %v10432_v30  ;;  %v2636_v55 = vsub.f32 1.0, %v2635_v23  ;;  %v2643_v24 = vand.u32 2147483647, %v7779_v16  ;;  %v2185_v5 = vadd.f32 0.001143296, %v2184_v60 }
 0x2ad   :  { %v2645_v58 = vand.u32 2147483648, %v7779_v16  ;;  %v7851_v27 = vadd.f32 1.0, %v2672_v3  ;;  %v2733_v44 = vmul.f32 2.1237322e-06, %v7772_v62  ;;  %v2748_v50 = vmul.f32 %v2747_v56, %v7772_v62 }
 0x2ae   :  { %vm2639_vm8 = vweird.f32 %v7779_v16  ;;  %v2661_v31 = vmul.f32 %v2660_v51, %v7680_v33  ;;  %v2077_v39 = vmul.f32 %v7810_v54, %v2076_v14  ;;  %v2150_v57 = vmul.f32 %v2149_v36, %v7197_v32 }
 0x2af   :  { %v2107_v17 = vadd.f32 0.014752088, %v2106_v13  ;;  %v3752_v4 = vadd.f32 0.05243302, %v3751_v7  ;;  %v2698_v43 = vadd.f32 0.05243302, %v2697_v29  ;;  %v2186_v49 = vmul.f32 %v2185_v5, %v10434_v42 }
 0x2b0   :  { %v2711_v23 = vadd.f32 0.4994258, %v2710_v1  ;;  %v2637_v3 = vmul.f32 %v7819_v46, %v2636_v55  ;;  %vm2640_vm9 = vweird.f32 %v7819_v46  ;;  %v2151_v41 = vadd.f32 0.4994258, %v2150_v57 }
 0x2b1   :  { %v2108_v56 = vmul.f32 %v2107_v17, %v10432_v30  ;;  %5650 = vrcp.f32 %v7851_v27  ;;  %v2734_v33 = vadd.f32 0.00028619796, %v2733_v44  ;;  %v2749_v51 = vadd.f32 0.112945676, %v2748_v50  ;;  %vm7898_vm14 = vmor %vm2639_vm8, %vm2640_vm9 }
 0x2b2   :  { %v2187_v14 = vadd.f32 0.014752088, %v2186_v49  ;;  %vm7864_vm10 = vcmp.eq.f32.partialorder %v2643_v24, 8.507059e+37  ;;  %v2078_v7 = vadd.f32 %v7810_v54, %v2077_v39  ;;  %vm2080_vm11 = vweird.f32 %v7810_v54 }
 0x2b3   :  { %v2152_v29 = vmul.f32 %v2151_v41, %v7197_v32  ;;  %v2109_v1 = vadd.f32 0.112945676, %v2108_v56  ;;  %v2699_v36 = vmul.f32 %v2698_v43, %v7730_v26  ;;  %v2712_v13 = vmul.f32 %v2711_v23, %v7730_v26 }
 0x2b4   :  { %v2085_v55 = vand.u32 2147483648, %v7784_v20  ;;  %v2188_v5 = vmul.f32 %v2187_v14, %v10434_v42  ;;  %v2638_v24 = vadd.f32 %v7819_v46, %v2637_v3  ;;  %vm2079_vm12 = vweird.f32 %v7784_v20 }
 0x2b5   :  { %v2083_v44 = vand.u32 2147483647, %v7784_v20  ;;  %v7878_v50 = vadd.f32 1.0, %v2152_v29  ;;  %v2646_v39 = vor.u32 1.1754944e-38, %v2645_v58  ;;  %v3753_v32 = vmul.f32 %v3752_v4, %v7763_v48  ;;  %vm7881_vm13 = vmor %vm2079_vm12, %vm2080_vm11 }
 0x2b6   :  { %v2110_v17 = vmul.f32 %v2109_v1, %v10432_v30  ;;  %v2189_v43 = vadd.f32 0.112945676, %v2188_v5  ;;  %v2735_v23 = vmul.f32 %v2734_v33, %v7772_v62  ;;  %v2750_v49 = vmul.f32 %v2749_v51, %v7772_v62 }
 0x2b7   :  { %v2082_v20 = vsel %vm7881_vm13, %v7810_v54, %v2078_v7  ;;  %5652 = vrcp.f32 %v7878_v50  ;;  %v7892_v58 = vpop.eup %5650  ;;  %v2662_v3 = vadd.f32 1.1283791, %v2661_v31  ;;  %v7902_v41 = vadd.f32 1.0, %v2712_v13 }
 0x2b8   :  { %v2086_v56 = vor.u32 1.1754944e-38, %v2085_v55  ;;  %v2111_v33 = vadd.f32 0.4994258, %v2110_v17  ;;  %v2642_v54 = vsel %vm7898_vm14, %v7819_v46, %v2638_v24  ;;  %v2700_v51 = vadd.f32 0.18741608, %v2699_v36  ;;  %v10441_v36 = vld [vmem:[#allocation16_spill] sm:$0xff] }
 0x2b9   :  { %vm2084_vm15 = vcmp.eq.f32.partialorder %v2083_v44, 8.507059e+37  ;;  %v2190_v14 = vmul.f32 %v2189_v43, %v10434_v42  ;;  %v2685_v7 = vand.u32 2147483648, %v7851_v27  ;;  %v3754_v16 = vadd.f32 0.18741608, %v3753_v32  ;;  %v10442_v17 = vld [vmem:[#allocation12_spill] sm:$0xff] }
 0x2ba   :  { %v2087_v29 = vsel %vm2084_vm15, %v2086_v56, %v2082_v20  ;;  %v2112_v1 = vmul.f32 %v2111_v33, %v10432_v30  ;;  %v2675_v31 = vmul.f32 %v7892_v58, %v7851_v27  ;;  %v2736_v13 = vadd.f32 0.0036580483, %v2735_v23  ;;  %v381_v33 = vpop.f32.mrf.mxu0 }
 0x2bb   :  { %v2751_v55 = vadd.f32 0.4994258, %v2750_v49  ;;  %v2191_v5 = vadd.f32 0.4994258, %v2190_v14  ;;  %v2647_v57 = vsel %vm7864_vm10, %v2646_v39, %v2642_v54  ;;  %5654 = vrcp.f32 %v7902_v41  ;;  %v10443_v49 = vld [vmem:[#allocation18_spill] sm:$0xff] }
 0x2bc   :  { %v7915_v46 = vadd.f32 1.0, %v2112_v1  ;;  %v2224_v24 = vmul.f32 3.8918573e-05, %v10441_v36  ;;  %v7919_v32 = vmul.f32 %v2662_v3, %v7648_v12  ;;  %v2701_v30 = vmul.f32 %v2700_v51, %v7730_v26 }
 0x2bd   :  { %v5653_v44 = vpop.eup %5652  ;;  %v2088_v43 = vmul.f32 %v2087_v29, %v10442_v17  ;;  %v2192_v23 = vmul.f32 %v2191_v5, %v10434_v42  ;;  %v7925_v60 = vor.u32 1.1754944e-38, %v2685_v7  ;;  %v7930_v20 = vmul.f32 %v2647_v57, %v7847_v9  ;;  %v3477_v57 = vpop.f32.mrf.mxu2 }
 0x2be   :  { %v2155_v39 = vmul.f32 %v5653_v44, %v7878_v50  ;;  %5656 = vrcp.f32 %v7915_v46  ;;  %v2676_v4 = vsub.f32 1.0, %v2675_v31  ;;  %v2737_v12 = vmul.f32 %v2736_v13, %v7772_v62 }
 0x2bf   :  { %v2752_v26 = vmul.f32 %v2751_v55, %v7772_v62  ;;  %v7935_v3 = vmul.f32 %v3754_v16, %v7763_v48  ;;  %v7937_v56 = vadd.f32 1.0, %v2192_v23  ;;  %v2225_v54 = vadd.f32 0.001143296, %v2224_v24 }
 0x2c0   :  { %v2156_v42 = vsub.f32 1.0, %v2155_v39  ;;  %v7939_v51 = vadd.f32 1.1283791, %v2701_v30  ;;  %v5388_v14 = vclamps-f32 %v2088_v43, 1.0  ;;  %v2165_v7 = vand.u32 2147483648, %v7878_v50 }
 0x2c1   :  { %v7943_v9 = vadd.f32 %v381_v33, %v5907_v2  ;;  %v7945_v29 = vpop.eup %5654  ;;  %vm2160_vm0 = vweird.f32 %v5653_v44  ;;  %v2163_v16 = vand.u32 2147483647, %v7878_v50  ;;  %5658 = vrcp.f32 %v7937_v56 }
 0x2c2   :  { %v2157_v1 = vmul.f32 %v5653_v44, %v2156_v42  ;;  %v7951_v13 = vmul.f32 %v7892_v58, %v2676_v4  ;;  %v7953_v55 = vadd.f32 0.05243302, %v2737_v12  ;;  %v7955_v5 = vadd.f32 1.0, %v2752_v26 }
 0x2c3   :  { %vm2159_vm1 = vweird.f32 %v7878_v50  ;;  %v7959_v17 = vmul.f32 0.70710677, %v7943_v9  ;;  %v2226_v43 = vmul.f32 %v2225_v54, %v10441_v36  ;;  %v7964_v23 = vmul.f32 %v7945_v29, %v7902_v41 }
 0x2c4   :  { %v5657_v24 = vpop.eup %5656  ;;  %v2158_v30 = vadd.f32 %v5653_v44, %v2157_v1  ;;  %vm2161_vm2 = vmor %vm2159_vm1, %vm2160_vm0  ;;  %v2166_v39 = vor.u32 1.1754944e-38, %v2165_v7  ;;  %v3207_v4 = vadd.f32 1.0, %v5388_v14  ;;  %vm2164_vm3 = vcmp.eq.f32.partialorder %v2163_v16, 8.507059e+37  ;;  %v10444_v16 = vld [vmem:[#allocation11_spill] sm:$0xff] }
 0x2c5   :  { %v2115_v12 = vmul.f32 %v5657_v24, %v7915_v46  ;;  %v3478_v42 = vadd.f32 %v7574_v18, %v3477_v57  ;;  %v2771_v50 = vmul.f32 %v7959_v17, %v7959_v17  ;;  %5660 = vrcp.f32 %v7955_v5 }
 0x2c6   :  { %v2162_v26 = vsel %vm2161_vm2, %v5653_v44, %v2158_v30  ;;  %v2123_v1 = vand.u32 2147483647, %v7915_v46  ;;  %v2125_v14 = vand.u32 2147483648, %v7915_v46  ;;  %v2227_v44 = vadd.f32 0.014752088, %v2226_v43 }
 0x2c7   :  { %v2167_v33 = vsel %vm2164_vm3, %v2166_v39, %v2162_v26  ;;  %v2116_v54 = vsub.f32 1.0, %v2115_v12  ;;  %v5659_v31 = vpop.eup %5658  ;;  %v7974_v7 = vmin.f32 %v2771_v50, 16.0  ;;  %v3271_v30 = vmul.f32 %v3207_v4, %v10444_v16  ;;  %v470_v26 = vpop.f32.mrf.mxu1 }
 0x2c8   :  { %v2168_v34 = vmul.f32 %v2167_v33, %v10443_v49  ;;  %vm2120_vm4 = vweird.f32 %v5657_v24  ;;  %v2195_v28 = vmul.f32 %v5659_v31, %v7937_v56  ;;  %vm2680_vm5 = vweird.f32 %v7892_v58 }
 0x2c9   :  { %v2117_v57 = vmul.f32 %v5657_v24, %v2116_v54  ;;  %vm2119_vm6 = vweird.f32 %v7915_v46  ;;  %v7980_v12 = vadd.f32 %v3566_v61, %v3478_v42  ;;  %v2784_v49 = vmul.f32 3.8918573e-05, %v7974_v7 }
 0x2ca   :  { %v5390_v39 = vclamps-f32 %v2168_v34, 1.0  ;;  %vm2124_vm7 = vcmp.eq.f32.partialorder %v2123_v1, 8.507059e+37  ;;  %v2196_v43 = vsub.f32 1.0, %v2195_v28  ;;  %v7984_v4 = vadd.f32 %v470_v26, %v5912_v8  ;;  %vm2121_vm9 = vmor %vm2119_vm6, %vm2120_vm4  ;;  %v10445_v28 = vld [vmem:[#allocation24_spill] sm:$0xff] }
 0x2cb   :  { %v2118_v50 = vadd.f32 %v5657_v24, %v2117_v57  ;;  %vm2679_vm8 = vweird.f32 %v7851_v27  ;;  %v2126_v54 = vor.u32 1.1754944e-38, %v2125_v14  ;;  %v2203_v34 = vand.u32 2147483647, %v7937_v56  ;;  %v7990_v46 = vpop.eup %5660 }
 0x2cc   :  { %v3209_v33 = vadd.f32 1.0, %v5390_v39  ;;  %v2205_v61 = vand.u32 2147483648, %v7937_v56  ;;  %v2197_v16 = vmul.f32 %v5659_v31, %v2196_v43  ;;  %vm2200_vm10 = vweird.f32 %v5659_v31  ;;  %vm8032_vm15 = vmor %vm2679_vm8, %vm2680_vm5 }
 0x2cd   :  { %v2122_v42 = vsel %vm2121_vm9, %v5657_v24, %v2118_v50  ;;  %v2785_v1 = vadd.f32 0.001143296, %v2784_v49  ;;  %vm2199_vm11 = vweird.f32 %v7937_v56  ;;  %v7995_v39 = vmul.f32 0.70710677, %v7980_v12 }
 0x2ce   :  { %v3273_v57 = vmul.f32 %v3209_v33, %v10445_v28  ;;  %v2127_v26 = vsel %vm2124_vm7, %v2126_v54, %v2122_v42  ;;  %v2198_v21 = vadd.f32 %v5659_v31, %v2197_v16  ;;  %v8000_v11 = vmul.f32 0.70710677, %v7984_v4  ;;  %vm2201_vm12 = vmor %vm2199_vm11, %vm2200_vm10 }
 0x2cf   :  { %v2128_v14 = vmul.f32 %v2127_v26, %v10446_v25  ;;  %v2786_v22 = vmul.f32 %v2785_v1, %v7974_v7  ;;  %vm2204_vm13 = vcmp.eq.f32.partialorder %v2203_v34, 8.507059e+37  ;;  %v2206_v49 = vor.u32 1.1754944e-38, %v2205_v61  ;;  %v10447_v1 = vld [vmem:[#allocation20_spill] sm:$0xff]  ;;  %v384_v26 = vpop.f32.mrf.mxu0 }
 0x2d0   :  { %v3317_v24 = vpack.c.bf16 %v3273_v57, %v3271_v30  ;;  %v2773_v50 = vmul.f32 2.1237322e-06, %v7974_v7  ;;  %v2202_v33 = vsel %vm2201_vm12, %v5659_v31, %v2198_v21  ;;  %v2811_v54 = vmul.f32 %v8000_v11, %v8000_v11  ;;  %v3479_v30 = vpop.f32.mrf.mxu2 }
 0x2d1   :  { %v5389_v43 = vclamps-f32 %v2128_v14, 1.0  ;;  %v2787_v56 = vadd.f32 0.014752088, %v2786_v22  ;;  %v2678_v25 = vadd.f32 %v7892_v58, %v7951_v13  ;;  %v2739_v42 = vmul.f32 %v7953_v55, %v7772_v62  ;;  %v3568_v14 = vpop.f32.mrf.mxu3 }
 0x2d2   :  { %3516 = vmatmul.bf16.gmra.mxu2 %v3317_v24  ;;  %v2207_v16 = vsel %vm2204_vm13, %v2206_v49, %v2202_v33  ;;  %v2228_v34 = vmul.f32 %v2227_v44, %v10441_v36  ;;  %v2716_v61 = vsub.f32 1.0, %v7964_v23  ;;  %v3785_v21 = vmul.f32 %v7995_v39, %v7995_v39 }
 0x2d3   :  { %v2208_v28 = vmul.f32 %v2207_v16, %v10447_v1  ;;  %v8014_v22 = vmin.f32 %v2811_v54, 16.0  ;;  %v10448_v31 = vand.u32 2147483647, %v7851_v27  ;;  %v8024_v55 = vmul.f32 %v7939_v51, %v7689_v6 }
 0x2d4   :  { %v2723_v44 = vand.u32 2147483647, %v7902_v41  ;;  %v2774_v23 = vadd.f32 0.00028619796, %v2773_v50  ;;  %v2788_v57 = vmul.f32 %v2787_v56, %v7974_v7  ;;  %v2755_v24 = vmul.f32 %v7990_v46, %v7955_v5 }
 0x2d5   :  { %vm8018_vm14 = vcmp.eq.f32.partialorder %v10448_v31, 8.507059e+37  ;;  %v5391_v49 = vclamps-f32 %v2208_v28, 1.0  ;;  %v3208_v6 = vadd.f32 1.0, %v5389_v43  ;;  %v3480_v51 = vadd.f32 %v7574_v18, %v3479_v30 }
 0x2d6   :  { %v2682_v50 = vsel %vm8032_vm15, %v7892_v58, %v2678_v25  ;;  %v2740_v33 = vadd.f32 0.18741608, %v2739_v42  ;;  %v2824_v56 = vmul.f32 3.8918573e-05, %v8014_v22  ;;  %v2229_v54 = vadd.f32 0.112945676, %v2228_v34 }
 0x2d7   :  { %v2717_v27 = vmul.f32 %v7945_v29, %v2716_v61  ;;  %v3210_v16 = vadd.f32 1.0, %v5391_v49  ;;  %v8044_v1 = vmin.f32 %v3785_v21, 16.0  ;;  %v8047_v31 = vadd.f32 %v384_v26, %v5907_v2  ;;  %v10454_v25 = vld [vmem:[#allocation19_spill] sm:$0xff] }
 0x2d8   :  { %v2725_v43 = vand.u32 2147483648, %v7902_v41  ;;  %v2775_v18 = vmul.f32 %v2774_v23, %v7974_v7  ;;  %v2789_v30 = vadd.f32 0.112945676, %v2788_v57  ;;  %v2825_v28 = vadd.f32 0.001143296, %v2824_v56 }
 0x2d9   :  { %10453 = vst [vmem:[#allocation10_spill] sm:$0xff] %v8044_v1  ;;  %v2756_v58 = vsub.f32 1.0, %v2755_v24  ;;  %v3272_v42 = vmul.f32 %v3208_v6, %v10454_v25  ;;  %v3274_v34 = vmul.f32 %v3210_v16, %v10455_v10  ;;  %v8053_v48 = vadd.f32 %v3568_v14, %v3480_v51  ;;  %v473_v6 = vpop.f32.mrf.mxu1 }
 0x2da   :  { %vm2720_vm0 = vweird.f32 %v7945_v29  ;;  %v2741_v61 = vmul.f32 %v2740_v33, %v7772_v62  ;;  %v2826_v21 = vmul.f32 %v2825_v28, %v8014_v22  ;;  %v2230_v26 = vmul.f32 %v2229_v54, %v10441_v36 }
 0x2db   :  { %v2718_v23 = vadd.f32 %v7945_v29, %v2717_v27  ;;  %v3318_v57 = vpack.c.bf16 %v3274_v34, %v3272_v42  ;;  %v3787_v49 = vmul.f32 2.1237322e-06, %v8044_v1  ;;  %v8062_v24 = vmul.f32 0.70710677, %v8047_v31 }
 0x2dc   :  { %vm2719_vm1 = vweird.f32 %v7902_v41  ;;  %v2776_v10 = vadd.f32 0.0036580483, %v2775_v18  ;;  %v2790_v51 = vmul.f32 %v2789_v30, %v7974_v7  ;;  %v2827_v56 = vadd.f32 0.014752088, %v2826_v21 }
 0x2dd   :  { %v2687_v62 = vsel %vm8018_vm14, %v7925_v60, %v2682_v50  ;;  %v2757_v33 = vmul.f32 %v7990_v46, %v2756_v58  ;;  %3605 = vmatmul.bf16.gmra.mxu3 %v3318_v57  ;;  %v8071_v54 = vmul.f32 0.70710677, %v8053_v48  ;;  %v2851_v27 = vmul.f32 %v8062_v24, %v8062_v24  ;;  %vm8077_vm2 = vmor %vm2719_vm1, %vm2720_vm0 }
 0x2de   :  { %vm8081_vm3 = vcmp.eq.f32.partialorder %v2723_v44, 8.507059e+37  ;;  %v2828_v60 = vmul.f32 %v2827_v56, %v8014_v22  ;;  %v8087_v13 = vadd.f32 %v473_v6, %v5912_v8  ;;  %v2231_v50 = vadd.f32 0.4994258, %v2230_v26 }
 0x2df   :  { %v2722_v18 = vsel %vm8077_vm2, %v7945_v29, %v2718_v23  ;;  %v2726_v30 = vor.u32 1.1754944e-38, %v2725_v43  ;;  %v2742_v28 = vadd.f32 1.1283791, %v2741_v61  ;;  %v3788_v14 = vadd.f32 0.00028619796, %v3787_v49 }
 0x2e0   :  { %vm2760_vm4 = vweird.f32 %v7990_v46  ;;  %v2777_v44 = vmul.f32 %v2776_v10, %v7974_v7  ;;  %v2791_v58 = vadd.f32 0.4994258, %v2790_v51  ;;  %v2829_v25 = vadd.f32 0.112945676, %v2828_v60 }
 0x2e1   :  { %v2758_v42 = vadd.f32 %v7990_v46, %v2757_v33  ;;  %v2813_v34 = vmul.f32 2.1237322e-06, %v8014_v22  ;;  %v3825_v21 = vmul.f32 %v8071_v54, %v8071_v54  ;;  %v8098_v26 = vmin.f32 %v2851_v27, 16.0 }
 0x2e2   :  { %v2765_v29 = vand.u32 2147483648, %v7955_v5  ;;  %v2830_v43 = vmul.f32 %v2829_v25, %v8014_v22  ;;  %v8103_v61 = vmul.f32 0.70710677, %v8087_v13  ;;  %v2232_v23 = vmul.f32 %v2231_v50, %v10441_v36 }
 0x2e3   :  { %vm2759_vm5 = vweird.f32 %v7955_v5  ;;  %v2763_v57 = vand.u32 2147483647, %v7955_v5  ;;  %v3789_v49 = vmul.f32 %v3788_v14, %v8044_v1  ;;  %v2864_v6 = vmul.f32 3.8918573e-05, %v8098_v26 }
 0x2e4   :  { %v2727_v10 = vsel %vm8081_vm3, %v2726_v30, %v2722_v18  ;;  %vm8114_vm6 = vmor %vm2759_vm5, %vm2760_vm4  ;;  %v2778_v56 = vadd.f32 0.05243302, %v2777_v44  ;;  %v2792_v36 = vmul.f32 %v2791_v58, %v7974_v7  ;;  %v2891_v33 = vmul.f32 %v8103_v61, %v8103_v61 }
 0x2e5   :  { %v2762_v5 = vsel %vm8114_vm6, %v7990_v46, %v2758_v42  ;;  %v2814_v27 = vadd.f32 0.00028619796, %v2813_v34  ;;  %v8124_v41 = vmin.f32 %v3825_v21, 16.0  ;;  %v2865_v16 = vadd.f32 0.001143296, %v2864_v6 }
 0x2e6   :  { %v2688_v60 = vmul.f32 %v2687_v62, %v7919_v32  ;;  %v2766_v50 = vor.u32 1.1754944e-38, %v2765_v29  ;;  %v2831_v18 = vadd.f32 0.4994258, %v2830_v43  ;;  %v8127_v30 = vadd.f32 1.0, %v2232_v23 }
 0x2e7   :  { %10462 = vst [vmem:[#allocation16_spill] sm:$0xff] %v8124_v41  ;;  %v2728_v14 = vmul.f32 %v2727_v10, %v8024_v55  ;;  %vm2764_vm7 = vcmp.eq.f32.partialorder %v2763_v57, 8.507059e+37  ;;  %v3790_v44 = vadd.f32 0.0036580483, %v3789_v49  ;;  %v2866_v58 = vmul.f32 %v2865_v16, %v8098_v26 }
 0x2e8   :  { %v2767_v25 = vsel %vm2764_vm7, %v2766_v50, %v2762_v5  ;;  %v2779_v51 = vmul.f32 %v2778_v56, %v7974_v7  ;;  %v8132_v46 = vadd.f32 1.0, %v2792_v36  ;;  %v8134_v42 = vmin.f32 %v2891_v33, 16.0 }
 0x2e9   :  { %v2743_v34 = vmul.f32 %v2742_v28, %v7739_v59  ;;  %v2815_v32 = vmul.f32 %v2814_v27, %v8014_v22  ;;  %v3827_v62 = vmul.f32 2.1237322e-06, %v8124_v41  ;;  %v2867_v21 = vadd.f32 0.014752088, %v2866_v58 }
 0x2ea   :  { %v5403_v29 = vclamps-f32 %v2688_v60, 1.0  ;;  %v2832_v55 = vmul.f32 %v2831_v18, %v8014_v22  ;;  %v2853_v43 = vmul.f32 2.1237322e-06, %v8098_v26  ;;  %5662 = vrcp.f32 %v8127_v30 }
 0x2eb   :  { %v3756_v23 = vadd.f32 1.1283791, %v7935_v3  ;;  %v5404_v57 = vclamps-f32 %v2728_v14, 1.0  ;;  %v2768_v49 = vmul.f32 %v2767_v25, %v2743_v34  ;;  %v3791_v6 = vmul.f32 %v3790_v44, %v8044_v1 }
 0x2ec   :  { %v2780_v10 = vadd.f32 0.18741608, %v2779_v51  ;;  %5664 = vrcp.f32 %v8132_v46  ;;  %v2868_v59 = vmul.f32 %v2867_v21, %v8098_v26  ;;  %v2904_v28 = vmul.f32 3.8918573e-05, %v8134_v42 }
 0x2ed   :  { %v10463_v56 = vclamps-f32 %v7930_v20, 1.0  ;;  %v535_v33 = vmul.f32 0.5, %v7672_v45  ;;  %v2816_v5 = vadd.f32 0.0036580483, %v2815_v32  ;;  %v3828_v27 = vadd.f32 0.00028619796, %v3827_v62 }
 0x2ee   :  { %v3222_v16 = vadd.f32 1.0, %v5403_v29  ;;  %v8150_v3 = vadd.f32 1.0, %v2832_v55  ;;  %v2854_v60 = vadd.f32 0.00028619796, %v2853_v43  ;;  %v2905_v50 = vadd.f32 0.001143296, %v2904_v28 }
 0x2ef   :  { %v3221_v36 = vadd.f32 1.0, %v10463_v56  ;;  %v8154_v18 = vmul.f32 %v7832_v40, %v7628_v52  ;;  %v3223_v14 = vadd.f32 1.0, %v5404_v57  ;;  %v8157_v44 = vmul.f32 0.5, %v7720_v63 }
 0x2f0   :  { %v2869_v58 = vadd.f32 0.112945676, %v2868_v59  ;;  %v8159_v20 = vpop.eup %5662  ;;  %v5405_v25 = vclamps-f32 %v2768_v49, 1.0  ;;  %v3792_v45 = vadd.f32 0.05243302, %v3791_v6  ;;  %v2781_v51 = vmul.f32 %v2780_v10, %v7974_v7 }
 0x2f1   :  { %v2906_v34 = vmul.f32 %v2905_v50, %v8134_v42  ;;  %v8164_v32 = vmul.f32 %v3221_v36, %v7807_v19  ;;  %v8167_v62 = vmul.f32 %v3756_v23, %v7717_v37  ;;  %v2817_v52 = vmul.f32 %v2816_v5, %v8014_v22 }
 0x2f2   :  { %v3829_v63 = vmul.f32 %v3828_v27, %v8124_v41  ;;  %v8171_v40 = vpop.eup %5664  ;;  %v8174_v21 = vmul.f32 %v3222_v16, %v7822_v38  ;;  %5666 = vrcp.f32 %v8150_v3  ;;  %v2855_v7 = vmul.f32 %v2854_v60, %v8098_v26 }
 0x2f3   :  { %10464 = vst [vmem:[#allocation12_spill] sm:$0xff] %v8167_v62  ;;  %v2304_v29 = vmul.f32 3.8918573e-05, %v7365_v15  ;;  %v2870_v19 = vmul.f32 %v2869_v58, %v8098_v26  ;;  %v2893_v37 = vmul.f32 2.1237322e-06, %v8134_v42  ;;  %v2235_v43 = vmul.f32 %v8159_v20, %v8127_v30 }
 0x2f4   :  { %v2907_v55 = vadd.f32 0.014752088, %v2906_v34  ;;  %v8183_v23 = vmul.f32 %v3223_v14, %v535_v33  ;;  %v8185_v57 = vadd.f32 1.0, %v5405_v25  ;;  %v3793_v38 = vmul.f32 %v3792_v45, %v8044_v1 }
 0x2f5   :  { %v2782_v49 = vadd.f32 1.1283791, %v2781_v51  ;;  %v2795_v6 = vmul.f32 %v8171_v40, %v8132_v46  ;;  %v2818_v10 = vadd.f32 0.05243302, %v2817_v52  ;;  %v3830_v59 = vadd.f32 0.0036580483, %v3829_v63 }
 0x2f6   :  { %10465 = vst [vmem:[#allocation18_spill] sm:$0xff] %v8183_v23  ;;  %v2908_v28 = vmul.f32 %v2907_v55, %v8134_v42  ;;  %v8192_v56 = vmul.f32 0.5, %v7980_v12  ;;  %v8195_v36 = vmul.f32 0.5, %v7943_v9  ;;  %v2856_v33 = vadd.f32 0.0036580483, %v2855_v7 }
 0x2f7   :  { %v2305_v5 = vadd.f32 0.001143296, %v2304_v29  ;;  %v8198_v27 = vmul.f32 0.5, %v7984_v4  ;;  %v2871_v16 = vadd.f32 0.4994258, %v2870_v19  ;;  %v2236_v50 = vsub.f32 1.0, %v2235_v43 }
 0x2f8   :  { %10466 = vst [vmem:[#allocation11_spill] sm:$0xff] %v8192_v56  ;;  %v2894_v60 = vadd.f32 0.00028619796, %v2893_v37  ;;  %v8200_v14 = vpop.eup %5666  ;;  %v8202_v58 = vadd.f32 0.18741608, %v3793_v38  ;;  %v8205_v25 = vmul.f32 0.5, %v8053_v48  ;;  %v8211_v45 = vmul.f32 %v2782_v49, %v7959_v17 }
 0x2f9   :  { %v8208_v12 = vmul.f32 0.5, %v8047_v31  ;;  %v2909_v9 = vadd.f32 0.112945676, %v2908_v28  ;;  %v2796_v51 = vsub.f32 1.0, %v2795_v6  ;;  %v2819_v4 = vmul.f32 %v2818_v10, %v8014_v22  ;;  %v10468_v43 = vld [vmem:[#allocation23_spill] sm:$0xff] }
 0x2fa   :  { %10467 = vst [vmem:[#allocation24_spill] sm:$0xff] %v8205_v25  ;;  %v3831_v34 = vmul.f32 %v3830_v59, %v8124_v41  ;;  %v2803_v52 = vand.u32 2147483647, %v8132_v46  ;;  %v2805_v63 = vand.u32 2147483648, %v8132_v46  ;;  %v2857_v7 = vmul.f32 %v2856_v33, %v8098_v26 }
 0x2fb   :  { %vm2239_vm8 = vweird.f32 %v8127_v30  ;;  %v2306_v48 = vmul.f32 %v2305_v5, %v7365_v15  ;;  %v2835_v31 = vmul.f32 %v8200_v14, %v8150_v3  ;;  %v2872_v17 = vmul.f32 %v2871_v16, %v8098_v26 }
 0x2fc   :  { %v2895_v29 = vmul.f32 %v2894_v60, %v8134_v42  ;;  %v2237_v19 = vmul.f32 %v8159_v20, %v2236_v50  ;;  %v2910_v37 = vmul.f32 %v2909_v9, %v8134_v42  ;;  %v2264_v38 = vmul.f32 3.8918573e-05, %v10468_v43 }
 0x2fd   :  { %v2307_v55 = vadd.f32 0.014752088, %v2306_v48  ;;  %v2344_v49 = vmul.f32 3.8918573e-05, %v7378_v47  ;;  %v2797_v6 = vmul.f32 %v8171_v40, %v2796_v51  ;;  %v2820_v10 = vadd.f32 0.18741608, %v2819_v4 }
 0x2fe   :  { %v3832_v59 = vadd.f32 0.05243302, %v3831_v34  ;;  %vm2240_vm9 = vweird.f32 %v8159_v20  ;;  %vm2799_vm10 = vweird.f32 %v8132_v46  ;;  %v2858_v28 = vadd.f32 0.05243302, %v2857_v7 }
 0x2ff   :  { %v2308_v33 = vmul.f32 %v2307_v55, %v7365_v15  ;;  %v2265_v5 = vadd.f32 0.001143296, %v2264_v38  ;;  %v2345_v16 = vadd.f32 0.001143296, %v2344_v49  ;;  %v2836_v60 = vsub.f32 1.0, %v2835_v31  ;;  %vm8253_vm13 = vmor %vm2239_vm8, %vm2240_vm9 }
 0x300   :  { %v8232_v50 = vadd.f32 1.0, %v2872_v17  ;;  %v2896_v9 = vadd.f32 0.0036580483, %v2895_v29  ;;  %v2238_v48 = vadd.f32 %v8159_v20, %v2237_v19  ;;  %v2911_v25 = vadd.f32 0.4994258, %v2910_v37 }
 0x301   :  { %v2309_v56 = vadd.f32 0.112945676, %v2308_v33  ;;  %v2266_v51 = vmul.f32 %v2265_v5, %v10468_v43  ;;  %v2346_v4 = vmul.f32 %v2345_v16, %v7378_v47  ;;  %vm2800_vm11 = vweird.f32 %v8171_v40 }
 0x302   :  { %v2806_v34 = vor.u32 1.1754944e-38, %v2805_v63  ;;  %v2821_v7 = vmul.f32 %v2820_v10, %v8014_v22  ;;  %v2245_v55 = vand.u32 2147483648, %v8127_v30  ;;  %v2798_v31 = vadd.f32 %v8171_v40, %v2797_v6  ;;  %vm8272_vm15 = vmor %vm2799_vm10, %vm2800_vm11 }
 0x303   :  { %vm8241_vm12 = vcmp.eq.f32.partialorder %v2803_v52, 8.507059e+37  ;;  %v3833_v29 = vmul.f32 %v3832_v59, %v8124_v41  ;;  %v2859_v19 = vmul.f32 %v2858_v28, %v8098_v26  ;;  %v2243_v37 = vand.u32 2147483647, %v8127_v30 }
 0x304   :  { %5668 = vrcp.f32 %v8232_v50  ;;  %v2310_v52 = vmul.f32 %v2309_v56, %v7365_v15  ;;  %v2267_v63 = vadd.f32 0.014752088, %v2266_v51  ;;  %v2347_v38 = vadd.f32 0.014752088, %v2346_v4 }
 0x305   :  { %v2837_v49 = vmul.f32 %v8200_v14, %v2836_v60  ;;  %v2897_v6 = vmul.f32 %v2896_v9, %v8134_v42  ;;  %v2912_v10 = vmul.f32 %v2911_v25, %v8134_v42  ;;  %v2242_v59 = vsel %vm8253_vm13, %v8159_v20, %v2238_v48 }
 0x306   :  { %v2311_v28 = vadd.f32 0.4994258, %v2310_v52  ;;  %v2268_v30 = vmul.f32 %v2267_v63, %v10468_v43  ;;  %v2348_v33 = vmul.f32 %v2347_v38, %v7378_v47  ;;  %v2384_v5 = vmul.f32 3.8918573e-05, %v7446_v35 }
 0x307   :  { %v2822_v56 = vadd.f32 1.1283791, %v2821_v7  ;;  %vm2839_vm14 = vweird.f32 %v8150_v3  ;;  %v2860_v16 = vadd.f32 0.18741608, %v2859_v19  ;;  %v2246_v60 = vor.u32 1.1754944e-38, %v2245_v55 }
 0x308   :  { %vm2244_vm0 = vcmp.eq.f32.partialorder %v2243_v37, 8.507059e+37  ;;  %v2312_v20 = vmul.f32 %v2311_v28, %v7365_v15  ;;  %v2269_v9 = vadd.f32 0.112945676, %v2268_v30  ;;  %v2349_v48 = vadd.f32 0.112945676, %v2348_v33 }
 0x309   :  { %v2802_v51 = vsel %vm8272_vm15, %v8171_v40, %v2798_v31  ;;  %v2898_v4 = vadd.f32 0.05243302, %v2897_v6  ;;  %v8280_v7 = vadd.f32 1.0, %v2912_v10  ;;  %v2247_v55 = vsel %vm2244_vm0, %v2246_v60, %v2242_v59  ;;  %v10475_v6 = vld [vmem:[#allocation27_spill] sm:$0xff] }
 0x30a   :  { %v8282_v19 = vpop.eup %5668  ;;  %v2838_v46 = vadd.f32 %v8200_v14, %v2837_v49  ;;  %vm2840_vm1 = vweird.f32 %v8200_v14  ;;  %v8286_v22 = vadd.f32 1.0, %v2312_v20  ;;  %v2385_v37 = vadd.f32 0.001143296, %v2384_v5 }
 0x30b   :  { %v2843_v15 = vand.u32 2147483647, %v8150_v3  ;;  %v2845_v52 = vand.u32 2147483648, %v8150_v3  ;;  %v2270_v63 = vmul.f32 %v2269_v9, %v10468_v43  ;;  %v2350_v40 = vmul.f32 %v2349_v48, %v7378_v47  ;;  %vm8299_vm2 = vmor %vm2839_vm14, %vm2840_vm1 }
 0x30c   :  { %v2807_v31 = vsel %vm8241_vm12, %v2806_v34, %v2802_v51  ;;  %v2861_v38 = vmul.f32 %v2860_v16, %v8098_v26  ;;  %v2248_v49 = vmul.f32 %v2247_v55, %v10475_v6  ;;  %5670 = vrcp.f32 %v8286_v22 }
 0x30d   :  { %v2875_v59 = vmul.f32 %v8282_v19, %v8232_v50  ;;  %v2899_v28 = vmul.f32 %v2898_v4, %v8134_v42  ;;  %5672 = vrcp.f32 %v8280_v7  ;;  %v2271_v34 = vadd.f32 0.4994258, %v2270_v63 }
 0x30e   :  { %v2842_v26 = vsel %vm8299_vm2, %v8200_v14, %v2838_v46  ;;  %v3834_v17 = vadd.f32 0.18741608, %v3833_v29  ;;  %v2351_v30 = vadd.f32 0.4994258, %v2350_v40  ;;  %v2386_v3 = vmul.f32 %v2385_v37, %v7446_v35  ;;  %v3482_v14 = vpop.f32.mrf.mxu2 }
 0x30f   :  { %v8313_v33 = vmul.f32 %v8202_v58, %v8044_v1  ;;  %v8316_v5 = vmul.f32 %v2807_v31, %v8211_v45  ;;  %v2846_v16 = vor.u32 1.1754944e-38, %v2845_v52  ;;  %v2272_v60 = vmul.f32 %v2271_v34, %v10468_v43  ;;  %v8336_v52 = vld [vmem:[%s10284_s4] ss:$0 sm:$0xff]  ;;  %v3571_v34 = vpop.f32.mrf.mxu3 }
 0x310   :  { %vm2844_vm3 = vcmp.eq.f32.partialorder %v2843_v15, 8.507059e+37  ;;  %v2862_v25 = vadd.f32 1.1283791, %v2861_v38  ;;  %v5392_v20 = vclamps-f32 %v2248_v49, 1.0  ;;  %v2352_v9 = vmul.f32 %v2351_v30, %v7378_v47  ;;  %v386_v38 = vpop.f32.mrf.mxu0 }
 0x311   :  { %v2847_v29 = vsel %vm2844_vm3, %v2846_v16, %v2842_v26  ;;  %v2876_v48 = vsub.f32 1.0, %v2875_v59  ;;  %v2900_v51 = vadd.f32 0.18741608, %v2899_v28  ;;  %v8320_v4 = vadd.f32 1.0, %v2272_v60 }
 0x312   :  { %v5671_v55 = vpop.eup %5670  ;;  %v2823_v58 = vmul.f32 %v2822_v56, %v8000_v11  ;;  %v8324_v45 = vmul.f32 %v3834_v17, %v8124_v41  ;;  %v8326_v46 = vadd.f32 1.0, %v2352_v9  ;;  %v2387_v43 = vadd.f32 0.014752088, %v2386_v3 }
 0x313   :  { %v8328_v37 = vpop.eup %5672  ;;  %v2315_v47 = vmul.f32 %v5671_v55, %v8286_v22  ;;  %5674 = vrcp.f32 %v8320_v4  ;;  %v3483_v11 = vadd.f32 %v8336_v52, %v3482_v14  ;;  %v8342_v63 = vmul.f32 %v2862_v25, %v8062_v24  ;;  %v10478_v25 = vld [vmem:[#allocation13_spill] sm:$0xff] }
 0x314   :  { %v8339_v56 = vmul.f32 %v2847_v29, %v2823_v58  ;;  %v2885_v40 = vand.u32 2147483648, %v8232_v50  ;;  %v3211_v31 = vadd.f32 1.0, %v5392_v20  ;;  %v2877_v6 = vmul.f32 %v8282_v19, %v2876_v48 }
 0x315   :  { %v2901_v49 = vmul.f32 %v2900_v51, %v8134_v42  ;;  %v2316_v10 = vsub.f32 1.0, %v2315_v47  ;;  %5676 = vrcp.f32 %v8326_v46  ;;  %v8350_v59 = vmul.f32 %v8328_v37, %v8280_v7 }
 0x316   :  { %v2323_v28 = vand.u32 2147483647, %v8286_v22  ;;  %v2325_v24 = vand.u32 2147483648, %v8286_v22  ;;  %v2388_v26 = vmul.f32 %v2387_v43, %v7446_v35  ;;  %vm2320_vm4 = vweird.f32 %v5671_v55 }
 0x317   :  { %v2317_v17 = vmul.f32 %v5671_v55, %v2316_v10  ;;  %v8355_v30 = vadd.f32 %v3571_v34, %v3483_v11  ;;  %v8358_v42 = vadd.f32 %v386_v38, %v5907_v2  ;;  %v2883_v16 = vand.u32 2147483647, %v8232_v50  ;;  %v10479_v10 = vld [vmem:[#allocation33_spill] sm:$0xff] }
 0x318   :  { %v8362_v60 = vor.u32 1.1754944e-38, %v2885_v40  ;;  %v8365_v20 = vmul.f32 %v3211_v31, %v10478_v25  ;;  %v8367_v14 = vadd.f32 1.1283791, %v2901_v49  ;;  %vm2319_vm5 = vweird.f32 %v8286_v22 }
 0x319   :  { %v5675_v9 = vpop.eup %5674  ;;  %v2318_v29 = vadd.f32 %v5671_v55, %v2317_v17  ;;  %v8371_v48 = vmul.f32 0.70710677, %v8355_v30  ;;  %v8374_v51 = vadd.f32 %v8282_v19, %v2877_v6  ;;  %vm2321_vm6 = vmor %vm2319_vm5, %vm2320_vm4  ;;  %v2326_v58 = vor.u32 1.1754944e-38, %v2325_v24 }
 0x31a   :  { %v2275_v43 = vmul.f32 %v5675_v9, %v8320_v4  ;;  %v8378_v47 = vmul.f32 0.70710677, %v8358_v42  ;;  %vm2324_vm7 = vcmp.eq.f32.partialorder %v2323_v28, 8.507059e+37  ;;  %v2389_v38 = vadd.f32 0.112945676, %v2388_v26 }
 0x31b   :  { %v5677_v11 = vpop.eup %5676  ;;  %v2322_v31 = vsel %vm2321_vm6, %v5671_v55, %v2318_v29  ;;  %vm2279_vm8 = vweird.f32 %v8320_v4  ;;  %vm2880_vm9 = vweird.f32 %v8282_v19  ;;  %v2285_v34 = vand.u32 2147483648, %v8320_v4 }
 0x31c   :  { %v2327_v22 = vsel %vm2324_vm7, %v2326_v58, %v2322_v31  ;;  %v2276_v49 = vsub.f32 1.0, %v2275_v43  ;;  %v2355_v6 = vmul.f32 %v5677_v11, %v8326_v46  ;;  %v3865_v17 = vmul.f32 %v8371_v48, %v8371_v48 }
 0x31d   :  { %v2328_v24 = vmul.f32 %v2327_v22, %v10479_v10  ;;  %v2931_v55 = vmul.f32 %v8378_v47, %v8378_v47  ;;  %vm2280_vm10 = vweird.f32 %v5675_v9  ;;  %v2283_v26 = vand.u32 2147483647, %v8320_v4  ;;  %v475_v22 = vpop.f32.mrf.mxu1  ;;  %v10483_v4 = vld [vmem:[#allocation28_spill] sm:$0xff] }
 0x31e   :  { %v2277_v28 = vmul.f32 %v5675_v9, %v2276_v49  ;;  %v2356_v25 = vsub.f32 1.0, %v2355_v6  ;;  %vm2879_vm11 = vweird.f32 %v8232_v50  ;;  %v2363_v58 = vand.u32 2147483647, %v8326_v46  ;;  %vm2281_vm13 = vmor %vm2279_vm8, %vm2280_vm10 }
 0x31f   :  { %v5394_v29 = vclamps-f32 %v2328_v24, 1.0  ;;  %v2365_v43 = vand.u32 2147483648, %v8326_v46  ;;  %v8394_v31 = vmin.f32 %v2931_v55, 16.0  ;;  %vm2360_vm12 = vweird.f32 %v5677_v11  ;;  %vm8429_vm4 = vmor %vm2879_vm11, %vm2880_vm9 }
 0x320   :  { %v2278_v10 = vadd.f32 %v5675_v9, %v2277_v28  ;;  %v2357_v3 = vmul.f32 %v5677_v11, %v2356_v25  ;;  %v8397_v15 = vadd.f32 %v475_v22, %v5912_v8  ;;  %v2286_v6 = vor.u32 1.1754944e-38, %v2285_v34  ;;  %v10480_v28 = vld [vmem:[#allocation30_spill] sm:$0xff] }
 0x321   :  { %v3213_v49 = vadd.f32 1.0, %v5394_v29  ;;  %vm2359_vm14 = vweird.f32 %v8326_v46  ;;  %v8402_v24 = vmin.f32 %v3865_v17, 16.0  ;;  %vm2284_vm15 = vcmp.eq.f32.partialorder %v2283_v26, 8.507059e+37 }
 0x322   :  { %v2282_v40 = vsel %vm2281_vm13, %v5675_v9, %v2278_v10  ;;  %v2358_v55 = vadd.f32 %v5677_v11, %v2357_v3  ;;  %v2944_v23 = vmul.f32 3.8918573e-05, %v8394_v31  ;;  %vm2361_vm0 = vmor %vm2359_vm14, %vm2360_vm12  ;;  %vm2364_vm1 = vcmp.eq.f32.partialorder %v2363_v58, 8.507059e+37  ;;  %v3484_v3 = vpop.f32.mrf.mxu2 }
 0x323   :  { %v3277_v25 = vmul.f32 %v3213_v49, %v10480_v28  ;;  %v2287_v62 = vsel %vm2284_vm15, %v2286_v6, %v2282_v40  ;;  %v2366_v22 = vor.u32 1.1754944e-38, %v2365_v43  ;;  %vm8406_vm2 = vcmp.eq.f32.partialorder %v2883_v16, 8.507059e+37  ;;  %v10484_v16 = vld [vmem:[#allocation34_spill] sm:$0xff] }
 0x324   :  { %v2288_v34 = vmul.f32 %v2287_v62, %v10483_v4  ;;  %v2362_v46 = vsel %vm2361_vm0, %v5677_v11, %v2358_v55  ;;  %v2945_v17 = vadd.f32 0.001143296, %v2944_v23  ;;  %v8412_v9 = vmul.f32 0.70710677, %v8397_v15  ;;  %v3573_v4 = vpop.f32.mrf.mxu3 }
 0x325   :  { %v3319_v26 = vpack.c.bf16 %v3277_v25, %v8365_v20  ;;  %v2367_v10 = vsel %vm2364_vm1, %v2366_v22, %v2362_v46  ;;  %v3867_v40 = vmul.f32 2.1237322e-06, %v8402_v24  ;;  %v2390_v58 = vmul.f32 %v2389_v38, %v7446_v35 }
 0x326   :  { %v5393_v43 = vclamps-f32 %v2288_v34, 1.0  ;;  %v2368_v49 = vmul.f32 %v2367_v10, %v10484_v16  ;;  %v2946_v6 = vmul.f32 %v2945_v17, %v8394_v31  ;;  %v2971_v62 = vmul.f32 %v8412_v9, %v8412_v9  ;;  %v389_v34 = vpop.f32.mrf.mxu0 }
 0x327   :  { %vm2919_vm3 = vweird.f32 %v8280_v7  ;;  %v2923_v23 = vand.u32 2147483647, %v8280_v7  ;;  %3521 = vmatmul.bf16.gmra.mxu2 %v3319_v26  ;;  %v2933_v20 = vmul.f32 2.1237322e-06, %v8394_v31  ;;  %v3485_v11 = vadd.f32 %v8336_v52, %v3484_v3 }
 0x328   :  { %v5395_v55 = vclamps-f32 %v2368_v49, 1.0  ;;  %v3212_v28 = vadd.f32 1.0, %v5393_v43  ;;  %v2947_v25 = vadd.f32 0.014752088, %v2946_v6  ;;  %v8433_v22 = vmin.f32 %v2971_v62, 16.0  ;;  %v10488_v6 = vld [vmem:[#allocation26_spill] sm:$0xff] }
 0x329   :  { %v2882_v46 = vsel %vm8429_vm4, %v8282_v19, %v8374_v51  ;;  %v10487_v17 = vsub.f32 1.0, %v8350_v59  ;;  %v2925_v3 = vand.u32 2147483648, %v8280_v7  ;;  %v8443_v26 = vadd.f32 %v3573_v4, %v3485_v11  ;;  %v10489_v59 = vld [vmem:[#allocation31_spill] sm:$0xff]  ;;  %v10490_v4 = vld [vmem:[#allocation29_spill] sm:$0xff] }
 0x32a   :  { %v3214_v10 = vadd.f32 1.0, %v5395_v55  ;;  %v3868_v43 = vadd.f32 0.00028619796, %v3867_v40  ;;  %v2948_v16 = vmul.f32 %v2947_v25, %v8394_v31  ;;  %v2391_v49 = vadd.f32 0.4994258, %v2390_v58 }
 0x32b   :  { %v2917_v50 = vmul.f32 %v8328_v37, %v10487_v17  ;;  %v3276_v62 = vmul.f32 %v3212_v28, %v10488_v6  ;;  %v2934_v41 = vadd.f32 0.00028619796, %v2933_v20  ;;  %v2984_v1 = vmul.f32 3.8918573e-05, %v8433_v22 }
 0x32c   :  { %v8449_v19 = vadd.f32 %v389_v34, %v5907_v2  ;;  %v3278_v51 = vmul.f32 %v3214_v10, %v10489_v59  ;;  %v2949_v38 = vadd.f32 0.112945676, %v2948_v16  ;;  %v2973_v17 = vmul.f32 2.1237322e-06, %v8433_v22  ;;  %v478_v59 = vpop.f32.mrf.mxu1 }
 0x32d   :  { %v8454_v11 = vmul.f32 0.70710677, %v8443_v26  ;;  %v2887_v40 = vsel %vm8406_vm2, %v8362_v60, %v2882_v46  ;;  %v2918_v58 = vadd.f32 %v8328_v37, %v2917_v50  ;;  %vm2920_vm5 = vweird.f32 %v8328_v37 }
 0x32e   :  { %v2985_v20 = vadd.f32 0.001143296, %v2984_v1  ;;  %v3320_v55 = vpack.c.bf16 %v3278_v51, %v3276_v62  ;;  %v2950_v28 = vmul.f32 %v2949_v38, %v8394_v31  ;;  %v2392_v25 = vmul.f32 %v2391_v49, %v7446_v35  ;;  %vm8473_vm6 = vmor %vm2919_vm3, %vm2920_vm5 }
 0x32f   :  { %v2464_v34 = vmul.f32 3.8918573e-05, %v10490_v4  ;;  %v3869_v10 = vmul.f32 %v3868_v43, %v8402_v24  ;;  %v3905_v29 = vmul.f32 %v8454_v11, %v8454_v11  ;;  %v8469_v60 = vmul.f32 0.70710677, %v8449_v19 }
 0x330   :  { %v2986_v16 = vmul.f32 %v2985_v20, %v8433_v22  ;;  %vm8477_vm7 = vcmp.eq.f32.partialorder %v2923_v23, 8.507059e+37  ;;  %3610 = vmatmul.bf16.gmra.mxu3 %v3320_v55  ;;  %v2935_v46 = vmul.f32 %v2934_v41, %v8394_v31  ;;  %v2951_v50 = vadd.f32 0.4994258, %v2950_v28 }
 0x331   :  { %v2974_v43 = vadd.f32 0.00028619796, %v2973_v17  ;;  %v2922_v49 = vsel %vm8473_vm6, %v8328_v37, %v2918_v58  ;;  %v2926_v6 = vor.u32 1.1754944e-38, %v2925_v3  ;;  %v3011_v7 = vmul.f32 %v8469_v60, %v8469_v60 }
 0x332   :  { %v2987_v62 = vadd.f32 0.014752088, %v2986_v16  ;;  %v2888_v23 = vmul.f32 %v2887_v40, %v8342_v63  ;;  %v2952_v51 = vmul.f32 %v2951_v50, %v8394_v31  ;;  %v8489_v38 = vadd.f32 1.0, %v2392_v25 }
 0x333   :  { %v2465_v20 = vadd.f32 0.001143296, %v2464_v34  ;;  %v3870_v41 = vadd.f32 0.0036580483, %v3869_v10  ;;  %v8492_v55 = vmin.f32 %v3905_v29, 16.0  ;;  %v8494_v28 = vmin.f32 %v3011_v7, 16.0 }
 0x334   :  { %v2988_v17 = vmul.f32 %v2987_v62, %v8433_v22  ;;  %v2927_v37 = vsel %vm8477_vm7, %v2926_v6, %v2922_v49  ;;  %v2936_v3 = vadd.f32 0.0036580483, %v2935_v46  ;;  %v2975_v58 = vmul.f32 %v2974_v43, %v8433_v22 }
 0x335   :  { %v8500_v63 = vadd.f32 %v478_v59, %v5912_v8  ;;  %v2903_v40 = vmul.f32 %v8367_v14, %v8103_v61  ;;  %v8504_v25 = vadd.f32 1.0, %v2952_v51  ;;  %v3024_v10 = vmul.f32 3.8918573e-05, %v8494_v28 }
 0x336   :  { %v2989_v34 = vadd.f32 0.112945676, %v2988_v17  ;;  %v3796_v16 = vadd.f32 1.1283791, %v8313_v33  ;;  %v3836_v29 = vadd.f32 1.1283791, %v8324_v45  ;;  %v2466_v35 = vmul.f32 %v2465_v20, %v10490_v4 }
 0x337   :  { %v5408_v1 = vclamps-f32 %v2888_v23, 1.0  ;;  %v2928_v46 = vmul.f32 %v2927_v37, %v2903_v40  ;;  %v3871_v50 = vmul.f32 %v3870_v41, %v8402_v24  ;;  %v3907_v43 = vmul.f32 2.1237322e-06, %v8492_v55 }
 0x338   :  { %5678 = vrcp.f32 %v8489_v38  ;;  %v2937_v61 = vmul.f32 %v2936_v3, %v8394_v31  ;;  %v2976_v14 = vadd.f32 0.0036580483, %v2975_v58  ;;  %v3025_v49 = vadd.f32 0.001143296, %v3024_v10 }
 0x339   :  { %v8515_v6 = vmul.f32 0.70710677, %v8500_v63  ;;  %v10495_v33 = vclamps-f32 %v8316_v5, 1.0  ;;  %v10496_v62 = vclamps-f32 %v8339_v56, 1.0  ;;  %5680 = vrcp.f32 %v8504_v25 }
 0x33a   :  { %v2990_v59 = vmul.f32 %v2989_v34, %v8433_v22  ;;  %v3227_v23 = vadd.f32 1.0, %v5408_v1  ;;  %v3026_v51 = vmul.f32 %v3025_v49, %v8494_v28  ;;  %v2467_v41 = vadd.f32 0.014752088, %v2466_v35 }
 0x33b   :  { %v3225_v45 = vadd.f32 1.0, %v10495_v33  ;;  %v3226_v7 = vadd.f32 1.0, %v10496_v62  ;;  %v3051_v20 = vmul.f32 %v8515_v6, %v8515_v6  ;;  %v8528_v17 = vmul.f32 %v8185_v57, %v8157_v44 }
 0x33c   :  { %v3872_v5 = vadd.f32 0.05243302, %v3871_v50  ;;  %v3908_v37 = vadd.f32 0.00028619796, %v3907_v43  ;;  %v3013_v56 = vmul.f32 2.1237322e-06, %v8494_v28  ;;  %v2977_v40 = vmul.f32 %v2976_v14, %v8433_v22 }
 0x33d   :  { %v5409_v3 = vclamps-f32 %v2928_v46, 1.0  ;;  %v2938_v58 = vadd.f32 0.05243302, %v2937_v61  ;;  %v3027_v34 = vadd.f32 0.014752088, %v3026_v51  ;;  %v8535_v1 = vmul.f32 %v3796_v16, %v7995_v39 }
 0x33e   :  { %v8532_v10 = vpop.eup %5678  ;;  %v540_v35 = vmul.f32 0.5, %v8087_v13  ;;  %v2991_v49 = vadd.f32 0.4994258, %v2990_v59  ;;  %v8538_v33 = vmin.f32 %v3051_v20, 16.0  ;;  %v8541_v44 = vmul.f32 %v3225_v45, %v8195_v36 }
 0x33f   :  { %v8544_v57 = vmul.f32 %v3836_v29, %v8071_v54  ;;  %v3028_v46 = vmul.f32 %v3027_v34, %v8494_v28  ;;  %v2468_v50 = vmul.f32 %v2467_v41, %v10490_v4  ;;  %v8548_v43 = vpop.eup %5680  ;;  %v8551_v39 = vmul.f32 %v3226_v7, %v8198_v27 }
 0x340   :  { %v3873_v13 = vmul.f32 %v3872_v5, %v8402_v24  ;;  %v3909_v16 = vmul.f32 %v3908_v37, %v8492_v55  ;;  %v3014_v61 = vadd.f32 0.00028619796, %v3013_v56  ;;  %v8556_v36 = vmul.f32 %v3227_v23, %v8208_v12 }
 0x341   :  { %v3228_v14 = vadd.f32 1.0, %v5409_v3  ;;  %v2939_v54 = vmul.f32 %v2938_v58, %v8394_v31  ;;  %v2978_v29 = vadd.f32 0.05243302, %v2977_v40  ;;  %v8560_v45 = vmul.f32 0.5, %v8355_v30 }
 0x342   :  { %v2992_v62 = vmul.f32 %v2991_v49, %v8433_v22  ;;  %v3029_v59 = vadd.f32 0.112945676, %v3028_v46  ;;  %v3064_v27 = vmul.f32 3.8918573e-05, %v8538_v33  ;;  %v2955_v7 = vmul.f32 %v8548_v43, %v8504_v25 }
 0x343   :  { %10497 = vst [vmem:[#allocation14_spill] sm:$0xff] %v8560_v45  ;;  %v2395_v51 = vmul.f32 %v8532_v10, %v8489_v38  ;;  %v2405_v12 = vand.u32 2147483648, %v8489_v38  ;;  %v2469_v23 = vadd.f32 0.112945676, %v2468_v50  ;;  %v3874_v20 = vadd.f32 0.18741608, %v3873_v13 }
 0x344   :  { %v3910_v41 = vadd.f32 0.0036580483, %v3909_v16  ;;  %v3015_v5 = vmul.f32 %v3014_v61, %v8494_v28  ;;  %v3065_v30 = vadd.f32 0.001143296, %v3064_v27  ;;  %v8570_v37 = vmul.f32 %v3228_v14, %v540_v35 }
 0x345   :  { %v8573_v56 = vmul.f32 0.5, %v8358_v42  ;;  %v2940_v3 = vadd.f32 0.18741608, %v2939_v54  ;;  %v2979_v58 = vmul.f32 %v2978_v29, %v8433_v22  ;;  %v8576_v40 = vadd.f32 1.0, %v2992_v62 }
 0x346   :  { %v3030_v34 = vmul.f32 %v3029_v59, %v8494_v28  ;;  %v3066_v49 = vmul.f32 %v3065_v30, %v8538_v33  ;;  %v2403_v46 = vand.u32 2147483647, %v8489_v38  ;;  %v2956_v50 = vsub.f32 1.0, %v2955_v7 }
 0x347   :  { %v2396_v13 = vsub.f32 1.0, %v2395_v51  ;;  %v8581_v16 = vor.u32 1.1754944e-38, %v2405_v12  ;;  %v2470_v35 = vmul.f32 %v2469_v23, %v10490_v4  ;;  %v3875_v42 = vmul.f32 %v3874_v20, %v8402_v24 }
 0x348   :  { %v8586_v61 = vmul.f32 0.5, %v8397_v15  ;;  %v3911_v14 = vmul.f32 %v3910_v41, %v8492_v55  ;;  %v3016_v54 = vadd.f32 0.0036580483, %v3015_v5  ;;  %v2941_v29 = vmul.f32 %v2940_v3, %v8394_v31 }
 0x349   :  { %v2980_v62 = vadd.f32 0.18741608, %v2979_v58  ;;  %v3053_v59 = vmul.f32 2.1237322e-06, %v8538_v33  ;;  %v3067_v27 = vadd.f32 0.014752088, %v3066_v49  ;;  %5682 = vrcp.f32 %v8576_v40 }
 0x34a   :  { %v8593_v7 = vmul.f32 0.5, %v8443_v26  ;;  %v8596_v51 = vmul.f32 0.5, %v8449_v19  ;;  %v3031_v12 = vadd.f32 0.4994258, %v3030_v34  ;;  %vm2399_vm8 = vweird.f32 %v8489_v38 }
 0x34b   :  { %v2957_v15 = vmul.f32 %v8548_v43, %v2956_v50  ;;  %v3068_v23 = vmul.f32 %v3067_v27, %v8538_v33  ;;  %v2397_v31 = vmul.f32 %v8532_v10, %v2396_v13  ;;  %v2471_v20 = vadd.f32 0.4994258, %v2470_v35  ;;  %v10501_v27 = vld [vmem:[#allocation15_spill] sm:$0xff] }
 0x34c   :  { %10498 = vst [vmem:[#allocation20_spill] sm:$0xff] %v8593_v7  ;;  %v3876_v41 = vadd.f32 1.1283791, %v3875_v42  ;;  %v3912_v5 = vadd.f32 0.05243302, %v3911_v14  ;;  %v3017_v30 = vmul.f32 %v3016_v54, %v8494_v28  ;;  %v8604_v26 = vmul.f32 0.5, %v8500_v63 }
 0x34d   :  { %v2942_v3 = vadd.f32 1.1283791, %v2941_v29  ;;  %vm2959_vm9 = vweird.f32 %v8504_v25  ;;  %v2981_v19 = vmul.f32 %v2980_v62, %v8433_v22  ;;  %v3054_v58 = vadd.f32 0.00028619796, %v3053_v59 }
 0x34e   :  { %v2965_v34 = vand.u32 2147483648, %v8504_v25  ;;  %v3032_v49 = vmul.f32 %v3031_v12, %v8494_v28  ;;  %v3069_v50 = vadd.f32 0.112945676, %v3068_v23  ;;  %vm8610_vm10 = vcmp.eq.f32.partialorder %v2403_v46, 8.507059e+37 }
 0x34f   :  { %v2472_v35 = vmul.f32 %v2471_v20, %v10490_v4  ;;  %v2958_v63 = vadd.f32 %v8548_v43, %v2957_v15  ;;  %vm2960_vm11 = vweird.f32 %v8548_v43  ;;  %v2398_v42 = vadd.f32 %v8532_v10, %v2397_v31  ;;  %v8619_v22 = vpop.eup %5682 }
 0x350   :  { %vm2400_vm12 = vweird.f32 %v8532_v10  ;;  %v3913_v14 = vmul.f32 %v3912_v5, %v8492_v55  ;;  %v3018_v54 = vadd.f32 0.05243302, %v3017_v30  ;;  %v3070_v46 = vmul.f32 %v3069_v50, %v8538_v33  ;;  %vm8633_vm13 = vmor %vm2959_vm9, %vm2960_vm11 }
 0x351   :  { %v8623_v29 = vadd.f32 1.0, %v2472_v35  ;;  %v2963_v62 = vand.u32 2147483647, %v8504_v25  ;;  %v2982_v4 = vadd.f32 1.1283791, %v2981_v19  ;;  %v3055_v59 = vmul.f32 %v3054_v58, %v8538_v33  ;;  %vm8651_vm14 = vmor %vm2399_vm8, %vm2400_vm12 }
 0x352   :  { %v2424_v12 = vmul.f32 3.8918573e-05, %v10501_v27  ;;  %v8629_v15 = vmul.f32 %v3876_v41, %v8371_v48  ;;  %v8637_v31 = vadd.f32 1.0, %v3032_v49  ;;  %v2504_v20 = vmul.f32 3.8918573e-05, %v7548_v53 }
 0x353   :  { %5684 = vrcp.f32 %v8623_v29  ;;  %v2943_v5 = vmul.f32 %v2942_v3, %v8378_v47  ;;  %v2962_v30 = vsel %vm8633_vm13, %v8548_v43, %v2958_v63  ;;  %v2966_v48 = vor.u32 1.1754944e-38, %v2965_v34 }
 0x354   :  { %10502 = vst [vmem:[#allocation19_spill] sm:$0xff] %v8629_v15  ;;  %v2995_v25 = vmul.f32 %v8619_v22, %v8576_v40  ;;  %v3914_v19 = vadd.f32 0.18741608, %v3913_v14  ;;  %v3019_v58 = vmul.f32 %v3018_v54, %v8494_v28  ;;  %v3071_v47 = vadd.f32 0.4994258, %v3070_v46  ;;  %v10511_v15 = vld [vmem:[#allocation39_spill] sm:$0xff] }
 0x355   :  { %v2402_v43 = vsel %vm8651_vm14, %v8532_v10, %v2398_v42  ;;  %vm2964_vm15 = vcmp.eq.f32.partialorder %v2963_v62, 8.507059e+37  ;;  %v8660_v3 = vmul.f32 %v2982_v4, %v8412_v9  ;;  %v3056_v34 = vadd.f32 0.0036580483, %v3055_v59 }
 0x356   :  { %v2425_v49 = vadd.f32 0.001143296, %v2424_v12  ;;  %v2967_v50 = vsel %vm2964_vm15, %v2966_v48, %v2962_v30  ;;  %5686 = vrcp.f32 %v8637_v31  ;;  %v2505_v38 = vadd.f32 0.001143296, %v2504_v20  ;;  %v10507_v20 = vld [vmem:[#allocation22_spill] sm:$0xff]  ;;  %v10508_v30 = vld [vmem:[#allocation35_spill] sm:$0xff] }
 0x357   :  { %v3718_v35 = vmul.f32 3.8918573e-05, %v7658_v0  ;;  %v2996_v63 = vsub.f32 1.0, %v2995_v25  ;;  %v3003_v14 = vand.u32 2147483647, %v8576_v40  ;;  %v2407_v54 = vsel %vm8610_vm10, %v8581_v16, %v2402_v43 }
 0x358   :  { %v2426_v10 = vmul.f32 %v2425_v49, %v10501_v27  ;;  %v3005_v9 = vand.u32 2147483648, %v8576_v40  ;;  %v3915_v46 = vmul.f32 %v3914_v19, %v8492_v55  ;;  %v3020_v62 = vadd.f32 0.18741608, %v3019_v58 }
 0x359   :  { %v5685_v42 = vpop.eup %5684  ;;  %v3072_v4 = vmul.f32 %v3071_v47, %v8538_v33  ;;  %v8672_v59 = vmul.f32 %v2967_v50, %v2943_v5  ;;  %vm3000_vm0 = vweird.f32 %v8619_v22  ;;  %v3758_v13 = vmul.f32 3.8918573e-05, %v10507_v20 }
 0x35a   :  { %v2475_v12 = vmul.f32 %v5685_v42, %v8623_v29  ;;  %v2427_v23 = vadd.f32 0.014752088, %v2426_v10  ;;  %v3057_v16 = vmul.f32 %v3056_v34, %v8538_v33  ;;  %v2408_v48 = vmul.f32 %v2407_v54, %v10508_v30 }
 0x35b   :  { %v2506_v25 = vmul.f32 %v2505_v38, %v7548_v53  ;;  %v3719_v41 = vadd.f32 0.001143296, %v3718_v35  ;;  %v2997_v19 = vmul.f32 %v8619_v22, %v2996_v63  ;;  %vm2999_vm1 = vweird.f32 %v8576_v40 }
 0x35c   :  { %v2476_v5 = vsub.f32 1.0, %v2475_v12  ;;  %v2485_v58 = vand.u32 2147483648, %v8623_v29  ;;  %v2428_v47 = vmul.f32 %v2427_v23, %v10501_v27  ;;  %v8684_v43 = vpop.eup %5686  ;;  %v8686_v49 = vadd.f32 1.0, %v3072_v4  ;;  %vm8711_vm7 = vmor %vm2999_vm1, %vm3000_vm0 }
 0x35d   :  { %v2483_v34 = vand.u32 2147483647, %v8623_v29  ;;  %v2507_v50 = vadd.f32 0.014752088, %v2506_v25  ;;  %v3720_v54 = vmul.f32 %v3719_v41, %v7658_v0  ;;  %vm2480_vm2 = vweird.f32 %v5685_v42 }
 0x35e   :  { %v2477_v38 = vmul.f32 %v5685_v42, %v2476_v5  ;;  %v2429_v35 = vadd.f32 0.112945676, %v2428_v47  ;;  %v3759_v63 = vadd.f32 0.001143296, %v3758_v13  ;;  %v3058_v10 = vadd.f32 0.05243302, %v3057_v16 }
 0x35f   :  { %v5396_v30 = vclamps-f32 %v2408_v48, 1.0  ;;  %v2508_v12 = vmul.f32 %v2507_v50, %v7548_v53  ;;  %v3721_v7 = vadd.f32 0.014752088, %v3720_v54  ;;  %vm8691_vm3 = vcmp.eq.f32.partialorder %v3003_v14, 8.507059e+37 }
 0x360   :  { %v3035_v4 = vmul.f32 %v8684_v43, %v8637_v31  ;;  %v2478_v45 = vadd.f32 %v5685_v42, %v2477_v38  ;;  %vm2479_vm4 = vweird.f32 %v8623_v29  ;;  %v2486_v25 = vor.u32 1.1754944e-38, %v2485_v58 }
 0x361   :  { %5688 = vrcp.f32 %v8686_v49  ;;  %vm2481_vm5 = vmor %vm2479_vm4, %vm2480_vm2  ;;  %v2430_v13 = vmul.f32 %v2429_v35, %v10501_v27  ;;  %v2509_v16 = vadd.f32 0.112945676, %v2508_v12  ;;  %v3722_v48 = vmul.f32 %v3721_v7, %v7658_v0 }
 0x362   :  { %v2998_v14 = vadd.f32 %v8619_v22, %v2997_v19  ;;  %v2482_v41 = vsel %vm2481_vm5, %v5685_v42, %v2478_v45  ;;  %vm2484_vm6 = vcmp.eq.f32.partialorder %v2483_v34, 8.507059e+37  ;;  %v3760_v5 = vmul.f32 %v3759_v63, %v10507_v20 }
 0x363   :  { %v2487_v47 = vsel %vm2484_vm6, %v2486_v25, %v2482_v41  ;;  %v2431_v50 = vadd.f32 0.4994258, %v2430_v13  ;;  %v2510_v54 = vmul.f32 %v2509_v16, %v7548_v53  ;;  %v3723_v29 = vadd.f32 0.112945676, %v3722_v48  ;;  %v3487_v25 = vpop.f32.mrf.mxu2 }
 0x364   :  { %v3021_v58 = vmul.f32 %v3020_v62, %v8494_v28  ;;  %v3059_v38 = vmul.f32 %v3058_v10, %v8538_v33  ;;  %v2488_v35 = vmul.f32 %v2487_v47, %v10511_v15  ;;  %v3215_v12 = vadd.f32 1.0, %v5396_v30  ;;  %v391_v47 = vpop.f32.mrf.mxu0 }
 0x365   :  { %v3036_v7 = vsub.f32 1.0, %v3035_v4  ;;  %v2432_v42 = vmul.f32 %v2431_v50, %v10501_v27  ;;  %v2511_v19 = vadd.f32 0.4994258, %v2510_v54  ;;  %v3724_v34 = vmul.f32 %v3723_v29, %v7658_v0  ;;  %v10515_v50 = vld [vmem:[#allocation36_spill] sm:$0xff] }
 0x366   :  { %v3002_v28 = vsel %vm8711_vm7, %v8619_v22, %v2998_v14  ;;  %v3006_v15 = vor.u32 1.1754944e-38, %v3005_v9  ;;  %v3916_v62 = vadd.f32 1.1283791, %v3915_v46  ;;  %v5398_v63 = vclamps-f32 %v2488_v35, 1.0  ;;  %v10514_v46 = vld [vmem:[#allocation32_spill] sm:$0xff] }
 0x367   :  { %v8720_v10 = vpop.eup %5688  ;;  %v8722_v40 = vadd.f32 1.0, %v2432_v42  ;;  %v2512_v30 = vmul.f32 %v2511_v19, %v7548_v53  ;;  %v3725_v4 = vadd.f32 0.4994258, %v3724_v34  ;;  %v3761_v13 = vadd.f32 0.014752088, %v3760_v5 }
 0x368   :  { %v5410_v27 = vclamps-f32 %v8672_v59, 1.0  ;;  %v3022_v16 = vadd.f32 1.1283791, %v3021_v58  ;;  %v3060_v48 = vadd.f32 0.18741608, %v3059_v38  ;;  %v3217_v41 = vadd.f32 1.0, %v5398_v63 }
 0x369   :  { %v3007_v22 = vsel %vm8691_vm3, %v3006_v15, %v3002_v28  ;;  %v3037_v9 = vmul.f32 %v8684_v43, %v3036_v7  ;;  %v3279_v14 = vmul.f32 %v3215_v12, %v10514_v46  ;;  %5690 = vrcp.f32 %v8722_v40 }
 0x36a   :  { %v3075_v53 = vmul.f32 %v8720_v10, %v8686_v49  ;;  %v3281_v5 = vmul.f32 %v3217_v41, %v10515_v50  ;;  %v8734_v54 = vadd.f32 1.0, %v2512_v30  ;;  %v3488_v59 = vadd.f32 %v8336_v52, %v3487_v25 }
 0x36b   :  { %v8738_v29 = vmul.f32 %v3916_v62, %v8454_v11  ;;  %v8741_v23 = vadd.f32 %v391_v47, %v5907_v2  ;;  %v3726_v58 = vmul.f32 %v3725_v4, %v7658_v0  ;;  %v3762_v38 = vmul.f32 %v3761_v13, %v10507_v20  ;;  %v3576_v0 = vpop.f32.mrf.mxu3 }
 0x36c   :  { %v8746_v35 = vmul.f32 %v3007_v22, %v8660_v3  ;;  %v3045_v12 = vand.u32 2147483648, %v8637_v31  ;;  %v3321_v45 = vpack.c.bf16 %v3281_v5, %v3279_v14  ;;  %5692 = vrcp.f32 %v8734_v54 }
 0x36d   :  { %v8750_v7 = vadd.f32 1.0, %v5410_v27  ;;  %v8753_v11 = vadd.f32 %v8684_v43, %v3037_v9  ;;  %vm3040_vm8 = vweird.f32 %v8684_v43  ;;  %v3061_v2 = vmul.f32 %v3060_v48, %v8538_v33 }
 0x36e   :  { %v8758_v42 = vmul.f32 %v3022_v16, %v8469_v60  ;;  %v3076_v3 = vsub.f32 1.0, %v3075_v53  ;;  %3526 = vmatmul.bf16.gmra.mxu2 %v3321_v45  ;;  %v8760_v19 = vadd.f32 %v3576_v0, %v3488_v59  ;;  %v8763_v34 = vmul.f32 0.70710677, %v8741_v23  ;;  %v480_v45 = vpop.f32.mrf.mxu1 }
 0x36f   :  { %v5691_v28 = vpop.eup %5690  ;;  %vm3039_vm9 = vweird.f32 %v8637_v31  ;;  %v3043_v15 = vand.u32 2147483647, %v8637_v31  ;;  %v8767_v62 = vadd.f32 1.0, %v3726_v58  ;;  %v3763_v63 = vadd.f32 0.112945676, %v3762_v38 }
 0x370   :  { %vm8770_vm10 = vmor %vm3039_vm9, %vm3040_vm8  ;;  %v8774_v30 = vor.u32 1.1754944e-38, %v3045_v12  ;;  %v2435_v25 = vmul.f32 %v5691_v28, %v8722_v40  ;;  %v2443_v4 = vand.u32 2147483647, %v8722_v40  ;;  %v8782_v13 = vadd.f32 1.1283791, %v3061_v2 }
 0x371   :  { %v2445_v27 = vand.u32 2147483648, %v8722_v40  ;;  %v3091_v16 = vmul.f32 %v8763_v34, %v8763_v34  ;;  %v3077_v41 = vmul.f32 %v8720_v10, %v3076_v3  ;;  %v8789_v22 = vmul.f32 0.70710677, %v8760_v19 }
 0x372   :  { %v5693_v48 = vpop.eup %5692  ;;  %v2436_v47 = vsub.f32 1.0, %v2435_v25  ;;  %5694 = vrcp.f32 %v8767_v62  ;;  %vm2439_vm11 = vweird.f32 %v8722_v40  ;;  %v3764_v14 = vmul.f32 %v3763_v63, %v10507_v20 }
 0x373   :  { %v2515_v9 = vmul.f32 %v5693_v48, %v8734_v54  ;;  %v8794_v46 = vmin.f32 %v3091_v16, 16.0  ;;  %vm2440_vm12 = vweird.f32 %v5691_v28  ;;  %vm8797_vm13 = vcmp.eq.f32.partialorder %v2443_v4, 8.507059e+37 }
 0x374   :  { %v2437_v53 = vmul.f32 %v5691_v28, %v2436_v47  ;;  %v2523_v5 = vand.u32 2147483647, %v8734_v54  ;;  %v2446_v59 = vor.u32 1.1754944e-38, %v2445_v27  ;;  %v2525_v38 = vand.u32 2147483648, %v8734_v54  ;;  %vm2441_vm0 = vmor %vm2439_vm11, %vm2440_vm12 }
 0x375   :  { %v2516_v58 = vsub.f32 1.0, %v2515_v9  ;;  %v3104_v12 = vmul.f32 3.8918573e-05, %v8794_v46  ;;  %v3945_v0 = vmul.f32 %v8789_v22, %v8789_v22  ;;  %v3093_v3 = vmul.f32 2.1237322e-06, %v8794_v46 }
 0x376   :  { %v2438_v2 = vadd.f32 %v5691_v28, %v2437_v53  ;;  %v8808_v63 = vadd.f32 %v480_v45, %v5912_v8  ;;  %vm8810_vm14 = vcmp.eq.f32.partialorder %v3043_v15, 8.507059e+37  ;;  %vm3079_vm15 = vweird.f32 %v8686_v49  ;;  %v10524_v45 = vld [vmem:[#allocation38_spill] sm:$0xff] }
 0x377   :  { %v2517_v4 = vmul.f32 %v5693_v48, %v2516_v58  ;;  %vm2520_vm1 = vweird.f32 %v5693_v48  ;;  %v3105_v27 = vadd.f32 0.001143296, %v3104_v12  ;;  %v3765_v16 = vadd.f32 0.4994258, %v3764_v14  ;;  %v3489_v14 = vpop.f32.mrf.mxu2 }
 0x378   :  { %v8817_v47 = vpop.eup %5694  ;;  %v2442_v9 = vsel %vm2441_vm0, %v5691_v28, %v2438_v2  ;;  %vm2519_vm2 = vweird.f32 %v8734_v54  ;;  %vm8820_vm3 = vcmp.eq.f32.partialorder %v2523_v5, 8.507059e+37  ;;  %v8825_v15 = vmul.f32 0.70710677, %v8808_v63 }
 0x379   :  { %v2447_v40 = vsel %vm8797_vm13, %v2446_v59, %v2442_v9  ;;  %v2518_v53 = vadd.f32 %v5693_v48, %v2517_v4  ;;  %v2526_v58 = vor.u32 1.1754944e-38, %v2525_v38  ;;  %v3106_v12 = vmul.f32 %v3105_v27, %v8794_v46  ;;  %vm2521_vm4 = vmor %vm2519_vm2, %vm2520_vm1  ;;  %v10525_v9 = vld [vmem:[#allocation40_spill] sm:$0xff] }
 0x37a   :  { %v2448_v33 = vmul.f32 %v2447_v40, %v10524_v45  ;;  %v8831_v28 = vmin.f32 %v3945_v0, 16.0  ;;  %v3094_v54 = vadd.f32 0.00028619796, %v3093_v3  ;;  %v3131_v5 = vmul.f32 %v8825_v15, %v8825_v15  ;;  %v3578_v45 = vpop.f32.mrf.mxu3 }
 0x37b   :  { %v2522_v2 = vsel %vm2521_vm4, %v5693_v48, %v2518_v53  ;;  %v3107_v31 = vadd.f32 0.014752088, %v3106_v12  ;;  %v3729_v50 = vmul.f32 %v8817_v47, %v8767_v62  ;;  %v3766_v59 = vmul.f32 %v3765_v16, %v10507_v20 }
 0x37c   :  { %v5397_v38 = vclamps-f32 %v2448_v33, 1.0  ;;  %v2527_v4 = vsel %vm8820_vm3, %v2526_v58, %v2522_v2  ;;  %v8840_v27 = vmin.f32 %v3131_v5, 16.0  ;;  %v3490_v0 = vadd.f32 %v8336_v52, %v3489_v14 }
 0x37d   :  { %v3078_v3 = vadd.f32 %v8720_v10, %v3077_v41  ;;  %vm3080_vm5 = vweird.f32 %v8720_v10  ;;  %v2528_v48 = vmul.f32 %v2527_v4, %v10525_v9  ;;  %v3108_v40 = vmul.f32 %v3107_v31, %v8794_v46  ;;  %v10529_v4 = vld [vmem:[#allocation17_spill] sm:$0xff] }
 0x37e   :  { %v3083_v53 = vand.u32 2147483647, %v8686_v49  ;;  %v3947_v20 = vmul.f32 2.1237322e-06, %v8831_v28  ;;  %v3095_v33 = vmul.f32 %v3094_v54, %v8794_v46  ;;  %v3730_v16 = vsub.f32 1.0, %v3729_v50  ;;  %vm8862_vm6 = vmor %vm3079_vm15, %vm3080_vm5  ;;  %v10530_v9 = vld [vmem:[#allocation37_spill] sm:$0xff] }
 0x37f   :  { %v5399_v8 = vclamps-f32 %v2528_v48, 1.0  ;;  %v3216_v58 = vadd.f32 1.0, %v5397_v38  ;;  %v3109_v12 = vadd.f32 0.112945676, %v3108_v40  ;;  %v8850_v52 = vadd.f32 1.0, %v3766_v59 }
 0x380   :  { %v10526_v41 = vsel %vm8770_vm10, %v8684_v43, %v8753_v11  ;;  %v3085_v54 = vand.u32 2147483648, %v8686_v49  ;;  %v3144_v5 = vmul.f32 3.8918573e-05, %v8840_v27  ;;  %v8868_v2 = vadd.f32 %v3578_v45, %v3490_v0 }
 0x381   :  { %v3047_v31 = vsel %vm8810_vm14, %v8774_v30, %v10526_v41  ;;  %v3082_v43 = vsel %vm8862_vm6, %v8720_v10, %v3078_v3  ;;  %v3218_v11 = vadd.f32 1.0, %v5399_v8  ;;  %v3110_v60 = vmul.f32 %v3109_v12, %v8794_v46 }
 0x382   :  { %v3133_v30 = vmul.f32 2.1237322e-06, %v8840_v27  ;;  %v3948_v25 = vadd.f32 0.00028619796, %v3947_v20  ;;  %v3096_v50 = vadd.f32 0.0036580483, %v3095_v33  ;;  %v3731_v38 = vmul.f32 %v8817_v47, %v3730_v16 }
 0x383   :  { %v3145_v59 = vadd.f32 0.001143296, %v3144_v5  ;;  %v3280_v49 = vmul.f32 %v3216_v58, %v10529_v4  ;;  %v3282_v48 = vmul.f32 %v3218_v11, %v10530_v9  ;;  %vm3733_vm7 = vweird.f32 %v8767_v62  ;;  %v10533_v11 = vld [vmem:[#allocation41_spill] sm:$0xff] }
 0x384   :  { %5696 = vrcp.f32 %v8850_v52  ;;  %v3111_v0 = vadd.f32 0.4994258, %v3110_v60  ;;  %v8882_v3 = vmul.f32 0.70710677, %v8868_v2  ;;  %v3732_v40 = vadd.f32 %v8817_v47, %v3731_v38 }
 0x385   :  { %v3146_v10 = vmul.f32 %v3145_v59, %v8840_v27  ;;  %v3322_v20 = vpack.c.bf16 %v3282_v48, %v3280_v49  ;;  %v3134_v33 = vadd.f32 0.00028619796, %v3133_v30  ;;  %v3737_v16 = vand.u32 2147483647, %v8767_v62 }
 0x386   :  { %v3739_v8 = vand.u32 2147483648, %v8767_v62  ;;  %v3949_v58 = vmul.f32 %v3948_v25, %v8831_v28  ;;  %v3097_v12 = vmul.f32 %v3096_v50, %v8794_v46  ;;  %vm3734_vm8 = vweird.f32 %v8817_v47 }
 0x387   :  { %v3147_v45 = vadd.f32 0.014752088, %v3146_v10  ;;  %v3048_v41 = vmul.f32 %v3047_v31, %v8758_v42  ;;  %vm3084_vm9 = vcmp.eq.f32.partialorder %v3083_v53, 8.507059e+37  ;;  %v3086_v14 = vor.u32 1.1754944e-38, %v3085_v54  ;;  %3615 = vmatmul.bf16.gmra.mxu3 %v3322_v20  ;;  %vm8893_vm10 = vmor %vm3733_vm7, %vm3734_vm8  ;;  %v3492_v53 = vpop.f32.mrf.mxu2 }
 0x388   :  { %v3323_v60 = vpack.c.bf16 %v8164_v32, %v10533_v11  ;;  %v3112_v30 = vmul.f32 %v3111_v0, %v8794_v46  ;;  %v3985_v50 = vmul.f32 %v8882_v3, %v8882_v3  ;;  %v3736_v42 = vsel %vm8893_vm10, %v8817_v47, %v3732_v40 }
 0x389   :  { %v3148_v25 = vmul.f32 %v3147_v45, %v8840_v27  ;;  %v3087_v31 = vsel %vm3084_vm9, %v3086_v14, %v3082_v43  ;;  %v3135_v54 = vmul.f32 %v3134_v33, %v8840_v27  ;;  %vm3738_vm11 = vcmp.eq.f32.partialorder %v3737_v16, 8.507059e+37  ;;  %v8916_v43 = vld [vmem:[%s10284_s4] ss:$0 sm:$0xff]  ;;  %v3581_v33 = vpop.f32.mrf.mxu3 }
 0x38a   :  { %v8906_v62 = vpop.eup %5696  ;;  %v3740_v59 = vor.u32 1.1754944e-38, %v3739_v8  ;;  %3531 = vmatmul.bf16.gmra.mxu2 %v3323_v60  ;;  %v3063_v32 = vmul.f32 %v8782_v13, %v8515_v6  ;;  %v3950_v38 = vadd.f32 0.0036580483, %v3949_v58  ;;  %v3098_v4 = vadd.f32 0.05243302, %v3097_v12 }
 0x38b   :  { %v3149_v49 = vadd.f32 0.112945676, %v3148_v25  ;;  %v10534_v9 = vclamps-f32 %v8746_v35, 1.0  ;;  %v5412_v0 = vclamps-f32 %v3048_v41, 1.0  ;;  %v3493_v10 = vadd.f32 %v8916_v43, %v3492_v53 }
 0x38c   :  { %v3741_v47 = vsel %vm3738_vm11, %v3740_v59, %v3736_v42  ;;  %v3088_v40 = vmul.f32 %v3087_v31, %v3063_v32  ;;  %v8919_v20 = vadd.f32 1.0, %v3112_v30  ;;  %v8922_v13 = vmin.f32 %v3985_v50, 16.0  ;;  %v10535_v32 = vld [vmem:[#allocation43_spill] sm:$0xff] }
 0x38d   :  { %v3230_v48 = vadd.f32 1.0, %v10534_v9  ;;  %v3150_v6 = vmul.f32 %v3149_v49, %v8840_v27  ;;  %v3136_v16 = vadd.f32 0.0036580483, %v3135_v54  ;;  %v3742_v35 = vmul.f32 %v3741_v47, %v8154_v18 }
 0x38e   :  { %v8925_v8 = vadd.f32 %v3581_v33, %v3493_v10  ;;  %v3769_v58 = vmul.f32 %v8906_v62, %v8850_v52  ;;  %v8931_v12 = vmul.f32 %v8750_v7, %v8573_v56  ;;  %v3951_v45 = vmul.f32 %v3950_v38, %v8831_v28 }
 0x38f   :  { %v3099_v41 = vmul.f32 %v3098_v4, %v8794_v46  ;;  %v3151_v14 = vadd.f32 0.4994258, %v3150_v6  ;;  %v8936_v5 = vmul.f32 %v3230_v48, %v8586_v61  ;;  %v5480_v11 = vclamps-f32 %v3742_v35, 1.0  ;;  %v8948_v61 = vld [vmem:[%s10285_s5] ss:$0 sm:$0xff]  ;;  %v10536_v4 = vld [vmem:[#allocation42_spill] sm:$0xff] }
 0x390   :  { %v8939_v18 = vmul.f32 0.70710677, %v8925_v8  ;;  %v3770_v60 = vsub.f32 1.0, %v3769_v58  ;;  %v3231_v30 = vadd.f32 1.0, %v5412_v0  ;;  %5698 = vrcp.f32 %v8919_v20 }
 0x391   :  { %v3152_v25 = vmul.f32 %v3151_v14, %v8840_v27  ;;  %v3987_v56 = vmul.f32 2.1237322e-06, %v8922_v13  ;;  %v5413_v7 = vclamps-f32 %v3088_v40, 1.0  ;;  %v3137_v50 = vmul.f32 %v3136_v16, %v8840_v27  ;;  %v3494_v40 = vpop.f32.mrf.mxu2 }
 0x392   :  { %v4985_v42 = vadd.f32 1.0, %v5480_v11  ;;  %v3771_v53 = vmul.f32 %v8906_v62, %v3770_v60  ;;  %v3952_v31 = vadd.f32 0.05243302, %v3951_v45  ;;  %v3100_v54 = vadd.f32 0.18741608, %v3099_v41 }
 0x393   :  { %v8951_v59 = vadd.f32 1.0, %v3152_v25  ;;  %v3324_v38 = vpack.c.bf16 %v8174_v21, %v10535_v32  ;;  %v4025_v9 = vmul.f32 %v8939_v18, %v8939_v18  ;;  %vm3774_vm12 = vweird.f32 %v8906_v62  ;;  %v3583_v25 = vpop.f32.mrf.mxu3 }
 0x394   :  { %v5017_v49 = vmul.f32 %v4985_v42, %v10536_v4  ;;  %v3772_v48 = vadd.f32 %v8906_v62, %v3771_v53  ;;  %v8961_v0 = vmul.f32 %v3231_v30, %v8596_v51  ;;  %v8964_v47 = vmul.f32 0.5, %v8760_v19 }
 0x395   :  { %v3988_v10 = vadd.f32 0.00028619796, %v3987_v56  ;;  %vm3773_vm13 = vweird.f32 %v8850_v52  ;;  %v3138_v21 = vadd.f32 0.05243302, %v3137_v50  ;;  %5700 = vrcp.f32 %v8951_v59  ;;  %v10539_v56 = vld [vmem:[#allocation10_spill] sm:$0xff]  ;;  %v10540_v50 = vld [vmem:[#allocation16_spill] sm:$0xff] }
 0x396   :  { %v5053_v6 = vmul.f32 %v8948_v61, %v5017_v49  ;;  %v3777_v33 = vand.u32 2147483647, %v8850_v52  ;;  %v8970_v16 = vpop.eup %5698  ;;  %v3232_v35 = vadd.f32 1.0, %v5413_v7  ;;  %v3953_v51 = vmul.f32 %v3952_v31, %v8831_v28  ;;  %vm8976_vm14 = vmor %vm3773_vm13, %vm3774_vm12 }
 0x397   :  { %v8974_v58 = vmul.f32 0.5, %v8741_v23  ;;  %v3779_v45 = vand.u32 2147483648, %v8850_v52  ;;  %v3101_v41 = vmul.f32 %v3100_v54, %v8794_v46  ;;  %3620 = vmatmul.bf16.gmra.mxu3 %v3324_v38  ;;  %v8982_v14 = vmin.f32 %v4025_v9, 16.0 }
 0x398   :  { %5085 = vadd.xlane.f32.xlu0 %v5053_v6  ;;  %v3776_v11 = vsel %vm8976_vm14, %v8906_v62, %v3772_v48  ;;  %v3495_v60 = vadd.f32 %v8916_v43, %v3494_v40  ;;  %v3989_v23 = vmul.f32 %v3988_v10, %v8922_v13  ;;  %v3798_v7 = vmul.f32 3.8918573e-05, %v10539_v56 }
 0x399   :  { %v3780_v30 = vor.u32 1.1754944e-38, %v3779_v45  ;;  %v3838_v52 = vmul.f32 3.8918573e-05, %v10540_v50  ;;  %v3115_v46 = vmul.f32 %v8970_v16, %v8919_v20  ;;  %v3139_v42 = vmul.f32 %v3138_v21, %v8840_v27  ;;  %v10541_v21 = vld [vmem:[#allocation12_spill] sm:$0xff] }
 0x39a   :  { %vm3778_vm15 = vcmp.eq.f32.partialorder %v3777_v33, 8.507059e+37  ;;  %v8994_v53 = vadd.f32 %v3583_v25, %v3495_v60  ;;  %v3125_v62 = vand.u32 2147483648, %v8919_v20  ;;  %v3799_v54 = vadd.f32 0.001143296, %v3798_v7 }
 0x39b   :  { %v3781_v31 = vsel %vm3778_vm15, %v3780_v30, %v3776_v11  ;;  %v3839_v32 = vadd.f32 0.001143296, %v3838_v52  ;;  %v8997_v38 = vpop.eup %5700  ;;  %v9000_v4 = vmul.f32 %v3232_v35, %v8604_v26  ;;  %v9002_v49 = vadd.f32 0.18741608, %v3953_v51 }
 0x39c   :  { %v9005_v9 = vmul.f32 0.5, %v8808_v63  ;;  %v4027_v48 = vmul.f32 2.1237322e-06, %v8982_v14  ;;  %v9008_v10 = vadd.f32 1.1283791, %v3101_v41  ;;  %v3782_v6 = vmul.f32 %v3781_v31, %v10541_v21  ;;  %v10542_v21 = vld [vmem:[#allocation21_spill] sm:$0xff] }
 0x39d   :  { %v3990_v40 = vadd.f32 0.0036580483, %v3989_v23  ;;  %v9012_v33 = vmul.f32 0.70710677, %v8994_v53  ;;  %v3116_v19 = vsub.f32 1.0, %v3115_v46  ;;  %v3800_v35 = vmul.f32 %v3799_v54, %v10539_v56 }
 0x39e   :  { %v3123_v45 = vand.u32 2147483647, %v8919_v20  ;;  %v3140_v26 = vadd.f32 0.18741608, %v3139_v42  ;;  %v9016_v51 = vor.u32 1.1754944e-38, %v3125_v62  ;;  %v3155_v63 = vmul.f32 %v8997_v38, %v8951_v59 }
 0x39f   :  { %v5481_v11 = vclamps-f32 %v3782_v6, 1.0  ;;  %v3840_v41 = vmul.f32 %v3839_v32, %v10540_v50  ;;  %vm3119_vm0 = vweird.f32 %v8919_v20  ;;  %v4028_v60 = vadd.f32 0.00028619796, %v4027_v48 }
 0x3a0   :  { %v3801_v23 = vadd.f32 0.014752088, %v3800_v35  ;;  %v3878_v30 = vmul.f32 3.8918573e-05, %v8402_v24  ;;  %v3991_v25 = vmul.f32 %v3990_v40, %v8922_v13  ;;  %v4065_v52 = vmul.f32 %v9012_v33, %v9012_v33 }
 0x3a1   :  { %v4986_v7 = vadd.f32 1.0, %v5481_v11  ;;  %v3841_v46 = vadd.f32 0.014752088, %v3840_v41  ;;  %v3117_v42 = vmul.f32 %v8970_v16, %v3116_v19  ;;  %v3141_v62 = vmul.f32 %v3140_v26, %v8840_v27 }
 0x3a2   :  { %v3802_v31 = vmul.f32 %v3801_v23, %v10539_v56  ;;  %v3879_v54 = vadd.f32 0.001143296, %v3878_v30  ;;  %v3156_v32 = vsub.f32 1.0, %v3155_v63  ;;  %v3918_v35 = vmul.f32 3.8918573e-05, %v8492_v55 }
 0x3a3   :  { %v5018_v48 = vmul.f32 %v4986_v7, %v10542_v21  ;;  %v3842_v6 = vmul.f32 %v3841_v46, %v10540_v50  ;;  %vm3120_vm1 = vweird.f32 %v8970_v16  ;;  %vm9033_vm2 = vcmp.eq.f32.partialorder %v3123_v45, 8.507059e+37 }
 0x3a4   :  { %v4029_v19 = vmul.f32 %v4028_v60, %v8982_v14  ;;  %v3803_v11 = vadd.f32 0.112945676, %v3802_v31  ;;  %v3880_v27 = vmul.f32 %v3879_v54, %v8402_v24  ;;  %v3992_v26 = vadd.f32 0.05243302, %v3991_v25  ;;  %vm9054_vm4 = vmor %vm3119_vm0, %vm3120_vm1 }
 0x3a5   :  { %v5054_v63 = vmul.f32 %v8948_v61, %v5018_v48  ;;  %v9040_v41 = vmin.f32 %v4065_v52, 16.0  ;;  %v3843_v23 = vadd.f32 0.112945676, %v3842_v6  ;;  %v3118_v30 = vadd.f32 %v8970_v16, %v3117_v42  ;;  %v10547_v6 = vld [vmem:[#allocation18_spill] sm:$0xff] }
 0x3a6   :  { %vm3159_vm3 = vweird.f32 %v8951_v59  ;;  %v3804_v45 = vmul.f32 %v3803_v11, %v10539_v56  ;;  %v3881_v7 = vadd.f32 0.014752088, %v3880_v27  ;;  %v3157_v46 = vmul.f32 %v8997_v38, %v3156_v32 }
 0x3a7   :  { %v3163_v60 = vand.u32 2147483647, %v8951_v59  ;;  %5087 = vadd.xlane.f32.xlu0 %v5054_v63  ;;  %v3844_v31 = vmul.f32 %v3843_v23, %v10540_v50  ;;  %v3919_v25 = vadd.f32 0.001143296, %v3918_v35  ;;  %v3165_v54 = vand.u32 2147483648, %v8951_v59 }
 0x3a8   :  { %v4030_v52 = vadd.f32 0.0036580483, %v4029_v19  ;;  %v3805_v21 = vadd.f32 0.4994258, %v3804_v45  ;;  %v3882_v48 = vmul.f32 %v3881_v7, %v8402_v24  ;;  %v4067_v32 = vmul.f32 2.1237322e-06, %v9040_v41  ;;  %v3497_v19 = vpop.f32.mrf.mxu2  ;;  %v3586_v45 = vpop.f32.mrf.mxu3 }
 0x3a9   :  { %v3325_v11 = vpack.c.bf16 %v8541_v44, %v10547_v6  ;;  %v3326_v35 = vpack.c.bf16 %v8551_v39, %v8528_v17  ;;  %v3845_v27 = vadd.f32 0.4994258, %v3844_v31  ;;  %v3122_v63 = vsel %vm9054_vm4, %v8970_v16, %v3118_v30 }
 0x3aa   :  { %vm3160_vm5 = vweird.f32 %v8997_v38  ;;  %v3806_v20 = vmul.f32 %v3805_v21, %v10539_v56  ;;  %v3498_v23 = vadd.f32 %v8916_v43, %v3497_v19  ;;  %v3158_v7 = vadd.f32 %v8997_v38, %v3157_v46 }
 0x3ab   :  { %3536 = vmatmul.bf16.gmra.mxu2 %v3325_v11  ;;  %3625 = vmatmul.bf16.gmra.mxu3 %v3326_v35  ;;  %v3846_v44 = vmul.f32 %v3845_v27, %v10540_v50  ;;  %v3883_v17 = vadd.f32 0.112945676, %v3882_v48  ;;  %v3920_v39 = vmul.f32 %v3919_v25, %v8492_v55  ;;  %v3993_v31 = vmul.f32 %v3992_v26, %v8922_v13  ;;  %vm9092_vm6 = vmor %vm3159_vm3, %vm3160_vm5 }
 0x3ac   :  { %v4031_v16 = vmul.f32 %v4030_v52, %v8982_v14  ;;  %v9074_v30 = vadd.f32 1.0, %v3806_v20  ;;  %v9076_v42 = vadd.f32 %v3586_v45, %v3498_v23  ;;  %v3127_v56 = vsel %vm9033_vm2, %v9016_v51, %v3122_v63 }
 0x3ad   :  { %v4068_v46 = vadd.f32 0.00028619796, %v4067_v32  ;;  %v9081_v21 = vadd.f32 1.0, %v3846_v44  ;;  %v3884_v50 = vmul.f32 %v3883_v17, %v8402_v24  ;;  %v3955_v25 = vmul.f32 %v9002_v49, %v8831_v28 }
 0x3ae   :  { %v3103_v26 = vmul.f32 %v9008_v10, %v8763_v34  ;;  %5702 = vrcp.f32 %v9074_v30  ;;  %v3921_v51 = vadd.f32 0.014752088, %v3920_v39  ;;  %v3142_v40 = vadd.f32 1.1283791, %v3141_v62 }
 0x3af   :  { %v3162_v48 = vsel %vm9092_vm6, %v8997_v38, %v3158_v7  ;;  %v9101_v49 = vmul.f32 0.70710677, %v9076_v42  ;;  %5704 = vrcp.f32 %v9081_v21  ;;  %v3166_v59 = vor.u32 1.1754944e-38, %v3165_v54 }
 0x3b0   :  { %v9104_v34 = vmul.f32 %v3127_v56, %v3103_v26  ;;  %v3994_v10 = vadd.f32 0.18741608, %v3993_v31  ;;  %v4032_v32 = vadd.f32 0.05243302, %v4031_v16  ;;  %vm3164_vm7 = vcmp.eq.f32.partialorder %v3163_v60, 8.507059e+37  ;;  %v3499_v11 = vpop.f32.mrf.mxu2  ;;  %v3588_v39 = vpop.f32.mrf.mxu3 }
 0x3b1   :  { %v4069_v6 = vmul.f32 %v4068_v46, %v9040_v41  ;;  %v3885_v35 = vadd.f32 0.4994258, %v3884_v50  ;;  %v3958_v62 = vmul.f32 3.8918573e-05, %v8831_v28  ;;  %v3167_v19 = vsel %vm3164_vm7, %v3166_v59, %v3162_v48 }
 0x3b2   :  { %v4105_v38 = vmul.f32 %v9101_v49, %v9101_v49  ;;  %v3500_v27 = vadd.f32 %v8916_v43, %v3499_v11  ;;  %v3922_v63 = vmul.f32 %v3921_v51, %v8492_v55  ;;  %v9112_v20 = vadd.f32 1.1283791, %v3955_v25 }
 0x3b3   :  { %v3143_v54 = vmul.f32 %v3142_v40, %v8825_v15  ;;  %v9116_v60 = vmul.f32 0.5, %v8868_v2  ;;  %v3886_v23 = vmul.f32 %v3885_v35, %v8402_v24  ;;  %v5414_v7 = vclamps-f32 %v9104_v34, 1.0 }
 0x3b4   :  { %v5703_v45 = vpop.eup %5702  ;;  %v3995_v44 = vmul.f32 %v3994_v10, %v8922_v13  ;;  %v4033_v17 = vmul.f32 %v4032_v32, %v8982_v14  ;;  %v3923_v31 = vadd.f32 0.112945676, %v3922_v63  ;;  %v4070_v46 = vadd.f32 0.0036580483, %v4069_v6 }
 0x3b5   :  { %v5705_v16 = vpop.eup %5704  ;;  %v9122_v56 = vmul.f32 %v3167_v19, %v3143_v54  ;;  %v3809_v15 = vmul.f32 %v5703_v45, %v9074_v30  ;;  %v3959_v50 = vadd.f32 0.001143296, %v3958_v62  ;;  %v3817_v2 = vand.u32 2147483647, %v9074_v30 }
 0x3b6   :  { %v9126_v25 = vmin.f32 %v4105_v38, 16.0  ;;  %v3849_v24 = vmul.f32 %v5705_v16, %v9081_v21  ;;  %v9129_v26 = vadd.f32 %v3588_v39, %v3500_v27  ;;  %v9131_v51 = vadd.f32 1.0, %v3886_v23 }
 0x3b7   :  { %v3810_v52 = vsub.f32 1.0, %v3809_v15  ;;  %v3327_v40 = vpack.c.bf16 %v8931_v12, %v8556_v36  ;;  %v3328_v48 = vpack.c.bf16 %v8936_v5, %v8570_v37  ;;  %v3819_v34 = vand.u32 2147483648, %v9074_v30 }
 0x3b8   :  { %v3850_v59 = vsub.f32 1.0, %v3849_v24  ;;  %v3857_v10 = vand.u32 2147483647, %v9081_v21  ;;  %v3924_v32 = vmul.f32 %v3923_v31, %v8492_v55  ;;  %vm3814_vm8 = vweird.f32 %v5703_v45  ;;  %v3502_v35 = vpop.f32.mrf.mxu2 }
 0x3b9   :  { %v3811_v6 = vmul.f32 %v5703_v45, %v3810_v52  ;;  %v3859_v11 = vand.u32 2147483648, %v9081_v21  ;;  %5706 = vrcp.f32 %v9131_v51  ;;  %v4107_v62 = vmul.f32 2.1237322e-06, %v9126_v25 }
 0x3ba   :  { %v3851_v36 = vmul.f32 %v5705_v16, %v3850_v59  ;;  %vm3854_vm9 = vweird.f32 %v5705_v16  ;;  %v9144_v37 = vmul.f32 0.70710677, %v9129_v26  ;;  %vm3813_vm10 = vweird.f32 %v9074_v30 }
 0x3bb   :  { %v3812_v12 = vadd.f32 %v5703_v45, %v3811_v6  ;;  %vm3818_vm11 = vcmp.eq.f32.partialorder %v3817_v2, 8.507059e+37  ;;  %3541 = vmatmul.bf16.gmra.mxu2 %v3327_v40  ;;  %3630 = vmatmul.bf16.gmra.mxu3 %v3328_v48  ;;  %v3925_v5 = vadd.f32 0.4994258, %v3924_v32  ;;  %vm3815_vm12 = vmor %vm3813_vm10, %vm3814_vm8  ;;  %v3820_v19 = vor.u32 1.1754944e-38, %v3819_v34  ;;  %v3591_v2 = vpop.f32.mrf.mxu3 }
 0x3bc   :  { %v3852_v38 = vadd.f32 %v5705_v16, %v3851_v36  ;;  %vm3853_vm13 = vweird.f32 %v9081_v21  ;;  %vm3858_vm14 = vcmp.eq.f32.partialorder %v3857_v10, 8.507059e+37  ;;  %v3860_v63 = vor.u32 1.1754944e-38, %v3859_v11 }
 0x3bd   :  { %v3816_v27 = vsel %vm3815_vm12, %v5703_v45, %v3812_v12  ;;  %vm3855_vm15 = vmor %vm3853_vm13, %vm3854_vm9  ;;  %v3926_v54 = vmul.f32 %v3925_v5, %v8492_v55  ;;  %v3960_v23 = vmul.f32 %v3959_v50, %v8831_v28  ;;  %v4108_v31 = vadd.f32 0.00028619796, %v4107_v62  ;;  %v10550_v5 = vld [vmem:[#allocation11_spill] sm:$0xff] }
 0x3be   :  { %v3821_v39 = vsel %vm3818_vm11, %v3820_v19, %v3816_v27  ;;  %v3856_v30 = vsel %vm3855_vm15, %v5705_v16, %v3852_v38  ;;  %v4145_v15 = vmul.f32 %v9144_v37, %v9144_v37  ;;  %v3233_v52 = vadd.f32 1.0, %v5414_v7 }
 0x3bf   :  { %v5707_v24 = vpop.eup %5706  ;;  %v9152_v40 = vadd.f32 1.1283791, %v3995_v44  ;;  %v3822_v21 = vmul.f32 %v3821_v39, %v8535_v1  ;;  %v3861_v45 = vsel %vm3858_vm14, %v3860_v63, %v3856_v30  ;;  %v5415_v48 = vclamps-f32 %v9122_v56, 1.0 }
 0x3c0   :  { %v4034_v34 = vadd.f32 0.18741608, %v4033_v17  ;;  %v3862_v55 = vmul.f32 %v3861_v45, %v8544_v57  ;;  %v3889_v50 = vmul.f32 %v5707_v24, %v9131_v51  ;;  %v4071_v16 = vmul.f32 %v4070_v46, %v9040_v41  ;;  %v3504_v11 = vpop.f32.mrf.mxu2 }
 0x3c1   :  { %v5482_v59 = vclamps-f32 %v3822_v21, 1.0  ;;  %v9159_v10 = vadd.f32 1.0, %v3926_v54  ;;  %v3961_v32 = vadd.f32 0.014752088, %v3960_v23  ;;  %v4109_v7 = vmul.f32 %v4108_v31, %v9126_v25 }
 0x3c2   :  { %v5483_v44 = vclamps-f32 %v3862_v55, 1.0  ;;  %v9162_v6 = vmin.f32 %v4145_v15, 16.0  ;;  %v3890_v1 = vsub.f32 1.0, %v3889_v50  ;;  %v3899_v17 = vand.u32 2147483648, %v9131_v51 }
 0x3c3   :  { %v4987_v62 = vadd.f32 1.0, %v5482_v59  ;;  %v3503_v57 = vadd.f32 %v8916_v43, %v3502_v35  ;;  %5708 = vrcp.f32 %v9159_v10  ;;  %v3234_v56 = vadd.f32 1.0, %v5415_v48  ;;  %v3593_v48 = vpop.f32.mrf.mxu3 }
 0x3c4   :  { %v3891_v46 = vmul.f32 %v5707_v24, %v3890_v1  ;;  %vm3894_vm0 = vweird.f32 %v5707_v24  ;;  %v3897_v36 = vand.u32 2147483647, %v9131_v51  ;;  %v4072_v12 = vadd.f32 0.05243302, %v4071_v16 }
 0x3c5   :  { %v5019_v19 = vmul.f32 %v4987_v62, %v10550_v5  ;;  %v4988_v38 = vadd.f32 1.0, %v5483_v44  ;;  %v3505_v27 = vadd.f32 %v8916_v43, %v3504_v11  ;;  %v4110_v63 = vadd.f32 0.0036580483, %v4109_v7 }
 0x3c6   :  { %v4147_v54 = vmul.f32 2.1237322e-06, %v9162_v6  ;;  %v3892_v23 = vadd.f32 %v5707_v24, %v3891_v46  ;;  %vm3893_vm1 = vweird.f32 %v9131_v51  ;;  %v3900_v39 = vor.u32 1.1754944e-38, %v3899_v17  ;;  %v10551_v51 = vld [vmem:[#allocation24_spill] sm:$0xff] }
 0x3c7   :  { %v5055_v35 = vmul.f32 %v8948_v61, %v5019_v19  ;;  %vm3895_vm2 = vmor %vm3893_vm1, %vm3894_vm0  ;;  %v9173_v31 = vadd.f32 %v3591_v2, %v3503_v57  ;;  %v3962_v30 = vmul.f32 %v3961_v32, %v8831_v28  ;;  %v3297_v15 = vmul.f32 %v3233_v52, %v8974_v58  ;;  %v10552_v32 = vld [vmem:[#allocation19_spill] sm:$0xff] }
 0x3c8   :  { %v4035_v21 = vmul.f32 %v4034_v34, %v8982_v14  ;;  %v3896_v45 = vsel %vm3895_vm2, %v5707_v24, %v3892_v23  ;;  %vm3898_vm3 = vcmp.eq.f32.partialorder %v3897_v36, 8.507059e+37  ;;  %v3298_v50 = vmul.f32 %v3234_v56, %v9005_v9  ;;  %v10555_v23 = vld [vmem:[#allocation14_spill] sm:$0xff] }
 0x3c9   :  { %v5709_v55 = vpop.eup %5708  ;;  %5089 = vadd.xlane.f32.xlu1 %v5055_v35  ;;  %v5020_v16 = vmul.f32 %v4988_v38, %v10551_v51  ;;  %v3901_v59 = vsel %vm3898_vm3, %v3900_v39, %v3896_v45  ;;  %v9180_v7 = vadd.f32 %v3593_v48, %v3505_v27  ;;  %v4073_v2 = vmul.f32 %v4072_v12, %v9040_v41  ;;  %v3507_v45 = vpop.f32.mrf.mxu2 }
 0x3ca   :  { %v4148_v44 = vadd.f32 0.00028619796, %v4147_v54  ;;  %v3902_v1 = vmul.f32 %v3901_v59, %v10552_v32  ;;  %v3929_v58 = vmul.f32 %v5709_v55, %v9159_v10  ;;  %v4111_v24 = vmul.f32 %v4110_v63, %v9126_v25 }
 0x3cb   :  { %v9187_v52 = vmul.f32 0.70710677, %v9173_v31  ;;  %v3937_v9 = vand.u32 2147483647, %v9159_v10  ;;  %v3963_v34 = vadd.f32 0.112945676, %v3962_v30  ;;  %v5056_v56 = vmul.f32 %v8948_v61, %v5020_v16 }
 0x3cc   :  { %v5484_v11 = vclamps-f32 %v3902_v1, 1.0  ;;  %v3930_v62 = vsub.f32 1.0, %v3929_v58  ;;  %v3939_v17 = vand.u32 2147483648, %v9159_v10  ;;  %v3998_v57 = vmul.f32 3.8918573e-05, %v8922_v13 }
 0x3cd   :  { %v9194_v46 = vmul.f32 0.70710677, %v9180_v7  ;;  %v3964_v36 = vmul.f32 %v3963_v34, %v8831_v28  ;;  %v4038_v12 = vmul.f32 3.8918573e-05, %v8982_v14  ;;  %vm3934_vm4 = vweird.f32 %v5709_v55 }
 0x3ce   :  { %v4989_v5 = vadd.f32 1.0, %v5484_v11  ;;  %v3931_v19 = vmul.f32 %v5709_v55, %v3930_v62  ;;  %v3999_v38 = vadd.f32 0.001143296, %v3998_v57  ;;  %v4185_v27 = vmul.f32 %v9187_v52, %v9187_v52 }
 0x3cf   :  { %vm3933_vm5 = vweird.f32 %v9159_v10  ;;  %vm9201_vm6 = vcmp.eq.f32.partialorder %v3937_v9, 8.507059e+37  ;;  %v3965_v54 = vadd.f32 0.4994258, %v3964_v36  ;;  %v3329_v30 = vpack.c.bf16 %v3297_v15, %v8961_v0 }
 0x3d0   :  { %v5021_v35 = vmul.f32 %v4989_v5, %v10555_v23  ;;  %v3932_v39 = vadd.f32 %v5709_v55, %v3931_v19  ;;  %v4039_v48 = vadd.f32 0.001143296, %v4038_v12  ;;  %vm3935_vm7 = vmor %vm3933_vm5, %vm3934_vm4  ;;  %v3940_v51 = vor.u32 1.1754944e-38, %v3939_v17 }
 0x3d1   :  { %5091 = vadd.xlane.f32.xlu1 %v5056_v56  ;;  %v4225_v16 = vmul.f32 %v9194_v46, %v9194_v46  ;;  %v3966_v10 = vmul.f32 %v3965_v54, %v8831_v28  ;;  %v3330_v59 = vpack.c.bf16 %v3298_v50, %v9000_v4  ;;  %3546 = vmatmul.bf16.gmra.mxu2 %v3329_v30  ;;  %v4112_v15 = vadd.f32 0.05243302, %v4111_v24  ;;  %v3596_v28 = vpop.f32.mrf.mxu3  ;;  %v10556_v54 = vld [vmem:[#allocation20_spill] sm:$0xff] }
 0x3d2   :  { %v5057_v32 = vmul.f32 %v8948_v61, %v5021_v35  ;;  %v3936_v1 = vsel %vm3935_vm7, %v5709_v55, %v3932_v39  ;;  %v3508_v58 = vadd.f32 %v8916_v43, %v3507_v45  ;;  %v4000_v0 = vmul.f32 %v3999_v38, %v8922_v13 }
 0x3d3   :  { %v9214_v9 = vmin.f32 %v4185_v27, 16.0  ;;  %v3941_v34 = vsel %vm9201_vm6, %v3940_v51, %v3936_v1  ;;  %v9218_v11 = vadd.f32 1.0, %v3966_v10  ;;  %3635 = vmatmul.bf16.gmra.mxu3 %v3330_v59  ;;  %v4040_v62 = vmul.f32 %v4039_v48, %v8982_v14 }
 0x3d4   :  { %5093 = vadd.xlane.f32.xlu2 %v5057_v32  ;;  %v3942_v4 = vmul.f32 %v3941_v34, %v8738_v29  ;;  %v9221_v50 = vadd.f32 %v3596_v28, %v3508_v58  ;;  %v4001_v55 = vadd.f32 0.014752088, %v4000_v0  ;;  %v9226_v24 = vmul.f32 %v9112_v20, %v8789_v22 }
 0x3d5   :  { %v4036_v17 = vadd.f32 1.1283791, %v4035_v21  ;;  %v4149_v57 = vmul.f32 %v4148_v44, %v9162_v6  ;;  %5710 = vrcp.f32 %v9218_v11  ;;  %v9231_v56 = vmul.f32 0.5, %v8925_v8 }
 0x3d6   :  { %v9234_v36 = vmul.f32 0.5, %v8994_v53  ;;  %v5485_v29 = vclamps-f32 %v3942_v4, 1.0  ;;  %v9236_v12 = vmin.f32 %v4225_v16, 16.0  ;;  %v4074_v5 = vadd.f32 0.18741608, %v4073_v2  ;;  %v3509_v4 = vpop.f32.mrf.mxu2 }
 0x3d7   :  { %v4113_v19 = vmul.f32 %v4112_v15, %v9126_v25  ;;  %v9240_v22 = vmul.f32 0.70710677, %v9221_v50  ;;  %v4002_v20 = vmul.f32 %v4001_v55, %v8922_v13  ;;  %v9245_v21 = vmul.f32 %v9152_v40, %v8882_v3 }
 0x3d8   :  { %v4187_v8 = vmul.f32 2.1237322e-06, %v9214_v9  ;;  %v4990_v44 = vadd.f32 1.0, %v5485_v29  ;;  %v4041_v53 = vadd.f32 0.014752088, %v4040_v62  ;;  %v9249_v38 = vmul.f32 %v4036_v17, %v8939_v18 }
 0x3d9   :  { %v4150_v27 = vadd.f32 0.0036580483, %v4149_v57  ;;  %v4265_v2 = vmul.f32 %v9240_v22, %v9240_v22  ;;  %v4003_v63 = vadd.f32 0.112945676, %v4002_v20  ;;  %v4227_v35 = vmul.f32 2.1237322e-06, %v9236_v12 }
 0x3da   :  { %v5022_v23 = vmul.f32 %v4990_v44, %v10556_v54  ;;  %v4042_v39 = vmul.f32 %v4041_v53, %v8982_v14  ;;  %v4078_v3 = vmul.f32 3.8918573e-05, %v9040_v41  ;;  %v4075_v30 = vmul.f32 %v4074_v5, %v9040_v41 }
 0x3db   :  { %v5711_v40 = vpop.eup %5710  ;;  %v4114_v45 = vadd.f32 0.18741608, %v4113_v19  ;;  %v9258_v48 = vmin.f32 %v4265_v2, 16.0  ;;  %v4004_v18 = vmul.f32 %v4003_v63, %v8922_v13  ;;  %v4188_v51 = vadd.f32 0.00028619796, %v4187_v8  ;;  %v3598_v19 = vpop.f32.mrf.mxu3 }
 0x3dc   :  { %v5058_v16 = vmul.f32 %v8948_v61, %v5022_v23  ;;  %v3969_v10 = vmul.f32 %v5711_v40, %v9218_v11  ;;  %v4043_v59 = vadd.f32 0.112945676, %v4042_v39  ;;  %v4151_v32 = vmul.f32 %v4150_v27, %v9162_v6 }
 0x3dd   :  { %v4005_v1 = vadd.f32 0.4994258, %v4004_v18  ;;  %v4079_v58 = vadd.f32 0.001143296, %v4078_v3  ;;  %v4118_v0 = vmul.f32 3.8918573e-05, %v9126_v25  ;;  %v3510_v29 = vadd.f32 %v8916_v43, %v3509_v4 }
 0x3de   :  { %5095 = vadd.xlane.f32.xlu2 %v5058_v16  ;;  %v4228_v15 = vadd.f32 0.00028619796, %v4227_v35  ;;  %v3970_v34 = vsub.f32 1.0, %v3969_v10  ;;  %v3977_v28 = vand.u32 2147483647, %v9218_v11  ;;  %v4044_v55 = vmul.f32 %v4043_v59, %v8982_v14 }
 0x3df   :  { %v3979_v62 = vand.u32 2147483648, %v9218_v11  ;;  %v4267_v17 = vmul.f32 2.1237322e-06, %v9258_v48  ;;  %v4006_v57 = vmul.f32 %v4005_v1, %v8922_v13  ;;  %vm3974_vm8 = vweird.f32 %v5711_v40 }
 0x3e0   :  { %v3971_v5 = vmul.f32 %v5711_v40, %v3970_v34  ;;  %v4045_v20 = vadd.f32 0.4994258, %v4044_v55  ;;  %v4080_v8 = vmul.f32 %v4079_v58, %v9040_v41  ;;  %v4152_v44 = vadd.f32 0.05243302, %v4151_v32 }
 0x3e1   :  { %v9272_v53 = vadd.f32 1.0, %v4006_v57  ;;  %v9274_v27 = vadd.f32 %v3598_v19, %v3510_v29  ;;  %v4119_v2 = vadd.f32 0.001143296, %v4118_v0  ;;  %v4189_v63 = vmul.f32 %v4188_v51, %v9214_v9 }
 0x3e2   :  { %v3972_v54 = vadd.f32 %v5711_v40, %v3971_v5  ;;  %vm3973_vm9 = vweird.f32 %v9218_v11  ;;  %v4046_v13 = vmul.f32 %v4045_v20, %v8982_v14  ;;  %v4229_v23 = vmul.f32 %v4228_v15, %v9236_v12 }
 0x3e3   :  { %vm3975_vm10 = vmor %vm3973_vm9, %vm3974_vm8  ;;  %v3980_v35 = vor.u32 1.1754944e-38, %v3979_v62  ;;  %v4268_v39 = vadd.f32 0.00028619796, %v4267_v17  ;;  %5712 = vrcp.f32 %v9272_v53  ;;  %v9282_v3 = vmul.f32 0.5, %v9076_v42  ;;  %v3512_v42 = vpop.f32.mrf.mxu2 }
 0x3e4   :  { %v3976_v18 = vsel %vm3975_vm10, %v5711_v40, %v3972_v54  ;;  %vm3978_vm11 = vcmp.eq.f32.partialorder %v3977_v28, 8.507059e+37  ;;  %v4081_v16 = vadd.f32 0.014752088, %v4080_v8  ;;  %v4076_v10 = vadd.f32 1.1283791, %v4075_v30 }
 0x3e5   :  { %v3981_v51 = vsel %vm3978_vm11, %v3980_v35, %v3976_v18  ;;  %v9285_v59 = vmul.f32 0.70710677, %v9274_v27  ;;  %v4120_v14 = vmul.f32 %v4119_v2, %v9126_v25  ;;  %v4115_v11 = vmul.f32 %v4114_v45, %v9126_v25 }
 0x3e6   :  { %v4153_v32 = vmul.f32 %v4152_v44, %v9162_v6  ;;  %v3982_v1 = vmul.f32 %v3981_v51, %v9226_v24  ;;  %v9291_v58 = vadd.f32 1.0, %v4046_v13  ;;  %v4190_v0 = vadd.f32 0.0036580483, %v4189_v63 }
 0x3e7   :  { %v4230_v40 = vadd.f32 0.0036580483, %v4229_v23  ;;  %v4269_v15 = vmul.f32 %v4268_v39, %v9258_v48  ;;  %v4305_v30 = vmul.f32 %v9285_v59, %v9285_v59  ;;  %v3513_v28 = vadd.f32 %v8916_v43, %v3512_v42 }
 0x3e8   :  { %v5486_v34 = vclamps-f32 %v3982_v1, 1.0  ;;  %5714 = vrcp.f32 %v9291_v58  ;;  %v4082_v45 = vmul.f32 %v4081_v16, %v9040_v41  ;;  %v9300_v24 = vmul.f32 %v4076_v10, %v9012_v33 }
 0x3e9   :  { %v5713_v4 = vpop.eup %5712  ;;  %v9303_v55 = vmul.f32 0.5, %v9129_v26  ;;  %v9306_v62 = vmul.f32 0.5, %v9173_v31  ;;  %v4121_v17 = vadd.f32 0.014752088, %v4120_v14  ;;  %v9308_v57 = vadd.f32 1.1283791, %v4115_v11  ;;  %v3601_v26 = vpop.f32.mrf.mxu3 }
 0x3ea   :  { %v4154_v29 = vadd.f32 0.18741608, %v4153_v32  ;;  %v4991_v5 = vadd.f32 1.0, %v5486_v34  ;;  %v4009_v19 = vmul.f32 %v5713_v4, %v9272_v53  ;;  %v4191_v20 = vmul.f32 %v4190_v0, %v9214_v9 }
 0x3eb   :  { %v9313_v8 = vmul.f32 %v4230_v40, %v9236_v12  ;;  %v4270_v33 = vadd.f32 0.0036580483, %v4269_v15  ;;  %v9315_v44 = vmin.f32 %v4305_v30, 16.0  ;;  %v9318_v63 = vadd.f32 %v3601_v26, %v3513_v28  ;;  %v3514_v34 = vpop.f32.mrf.mxu2 }
 0x3ec   :  { %v5023_v2 = vmul.f32 %v4991_v5, %v8964_v47  ;;  %v4010_v31 = vsub.f32 1.0, %v4009_v19  ;;  %v4083_v54 = vadd.f32 0.112945676, %v4082_v45  ;;  %v4017_v13 = vand.u32 2147483647, %v9272_v53 }
 0x3ed   :  { %v4019_v23 = vand.u32 2147483648, %v9272_v53  ;;  %v4122_v35 = vmul.f32 %v4121_v17, %v9126_v25  ;;  %v4158_v39 = vmul.f32 3.8918573e-05, %v9162_v6  ;;  %vm4014_vm12 = vweird.f32 %v5713_v4 }
 0x3ee   :  { %v5715_v18 = vpop.eup %5714  ;;  %v5059_v16 = vmul.f32 %v8948_v61, %v5023_v2  ;;  %v4011_v10 = vmul.f32 %v5713_v4, %v4010_v31  ;;  %v4084_v51 = vmul.f32 %v4083_v54, %v9040_v41  ;;  %v4271_v47 = vmul.f32 %v4270_v33, %v9258_v48 }
 0x3ef   :  { %vm4013_vm13 = vweird.f32 %v9272_v53  ;;  %v4307_v14 = vmul.f32 2.1237322e-06, %v9315_v44  ;;  %v4049_v11 = vmul.f32 %v5715_v18, %v9291_v58  ;;  %v9331_v1 = vmul.f32 0.70710677, %v9318_v63 }
 0x3f0   :  { %5097 = vadd.xlane.f32.xlu0 %v5059_v16  ;;  %v4012_v32 = vadd.f32 %v5713_v4, %v4011_v10  ;;  %v4085_v42 = vadd.f32 0.4994258, %v4084_v51  ;;  %v4123_v0 = vadd.f32 0.112945676, %v4122_v35  ;;  %vm4015_vm14 = vmor %vm4013_vm13, %vm4014_vm12  ;;  %v4020_v40 = vor.u32 1.1754944e-38, %v4019_v23 }
 0x3f1   :  { %v4050_v15 = vsub.f32 1.0, %v4049_v11  ;;  %v4059_v30 = vand.u32 2147483648, %v9291_v58  ;;  %v4159_v28 = vadd.f32 0.001143296, %v4158_v39  ;;  %vm4018_vm15 = vcmp.eq.f32.partialorder %v4017_v13, 8.507059e+37  ;;  %v3603_v51 = vpop.f32.mrf.mxu3 }
 0x3f2   :  { %v4016_v45 = vsel %vm4015_vm14, %v5713_v4, %v4012_v32  ;;  %v4057_v53 = vand.u32 2147483647, %v9291_v58  ;;  %v4086_v17 = vmul.f32 %v4085_v42, %v9040_v41  ;;  %vm4054_vm0 = vweird.f32 %v5715_v18 }
 0x3f3   :  { %v4021_v5 = vsel %vm4018_vm15, %v4020_v40, %v4016_v45  ;;  %v4051_v19 = vmul.f32 %v5715_v18, %v4050_v15  ;;  %v4124_v33 = vmul.f32 %v4123_v0, %v9126_v25  ;;  %v4308_v2 = vadd.f32 0.00028619796, %v4307_v14 }
 0x3f4   :  { %v4022_v26 = vmul.f32 %v4021_v5, %v9245_v21  ;;  %v4345_v31 = vmul.f32 %v9331_v1, %v9331_v1  ;;  %v9340_v54 = vadd.f32 1.0, %v4086_v17  ;;  %vm4053_vm1 = vweird.f32 %v9291_v58 }
 0x3f5   :  { %v4052_v23 = vadd.f32 %v5715_v18, %v4051_v19  ;;  %v4060_v4 = vor.u32 1.1754944e-38, %v4059_v30  ;;  %v4160_v13 = vmul.f32 %v4159_v28, %v9162_v6  ;;  %vm4055_vm2 = vmor %vm4053_vm1, %vm4054_vm0  ;;  %v3515_v35 = vadd.f32 %v8916_v43, %v3514_v34 }
 0x3f6   :  { %v5487_v41 = vclamps-f32 %v4022_v26, 1.0  ;;  %5716 = vrcp.f32 %v9340_v54  ;;  %v4125_v39 = vadd.f32 0.4994258, %v4124_v33  ;;  %v4155_v21 = vmul.f32 %v4154_v29, %v9162_v6  ;;  %v9379_v33 = vld [vmem:[%s10284_s4] ss:$0 sm:$0xff] }
 0x3f7   :  { %v4192_v16 = vadd.f32 0.05243302, %v4191_v20  ;;  %v4056_v10 = vsel %vm4055_vm2, %v5715_v18, %v4052_v23  ;;  %vm4058_vm3 = vcmp.eq.f32.partialorder %v4057_v53, 8.507059e+37  ;;  %v4309_v11 = vmul.f32 %v4308_v2, %v9315_v44 }
 0x3f8   :  { %v4992_v14 = vadd.f32 1.0, %v5487_v41  ;;  %v4061_v58 = vsel %vm4058_vm3, %v4060_v4, %v4056_v10  ;;  %v9348_v32 = vmin.f32 %v4345_v31, 16.0  ;;  %v9352_v42 = vmul.f32 %v9308_v57, %v9101_v49  ;;  %v3517_v57 = vpop.f32.mrf.mxu2 }
 0x3f9   :  { %v4232_v0 = vadd.f32 0.05243302, %v9313_v8  ;;  %v4062_v43 = vmul.f32 %v4061_v58, %v9249_v38  ;;  %v4161_v40 = vadd.f32 0.014752088, %v4160_v13  ;;  %v4272_v29 = vadd.f32 0.05243302, %v4271_v47  ;;  %v3606_v10 = vpop.f32.mrf.mxu3 }
 0x3fa   :  { %v5024_v20 = vmul.f32 %v4992_v14, %v9116_v60  ;;  %v9357_v18 = vadd.f32 %v3603_v51, %v3515_v35  ;;  %v4126_v15 = vmul.f32 %v4125_v39, %v9126_v25  ;;  %v4156_v30 = vadd.f32 1.1283791, %v4155_v21 }
 0x3fb   :  { %v4193_v34 = vmul.f32 %v4192_v16, %v9214_v9  ;;  %v9362_v28 = vmul.f32 0.5, %v9180_v7  ;;  %v5488_v49 = vclamps-f32 %v4062_v43, 1.0  ;;  %v4310_v38 = vadd.f32 0.0036580483, %v4309_v11 }
 0x3fc   :  { %v5717_v45 = vpop.eup %5716  ;;  %v5060_v8 = vmul.f32 %v8948_v61, %v5024_v20  ;;  %v4347_v47 = vmul.f32 2.1237322e-06, %v9348_v32  ;;  %v9366_v53 = vadd.f32 1.0, %v4126_v15  ;;  %v4233_v60 = vmul.f32 %v4232_v0, %v9236_v12 }
 0x3fd   :  { %v4993_v17 = vadd.f32 1.0, %v5488_v49  ;;  %v4089_v25 = vmul.f32 %v5717_v45, %v9340_v54  ;;  %v4162_v5 = vmul.f32 %v4161_v40, %v9162_v6  ;;  %v4273_v7 = vmul.f32 %v4272_v29, %v9258_v48 }
 0x3fe   :  { %5099 = vadd.xlane.f32.xlu1 %v5060_v8  ;;  %v9373_v19 = vmul.f32 0.70710677, %v9357_v18  ;;  %5718 = vrcp.f32 %v9366_v53  ;;  %v3518_v26 = vadd.f32 %v9379_v33, %v3517_v57  ;;  %v9383_v2 = vmul.f32 %v4156_v30, %v9144_v37 }
 0x3ff   :  { %v4194_v31 = vadd.f32 0.18741608, %v4193_v34  ;;  %v5025_v23 = vmul.f32 %v4993_v17, %v9231_v56  ;;  %v4090_v4 = vsub.f32 1.0, %v4089_v25  ;;  %v4311_v13 = vmul.f32 %v4310_v38, %v9315_v44 }
 0x400   :  { %v4348_v41 = vadd.f32 0.00028619796, %v4347_v47  ;;  %v4097_v35 = vand.u32 2147483647, %v9340_v54  ;;  %v4099_v39 = vand.u32 2147483648, %v9340_v54  ;;  %vm4094_vm4 = vweird.f32 %v5717_v45  ;;  %v3519_v25 = vpop.f32.mrf.mxu2 }
 0x401   :  { %v5061_v21 = vmul.f32 %v8948_v61, %v5025_v23  ;;  %v4091_v16 = vmul.f32 %v5717_v45, %v4090_v4  ;;  %v4163_v51 = vadd.f32 0.112945676, %v4162_v5  ;;  %v9390_v14 = vadd.f32 0.18741608, %v4233_v60 }
 0x402   :  { %v9392_v37 = vadd.f32 0.18741608, %v4273_v7  ;;  %v4385_v56 = vmul.f32 %v9373_v19, %v9373_v19  ;;  %v9396_v11 = vadd.f32 %v3606_v10, %v3518_v26  ;;  %vm4093_vm5 = vweird.f32 %v9340_v54  ;;  %v3608_v10 = vpop.f32.mrf.mxu3 }
 0x403   :  { %5101 = vadd.xlane.f32.xlu2 %v5061_v21  ;;  %v4092_v58 = vadd.f32 %v5717_v45, %v4091_v16  ;;  %v4164_v0 = vmul.f32 %v4163_v51, %v9162_v6  ;;  %v4198_v61 = vmul.f32 3.8918573e-05, %v9214_v9  ;;  %v4195_v40 = vmul.f32 %v4194_v31, %v9214_v9  ;;  %vm4095_vm6 = vmor %vm4093_vm5, %vm4094_vm4 }
 0x404   :  { %v5719_v43 = vpop.eup %5718  ;;  %v4312_v29 = vadd.f32 0.05243302, %v4311_v13  ;;  %v4100_v20 = vor.u32 1.1754944e-38, %v4099_v39  ;;  %v4238_v15 = vmul.f32 3.8918573e-05, %v9236_v12  ;;  %v4349_v30 = vmul.f32 %v4348_v41, %v9348_v32 }
 0x405   :  { %v4096_v34 = vsel %vm4095_vm6, %v5717_v45, %v4092_v58  ;;  %vm4098_vm7 = vcmp.eq.f32.partialorder %v4097_v35, 8.507059e+37  ;;  %v4129_v49 = vmul.f32 %v5719_v43, %v9366_v53  ;;  %v9406_v57 = vmin.f32 %v4385_v56, 16.0 }
 0x406   :  { %v4101_v54 = vsel %vm4098_vm7, %v4100_v20, %v4096_v34  ;;  %v9409_v8 = vmul.f32 0.70710677, %v9396_v11  ;;  %v4165_v38 = vadd.f32 0.4994258, %v4164_v0  ;;  %v4139_v17 = vand.u32 2147483648, %v9366_v53 }
 0x407   :  { %v4102_v47 = vmul.f32 %v4101_v54, %v9300_v24  ;;  %v4130_v60 = vsub.f32 1.0, %v4129_v49  ;;  %v4199_v5 = vadd.f32 0.001143296, %v4198_v61  ;;  %v4137_v7 = vand.u32 2147483647, %v9366_v53 }
 0x408   :  { %v4166_v45 = vmul.f32 %v4165_v38, %v9162_v6  ;;  %v3520_v26 = vadd.f32 %v9379_v33, %v3519_v25  ;;  %v4239_v31 = vadd.f32 0.001143296, %v4238_v15  ;;  %vm4134_vm8 = vweird.f32 %v5719_v43 }
 0x409   :  { %v5489_v23 = vclamps-f32 %v4102_v47, 1.0  ;;  %v4131_v4 = vmul.f32 %v5719_v43, %v4130_v60  ;;  %v4200_v13 = vmul.f32 %v4199_v5, %v9214_v9  ;;  %v4350_v41 = vadd.f32 0.0036580483, %v4349_v30 }
 0x40a   :  { %vm4133_vm9 = vweird.f32 %v9366_v53  ;;  %v4425_v24 = vmul.f32 %v9409_v8, %v9409_v8  ;;  %v9420_v35 = vadd.f32 1.0, %v4166_v45  ;;  %v4387_v21 = vmul.f32 2.1237322e-06, %v9406_v57 }
 0x40b   :  { %v4994_v39 = vadd.f32 1.0, %v5489_v23  ;;  %v4132_v6 = vadd.f32 %v5719_v43, %v4131_v4  ;;  %v4140_v16 = vor.u32 1.1754944e-38, %v4139_v17  ;;  %vm4135_vm10 = vmor %vm4133_vm9, %vm4134_vm8  ;;  %v9424_v51 = vadd.f32 %v3608_v10, %v3520_v26 }
 0x40c   :  { %5720 = vrcp.f32 %v9420_v35  ;;  %v4201_v56 = vadd.f32 0.014752088, %v4200_v13  ;;  %v4240_v58 = vmul.f32 %v4239_v31, %v9236_v12  ;;  %vm4138_vm11 = vcmp.eq.f32.partialorder %v4137_v7, 8.507059e+37 }
 0x40d   :  { %v5026_v53 = vmul.f32 %v4994_v39, %v9234_v36  ;;  %v4136_v0 = vsel %vm4135_vm10, %v5719_v43, %v4132_v6  ;;  %v4278_v61 = vmul.f32 3.8918573e-05, %v9258_v48  ;;  %v9429_v20 = vadd.f32 1.1283791, %v4195_v40  ;;  %v9441_v36 = vld [vmem:[%s10285_s5] ss:$0 sm:$0xff] }
 0x40e   :  { %v9432_v15 = vmul.f32 0.5, %v9221_v50  ;;  %v4141_v30 = vsel %vm4138_vm11, %v4140_v16, %v4136_v0  ;;  %v9434_v34 = vmin.f32 %v4425_v24, 16.0  ;;  %v4313_v49 = vmul.f32 %v4312_v29, %v9315_v44 }
 0x40f   :  { %v4351_v54 = vmul.f32 %v4350_v41, %v9348_v32  ;;  %v5062_v43 = vmul.f32 %v9441_v36, %v5026_v53  ;;  %v4142_v40 = vmul.f32 %v4141_v30, %v9352_v42  ;;  %v4388_v38 = vadd.f32 0.00028619796, %v4387_v21 }
 0x410   :  { %v9446_v50 = vmul.f32 0.70710677, %v9424_v51  ;;  %v4202_v47 = vmul.f32 %v4201_v56, %v9214_v9  ;;  %v4241_v60 = vadd.f32 0.014752088, %v4240_v58  ;;  %v4235_v29 = vmul.f32 %v9390_v14, %v9236_v12 }
 0x411   :  { %v4275_v17 = vmul.f32 %v9392_v37, %v9258_v48  ;;  %5103 = vadd.xlane.f32.xlu0 %v5062_v43  ;;  %v5490_v25 = vclamps-f32 %v4142_v40, 1.0  ;;  %v4279_v5 = vadd.f32 0.001143296, %v4278_v61  ;;  %v4427_v45 = vmul.f32 2.1237322e-06, %v9434_v34 }
 0x412   :  { %v5721_v7 = vpop.eup %5720  ;;  %v4465_v42 = vmul.f32 %v9446_v50, %v9446_v50  ;;  %v4203_v26 = vadd.f32 0.112945676, %v4202_v47  ;;  %v4242_v31 = vmul.f32 %v4241_v60, %v9236_v12  ;;  %v4314_v23 = vadd.f32 0.18741608, %v4313_v49  ;;  %v3522_v49 = vpop.f32.mrf.mxu2 }
 0x413   :  { %v4352_v4 = vadd.f32 0.05243302, %v4351_v54  ;;  %v4995_v13 = vadd.f32 1.0, %v5490_v25  ;;  %v4169_v14 = vmul.f32 %v5721_v7, %v9420_v35  ;;  %v4389_v41 = vmul.f32 %v4388_v38, %v9406_v57  ;;  %v3611_v25 = vpop.f32.mrf.mxu3 }
 0x414   :  { %v9459_v37 = vmin.f32 %v4465_v42, 16.0  ;;  %v4204_v24 = vmul.f32 %v4203_v26, %v9214_v9  ;;  %v4243_v39 = vadd.f32 0.112945676, %v4242_v31  ;;  %v4179_v16 = vand.u32 2147483648, %v9420_v35 }
 0x415   :  { %v5027_v21 = vmul.f32 %v4995_v13, %v9282_v3  ;;  %v4170_v6 = vsub.f32 1.0, %v4169_v14  ;;  %v4280_v10 = vmul.f32 %v4279_v5, %v9258_v48  ;;  %v4428_v56 = vadd.f32 0.00028619796, %v4427_v45 }
 0x416   :  { %v4177_v58 = vand.u32 2147483647, %v9420_v35  ;;  %v4205_v53 = vadd.f32 0.4994258, %v4204_v24  ;;  %v4244_v0 = vmul.f32 %v4243_v39, %v9236_v12  ;;  %vm4174_vm12 = vweird.f32 %v5721_v7 }
 0x417   :  { %v5063_v61 = vmul.f32 %v9441_v36, %v5027_v21  ;;  %v4171_v30 = vmul.f32 %v5721_v7, %v4170_v6  ;;  %v4281_v54 = vadd.f32 0.014752088, %v4280_v10  ;;  %v4467_v43 = vmul.f32 2.1237322e-06, %v9459_v37 }
 0x418   :  { %v4206_v3 = vmul.f32 %v4205_v53, %v9214_v9  ;;  %v3523_v40 = vadd.f32 %v9379_v33, %v3522_v49  ;;  %v4245_v38 = vadd.f32 0.4994258, %v4244_v0  ;;  %vm4173_vm13 = vweird.f32 %v9420_v35 }
 0x419   :  { %5105 = vadd.xlane.f32.xlu1 %v5063_v61  ;;  %v4172_v47 = vadd.f32 %v5721_v7, %v4171_v30  ;;  %v4180_v60 = vor.u32 1.1754944e-38, %v4179_v16  ;;  %v4282_v5 = vmul.f32 %v4281_v54, %v9258_v48  ;;  %vm4175_vm14 = vmor %vm4173_vm13, %vm4174_vm12  ;;  %v4318_v9 = vmul.f32 3.8918573e-05, %v9315_v44 }
 0x41a   :  { %v9473_v45 = vadd.f32 1.0, %v4206_v3  ;;  %v9475_v42 = vadd.f32 %v3611_v25, %v3523_v40  ;;  %v4246_v26 = vmul.f32 %v4245_v38, %v9236_v12  ;;  %v4390_v31 = vadd.f32 0.0036580483, %v4389_v41  ;;  %v3524_v61 = vpop.f32.mrf.mxu2 }
 0x41b   :  { %v4176_v13 = vsel %vm4175_vm14, %v5721_v7, %v4172_v47  ;;  %vm4178_vm15 = vcmp.eq.f32.partialorder %v4177_v58, 8.507059e+37  ;;  %v4283_v14 = vadd.f32 0.112945676, %v4282_v5  ;;  %v4429_v24 = vmul.f32 %v4428_v56, %v9434_v34  ;;  %v3613_v47 = vpop.f32.mrf.mxu3 }
 0x41c   :  { %v4181_v35 = vsel %vm4178_vm15, %v4180_v60, %v4176_v13  ;;  %v4468_v39 = vadd.f32 0.00028619796, %v4467_v43  ;;  %5722 = vrcp.f32 %v9473_v45  ;;  %v9483_v21 = vmul.f32 %v9429_v20, %v9187_v52 }
 0x41d   :  { %v4236_v6 = vadd.f32 1.1283791, %v4235_v29  ;;  %v4276_v16 = vadd.f32 1.1283791, %v4275_v17  ;;  %v4182_v12 = vmul.f32 %v4181_v35, %v9383_v2  ;;  %v4315_v10 = vmul.f32 %v4314_v23, %v9315_v44 }
 0x41e   :  { %v9488_v7 = vmul.f32 0.70710677, %v9475_v42  ;;  %v9490_v41 = vadd.f32 1.0, %v4246_v26  ;;  %v4319_v56 = vadd.f32 0.001143296, %v4318_v9  ;;  %v4353_v58 = vmul.f32 %v4352_v4, %v9348_v32 }
 0x41f   :  { %v4391_v53 = vmul.f32 %v4390_v31, %v9406_v57  ;;  %v5491_v0 = vclamps-f32 %v4182_v12, 1.0  ;;  %v4284_v52 = vmul.f32 %v4283_v14, %v9258_v48  ;;  %v9496_v20 = vmul.f32 0.5, %v9274_v27  ;;  %v9523_v14 = vld [vmem:[#allocation2] ss:$0 sm:$0xff] }
 0x420   :  { %v4430_v2 = vadd.f32 0.0036580483, %v4429_v24  ;;  %v4469_v29 = vmul.f32 %v4468_v39, %v9459_v37  ;;  %5724 = vrcp.f32 %v9490_v41  ;;  %v9501_v17 = vmul.f32 %v4236_v6, %v9194_v46 }
 0x421   :  { %v9504_v23 = vmul.f32 0.5, %v9318_v63  ;;  %v4996_v4 = vadd.f32 1.0, %v5491_v0  ;;  %v4505_v30 = vmul.f32 %v9488_v7, %v9488_v7  ;;  %v9509_v54 = vmul.f32 %v4276_v16, %v9240_v22 }
 0x422   :  { %v5723_v49 = vpop.eup %5722  ;;  %v9511_v27 = vadd.f32 1.1283791, %v4315_v10  ;;  %v4285_v43 = vadd.f32 0.4994258, %v4284_v52  ;;  %v4320_v3 = vmul.f32 %v4319_v56, %v9315_v44  ;;  %v4354_v40 = vadd.f32 0.18741608, %v4353_v58 }
 0x423   :  { %v4392_v38 = vadd.f32 0.05243302, %v4391_v53  ;;  %v5028_v46 = vmul.f32 %v4996_v4, %v9303_v55  ;;  %v4209_v63 = vmul.f32 %v5723_v49, %v9473_v45  ;;  %v4431_v60 = vmul.f32 %v4430_v2, %v9434_v34  ;;  %v5086_v55 = vpop.xlane.xlu0 %5085  ;;  %v3527_v53 = vpop.f32.mrf.mxu2 }
 0x424   :  { %v4470_v25 = vadd.f32 0.0036580483, %v4469_v29  ;;  %v4217_v5 = vand.u32 2147483647, %v9473_v45  ;;  %v4219_v22 = vand.u32 2147483648, %v9473_v45  ;;  %v9520_v31 = vmin.f32 %v4505_v30, 16.0 }
 0x425   :  { %v5064_v26 = vmul.f32 %v9441_v36, %v5028_v46  ;;  %v4210_v9 = vsub.f32 1.0, %v4209_v63  ;;  %v4286_v13 = vmul.f32 %v4285_v43, %v9258_v48  ;;  %vm4213_vm0 = vweird.f32 %v9473_v45 }
 0x426   :  { %v5725_v24 = vpop.eup %5724  ;;  %vm4214_vm1 = vweird.f32 %v5723_v49  ;;  %v3525_v35 = vadd.f32 %v9379_v33, %v3524_v61  ;;  %v4321_v39 = vadd.f32 0.014752088, %v4320_v3  ;;  %vm5185_vm2 = vcmask 7168  }
 0x427   :  { %5107 = vadd.xlane.f32.xlu2 %v5064_v26  ;;  %v4211_v6 = vmul.f32 %v5723_v49, %v4210_v9  ;;  %v4249_v16 = vmul.f32 %v5725_v24, %v9490_v41  ;;  %v9528_v12 = vadd.f32 1.0, %v4286_v13  ;;  %v4471_v10 = vmul.f32 %v4470_v25, %v9459_v37  ;;  %vm4215_vm4 = vmor %vm4213_vm0, %vm4214_vm1  ;;  %v3616_v9 = vpop.f32.mrf.mxu3 }
 0x428   :  { %vm9531_vm3 = vcmp.eq.f32.partialorder %v4217_v5, 8.507059e+37  ;;  %v4220_v56 = vor.u32 1.1754944e-38, %v4219_v22  ;;  %v5153_v58 = vadd.f32 %v9523_v14, %v5086_v55  ;;  %v4507_v61 = vmul.f32 2.1237322e-06, %v9520_v31 }
 0x429   :  { %v4212_v0 = vadd.f32 %v5723_v49, %v4211_v6  ;;  %v4250_v52 = vsub.f32 1.0, %v4249_v16  ;;  %5726 = vrcp.f32 %v9528_v12  ;;  %v4257_v2 = vand.u32 2147483647, %v9490_v41 }
 0x42a   :  { %v4259_v29 = vand.u32 2147483648, %v9490_v41  ;;  %v9543_v4 = vadd.f32 %v3613_v47, %v3525_v35  ;;  %5186 = vst.msk [vmem:[%s10287_s7] sm:$0xff] %vm5185_vm2, %v5153_v58  ;;  %v4322_v30 = vmul.f32 %v4321_v39, %v9315_v44  ;;  %vm4254_vm5 = vweird.f32 %v5725_v24 }
 0x42b   :  { %v4216_v43 = vsel %vm4215_vm4, %v5723_v49, %v4212_v0  ;;  %v4251_v3 = vmul.f32 %v5725_v24, %v4250_v52  ;;  %v3528_v46 = vadd.f32 %v9379_v33, %v3527_v53  ;;  %v4393_v45 = vmul.f32 %v4392_v38, %v9406_v57 }
 0x42c   :  { %v4432_v63 = vadd.f32 0.05243302, %v4431_v60  ;;  %v4472_v25 = vadd.f32 0.05243302, %v4471_v10  ;;  %v4221_v47 = vsel %vm9531_vm3, %v4220_v56, %v4216_v43  ;;  %v4508_v22 = vadd.f32 0.00028619796, %v4507_v61 }
 0x42d   :  { %v4222_v5 = vmul.f32 %v4221_v47, %v9483_v21  ;;  %v4252_v26 = vadd.f32 %v5725_v24, %v4251_v3  ;;  %vm4253_vm6 = vweird.f32 %v9490_v41  ;;  %v4260_v49 = vor.u32 1.1754944e-38, %v4259_v29  ;;  %v3529_v47 = vpop.f32.mrf.mxu2 }
 0x42e   :  { %vm4255_vm7 = vmor %vm4253_vm6, %vm4254_vm5  ;;  %v9557_v13 = vmul.f32 0.70710677, %v9543_v4  ;;  %v9559_v55 = vadd.f32 %v3616_v9, %v3528_v46  ;;  %v4323_v38 = vadd.f32 0.112945676, %v4322_v30  ;;  %v9562_v35 = vmul.f32 %v4354_v40, %v9348_v32 }
 0x42f   :  { %v5727_v60 = vpop.eup %5726  ;;  %v5492_v39 = vclamps-f32 %v4222_v5, 1.0  ;;  %v4256_v6 = vsel %vm4255_vm7, %v5725_v24, %v4252_v26  ;;  %vm4258_vm8 = vcmp.eq.f32.partialorder %v4257_v2, 8.507059e+37  ;;  %v4394_v21 = vadd.f32 0.18741608, %v4393_v45 }
 0x430   :  { %v4433_v16 = vmul.f32 %v4432_v63, %v9434_v34  ;;  %v4261_v41 = vsel %vm4258_vm8, %v4260_v49, %v4256_v6  ;;  %v4289_v10 = vmul.f32 %v5727_v60, %v9528_v12  ;;  %v4473_v48 = vmul.f32 %v4472_v25, %v9459_v37  ;;  %v5088_v25 = vpop.xlane.xlu0 %5087 }
 0x431   :  { %v4997_v56 = vadd.f32 1.0, %v5492_v39  ;;  %v4509_v58 = vmul.f32 %v4508_v22, %v9520_v31  ;;  %v4262_v53 = vmul.f32 %v4261_v41, %v9501_v17  ;;  %v4545_v40 = vmul.f32 %v9557_v13, %v9557_v13  ;;  %v3618_v41 = vpop.f32.mrf.mxu3 }
 0x432   :  { %v4290_v0 = vsub.f32 1.0, %v4289_v10  ;;  %v9572_v24 = vmul.f32 0.70710677, %v9559_v55  ;;  %v4324_v61 = vmul.f32 %v4323_v38, %v9315_v44  ;;  %v4297_v29 = vand.u32 2147483647, %v9528_v12 }
 0x433   :  { %v5029_v52 = vmul.f32 %v4997_v56, %v9306_v62  ;;  %v5493_v2 = vclamps-f32 %v4262_v53, 1.0  ;;  %v4299_v30 = vand.u32 2147483648, %v9528_v12  ;;  %vm4294_vm9 = vweird.f32 %v5727_v60 }
 0x434   :  { %v4291_v43 = vmul.f32 %v5727_v60, %v4290_v0  ;;  %v4325_v3 = vadd.f32 0.4994258, %v4324_v61  ;;  %v4358_v17 = vmul.f32 3.8918573e-05, %v9348_v32  ;;  %v4510_v45 = vadd.f32 0.0036580483, %v4509_v58 }
 0x435   :  { %v5065_v46 = vmul.f32 %v9441_v36, %v5029_v52  ;;  %v4998_v63 = vadd.f32 1.0, %v5493_v2  ;;  %vm4293_vm10 = vweird.f32 %v9528_v12  ;;  %v9581_v5 = vmin.f32 %v4545_v40, 16.0 }
 0x436   :  { %v4292_v62 = vadd.f32 %v5727_v60, %v4291_v43  ;;  %v4585_v22 = vmul.f32 %v9572_v24, %v9572_v24  ;;  %v4326_v26 = vmul.f32 %v4325_v3, %v9315_v44  ;;  %vm4295_vm11 = vmor %vm4293_vm10, %vm4294_vm9  ;;  %v4300_v49 = vor.u32 1.1754944e-38, %v4299_v30 }
 0x437   :  { %5109 = vadd.xlane.f32.xlu0 %v5065_v46  ;;  %v5030_v9 = vmul.f32 %v4998_v63, %v9362_v28  ;;  %v5154_v38 = vadd.f32 %v9523_v14, %v5088_v25  ;;  %v3530_v12 = vadd.f32 %v9379_v33, %v3529_v47  ;;  %vm4298_vm12 = vcmp.eq.f32.partialorder %v4297_v29, 8.507059e+37 }
 0x438   :  { %v4296_v39 = vsel %vm4295_vm11, %v5727_v60, %v4292_v62  ;;  %v9590_v6 = vadd.f32 1.0, %v4326_v26  ;;  %v4359_v10 = vadd.f32 0.001143296, %v4358_v17  ;;  %v4511_v56 = vmul.f32 %v4510_v45, %v9520_v31 }
 0x439   :  { %v5066_v44 = vmul.f32 %v9441_v36, %v5030_v9  ;;  %v4301_v58 = vsel %vm4298_vm12, %v4300_v49, %v4296_v39  ;;  %5187 = vst.msk [vmem:[%s10287_s7 + $0x8] sm:$0xff] %vm5185_vm2, %v5154_v38  ;;  %v9598_v28 = vadd.f32 %v3618_v41, %v3530_v12  ;;  %v9601_v53 = vmul.f32 0.5, %v9357_v18 }
 0x43a   :  { %v4302_v60 = vmul.f32 %v4301_v58, %v9509_v54  ;;  %v9604_v40 = vmin.f32 %v4585_v22, 16.0  ;;  %5728 = vrcp.f32 %v9590_v6  ;;  %v4395_v0 = vmul.f32 %v4394_v21, %v9406_v57 }
 0x43b   :  { %v9609_v61 = vmul.f32 0.5, %v9396_v11  ;;  %v4434_v52 = vadd.f32 0.18741608, %v4433_v16  ;;  %v4474_v2 = vadd.f32 0.18741608, %v4473_v48  ;;  %5111 = vadd.xlane.f32.xlu1 %v5066_v44  ;;  %v4360_v54 = vmul.f32 %v4359_v10, %v9348_v32 }
 0x43c   :  { %v4547_v29 = vmul.f32 2.1237322e-06, %v9581_v5  ;;  %v5494_v30 = vclamps-f32 %v4302_v60, 1.0  ;;  %v9613_v18 = vmul.f32 0.70710677, %v9598_v28  ;;  %v9618_v43 = vmul.f32 %v9511_v27, %v9285_v59 }
 0x43d   :  { %v9621_v21 = vadd.f32 1.1283791, %v9562_v35  ;;  %v4512_v11 = vadd.f32 0.05243302, %v4511_v56  ;;  %v4398_v16 = vmul.f32 3.8918573e-05, %v9406_v57  ;;  %v9630_v63 = vmul.f32 %v4434_v52, %v9434_v34 }
 0x43e   :  { %v4999_v48 = vadd.f32 1.0, %v5494_v30  ;;  %v4587_v3 = vmul.f32 2.1237322e-06, %v9604_v40  ;;  %v4625_v17 = vmul.f32 %v9613_v18, %v9613_v18  ;;  %v4361_v46 = vadd.f32 0.014752088, %v4360_v54 }
 0x43f   :  { %v9627_v45 = vadd.f32 1.1283791, %v4395_v0  ;;  %v4399_v59 = vadd.f32 0.001143296, %v4398_v16  ;;  %v4438_v27 = vmul.f32 3.8918573e-05, %v9434_v34  ;;  %v4475_v25 = vmul.f32 %v4474_v2, %v9459_v37 }
 0x440   :  { %v5729_v35 = vpop.eup %5728  ;;  %v4548_v47 = vadd.f32 0.00028619796, %v4547_v29  ;;  %v5031_v62 = vmul.f32 %v4999_v48, %v9432_v15  ;;  %v4362_v22 = vmul.f32 %v4361_v46, %v9348_v32  ;;  %v4513_v26 = vmul.f32 %v4512_v11, %v9520_v31 }
 0x441   :  { %v4329_v9 = vmul.f32 %v5729_v35, %v9590_v6  ;;  %v9638_v49 = vmin.f32 %v4625_v17, 16.0  ;;  %v4400_v38 = vmul.f32 %v4399_v59, %v9406_v57  ;;  %v4588_v39 = vadd.f32 0.00028619796, %v4587_v3  ;;  %v5090_v59 = vpop.xlane.xlu1 %5089 }
 0x442   :  { %v5067_v12 = vmul.f32 %v9441_v36, %v5031_v62  ;;  %v4363_v41 = vadd.f32 0.112945676, %v4362_v22  ;;  %v4439_v10 = vadd.f32 0.001143296, %v4438_v27  ;;  %v4337_v44 = vand.u32 2147483647, %v9590_v6  ;;  %v3532_v27 = vpop.f32.mrf.mxu2 }
 0x443   :  { %v4330_v56 = vsub.f32 1.0, %v4329_v9  ;;  %v4339_v15 = vand.u32 2147483648, %v9590_v6  ;;  %v4401_v58 = vadd.f32 0.014752088, %v4400_v38  ;;  %v4549_v60 = vmul.f32 %v4548_v47, %v9581_v5 }
 0x444   :  { %5113 = vadd.xlane.f32.xlu2 %v5067_v12  ;;  %v4364_v0 = vmul.f32 %v4363_v41, %v9348_v32  ;;  %v4440_v52 = vmul.f32 %v4439_v10, %v9434_v34  ;;  %v4478_v2 = vmul.f32 3.8918573e-05, %v9459_v37  ;;  %vm4334_vm13 = vweird.f32 %v5729_v35 }
 0x445   :  { %v4331_v29 = vmul.f32 %v5729_v35, %v4330_v56  ;;  %v4627_v30 = vmul.f32 2.1237322e-06, %v9638_v49  ;;  %v4402_v54 = vmul.f32 %v4401_v58, %v9406_v57  ;;  %v4589_v11 = vmul.f32 %v4588_v39, %v9604_v40  ;;  %v3621_v39 = vpop.f32.mrf.mxu3 }
 0x446   :  { %vm4333_vm14 = vweird.f32 %v9590_v6  ;;  %v4365_v16 = vadd.f32 0.4994258, %v4364_v0  ;;  %v4441_v48 = vadd.f32 0.014752088, %v4440_v52  ;;  %vm9652_vm15 = vcmp.eq.f32.partialorder %v4337_v44, 8.507059e+37 }
 0x447   :  { %v4332_v3 = vadd.f32 %v5729_v35, %v4331_v29  ;;  %v4340_v46 = vor.u32 1.1754944e-38, %v4339_v15  ;;  %v4403_v47 = vadd.f32 0.112945676, %v4402_v54  ;;  %vm4335_vm0 = vmor %vm4333_vm14, %vm4334_vm13  ;;  %v5155_v22 = vadd.f32 %v9523_v14, %v5090_v59 }
 0x448   :  { %v4366_v62 = vmul.f32 %v4365_v16, %v9348_v32  ;;  %v3533_v9 = vadd.f32 %v9379_v33, %v3532_v27  ;;  %v4479_v38 = vadd.f32 0.001143296, %v4478_v2  ;;  %v4628_v12 = vadd.f32 0.00028619796, %v4627_v30 }
 0x449   :  { %v4336_v6 = vsel %vm4335_vm0, %v5729_v35, %v4332_v3  ;;  %v4404_v41 = vmul.f32 %v4403_v47, %v9406_v57  ;;  %v4442_v10 = vmul.f32 %v4441_v48, %v9434_v34  ;;  %v4550_v56 = vadd.f32 0.0036580483, %v4549_v60  ;;  %5188 = vst.msk [vmem:[%s10287_s7 + $0x10] sm:$0xff] %vm5185_vm2, %v5155_v22 }
 0x44a   :  { %v4341_v44 = vsel %vm9652_vm15, %v4340_v46, %v4336_v6  ;;  %v9663_v15 = vadd.f32 1.0, %v4366_v62  ;;  %v9669_v32 = vadd.f32 %v3621_v39, %v3533_v9  ;;  %v4590_v35 = vadd.f32 0.0036580483, %v4589_v11  ;;  %v3534_v46 = vpop.f32.mrf.mxu2 }
 0x44b   :  { %v4342_v58 = vmul.f32 %v4341_v44, %v9618_v43  ;;  %v4405_v0 = vadd.f32 0.4994258, %v4404_v41  ;;  %v4443_v52 = vadd.f32 0.112945676, %v4442_v10  ;;  %v9674_v60 = vmul.f32 %v9621_v21, %v9331_v1 }
 0x44c   :  { %v9677_v2 = vmul.f32 0.5, %v9424_v51  ;;  %5730 = vrcp.f32 %v9663_v15  ;;  %v4480_v29 = vmul.f32 %v4479_v38, %v9459_v37  ;;  %v9683_v30 = vmul.f32 %v9627_v45, %v9373_v19  ;;  %v5092_v45 = vpop.xlane.xlu1 %5091 }
 0x44d   :  { %v4436_v54 = vadd.f32 1.1283791, %v9630_v63  ;;  %v5495_v43 = vclamps-f32 %v4342_v58, 1.0  ;;  %v4629_v11 = vmul.f32 %v4628_v12, %v9638_v49  ;;  %v4476_v16 = vadd.f32 1.1283791, %v4475_v25  ;;  %v3623_v12 = vpop.f32.mrf.mxu3  ;;  %v5094_v58 = vpop.xlane.xlu2 %5093 }
 0x44e   :  { %v9688_v1 = vmul.f32 0.70710677, %v9669_v32  ;;  %v4406_v51 = vmul.f32 %v4405_v0, %v9406_v57  ;;  %v4444_v21 = vmul.f32 %v4443_v52, %v9434_v34  ;;  %v4514_v48 = vadd.f32 0.18741608, %v4513_v26 }
 0x44f   :  { %v4551_v3 = vmul.f32 %v4550_v56, %v9581_v5  ;;  %v4591_v17 = vmul.f32 %v4590_v35, %v9604_v40  ;;  %v5000_v19 = vadd.f32 1.0, %v5495_v43  ;;  %v5156_v59 = vadd.f32 %v9523_v14, %v5092_v45 }
 0x450   :  { %v9694_v63 = vadd.f32 1.0, %v4406_v51  ;;  %v3535_v25 = vadd.f32 %v9379_v33, %v3534_v46  ;;  %v4481_v27 = vadd.f32 0.014752088, %v4480_v29  ;;  %v9699_v47 = vmul.f32 %v4436_v54, %v9409_v8 }
 0x451   :  { %v5032_v57 = vmul.f32 %v5000_v19, %v9496_v20  ;;  %v4630_v26 = vadd.f32 0.0036580483, %v4629_v11  ;;  %v4445_v62 = vadd.f32 0.4994258, %v4444_v21  ;;  %v9703_v9 = vmul.f32 0.5, %v9475_v42  ;;  %5189 = vst.msk [vmem:[%s10287_s7 + $0x18] sm:$0xff] %vm5185_vm2, %v5156_v59 }
 0x452   :  { %v5731_v22 = vpop.eup %5730  ;;  %v9706_v38 = vmul.f32 0.5, %v9543_v4  ;;  %v4665_v6 = vmul.f32 %v9688_v1, %v9688_v1  ;;  %5732 = vrcp.f32 %v9694_v63  ;;  %v9716_v8 = vmul.f32 %v4476_v16, %v9446_v50  ;;  %v3537_v46 = vpop.f32.mrf.mxu2 }
 0x453   :  { %v4515_v20 = vmul.f32 %v4514_v48, %v9520_v31  ;;  %v5068_v42 = vmul.f32 %v9441_v36, %v5032_v57  ;;  %v4369_v4 = vmul.f32 %v5731_v22, %v9663_v15  ;;  %v4552_v39 = vadd.f32 0.05243302, %v4551_v3 }
 0x454   :  { %v4592_v41 = vadd.f32 0.05243302, %v4591_v17  ;;  %v9721_v10 = vadd.f32 %v3623_v12, %v3535_v25  ;;  %v4482_v56 = vmul.f32 %v4481_v27, %v9459_v37  ;;  %v4631_v44 = vmul.f32 %v4630_v26, %v9638_v49 }
 0x455   :  { %5115 = vadd.xlane.f32.xlu0 %v5068_v42  ;;  %v4370_v35 = vsub.f32 1.0, %v4369_v4  ;;  %v4446_v50 = vmul.f32 %v4445_v62, %v9434_v34  ;;  %v4518_v0 = vmul.f32 3.8918573e-05, %v9520_v31  ;;  %vm4374_vm1 = vweird.f32 %v5731_v22 }
 0x456   :  { %v4377_v52 = vand.u32 2147483647, %v9663_v15  ;;  %v4379_v29 = vand.u32 2147483648, %v9663_v15  ;;  %v9729_v54 = vmin.f32 %v4665_v6, 16.0  ;;  %v9732_v11 = vmul.f32 0.70710677, %v9721_v10 }
 0x457   :  { %v4371_v43 = vmul.f32 %v5731_v22, %v4370_v35  ;;  %v9734_v16 = vadd.f32 1.0, %v4446_v50  ;;  %v5157_v51 = vadd.f32 %v9523_v14, %v5094_v58  ;;  %v9737_v34 = vadd.f32 1.1283791, %v4515_v20 }
 0x458   :  { %v5733_v21 = vpop.eup %5732  ;;  %v4553_v48 = vmul.f32 %v4552_v39, %v9581_v5  ;;  %v4593_v3 = vmul.f32 %v4592_v41, %v9604_v40  ;;  %v4483_v17 = vadd.f32 0.112945676, %v4482_v56  ;;  %vm4373_vm3 = vweird.f32 %v9663_v15 }
 0x459   :  { %v4372_v19 = vadd.f32 %v5731_v22, %v4371_v43  ;;  %v4409_v45 = vmul.f32 %v5733_v21, %v9694_v63  ;;  %5190 = vst.msk [vmem:[%s10287_s7 + $0x20] sm:$0xff] %vm5185_vm2, %v5157_v51  ;;  %v4519_v59 = vadd.f32 0.001143296, %v4518_v0  ;;  %v4632_v25 = vadd.f32 0.05243302, %v4631_v44  ;;  %vm4375_vm4 = vmor %vm4373_vm3, %vm4374_vm1 }
 0x45a   :  { %v4380_v27 = vor.u32 1.1754944e-38, %v4379_v29  ;;  %v4667_v57 = vmul.f32 2.1237322e-06, %v9729_v54  ;;  %5734 = vrcp.f32 %v9734_v16  ;;  %vm4378_vm5 = vcmp.eq.f32.partialorder %v4377_v52, 8.507059e+37  ;;  %v3626_v52 = vpop.f32.mrf.mxu3 }
 0x45b   :  { %v4376_v26 = vsel %vm4375_vm4, %v5731_v22, %v4372_v19  ;;  %v4410_v15 = vsub.f32 1.0, %v4409_v45  ;;  %v4705_v62 = vmul.f32 %v9732_v11, %v9732_v11  ;;  %v4419_v20 = vand.u32 2147483648, %v9694_v63 }
 0x45c   :  { %v4381_v6 = vsel %vm4378_vm5, %v4380_v27, %v4376_v26  ;;  %v3538_v42 = vadd.f32 %v9379_v33, %v3537_v46  ;;  %v4484_v4 = vmul.f32 %v4483_v17, %v9459_v37  ;;  %vm4414_vm6 = vweird.f32 %v5733_v21 }
 0x45d   :  { %v4382_v12 = vmul.f32 %v4381_v6, %v9674_v60  ;;  %v4411_v39 = vmul.f32 %v5733_v21, %v4410_v15  ;;  %v4417_v41 = vand.u32 2147483647, %v9694_v63  ;;  %v4554_v56 = vadd.f32 0.18741608, %v4553_v48 }
 0x45e   :  { %v4594_v22 = vadd.f32 0.18741608, %v4593_v3  ;;  %v4633_v44 = vmul.f32 %v4632_v25, %v9638_v49  ;;  %v4668_v35 = vadd.f32 0.00028619796, %v4667_v57  ;;  %vm4413_vm7 = vweird.f32 %v9694_v63 }
 0x45f   :  { %v5496_v50 = vclamps-f32 %v4382_v12, 1.0  ;;  %v4412_v58 = vadd.f32 %v5733_v21, %v4411_v39  ;;  %v9759_v0 = vmin.f32 %v4705_v62, 16.0  ;;  %vm4415_vm8 = vmor %vm4413_vm7, %vm4414_vm6  ;;  %v4420_v43 = vor.u32 1.1754944e-38, %v4419_v20 }
 0x460   :  { %v5735_v29 = vpop.eup %5734  ;;  %v9761_v60 = vadd.f32 %v3626_v52, %v3538_v42  ;;  %v4485_v51 = vadd.f32 0.4994258, %v4484_v4  ;;  %v4520_v17 = vmul.f32 %v4519_v59, %v9520_v31  ;;  %vm4418_vm9 = vcmp.eq.f32.partialorder %v4417_v41, 8.507059e+37  ;;  %v5096_v59 = vpop.xlane.xlu2 %5095 }
 0x461   :  { %v5001_v48 = vadd.f32 1.0, %v5496_v50  ;;  %v4416_v3 = vsel %vm4415_vm8, %v5733_v21, %v4412_v58  ;;  %v4449_v19 = vmul.f32 %v5735_v29, %v9734_v16  ;;  %v4669_v45 = vmul.f32 %v4668_v35, %v9729_v54  ;;  %v3539_v50 = vpop.f32.mrf.mxu2 }
 0x462   :  { %v4421_v46 = vsel %vm4418_vm9, %v4420_v43, %v4416_v3  ;;  %v4457_v63 = vand.u32 2147483647, %v9734_v16  ;;  %v4459_v25 = vand.u32 2147483648, %v9734_v16  ;;  %v4707_v26 = vmul.f32 2.1237322e-06, %v9759_v0 }
 0x463   :  { %v5033_v27 = vmul.f32 %v5001_v48, %v9504_v23  ;;  %v4422_v57 = vmul.f32 %v4421_v46, %v9683_v30  ;;  %v4450_v15 = vsub.f32 1.0, %v4449_v19  ;;  %v9772_v21 = vmul.f32 0.70710677, %v9761_v60 }
 0x464   :  { %v4486_v62 = vmul.f32 %v4485_v51, %v9459_v37  ;;  %v5158_v6 = vadd.f32 %v9523_v14, %v5096_v59  ;;  %v4521_v20 = vadd.f32 0.014752088, %v4520_v17  ;;  %vm4454_vm10 = vweird.f32 %v5735_v29 }
 0x465   :  { %v5069_v42 = vmul.f32 %v9441_v36, %v5033_v27  ;;  %v5497_v4 = vclamps-f32 %v4422_v57, 1.0  ;;  %v4451_v12 = vmul.f32 %v5735_v29, %v4450_v15  ;;  %v4555_v23 = vmul.f32 %v4554_v56, %v9581_v5 }
 0x466   :  { %v4634_v30 = vadd.f32 0.18741608, %v4633_v44  ;;  %v4670_v39 = vadd.f32 0.0036580483, %v4669_v45  ;;  %v9778_v41 = vadd.f32 1.0, %v4486_v62  ;;  %5191 = vst.msk [vmem:[%s10287_s7 + $0x28] sm:$0xff] %vm5185_vm2, %v5158_v6  ;;  %vm4453_vm11 = vweird.f32 %v9734_v16 }
 0x467   :  { %5117 = vadd.xlane.f32.xlu1 %v5069_v42  ;;  %v5002_v37 = vadd.f32 1.0, %v5497_v4  ;;  %v4452_v35 = vadd.f32 %v5735_v29, %v4451_v12  ;;  %vm4458_vm12 = vcmp.eq.f32.partialorder %v4457_v63, 8.507059e+37  ;;  %v4708_v58 = vadd.f32 0.00028619796, %v4707_v26  ;;  %vm4455_vm13 = vmor %vm4453_vm11, %vm4454_vm10 }
 0x468   :  { %v4460_v52 = vor.u32 1.1754944e-38, %v4459_v25  ;;  %v4745_v56 = vmul.f32 %v9772_v21, %v9772_v21  ;;  %5736 = vrcp.f32 %v9778_v41  ;;  %v4522_v51 = vmul.f32 %v4521_v20, %v9520_v31 }
 0x469   :  { %v5034_v44 = vmul.f32 %v5002_v37, %v9601_v53  ;;  %v4456_v43 = vsel %vm4455_vm13, %v5735_v29, %v4452_v35  ;;  %v4558_v17 = vmul.f32 3.8918573e-05, %v9581_v5  ;;  %v4595_v48 = vmul.f32 %v4594_v22, %v9604_v40  ;;  %v3628_v29 = vpop.f32.mrf.mxu3 }
 0x46a   :  { %v4635_v16 = vmul.f32 %v4634_v30, %v9638_v49  ;;  %v4461_v3 = vsel %vm4458_vm12, %v4460_v52, %v4456_v43  ;;  %v3540_v19 = vadd.f32 %v9379_v33, %v3539_v50  ;;  %v9795_v45 = vmul.f32 0.5, %v9559_v55  ;;  %v5098_v52 = vpop.xlane.xlu0 %5097 }
 0x46b   :  { %v4671_v46 = vmul.f32 %v4670_v39, %v9729_v54  ;;  %v5070_v63 = vmul.f32 %v9441_v36, %v5034_v44  ;;  %v4462_v53 = vmul.f32 %v4461_v3, %v9699_v47  ;;  %v9802_v25 = vmul.f32 %v9737_v34, %v9488_v7 }
 0x46c   :  { %v4556_v22 = vadd.f32 1.1283791, %v4555_v23  ;;  %v4709_v27 = vmul.f32 %v4708_v58, %v9759_v0  ;;  %v9805_v57 = vmin.f32 %v4745_v56, 16.0  ;;  %v9808_v33 = vmul.f32 0.5, %v9598_v28  ;;  %v3542_v56 = vpop.f32.mrf.mxu2 }
 0x46d   :  { %5119 = vadd.xlane.f32.xlu2 %v5070_v63  ;;  %v5498_v55 = vclamps-f32 %v4462_v53, 1.0  ;;  %v4523_v26 = vadd.f32 0.112945676, %v4522_v51  ;;  %v4559_v15 = vadd.f32 0.001143296, %v4558_v17  ;;  %v9810_v6 = vadd.f32 %v3628_v29, %v3540_v19 }
 0x46e   :  { %v5737_v59 = vpop.eup %5736  ;;  %v4596_v62 = vadd.f32 1.1283791, %v4595_v48  ;;  %v4636_v47 = vadd.f32 1.1283791, %v4635_v16  ;;  %v4598_v7 = vmul.f32 3.8918573e-05, %v9604_v40  ;;  %v5159_v16 = vadd.f32 %v9523_v14, %v5098_v52 }
 0x46f   :  { %v4672_v34 = vadd.f32 0.05243302, %v4671_v46  ;;  %v5003_v20 = vadd.f32 1.0, %v5498_v55  ;;  %v4489_v42 = vmul.f32 %v5737_v59, %v9778_v41  ;;  %v4524_v4 = vmul.f32 %v4523_v26, %v9520_v31  ;;  %v9830_v19 = vld [vmem:[%s10284_s4] ss:$0 sm:$0xff] }
 0x470   :  { %v4710_v12 = vadd.f32 0.0036580483, %v4709_v27  ;;  %v4747_v28 = vmul.f32 2.1237322e-06, %v9805_v57  ;;  %v4497_v23 = vand.u32 2147483647, %v9778_v41  ;;  %v4560_v30 = vmul.f32 %v4559_v15, %v9581_v5 }
 0x471   :  { %v5035_v39 = vmul.f32 %v5003_v20, %v9609_v61  ;;  %v4490_v37 = vsub.f32 1.0, %v4489_v42  ;;  %v4499_v35 = vand.u32 2147483648, %v9778_v41  ;;  %v4525_v50 = vadd.f32 0.4994258, %v4524_v4  ;;  %5192 = vst.msk [vmem:[%s10287_s7 + $0x30] sm:$0xff] %vm5185_vm2, %v5159_v16  ;;  %v3631_v29 = vpop.f32.mrf.mxu3 }
 0x472   :  { %vm4494_vm14 = vweird.f32 %v5737_v59  ;;  %v9821_v58 = vmul.f32 0.70710677, %v9810_v6  ;;  %v4561_v44 = vadd.f32 0.014752088, %v4560_v30  ;;  %v4599_v43 = vadd.f32 0.001143296, %v4598_v7 }
 0x473   :  { %v5071_v51 = vmul.f32 %v9441_v36, %v5035_v39  ;;  %v4491_v17 = vmul.f32 %v5737_v59, %v4490_v37  ;;  %v4526_v48 = vmul.f32 %v4525_v50, %v9520_v31  ;;  %v4711_v61 = vmul.f32 %v4710_v12, %v9759_v0 }
 0x474   :  { %v4748_v3 = vadd.f32 0.00028619796, %v4747_v28  ;;  %v3543_v46 = vadd.f32 %v9830_v19, %v3542_v56  ;;  %v4562_v63 = vmul.f32 %v4561_v44, %v9581_v5  ;;  %vm4493_vm15 = vweird.f32 %v9778_v41 }
 0x475   :  { %5121 = vadd.xlane.f32.xlu0 %v5071_v51  ;;  %v4492_v53 = vadd.f32 %v5737_v59, %v4491_v17  ;;  %v4500_v36 = vor.u32 1.1754944e-38, %v4499_v35  ;;  %v9835_v31 = vadd.f32 1.0, %v4526_v48  ;;  %vm4495_vm0 = vmor %vm4493_vm15, %vm4494_vm14  ;;  %v4785_v27 = vmul.f32 %v9821_v58, %v9821_v58 }
 0x476   :  { %v9844_v55 = vadd.f32 %v3631_v29, %v3543_v46  ;;  %v4563_v26 = vadd.f32 0.112945676, %v4562_v63  ;;  %v4600_v15 = vmul.f32 %v4599_v43, %v9604_v40  ;;  %vm4498_vm1 = vcmp.eq.f32.partialorder %v4497_v23, 8.507059e+37 }
 0x477   :  { %v4496_v41 = vsel %vm4495_vm0, %v5737_v59, %v4492_v53  ;;  %5738 = vrcp.f32 %v9835_v31  ;;  %v4638_v7 = vmul.f32 3.8918573e-05, %v9638_v49  ;;  %v9850_v20 = vmul.f32 %v4556_v22, %v9557_v13 }
 0x478   :  { %v9853_v42 = vmul.f32 %v4596_v62, %v9572_v24  ;;  %v4673_v4 = vmul.f32 %v4672_v34, %v9729_v54  ;;  %v4501_v12 = vsel %vm4498_vm1, %v4500_v36, %v4496_v41  ;;  %v9857_v28 = vmul.f32 0.5, %v9669_v32  ;;  %v9893_v41 = vld [vmem:[%s10285_s5] ss:$0 sm:$0xff] }
 0x479   :  { %v4712_v30 = vadd.f32 0.05243302, %v4711_v61  ;;  %v4502_v59 = vmul.f32 %v4501_v12, %v9716_v8  ;;  %v9861_v23 = vmul.f32 0.70710677, %v9844_v55  ;;  %v4749_v39 = vmul.f32 %v4748_v3, %v9805_v57 }
 0x47a   :  { %v9864_v37 = vmin.f32 %v4785_v27, 16.0  ;;  %v4564_v13 = vmul.f32 %v4563_v26, %v9581_v5  ;;  %v4601_v24 = vadd.f32 0.014752088, %v4600_v15  ;;  %v9868_v22 = vmul.f32 %v4636_v47, %v9613_v18  ;;  %v5100_v18 = vpop.xlane.xlu1 %5099  ;;  %v3544_v47 = vpop.f32.mrf.mxu2 }
 0x47b   :  { %v5499_v62 = vclamps-f32 %v4502_v59, 1.0  ;;  %v4825_v32 = vmul.f32 %v9861_v23, %v9861_v23  ;;  %v4639_v34 = vadd.f32 0.001143296, %v4638_v7  ;;  %v4674_v35 = vadd.f32 0.18741608, %v4673_v4  ;;  %v3633_v26 = vpop.f32.mrf.mxu3 }
 0x47c   :  { %v9873_v8 = vmul.f32 0.5, %v9721_v10  ;;  %v4565_v50 = vadd.f32 0.4994258, %v4564_v13  ;;  %v4602_v52 = vmul.f32 %v4601_v24, %v9604_v40  ;;  %v4713_v44 = vmul.f32 %v4712_v30, %v9759_v0 }
 0x47d   :  { %v5739_v56 = vpop.eup %5738  ;;  %v5004_v43 = vadd.f32 1.0, %v5499_v62  ;;  %v9877_v51 = vmin.f32 %v4825_v32, 16.0  ;;  %v4640_v17 = vmul.f32 %v4639_v34, %v9638_v49  ;;  %v4750_v48 = vadd.f32 0.0036580483, %v4749_v39 }
 0x47e   :  { %v4787_v16 = vmul.f32 2.1237322e-06, %v9864_v37  ;;  %v4529_v61 = vmul.f32 %v5739_v56, %v9835_v31  ;;  %v4566_v10 = vmul.f32 %v4565_v50, %v9581_v5  ;;  %v5160_v63 = vadd.f32 %v9523_v14, %v5100_v18 }
 0x47f   :  { %v5036_v3 = vmul.f32 %v5004_v43, %v9677_v2  ;;  %v4827_v46 = vmul.f32 2.1237322e-06, %v9877_v51  ;;  %v3545_v53 = vadd.f32 %v9830_v19, %v3544_v47  ;;  %v4539_v29 = vand.u32 2147483648, %v9835_v31 }
 0x480   :  { %v4530_v36 = vsub.f32 1.0, %v4529_v61  ;;  %v9888_v27 = vadd.f32 1.0, %v4566_v10  ;;  %v4603_v15 = vadd.f32 0.112945676, %v4602_v52  ;;  %5193 = vst.msk [vmem:[%s10287_s7 + $0x38] sm:$0xff] %vm5185_vm2, %v5160_v63  ;;  %vm4534_vm3 = vweird.f32 %v5739_v56  ;;  %v5102_v61 = vpop.xlane.xlu2 %5101 }
 0x481   :  { %v5072_v5 = vmul.f32 %v9893_v41, %v5036_v3  ;;  %v9900_v2 = vadd.f32 %v3633_v26, %v3545_v53  ;;  %v4641_v7 = vadd.f32 0.014752088, %v4640_v17  ;;  %v4678_v4 = vmul.f32 3.8918573e-05, %v9729_v54 }
 0x482   :  { %v4531_v12 = vmul.f32 %v5739_v56, %v4530_v36  ;;  %v4537_v30 = vand.u32 2147483647, %v9835_v31  ;;  %5740 = vrcp.f32 %v9888_v27  ;;  %v4675_v59 = vmul.f32 %v4674_v35, %v9729_v54  ;;  %v3547_v10 = vpop.f32.mrf.mxu2 }
 0x483   :  { %v9907_v39 = vmul.f32 0.5, %v9761_v60  ;;  %5123 = vadd.xlane.f32.xlu1 %v5072_v5  ;;  %v4788_v13 = vadd.f32 0.00028619796, %v4787_v16  ;;  %v4828_v24 = vadd.f32 0.00028619796, %v4827_v46  ;;  %vm4533_vm4 = vweird.f32 %v9835_v31 }
 0x484   :  { %v4714_v62 = vadd.f32 0.18741608, %v4713_v44  ;;  %v4532_v32 = vadd.f32 %v5739_v56, %v4531_v12  ;;  %v4604_v34 = vmul.f32 %v4603_v15, %v9604_v40  ;;  %vm4535_vm5 = vmor %vm4533_vm4, %vm4534_vm3  ;;  %v4540_v50 = vor.u32 1.1754944e-38, %v4539_v29 }
 0x485   :  { %v9912_v52 = vmul.f32 0.70710677, %v9900_v2  ;;  %v4642_v43 = vmul.f32 %v4641_v7, %v9638_v49  ;;  %v4679_v35 = vadd.f32 0.001143296, %v4678_v4  ;;  %v4751_v60 = vmul.f32 %v4750_v48, %v9805_v57 }
 0x486   :  { %v4536_v18 = vsel %vm4535_vm5, %v5739_v56, %v4532_v32  ;;  %vm4538_vm6 = vcmp.eq.f32.partialorder %v4537_v30, 8.507059e+37  ;;  %v4605_v47 = vadd.f32 0.4994258, %v4604_v34  ;;  %v4676_v17 = vadd.f32 1.1283791, %v4675_v59  ;;  %v3636_v34 = vpop.f32.mrf.mxu3 }
 0x487   :  { %v4789_v44 = vmul.f32 %v4788_v13, %v9864_v37  ;;  %v4541_v16 = vsel %vm4538_vm6, %v4540_v50, %v4536_v18  ;;  %v4829_v31 = vmul.f32 %v4828_v24, %v9877_v51  ;;  %v5161_v53 = vadd.f32 %v9523_v14, %v5102_v61 }
 0x488   :  { %v5741_v3 = vpop.eup %5740  ;;  %v4542_v46 = vmul.f32 %v4541_v16, %v9802_v25  ;;  %v4606_v63 = vmul.f32 %v4605_v47, %v9604_v40  ;;  %v4643_v36 = vadd.f32 0.112945676, %v4642_v43  ;;  %v4715_v56 = vmul.f32 %v4714_v62, %v9759_v0 }
 0x489   :  { %v4569_v48 = vmul.f32 %v5741_v3, %v9888_v27  ;;  %v4865_v29 = vmul.f32 %v9912_v52, %v9912_v52  ;;  %v4680_v26 = vmul.f32 %v4679_v35, %v9729_v54  ;;  %v4752_v15 = vadd.f32 0.05243302, %v4751_v60  ;;  %5194 = vst.msk [vmem:[%s10287_s7 + $0x40] sm:$0xff] %vm5185_vm2, %v5161_v53 }
 0x48a   :  { %v5500_v5 = vclamps-f32 %v4542_v46, 1.0  ;;  %v9926_v7 = vadd.f32 1.0, %v4606_v63  ;;  %v3548_v40 = vadd.f32 %v9830_v19, %v3547_v10  ;;  %v4790_v25 = vadd.f32 0.0036580483, %v4789_v44  ;;  %v5104_v46 = vpop.xlane.xlu0 %5103 }
 0x48b   :  { %v4570_v4 = vsub.f32 1.0, %v4569_v48  ;;  %v4577_v12 = vand.u32 2147483647, %v9888_v27  ;;  %v4579_v30 = vand.u32 2147483648, %v9888_v27  ;;  %v4830_v13 = vadd.f32 0.0036580483, %v4829_v31 }
 0x48c   :  { %v5005_v59 = vadd.f32 1.0, %v5500_v5  ;;  %5742 = vrcp.f32 %v9926_v7  ;;  %v4644_v24 = vmul.f32 %v4643_v36, %v9638_v49  ;;  %vm4574_vm7 = vweird.f32 %v5741_v3 }
 0x48d   :  { %v4571_v62 = vmul.f32 %v5741_v3, %v4570_v4  ;;  %v9937_v32 = vmin.f32 %v4865_v29, 16.0  ;;  %v4681_v50 = vadd.f32 0.014752088, %v4680_v26  ;;  %v9940_v43 = vmul.f32 %v4676_v17, %v9688_v1 }
 0x48e   :  { %v4716_v35 = vadd.f32 1.1283791, %v4715_v56  ;;  %v5037_v60 = vmul.f32 %v5005_v59, %v9703_v9  ;;  %v9943_v18 = vadd.f32 %v3636_v34, %v3548_v40  ;;  %v4753_v47 = vmul.f32 %v4752_v15, %v9805_v57  ;;  %v3549_v59 = vpop.f32.mrf.mxu2 }
 0x48f   :  { %v4791_v44 = vmul.f32 %v4790_v25, %v9864_v37  ;;  %v4572_v16 = vadd.f32 %v5741_v3, %v4571_v62  ;;  %vm4573_vm8 = vweird.f32 %v9888_v27  ;;  %v4831_v61 = vmul.f32 %v4830_v13, %v9877_v51 }
 0x490   :  { %v5073_v31 = vmul.f32 %v9893_v41, %v5037_v60  ;;  %vm4575_vm9 = vmor %vm4573_vm8, %vm4574_vm7  ;;  %v4580_v10 = vor.u32 1.1754944e-38, %v4579_v30  ;;  %v4645_v1 = vadd.f32 0.4994258, %v4644_v24  ;;  %vm4578_vm10 = vcmp.eq.f32.partialorder %v4577_v12, 8.507059e+37 }
 0x491   :  { %v4576_v17 = vsel %vm4575_vm9, %v5741_v3, %v4572_v16  ;;  %v4867_v9 = vmul.f32 2.1237322e-06, %v9937_v32  ;;  %v4682_v63 = vmul.f32 %v4681_v50, %v9729_v54  ;;  %v9953_v36 = vmul.f32 %v4716_v35, %v9732_v11 }
 0x492   :  { %v5743_v53 = vpop.eup %5742  ;;  %5125 = vadd.xlane.f32.xlu2 %v5073_v31  ;;  %v4581_v27 = vsel %vm4578_vm10, %v4580_v10, %v4576_v17  ;;  %v9956_v56 = vmul.f32 0.70710677, %v9943_v18  ;;  %v4646_v48 = vmul.f32 %v4645_v1, %v9638_v49  ;;  %v4754_v29 = vadd.f32 0.18741608, %v4753_v47 }
 0x493   :  { %v4582_v3 = vmul.f32 %v4581_v27, %v9850_v20  ;;  %v4609_v26 = vmul.f32 %v5743_v53, %v9926_v7  ;;  %v4718_v15 = vmul.f32 3.8918573e-05, %v9759_v0  ;;  %v4792_v5 = vadd.f32 0.05243302, %v4791_v44 }
 0x494   :  { %v4832_v40 = vadd.f32 0.05243302, %v4831_v61  ;;  %v9962_v25 = vadd.f32 1.0, %v4646_v48  ;;  %v5162_v11 = vadd.f32 %v9523_v14, %v5104_v46  ;;  %v4868_v12 = vadd.f32 0.00028619796, %v4867_v9 }
 0x495   :  { %v5501_v4 = vclamps-f32 %v4582_v3, 1.0  ;;  %v4610_v30 = vsub.f32 1.0, %v4609_v26  ;;  %v4683_v13 = vadd.f32 0.112945676, %v4682_v63  ;;  %v4617_v49 = vand.u32 2147483647, %v9926_v7 }
 0x496   :  { %v4619_v24 = vand.u32 2147483648, %v9926_v7  ;;  %v4905_v20 = vmul.f32 %v9956_v56, %v9956_v56  ;;  %5744 = vrcp.f32 %v9962_v25  ;;  %5195 = vst.msk [vmem:[%s10287_s7 + $0x48] sm:$0xff] %vm5185_vm2, %v5162_v11  ;;  %vm4614_vm11 = vweird.f32 %v5743_v53 }
 0x497   :  { %v5006_v14 = vadd.f32 1.0, %v5501_v4  ;;  %v4611_v62 = vmul.f32 %v5743_v53, %v4610_v30  ;;  %v4719_v34 = vadd.f32 0.001143296, %v4718_v15  ;;  %v4755_v50 = vmul.f32 %v4754_v29, %v9805_v57 }
 0x498   :  { %v4793_v35 = vmul.f32 %v4792_v5, %v9864_v37  ;;  %v3550_v60 = vadd.f32 %v9830_v19, %v3549_v59  ;;  %v4684_v47 = vmul.f32 %v4683_v13, %v9729_v54  ;;  %v4833_v44 = vmul.f32 %v4832_v40, %v9877_v51  ;;  %v3638_v19 = vpop.f32.mrf.mxu3 }
 0x499   :  { %v5038_v16 = vmul.f32 %v5006_v14, %v9706_v38  ;;  %v4612_v31 = vadd.f32 %v5743_v53, %v4611_v62  ;;  %vm4613_vm12 = vweird.f32 %v9926_v7  ;;  %v4869_v61 = vmul.f32 %v4868_v12, %v9937_v32  ;;  %v5106_v7 = vpop.xlane.xlu1 %5105  ;;  %v9993_v12 = vld [vmem:[#allocation2] ss:$0 sm:$0xff] }
 0x49a   :  { %vm4615_vm13 = vmor %vm4613_vm12, %vm4614_vm11  ;;  %vm4618_vm14 = vcmp.eq.f32.partialorder %v4617_v49, 8.507059e+37  ;;  %v4620_v10 = vor.u32 1.1754944e-38, %v4619_v24  ;;  %v9982_v1 = vmin.f32 %v4905_v20, 16.0  ;;  %v4685_v46 = vadd.f32 0.4994258, %v4684_v47 }
 0x49b   :  { %v5074_v17 = vmul.f32 %v9893_v41, %v5038_v16  ;;  %v4616_v9 = vsel %vm4615_vm13, %v5743_v53, %v4612_v31  ;;  %v4720_v63 = vmul.f32 %v4719_v34, %v9759_v0  ;;  %v4756_v48 = vadd.f32 1.1283791, %v4755_v50 }
 0x49c   :  { %v5745_v27 = vpop.eup %5744  ;;  %v4794_v38 = vadd.f32 0.18741608, %v4793_v35  ;;  %v4621_v29 = vsel %vm4618_vm14, %v4620_v10, %v4616_v9  ;;  %v9986_v3 = vadd.f32 %v3638_v19, %v3550_v60  ;;  %v4834_v26 = vadd.f32 0.18741608, %v4833_v44 }
 0x49d   :  { %5127 = vadd.xlane.f32.xlu0 %v5074_v17  ;;  %v4622_v15 = vmul.f32 %v4621_v29, %v9853_v42  ;;  %v4649_v5 = vmul.f32 %v5745_v27, %v9962_v25  ;;  %v4686_v40 = vmul.f32 %v4685_v46, %v9729_v54  ;;  %v4870_v53 = vadd.f32 0.0036580483, %v4869_v61 }
 0x49e   :  { %v4907_v11 = vmul.f32 2.1237322e-06, %v9982_v1  ;;  %v4657_v4 = vand.u32 2147483647, %v9962_v25  ;;  %v5163_v30 = vadd.f32 %v9993_v12, %v5106_v7  ;;  %v4721_v24 = vadd.f32 0.014752088, %v4720_v63 }
 0x49f   :  { %v5502_v59 = vclamps-f32 %v4622_v15, 1.0  ;;  %v4650_v13 = vsub.f32 1.0, %v4649_v5  ;;  %v9996_v49 = vadd.f32 1.0, %v4686_v40  ;;  %v9999_v42 = vmul.f32 %v4756_v48, %v9772_v21 }
 0x4a0   :  { %v4659_v20 = vand.u32 2147483648, %v9962_v25  ;;  %v10003_v54 = vmul.f32 0.70710677, %v9986_v3  ;;  %5196 = vst.msk [vmem:[%s10287_s7 + $0x50] sm:$0xff] %vm5185_vm2, %v5163_v30  ;;  %v4758_v14 = vmul.f32 3.8918573e-05, %v9805_v57  ;;  %vm4654_vm15 = vweird.f32 %v5745_v27 }
 0x4a1   :  { %v5007_v62 = vadd.f32 1.0, %v5502_v59  ;;  %v4651_v34 = vmul.f32 %v5745_v27, %v4650_v13  ;;  %5746 = vrcp.f32 %v9996_v49  ;;  %v4795_v21 = vmul.f32 %v4794_v38, %v9864_v37 }
 0x4a2   :  { %v4835_v50 = vmul.f32 %v4834_v26, %v9877_v51  ;;  %v4871_v35 = vmul.f32 %v4870_v53, %v9937_v32  ;;  %v4722_v60 = vmul.f32 %v4721_v24, %v9759_v0  ;;  %vm4653_vm0 = vweird.f32 %v9962_v25 }
 0x4a3   :  { %v5039_v47 = vmul.f32 %v5007_v62, %v9795_v45  ;;  %v4652_v44 = vadd.f32 %v5745_v27, %v4651_v34  ;;  %v4759_v16 = vadd.f32 0.001143296, %v4758_v14  ;;  %v4908_v31 = vadd.f32 0.00028619796, %v4907_v11  ;;  %vm4655_vm1 = vmor %vm4653_vm0, %vm4654_vm15 }
 0x4a4   :  { %v4660_v61 = vor.u32 1.1754944e-38, %v4659_v20  ;;  %v4945_v10 = vmul.f32 %v10003_v54, %v10003_v54  ;;  %v4723_v17 = vadd.f32 0.112945676, %v4722_v60  ;;  %vm4658_vm3 = vcmp.eq.f32.partialorder %v4657_v4, 8.507059e+37  ;;  %v5108_v20 = vpop.xlane.xlu2 %5107 }
 0x4a5   :  { %v5075_v9 = vmul.f32 %v9893_v41, %v5039_v47  ;;  %v4656_v19 = vsel %vm4655_vm1, %v5745_v27, %v4652_v44  ;;  %v4760_v46 = vmul.f32 %v4759_v16, %v9805_v57  ;;  %v4796_v63 = vadd.f32 1.1283791, %v4795_v21 }
 0x4a6   :  { %v4836_v48 = vadd.f32 1.1283791, %v4835_v50  ;;  %v4661_v45 = vsel %vm4658_vm3, %v4660_v61, %v4656_v19  ;;  %v4724_v38 = vmul.f32 %v4723_v17, %v9759_v0  ;;  %v4798_v26 = vmul.f32 3.8918573e-05, %v9864_v37 }
 0x4a7   :  { %v5747_v25 = vpop.eup %5746  ;;  %5129 = vadd.xlane.f32.xlu1 %v5075_v9  ;;  %v4662_v29 = vmul.f32 %v4661_v45, %v9868_v22  ;;  %v4761_v7 = vadd.f32 0.014752088, %v4760_v46  ;;  %v4838_v15 = vmul.f32 3.8918573e-05, %v9877_v51  ;;  %v4872_v5 = vadd.f32 0.05243302, %v4871_v35 }
 0x4a8   :  { %v4909_v27 = vmul.f32 %v4908_v31, %v9982_v1  ;;  %v10026_v40 = vmin.f32 %v4945_v10, 16.0  ;;  %v4689_v53 = vmul.f32 %v5747_v25, %v9996_v49  ;;  %v4725_v4 = vadd.f32 0.4994258, %v4724_v38 }
 0x4a9   :  { %v5503_v11 = vclamps-f32 %v4662_v29, 1.0  ;;  %v4762_v30 = vmul.f32 %v4761_v7, %v9805_v57  ;;  %v4799_v59 = vadd.f32 0.001143296, %v4798_v26  ;;  %v4697_v22 = vand.u32 2147483647, %v9996_v49 }
 0x4aa   :  { %v4690_v13 = vsub.f32 1.0, %v4689_v53  ;;  %v4699_v24 = vand.u32 2147483648, %v9996_v49  ;;  %v4839_v14 = vadd.f32 0.001143296, %v4838_v15  ;;  %v4726_v34 = vmul.f32 %v4725_v4, %v9759_v0  ;;  %v5110_v26 = vpop.xlane.xlu0 %5109 }
 0x4ab   :  { %v5008_v62 = vadd.f32 1.0, %v5503_v11  ;;  %v5164_v21 = vadd.f32 %v9993_v12, %v5108_v20  ;;  %v4763_v50 = vadd.f32 0.112945676, %v4762_v30  ;;  %vm4694_vm4 = vweird.f32 %v5747_v25 }
 0x4ac   :  { %v4691_v35 = vmul.f32 %v5747_v25, %v4690_v13  ;;  %v4800_v60 = vmul.f32 %v4799_v59, %v9864_v37  ;;  %v4840_v47 = vmul.f32 %v4839_v14, %v9877_v51  ;;  %v4947_v16 = vmul.f32 2.1237322e-06, %v10026_v40 }
 0x4ad   :  { %v5040_v44 = vmul.f32 %v5008_v62, %v9808_v33  ;;  %v10038_v31 = vadd.f32 1.0, %v4726_v34  ;;  %5197 = vst.msk [vmem:[%s10287_s7 + $0x58] sm:$0xff] %vm5185_vm2, %v5164_v21  ;;  %v4764_v0 = vmul.f32 %v4763_v50, %v9805_v57  ;;  %vm4693_vm5 = vweird.f32 %v9996_v49 }
 0x4ae   :  { %v4692_v61 = vadd.f32 %v5747_v25, %v4691_v35  ;;  %v4801_v10 = vadd.f32 0.014752088, %v4800_v60  ;;  %v4841_v17 = vadd.f32 0.014752088, %v4840_v47  ;;  %vm4695_vm6 = vmor %vm4693_vm5, %vm4694_vm4  ;;  %v4700_v33 = vor.u32 1.1754944e-38, %v4699_v24 }
 0x4af   :  { %v5076_v9 = vmul.f32 %v9893_v41, %v5040_v44  ;;  %5748 = vrcp.f32 %v10038_v31  ;;  %v4878_v19 = vmul.f32 3.8918573e-05, %v9937_v32  ;;  %v4873_v46 = vmul.f32 %v4872_v5, %v9937_v32  ;;  %v5112_v44 = vpop.xlane.xlu1 %5111 }
 0x4b0   :  { %v4696_v45 = vsel %vm4695_vm6, %v5747_v25, %v4692_v61  ;;  %vm4698_vm7 = vcmp.eq.f32.partialorder %v4697_v22, 8.507059e+37  ;;  %v4765_v38 = vadd.f32 0.4994258, %v4764_v0  ;;  %v4910_v29 = vadd.f32 0.0036580483, %v4909_v27 }
 0x4b1   :  { %5131 = vadd.xlane.f32.xlu2 %v5076_v9  ;;  %v4701_v7 = vsel %vm4698_vm7, %v4700_v33, %v4696_v45  ;;  %v4802_v49 = vmul.f32 %v4801_v10, %v9864_v37  ;;  %v4842_v15 = vmul.f32 %v4841_v17, %v9877_v51  ;;  %v10053_v53 = vmul.f32 %v4796_v63, %v9821_v58 }
 0x4b2   :  { %v4948_v11 = vadd.f32 0.00028619796, %v4947_v16  ;;  %v4702_v4 = vmul.f32 %v4701_v7, %v9940_v43  ;;  %v4766_v30 = vmul.f32 %v4765_v38, %v9805_v57  ;;  %v5165_v25 = vadd.f32 %v9993_v12, %v5110_v26 }
 0x4b3   :  { %v4803_v5 = vadd.f32 0.112945676, %v4802_v49  ;;  %v4843_v59 = vadd.f32 0.112945676, %v4842_v15  ;;  %v4879_v27 = vadd.f32 0.001143296, %v4878_v19  ;;  %v10059_v13 = vmul.f32 %v4836_v48, %v9861_v23 }
 0x4b4   :  { %v10061_v22 = vadd.f32 0.18741608, %v4873_v46  ;;  %v5504_v24 = vclamps-f32 %v4702_v4, 1.0  ;;  %v10063_v20 = vadd.f32 1.0, %v4766_v30  ;;  %v4911_v63 = vmul.f32 %v4910_v29, %v9982_v1  ;;  %5198 = vst.msk [vmem:[%s10287_s7 + $0x60] sm:$0xff] %vm5185_vm2, %v5165_v25 }
 0x4b5   :  { %v5749_v58 = vpop.eup %5748  ;;  %v4804_v57 = vmul.f32 %v4803_v5, %v9864_v37  ;;  %v4844_v43 = vmul.f32 %v4843_v59, %v9877_v51  ;;  %v4880_v23 = vmul.f32 %v4879_v27, %v9937_v32  ;;  %v4737_v62 = vand.u32 2147483647, %v10038_v31 }
 0x4b6   :  { %v5009_v48 = vadd.f32 1.0, %v5504_v24  ;;  %v4729_v14 = vmul.f32 %v5749_v58, %v10038_v31  ;;  %5750 = vrcp.f32 %v10063_v20  ;;  %v4949_v34 = vmul.f32 %v4948_v11, %v10026_v40 }
 0x4b7   :  { %v4739_v21 = vand.u32 2147483648, %v10038_v31  ;;  %v4805_v50 = vadd.f32 0.4994258, %v4804_v57  ;;  %v4918_v35 = vmul.f32 3.8918573e-05, %v9982_v1  ;;  %vm4734_vm8 = vweird.f32 %v5749_v58  ;;  %v5114_v17 = vpop.xlane.xlu2 %5113 }
 0x4b8   :  { %v5041_v60 = vmul.f32 %v5009_v48, %v9857_v28  ;;  %v4730_v47 = vsub.f32 1.0, %v4729_v14  ;;  %v4845_v16 = vadd.f32 0.4994258, %v4844_v43  ;;  %v4958_v0 = vmul.f32 3.8918573e-05, %v10026_v40 }
 0x4b9   :  { %v4806_v61 = vmul.f32 %v4805_v50, %v9864_v37  ;;  %v5166_v10 = vadd.f32 %v9993_v12, %v5112_v44  ;;  %v4881_v9 = vadd.f32 0.014752088, %v4880_v23  ;;  %v5167_v45 = vadd.f32 %v9993_v12, %v5114_v17 }
 0x4ba   :  { %v5077_v33 = vmul.f32 %v9893_v41, %v5041_v60  ;;  %v4731_v19 = vmul.f32 %v5749_v58, %v4730_v47  ;;  %v4846_v46 = vmul.f32 %v4845_v16, %v9877_v51  ;;  %v4950_v28 = vadd.f32 0.0036580483, %v4949_v34 }
 0x4bb   :  { %vm4733_vm9 = vweird.f32 %v10038_v31  ;;  %v4740_v38 = vor.u32 1.1754944e-38, %v4739_v21  ;;  %v10087_v29 = vadd.f32 1.0, %v4806_v61  ;;  %5199 = vst.msk [vmem:[%s10287_s7 + $0x68] sm:$0xff] %vm5185_vm2, %v5166_v10  ;;  %v4777_v26 = vand.u32 2147483647, %v10063_v20 }
 0x4bc   :  { %v5751_v37 = vpop.eup %5750  ;;  %5133 = vadd.xlane.f32.xlu0 %v5077_v33  ;;  %v4732_v7 = vadd.f32 %v5749_v58, %v4731_v19  ;;  %v4779_v51 = vand.u32 2147483648, %v10063_v20  ;;  %v10095_v49 = vadd.f32 1.0, %v4846_v46  ;;  %5200 = vst.msk [vmem:[%s10287_s7 + $0x70] sm:$0xff] %vm5185_vm2, %v5167_v45  ;;  %vm4735_vm10 = vmor %vm4733_vm9, %vm4734_vm8  ;;  %v4882_v15 = vmul.f32 %v4881_v9, %v9937_v32 }
 0x4bd   :  { %v4769_v31 = vmul.f32 %v5751_v37, %v10063_v20  ;;  %5752 = vrcp.f32 %v10087_v29  ;;  %v4919_v11 = vadd.f32 0.001143296, %v4918_v35  ;;  %vm4738_vm11 = vcmp.eq.f32.partialorder %v4737_v62, 8.507059e+37 }
 0x4be   :  { %v4736_v4 = vsel %vm4735_vm10, %v5749_v58, %v4732_v7  ;;  %5754 = vrcp.f32 %v10095_v49  ;;  %v4959_v30 = vadd.f32 0.001143296, %v4958_v0  ;;  %v10106_v25 = vadd.f32 0.05243302, %v4911_v63 }
 0x4bf   :  { %v10109_v5 = vmul.f32 %v4950_v28, %v10026_v40  ;;  %v4741_v59 = vsel %vm4738_vm11, %v4740_v38, %v4736_v4  ;;  %v4770_v27 = vsub.f32 1.0, %v4769_v31  ;;  %vm4773_vm12 = vweird.f32 %v10063_v20 }
 0x4c0   :  { %v4742_v24 = vmul.f32 %v4741_v59, %v9953_v36  ;;  %vm10113_vm13 = vcmp.eq.f32.partialorder %v4777_v26, 8.507059e+37  ;;  %v4780_v58 = vor.u32 1.1754944e-38, %v4779_v51  ;;  %vm4774_vm14 = vweird.f32 %v5751_v37 }
 0x4c1   :  { %v4771_v43 = vmul.f32 %v5751_v37, %v4770_v27  ;;  %v4883_v23 = vadd.f32 0.112945676, %v4882_v15  ;;  %v4920_v63 = vmul.f32 %v4919_v11, %v9982_v1  ;;  %vm4813_vm15 = vweird.f32 %v10087_v29  ;;  %vm4775_vm1 = vmor %vm4773_vm12, %vm4774_vm14 }
 0x4c2   :  { %v5505_v48 = vclamps-f32 %v4742_v24, 1.0  ;;  %v4817_v14 = vand.u32 2147483647, %v10087_v29  ;;  %v4819_v62 = vand.u32 2147483648, %v10087_v29  ;;  %v4960_v36 = vmul.f32 %v4959_v30, %v10026_v40 }
 0x4c3   :  { %v5753_v34 = vpop.eup %5752  ;;  %v4772_v21 = vadd.f32 %v5751_v37, %v4771_v43  ;;  %vm4853_vm0 = vweird.f32 %v10095_v49  ;;  %v4857_v50 = vand.u32 2147483647, %v10095_v49  ;;  %v4884_v35 = vmul.f32 %v4883_v23, %v9937_v32 }
 0x4c4   :  { %v4921_v60 = vadd.f32 0.014752088, %v4920_v63  ;;  %v5755_v47 = vpop.eup %5754  ;;  %v5010_v44 = vadd.f32 1.0, %v5505_v48  ;;  %v4809_v16 = vmul.f32 %v5753_v34, %v10087_v29  ;;  %v4859_v0 = vand.u32 2147483648, %v10095_v49 }
 0x4c5   :  { %v4961_v61 = vadd.f32 0.014752088, %v4960_v36  ;;  %v4776_v10 = vsel %vm4775_vm1, %v5751_v37, %v4772_v21  ;;  %vm4814_vm3 = vweird.f32 %v5753_v34  ;;  %v4849_v17 = vmul.f32 %v5755_v47, %v10095_v49 }
 0x4c6   :  { %v4885_v9 = vadd.f32 0.4994258, %v4884_v35  ;;  %v5042_v33 = vmul.f32 %v5010_v44, %v9873_v8  ;;  %v4781_v19 = vsel %vm10113_vm13, %v4780_v58, %v4776_v10  ;;  %v4810_v46 = vsub.f32 1.0, %v4809_v16  ;;  %vm4815_vm6 = vmor %vm4813_vm15, %vm4814_vm3 }
 0x4c7   :  { %v4922_v45 = vmul.f32 %v4921_v60, %v9982_v1  ;;  %v4782_v20 = vmul.f32 %v4781_v19, %v9999_v42  ;;  %v4850_v28 = vsub.f32 1.0, %v4849_v17  ;;  %v4962_v7 = vmul.f32 %v4961_v61, %v10026_v40 }
 0x4c8   :  { %v4886_v38 = vmul.f32 %v4885_v9, %v9937_v32  ;;  %v5078_v37 = vmul.f32 %v9893_v41, %v5042_v33  ;;  %v4811_v26 = vmul.f32 %v5753_v34, %v4810_v46  ;;  %vm4854_vm4 = vweird.f32 %v5755_v47  ;;  %v5116_v51 = vpop.xlane.xlu0 %5115 }
 0x4c9   :  { %v4923_v31 = vadd.f32 0.112945676, %v4922_v45  ;;  %v5506_v8 = vclamps-f32 %v4782_v20, 1.0  ;;  %v4851_v15 = vmul.f32 %v5755_v47, %v4850_v28  ;;  %v5168_v4 = vadd.f32 %v9993_v12, %v5116_v51  ;;  %vm4855_vm7 = vmor %vm4853_vm0, %vm4854_vm4 }
 0x4ca   :  { %v10139_v11 = vadd.f32 1.0, %v4886_v38  ;;  %5135 = vadd.xlane.f32.xlu1 %v5078_v37  ;;  %v4812_v30 = vadd.f32 %v5753_v34, %v4811_v26  ;;  %vm4818_vm5 = vcmp.eq.f32.partialorder %v4817_v14, 8.507059e+37  ;;  %v4963_v59 = vadd.f32 0.112945676, %v4962_v7 }
 0x4cb   :  { %v4924_v42 = vmul.f32 %v4923_v31, %v9982_v1  ;;  %v5011_v27 = vadd.f32 1.0, %v5506_v8  ;;  %v4820_v24 = vor.u32 1.1754944e-38, %v4819_v62  ;;  %v4852_v57 = vadd.f32 %v5755_v47, %v4851_v15  ;;  %5201 = vst.msk [vmem:[%s10287_s7 + $0x78] sm:$0xff] %vm5185_vm2, %v5168_v4 }
 0x4cc   :  { %5756 = vrcp.f32 %v10139_v11  ;;  %v4816_v58 = vsel %vm4815_vm6, %v5753_v34, %v4812_v30  ;;  %vm4858_vm8 = vcmp.eq.f32.partialorder %v4857_v50, 8.507059e+37  ;;  %v4860_v43 = vor.u32 1.1754944e-38, %v4859_v0 }
 0x4cd   :  { %v4925_v23 = vadd.f32 0.4994258, %v4924_v42  ;;  %v5043_v29 = vmul.f32 %v5011_v27, %v9907_v39  ;;  %v4821_v63 = vsel %vm4818_vm5, %v4820_v24, %v4816_v58  ;;  %v4856_v48 = vsel %vm4855_vm7, %v5755_v47, %v4852_v57 }
 0x4ce   :  { %v4964_v14 = vmul.f32 %v4963_v59, %v10026_v40  ;;  %v4952_v62 = vadd.f32 0.05243302, %v10109_v5  ;;  %v4822_v36 = vmul.f32 %v4821_v63, %v10053_v53  ;;  %v4861_v21 = vsel %vm4858_vm8, %v4860_v43, %v4856_v48 }
 0x4cf   :  { %v5079_v34 = vmul.f32 %v9893_v41, %v5043_v29  ;;  %v4862_v35 = vmul.f32 %v4861_v21, %v10059_v13  ;;  %v4926_v49 = vmul.f32 %v4925_v23, %v9982_v1  ;;  %v4875_v60 = vmul.f32 %v10061_v22, %v9937_v32 }
 0x4d0   :  { %v4965_v50 = vadd.f32 0.4994258, %v4964_v14  ;;  %v5507_v39 = vclamps-f32 %v4822_v36, 1.0  ;;  %v4913_v47 = vmul.f32 %v10106_v25, %v9982_v1  ;;  %v3668_v0 = vmul.f32 0.5, %v9810_v6 }
 0x4d1   :  { %5137 = vadd.xlane.f32.xlu2 %v5079_v34  ;;  %v5508_v5 = vclamps-f32 %v4862_v35, 1.0  ;;  %v10165_v16 = vadd.f32 1.0, %v4926_v49  ;;  %v3669_v10 = vmul.f32 0.5, %v9844_v55  ;;  %v4953_v32 = vmul.f32 %v4952_v62, %v10026_v40 }
 0x4d2   :  { %v5757_v44 = vpop.eup %5756  ;;  %v4966_v53 = vmul.f32 %v4965_v50, %v10026_v40  ;;  %v5012_v13 = vadd.f32 1.0, %v5507_v39  ;;  %v4876_v17 = vadd.f32 1.1283791, %v4875_v60  ;;  %v4914_v19 = vadd.f32 0.18741608, %v4913_v47 }
 0x4d3   :  { %v4889_v61 = vmul.f32 %v5757_v44, %v10139_v11  ;;  %v5013_v22 = vadd.f32 1.0, %v5508_v5  ;;  %5758 = vrcp.f32 %v10165_v16  ;;  %v4897_v45 = vand.u32 2147483647, %v10139_v11 }
 0x4d4   :  { %v5044_v25 = vmul.f32 %v5012_v13, %v3668_v0  ;;  %v10173_v33 = vadd.f32 1.0, %v4966_v53  ;;  %v4899_v6 = vand.u32 2147483648, %v10139_v11  ;;  %vm4894_vm9 = vweird.f32 %v5757_v44 }
 0x4d5   :  { %v4890_v9 = vsub.f32 1.0, %v4889_v61  ;;  %v5045_v46 = vmul.f32 %v5013_v22, %v3669_v10  ;;  %v4954_v55 = vadd.f32 0.18741608, %v4953_v32  ;;  %vm4893_vm10 = vweird.f32 %v10139_v11 }
 0x4d6   :  { %v5080_v20 = vmul.f32 %v9893_v41, %v5044_v25  ;;  %5760 = vrcp.f32 %v10173_v33  ;;  %v4915_v26 = vmul.f32 %v4914_v19, %v9982_v1  ;;  %vm4895_vm11 = vmor %vm4893_vm10, %vm4894_vm9  ;;  %v4900_v51 = vor.u32 1.1754944e-38, %v4899_v6 }
 0x4d7   :  { %v4891_v28 = vmul.f32 %v5757_v44, %v4890_v9  ;;  %v5081_v38 = vmul.f32 %v9893_v41, %v5045_v46  ;;  %v4877_v31 = vmul.f32 %v4876_v17, %v9912_v52  ;;  %vm4898_vm12 = vcmp.eq.f32.partialorder %v4897_v45, 8.507059e+37 }
 0x4d8   :  { %5139 = vadd.xlane.f32.xlu0 %v5080_v20  ;;  %v4955_v30 = vmul.f32 %v4954_v55, %v10026_v40  ;;  %v4939_v1 = vand.u32 2147483648, %v10165_v16  ;;  %v4916_v57 = vadd.f32 1.1283791, %v4915_v26  ;;  %v4937_v40 = vand.u32 2147483647, %v10165_v16 }
 0x4d9   :  { %v4892_v7 = vadd.f32 %v5757_v44, %v4891_v28  ;;  %v5759_v37 = vpop.eup %5758  ;;  %5141 = vadd.xlane.f32.xlu1 %v5081_v38  ;;  %v3670_v23 = vmul.f32 0.5, %v9900_v2  ;;  %vm4933_vm14 = vweird.f32 %v10165_v16  ;;  %v4979_v36 = vand.u32 2147483648, %v10173_v33 }
 0x4da   :  { %v4929_v15 = vmul.f32 %v5759_v37, %v10165_v16  ;;  %v5118_v4 = vpop.xlane.xlu1 %5117  ;;  %vm4934_vm13 = vweird.f32 %v5759_v37  ;;  %v4956_v29 = vadd.f32 1.1283791, %v4955_v30  ;;  %v4940_v62 = vor.u32 1.1754944e-38, %v4939_v1 }
 0x4db   :  { %v4896_v8 = vsel %vm4895_vm11, %v5757_v44, %v4892_v7  ;;  %v5169_v59 = vadd.f32 %v9993_v12, %v5118_v4  ;;  %vm4935_vm15 = vmor %vm4933_vm14, %vm4934_vm13  ;;  %v4977_v35 = vand.u32 2147483647, %v10173_v33  ;;  %v4917_v50 = vmul.f32 %v4916_v57, %v9956_v56 }
 0x4dc   :  { %v4901_v42 = vsel %vm4898_vm12, %v4900_v51, %v4896_v8  ;;  %v5761_v27 = vpop.eup %5760  ;;  %v4930_v24 = vsub.f32 1.0, %v4929_v15  ;;  %vm4938_vm1 = vcmp.eq.f32.partialorder %v4937_v40, 8.507059e+37  ;;  %vm4973_vm3 = vweird.f32 %v10173_v33 }
 0x4dd   :  { %v4902_v11 = vmul.f32 %v4901_v42, %v4877_v31  ;;  %5202 = vst.msk [vmem:[%s10287_s7 + $0x80] sm:$0xff] %vm5185_vm2, %v5169_v59  ;;  %v4969_v52 = vmul.f32 %v5761_v27, %v10173_v33  ;;  %vm4974_vm0 = vweird.f32 %v5761_v27  ;;  %v4980_v16 = vor.u32 1.1754944e-38, %v4979_v36 }
 0x4de   :  { %v4931_v43 = vmul.f32 %v5759_v37, %v4930_v24  ;;  %vm4975_vm4 = vmor %vm4973_vm3, %vm4974_vm0  ;;  %v4957_v53 = vmul.f32 %v4956_v29, %v10003_v54  ;;  %vm4978_vm5 = vcmp.eq.f32.partialorder %v4977_v35, 8.507059e+37  ;;  %v3671_v10 = vmul.f32 0.5, %v9943_v18 }
 0x4df   :  { %v5509_v58 = vclamps-f32 %v4902_v11, 1.0  ;;  %v4970_v63 = vsub.f32 1.0, %v4969_v52  ;;  %v3672_v33 = vmul.f32 0.5, %v9986_v3 }
 0x4e0   :  { %v4932_v14 = vadd.f32 %v5759_v37, %v4931_v43  ;;  %v5120_v21 = vpop.xlane.xlu2 %5119 }
 0x4e1   :  { %v5014_v48 = vadd.f32 1.0, %v5509_v58  ;;  %v4971_v34 = vmul.f32 %v5761_v27, %v4970_v63  ;;  %v5170_v49 = vadd.f32 %v9993_v12, %v5120_v21 }
 0x4e2   :  { %v4936_v60 = vsel %vm4935_vm15, %v5759_v37, %v4932_v14 }
 0x4e3   :  { %v5046_v2 = vmul.f32 %v5014_v48, %v3670_v23  ;;  %v4941_v39 = vsel %vm4938_vm1, %v4940_v62, %v4936_v60  ;;  %v4972_v44 = vadd.f32 %v5761_v27, %v4971_v34  ;;  %5203 = vst.msk [vmem:[%s10287_s7 + $0x88] sm:$0xff] %vm5185_vm2, %v5170_v49 }
 0x4e4   :  { %v4942_v5 = vmul.f32 %v4941_v39, %v4917_v50 }
 0x4e5   :  { %v5082_v47 = vmul.f32 %v9893_v41, %v5046_v2  ;;  %v4976_v56 = vsel %vm4975_vm4, %v5761_v27, %v4972_v44 }
 0x4e6   :  { %v5510_v0 = vclamps-f32 %v4942_v5, 1.0  ;;  %v4981_v13 = vsel %vm4978_vm5, %v4980_v16, %v4976_v56 }
 0x4e7   :  { %5143 = vadd.xlane.f32.xlu2 %v5082_v47  ;;  %v4982_v61 = vmul.f32 %v4981_v13, %v4957_v53 }
 0x4e8   :  { %v5015_v32 = vadd.f32 1.0, %v5510_v0  ;;  %v5122_v22 = vpop.xlane.xlu0 %5121 }
 0x4e9   :  { %v5511_v17 = vclamps-f32 %v4982_v61, 1.0  ;;  %v5171_v25 = vadd.f32 %v9993_v12, %v5122_v22 }
 0x4ea   :  { %v5047_v9 = vmul.f32 %v5015_v32, %v3671_v10 }
 0x4eb   :  { %v5016_v19 = vadd.f32 1.0, %v5511_v17  ;;  %5204 = vst.msk [vmem:[%s10287_s7 + $0x90] sm:$0xff] %vm5185_vm2, %v5171_v25 }
 0x4ec   :  { %v5083_v54 = vmul.f32 %v9893_v41, %v5047_v9 }
 0x4ed   :  { %v5048_v46 = vmul.f32 %v5016_v19, %v3672_v33 }
 0x4ee   :  { %5145 = vadd.xlane.f32.xlu0 %v5083_v54 }
 0x4ef   :  { %v5084_v18 = vmul.f32 %v9893_v41, %v5048_v46 }
 0x4f1   :  { %5147 = vadd.xlane.f32.xlu1 %v5084_v18 }
 0x4f6   :  { %v5124_v45 = vpop.xlane.xlu1 %5123 }
 0x4f7   :  { %v5172_v6 = vadd.f32 %v9993_v12, %v5124_v45 }
 0x4f9   :  { %5205 = vst.msk [vmem:[%s10287_s7 + $0x98] sm:$0xff] %vm5185_vm2, %v5172_v6 }
 0x505   :  { %v5126_v3 = vpop.xlane.xlu2 %5125 }
 0x506   :  { %v5173_v20 = vadd.f32 %v9993_v12, %v5126_v3 }
 0x508   :  { %5206 = vst.msk [vmem:[%s10287_s7 + $0xa0] sm:$0xff] %vm5185_vm2, %v5173_v20 }
 0x510   :  { %v5128_v28 = vpop.xlane.xlu0 %5127 }
 0x511   :  { %v5174_v41 = vadd.f32 %v9993_v12, %v5128_v28 }
 0x513   :  { %5207 = vst.msk [vmem:[%s10287_s7 + $0xa8] sm:$0xff] %vm5185_vm2, %v5174_v41 }
 0x51a   :  { %v5130_v55 = vpop.xlane.xlu1 %5129 }
 0x51b   :  { %v5175_v38 = vadd.f32 %v9993_v12, %v5130_v55 }
 0x51d   :  { %5208 = vst.msk [vmem:[%s10287_s7 + $0xb0] sm:$0xff] %vm5185_vm2, %v5175_v38 }
 0x524   :  { %v5132_v7 = vpop.xlane.xlu2 %5131 }
 0x525   :  { %v5176_v37 = vadd.f32 %v9993_v12, %v5132_v7 }
 0x527   :  { %5209 = vst.msk [vmem:[%s10287_s7 + $0xb8] sm:$0xff] %vm5185_vm2, %v5176_v37 }
 0x52f   :  { %v5134_v26 = vpop.xlane.xlu0 %5133 }
 0x530   :  { %v5177_v51 = vadd.f32 %v9993_v12, %v5134_v26 }
 0x532   :  { %5210 = vst.msk [vmem:[%s10287_s7 + $0xc0] sm:$0xff] %vm5185_vm2, %v5177_v51 }
 0x53d   :  { %v5136_v31 = vpop.xlane.xlu1 %5135 }
 0x53e   :  { %v5178_v8 = vadd.f32 %v9993_v12, %v5136_v31 }
 0x540   :  { %5211 = vst.msk [vmem:[%s10287_s7 + $0xc8] sm:$0xff] %vm5185_vm2, %v5178_v8 }
 0x544   :  { %v5138_v15 = vpop.xlane.xlu2 %5137 }
 0x545   :  { %v5179_v4 = vadd.f32 %v9993_v12, %v5138_v15 }
 0x547   :  { %5212 = vst.msk [vmem:[%s10287_s7 + $0xd0] sm:$0xff] %vm5185_vm2, %v5179_v4 }
 0x54b   :  { %v5140_v30 = vpop.xlane.xlu0 %5139 }
 0x54c   :  { %v5180_v42 = vadd.f32 %v9993_v12, %v5140_v30  ;;  %v5142_v59 = vpop.xlane.xlu1 %5141 }
 0x54d   :  { %v5181_v27 = vadd.f32 %v9993_v12, %v5142_v59 }
 0x54e   :  { %5213 = vst.msk [vmem:[%s10287_s7 + $0xd8] sm:$0xff] %vm5185_vm2, %v5180_v42 }
 0x54f   :  { %5214 = vst.msk [vmem:[%s10287_s7 + $0xe0] sm:$0xff] %vm5185_vm2, %v5181_v27 }
 0x55a   :  { %v5144_v11 = vpop.xlane.xlu2 %5143 }
 0x55b   :  { %v5182_v24 = vadd.f32 %v9993_v12, %v5144_v11 }
 0x55d   :  { %5215 = vst.msk [vmem:[%s10287_s7 + $0xe8] sm:$0xff] %vm5185_vm2, %v5182_v24 }
 0x561   :  { %v5146_v1 = vpop.xlane.xlu0 %5145 }
 0x562   :  { %v5183_v57 = vadd.f32 %v9993_v12, %v5146_v1 }
 0x564   :  { %5216 = vst.msk [vmem:[%s10287_s7 + $0xf0] sm:$0xff] %vm5185_vm2, %v5183_v57  ;;  %v5148_v52 = vpop.xlane.xlu1 %5147 }
 0x565   :  { %v5184_v58 = vadd.f32 %v9993_v12, %v5148_v52 }
 0x567   :  { %5217 = vst.msk [vmem:[%s10287_s7 + $0xf8] sm:$0xff] %vm5185_vm2, %v5184_v58 }
 0x568   :  { %5222 = vsyncpa [#allocation4], 1 }
 0x569   :  { %5223 = vsyncpa [#allocation6], 1 }

</bundles_post_ra>
